<compile_context>
chip_gen: v5e
topology: v5e:2x2
jax: 0.10.0
libtpu: 0.0.40
codegen_flags: <defaults>
</compile_context>

<pallas_src>
import functools

import jax
import jax.numpy as jnp
import numpy as np
from jax.experimental import pallas as pl
from jax.experimental.pallas import tpu as pltpu


def _pad_geometry(H, W):
    """Flat padded-plane geometry shared by kernel and wrapper.

    Planes are stored flattened (row-major h*W + w) with the interior at a
    128-aligned lane offset; halo rows plus a small guard live in the zeroed
    border of the same flat buffer.  Largest padding any conv here needs is 4
    (the 5x5 dilation-2 convs)."""
    guard = 4 * W + 4
    interior = ((guard + 127) // 128) * 128
    padlen = ((interior + H * W + guard + 127) // 128) * 128
    return interior, padlen


def _lsk_kernel(x_ref,
                w0_ref, b0_ref, w0s_ref, b0s_ref,
                w1_ref, b1_ref, w1s_ref, b1s_ref,
                wsq_ref, bsq_ref,
                w11_ref, b11_ref, w12_ref, b12_ref,
                w21_ref, b21_ref, w22_ref, b22_ref,
                wc_ref, bc_ref,
                o_ref,
                pad_ref,
                *, B, C, H, W):
    f32 = jnp.float32
    HW = H * W
    half = C // 2
    INT, PADLEN = _pad_geometry(H, W)
    ROWS = pad_ref.shape[0]

    # Column index (flat % W) used to mask the lane-wraps of the flat layout.
    lane = jax.lax.broadcasted_iota(jnp.int32, (1, HW), 1)
    col = (lane & (W - 1)) if (W & (W - 1)) == 0 else (lane % W)

    # Zero the pad borders ONCE; the interior [INT, INT+HW) is fully rewritten
    # before every conv, so no per-conv re-zeroing is needed.
    pad_ref[:, 0:INT] = jnp.zeros((ROWS, INT), f32)
    pad_ref[:, INT + HW:PADLEN] = jnp.zeros((ROWS, PADLEN - INT - HW), f32)

    def conv_accum(rows, wcol, k, dil, p, tap0, acc):
        """acc += k x k depthwise conv (dilation dil, zero pad p) of the plane
        currently held in the pad-scratch interior.  Per-row weights come from
        the pre-loaded value `wcol` at columns tap0 + ky*k + kx."""
        for kx in range(k):
            dc = kx * dil - p
            inner = None
            for ky in range(k):
                start = INT + (ky * dil - p) * W + dc
                win = pad_ref[0:rows, start:start + HW]          # (rows, HW)
                t = tap0 + ky * k + kx
                term = wcol[:, t:t + 1] * win                    # column FMA
                inner = term if inner is None else inner + term
            if dc == 0:
                acc = acc + inner
            else:
                lo, hi = max(0, -dc), min(W, W - dc)
                m = jnp.logical_and(col >= lo, col < hi)
                acc = acc + jnp.where(m, inner, 0.0)
        return acc

    def dwconv(src, w_ref_, b_ref_, k, dil, p):
        rows = src.shape[0]
        pad_ref[0:rows, INT:INT + HW] = src       # single aligned wide store
        w = w_ref_[...]                           # hoisted weight load
        acc = jnp.zeros((rows, HW), f32)
        acc = conv_accum(rows, w, k, dil, p, 0, acc)
        return acc + b_ref_[...]                  # (rows, 1) bias column

    def mix(src, n_in, n_out, w_s, b_s):
        """1x1 conv (n_in -> n_out) per batch with flat 1-D SMEM weights."""
        rows = []
        for b in range(B):
            ch = [src[b * n_in + c:b * n_in + c + 1, :] for c in range(n_in)]
            for j in range(n_out):
                r = w_s[j * n_in] * ch[0]
                for c in range(1, n_in):
                    r = r + w_s[j * n_in + c] * ch[c]
                rows.append(r + b_s[j])
        return jnp.concatenate(rows, axis=0)      # (B*n_out, HW)

    x = x_ref[...].astype(f32)                    # (B*C, H*W)

    # Branch 1: 3x3 -> 5x5(dil 2); project immediately so a11/a12 die early.
    a11 = dwconv(x, w0_ref, b0_ref, 3, 1, 1)
    a12 = dwconv(a11, w0s_ref, b0s_ref, 5, 2, 4)
    p11 = mix(a11, C, half, w11_ref, b11_ref)
    p12 = mix(a12, C, half, w12_ref, b12_ref)

    # Branch 2: 7x7 -> 5x5(dil 2).
    a21 = dwconv(x, w1_ref, b1_ref, 7, 1, 3)
    a22 = dwconv(a21, w1s_ref, b1s_ref, 5, 2, 4)
    p21 = mix(a21, C, half, w21_ref, b21_ref)
    p22 = mix(a22, C, half, w22_ref, b22_ref)

    # Channel mean / max over cat([p11, p12, p21, p22]) (2*dim planes per batch),
    # replicated 4x per batch so conv_squeeze accumulates all 4 outputs at once.
    s = p11 + p12 + p21 + p22
    m = jnp.maximum(jnp.maximum(p11, p12), jnp.maximum(p21, p22))
    rep_avg_rows, rep_max_rows = [], []
    for b in range(B):
        ssum = s[b * half:b * half + 1, :]
        smax = m[b * half:b * half + 1, :]
        for j in range(1, half):
            ssum = ssum + s[b * half + j:b * half + j + 1, :]
            smax = jnp.maximum(smax, m[b * half + j:b * half + j + 1, :])
        avg = ssum * (1.0 / (4.0 * half))         # mean over 2*dim planes
        rep_avg_rows += [avg] * 4
        rep_max_rows += [smax] * 4
    rep_avg = jnp.concatenate(rep_avg_rows, axis=0)   # (4*B, HW)
    rep_max = jnp.concatenate(rep_max_rows, axis=0)

    # conv_squeeze: 7x7, 2 -> 4, pad 3, then sigmoid (one column FMA per tap).
    wsq = wsq_ref[...]                                # (4*B, 2*49), hoisted
    sq = jnp.zeros((4 * B, HW), f32)
    pad_ref[0:4 * B, INT:INT + HW] = rep_avg
    sq = conv_accum(4 * B, wsq, 7, 1, 3, 0, sq)       # input channel 0 = avg
    pad_ref[0:4 * B, INT:INT + HW] = rep_max
    sq = conv_accum(4 * B, wsq, 7, 1, 3, 49, sq)      # input channel 1 = max
    # NOTE: pl.reciprocal(den, approx=True) would push this divide to the EUP,
    # but it is a single (4*B, HW) op and the exact divide keeps 1e-4 parity
    # with the f32 reference.
    sig = 1.0 / (1.0 + jnp.exp(-(sq + bsq_ref[...])))

    # Gated combination: p11*sig0 + p21*sig1 + p12*sig2 + p22*sig3.
    comb_rows = []
    for b in range(B):
        s0 = sig[b * 4 + 0:b * 4 + 1, :]
        s1 = sig[b * 4 + 1:b * 4 + 2, :]
        s2 = sig[b * 4 + 2:b * 4 + 3, :]
        s3 = sig[b * 4 + 3:b * 4 + 4, :]
        for j in range(half):
            r = b * half + j
            comb_rows.append(p11[r:r + 1, :] * s0 + p21[r:r + 1, :] * s1
                             + p12[r:r + 1, :] * s2 + p22[r:r + 1, :] * s3)
    comb = jnp.concatenate(comb_rows, axis=0)          # (B*half, HW)

    # Final 1x1 (dim//2 -> dim), input gate, single lane-dense aligned store.
    final = mix(comb, half, C, wc_ref, bc_ref)         # (B*C, HW)
    o_ref[...] = (x * final).astype(o_ref.dtype)


def lsk_block_pallas(x, params):
    """x: (B, C, H, W) float32 (NCHW).  Returns (B, C, H, W)."""
    B, C, H, W = x.shape
    HW = H * W
    (w0, b0, w0s, b0s, w1, b1, w1s, b1s,
     w11, b11, w12, b12, w21, b21, w22, b22,
     wsq, bsq, wc, bc) = params

    INT, PADLEN = _pad_geometry(H, W)
    ROWS = max(B * C, 4 * B)

    # Parameter layout plumbing (O(#params), not activation compute):
    #  * depthwise taps  -> (B*C, k*k) per-row weight columns (1 VMEM tile each)
    #  * biases          -> (rows, 1) columns
    #  * 1x1 / squeeze-bias-free weights -> flat 1-D SMEM scalars
    def dw_cols(w):                       # (C, k, k) -> (B*C, k*k)
        c, k, _ = w.shape
        return jnp.tile(w.reshape(c, k * k), (B, 1))

    def col_bias(b):                      # (n,) -> (B*n, 1)
        return jnp.tile(b.reshape(-1, 1), (B, 1))

    vmem_args = [dw_cols(w0), col_bias(b0), dw_cols(w0s), col_bias(b0s),
                 dw_cols(w1), col_bias(b1), dw_cols(w1s), col_bias(b1s),
                 jnp.tile(wsq.reshape(4, 2 * 7 * 7), (B, 1)),   # (B*4, 98)
                 col_bias(bsq)]                                  # (B*4, 1)
    smem_args = [w11.reshape(-1), b11.reshape(-1),
                 w12.reshape(-1), b12.reshape(-1),
                 w21.reshape(-1), b21.reshape(-1),
                 w22.reshape(-1), b22.reshape(-1),
                 wc.reshape(-1), bc.reshape(-1)]

    vmem_spec = pl.BlockSpec(memory_space=pltpu.MemorySpace.VMEM)
    smem_spec = pl.BlockSpec(memory_space=pltpu.MemorySpace.SMEM)

    # Contiguity-preserving (zero-copy) reshape: NCHW -> (B*C, H*W) puts 256
    # elements on the lane axis and folds batch*channel onto sublanes.
    xr = x.reshape(B * C, HW)

    kernel = functools.partial(_lsk_kernel, B=B, C=C, H=H, W=W)

    out = pl.pallas_call(
        kernel,
        out_shape=jax.ShapeDtypeStruct((B * C, HW), x.dtype),
        in_specs=[vmem_spec] * (1 + len(vmem_args)) + [smem_spec] * len(smem_args),
        out_specs=vmem_spec,
        scratch_shapes=[pltpu.VMEM((ROWS, PADLEN), jnp.float32)],
    )(xr, *vmem_args, *smem_args)
    return out.reshape(B, C, H, W)


def lsk_block_ref(x, params):
    """Pure-JAX reference (independent path via XLA convs) for verification."""
    (w0, b0, w0s, b0s, w1, b1, w1s, b1s,
     w11, b11, w12, b12, w21, b21, w22, b22,
     wsq, bsq, wc, bc) = params
    hp = jax.lax.Precision.HIGHEST

    def dwconv(v, w, b, pad, dil):
        c, k, _ = w.shape
        out = jax.lax.conv_general_dilated(
            v, w.reshape(c, 1, k, k), window_strides=(1, 1),
            padding=[(pad, pad), (pad, pad)], rhs_dilation=(dil, dil),
            dimension_numbers=("NCHW", "OIHW", "NCHW"),
            feature_group_count=c, precision=hp)
        return out + b.reshape(1, -1, 1, 1)

    def conv1x1(v, w, b):
        return jnp.einsum("bchw,oc->bohw", v, w, precision=hp) + b.reshape(1, -1, 1, 1)

    a11 = dwconv(x, w0, b0, 1, 1)
    a12 = dwconv(a11, w0s, b0s, 4, 2)
    a21 = dwconv(x, w1, b1, 3, 1)
    a22 = dwconv(a21, w1s, b1s, 4, 2)

    p11 = conv1x1(a11, w11, b11)
    p12 = conv1x1(a12, w12, b12)
    p21 = conv1x1(a21, w21, b21)
    p22 = conv1x1(a22, w22, b22)

    attn = jnp.concatenate([p11, p12, p21, p22], axis=1)
    avg = jnp.mean(attn, axis=1, keepdims=True)
    mx = jnp.max(attn, axis=1, keepdims=True)
    agg = jnp.concatenate([avg, mx], axis=1)

    z = jax.lax.conv_general_dilated(
        agg, wsq, window_strides=(1, 1), padding=[(3, 3), (3, 3)],
        dimension_numbers=("NCHW", "OIHW", "NCHW"), precision=hp)
    z = z + bsq.reshape(1, -1, 1, 1)
    sig = 1.0 / (1.0 + jnp.exp(-z))

    attn = (p11 * sig[:, 0:1] + p21 * sig[:, 1:2]
            + p12 * sig[:, 2:3] + p22 * sig[:, 3:4])
    attn = conv1x1(attn, wc, bc)
    return x * attn


if __name__ == "__main__":
    key = jax.random.PRNGKey(0)
    ks = jax.random.split(key, 24)

    B, dim, H, W = 2, 4, 16, 16
    half = dim // 2
    x = jax.random.normal(ks[0], (B, dim, H, W), dtype=jnp.float32)

    def init(k, shape, fan_in):
        return jax.random.normal(k, shape, dtype=jnp.float32) / np.sqrt(fan_in)

    w0 = init(ks[1], (dim, 3, 3), 9.0)
    b0 = 0.1 * jax.random.normal(ks[2], (dim,), dtype=jnp.float32)
    w0s = init(ks[3], (dim, 5, 5), 25.0)
    b0s = 0.1 * jax.random.normal(ks[4], (dim,), dtype=jnp.float32)
    w1 = init(ks[5], (dim, 7, 7), 49.0)
    b1 = 0.1 * jax.random.normal(ks[6], (dim,), dtype=jnp.float32)
    w1s = init(ks[7], (dim, 5, 5), 25.0)
    b1s = 0.1 * jax.random.normal(ks[8], (dim,), dtype=jnp.float32)
    w11 = init(ks[9], (half, dim), dim)
    b11 = 0.1 * jax.random.normal(ks[10], (half,), dtype=jnp.float32)
    w12 = init(ks[11], (half, dim), dim)
    b12 = 0.1 * jax.random.normal(ks[12], (half,), dtype=jnp.float32)
    w21 = init(ks[13], (half, dim), dim)
    b21 = 0.1 * jax.random.normal(ks[14], (half,), dtype=jnp.float32)
    w22 = init(ks[15], (half, dim), dim)
    b22 = 0.1 * jax.random.normal(ks[16], (half,), dtype=jnp.float32)
    wsq = init(ks[17], (4, 2, 7, 7), 2.0 * 49.0)
    bsq = 0.1 * jax.random.normal(ks[18], (4,), dtype=jnp.float32)
    wc = init(ks[19], (dim, half), half)
    bc = 0.1 * jax.random.normal(ks[20], (dim,), dtype=jnp.float32)

    params = (w0, b0, w0s, b0s, w1, b1, w1s, b1s,
              w11, b11, w12, b12, w21, b21, w22, b22,
              wsq, bsq, wc, bc)

    fwd = jax.jit(lsk_block_pallas)
    out = jax.block_until_ready(fwd(x, params))
    ref = jax.block_until_ready(lsk_block_ref(x, params))

    np.testing.assert_allclose(np.asarray(out), np.asarray(ref),
                               rtol=1e-4, atol=1e-4)
    print("KERNEL_OK")
</pallas_src>

<mosaic_0001>
module attributes {stable_mosaic.version = 11 : i64} {
  func.func @_lsk_kernel(%arg0: memref<8x256xf32, #tpu.memory_space<vmem>>, %arg1: memref<8x9xf32, #tpu.memory_space<vmem>>, %arg2: memref<8x1xf32, #tpu.memory_space<vmem>>, %arg3: memref<8x25xf32, #tpu.memory_space<vmem>>, %arg4: memref<8x1xf32, #tpu.memory_space<vmem>>, %arg5: memref<8x49xf32, #tpu.memory_space<vmem>>, %arg6: memref<8x1xf32, #tpu.memory_space<vmem>>, %arg7: memref<8x25xf32, #tpu.memory_space<vmem>>, %arg8: memref<8x1xf32, #tpu.memory_space<vmem>>, %arg9: memref<8x98xf32, #tpu.memory_space<vmem>>, %arg10: memref<8x1xf32, #tpu.memory_space<vmem>>, %arg11: memref<8xf32, #tpu.memory_space<smem>>, %arg12: memref<2xf32, #tpu.memory_space<smem>>, %arg13: memref<8xf32, #tpu.memory_space<smem>>, %arg14: memref<2xf32, #tpu.memory_space<smem>>, %arg15: memref<8xf32, #tpu.memory_space<smem>>, %arg16: memref<2xf32, #tpu.memory_space<smem>>, %arg17: memref<8xf32, #tpu.memory_space<smem>>, %arg18: memref<2xf32, #tpu.memory_space<smem>>, %arg19: memref<8xf32, #tpu.memory_space<smem>>, %arg20: memref<4xf32, #tpu.memory_space<smem>>, %arg21: memref<8x256xf32, #tpu.memory_space<vmem>>, %arg22: memref<8x512xf32, #tpu.memory_space<vmem>>) attributes {dimension_semantics = [], scalar_prefetch = 0 : i64, scratch_operands = 1 : i64, tpu.core_type = #tpu.core_type<tc>} {
    %0 = tpu.iota {dimensions = array<i32: 1>} : vector<1x256xi32>
    %c15_i32 = arith.constant 15 : i32
    %1 = vector.broadcast %c15_i32 : i32 to vector<1x256xi32>
    %2 = arith.andi %0, %1 : vector<1x256xi32>
    %cst = arith.constant 0.000000e+00 : f32
    %3 = vector.broadcast %cst : f32 to vector<8x128xf32>
    %c0 = arith.constant 0 : index
    %c0_0 = arith.constant 0 : index
    %4 = vector.load %arg22[%c0, %c0_0] : memref<8x512xf32, #tpu.memory_space<vmem>>, vector<8x128xf32>
    tpu.vector_store %arg22[%c0, %c0_0], %3 {strides = array<i32>} : memref<8x512xf32, #tpu.memory_space<vmem>>, vector<8x128xf32>,
    %cst_1 = arith.constant 0.000000e+00 : f32
    %5 = vector.broadcast %cst_1 : f32 to vector<8x128xf32>
    %c0_2 = arith.constant 0 : index
    %c384 = arith.constant 384 : index
    %6 = vector.load %arg22[%c0_2, %c384] : memref<8x512xf32, #tpu.memory_space<vmem>>, vector<8x128xf32>
    tpu.vector_store %arg22[%c0_2, %c384], %5 {strides = array<i32>} : memref<8x512xf32, #tpu.memory_space<vmem>>, vector<8x128xf32>,
    %c0_3 = arith.constant 0 : index
    %c0_4 = arith.constant 0 : index
    %7 = vector.load %arg0[%c0_3, %c0_4] : memref<8x256xf32, #tpu.memory_space<vmem>>, vector<8x256xf32>
    %c0_5 = arith.constant 0 : index
    %c128 = arith.constant 128 : index
    %8 = vector.load %arg22[%c0_5, %c128] : memref<8x512xf32, #tpu.memory_space<vmem>>, vector<8x256xf32>
    tpu.vector_store %arg22[%c0_5, %c128], %7 {strides = array<i32>} : memref<8x512xf32, #tpu.memory_space<vmem>>, vector<8x256xf32>,
    %c0_6 = arith.constant 0 : index
    %c0_7 = arith.constant 0 : index
    %9 = vector.load %arg1[%c0_6, %c0_7] : memref<8x9xf32, #tpu.memory_space<vmem>>, vector<8x9xf32>
    %cst_8 = arith.constant 0.000000e+00 : f32
    %10 = vector.broadcast %cst_8 : f32 to vector<8x256xf32>
    %c0_9 = arith.constant 0 : index
    %c111 = arith.constant 111 : index
    %11 = vector.load %arg22[%c0_9, %c111] : memref<8x512xf32, #tpu.memory_space<vmem>>, vector<8x256xf32>
    %12 = vector.extract_strided_slice %9 {offsets = [0, 0], sizes = [8, 1], strides = [1, 1]} : vector<8x9xf32> to vector<8x1xf32>
    %13 = vector.broadcast %12 : vector<8x1xf32> to vector<8x256xf32>
    %14 = arith.mulf %13, %11 : vector<8x256xf32>
    %c0_10 = arith.constant 0 : index
    %c127 = arith.constant 127 : index
    %15 = vector.load %arg22[%c0_10, %c127] : memref<8x512xf32, #tpu.memory_space<vmem>>, vector<8x256xf32>
    %16 = vector.extract_strided_slice %9 {offsets = [0, 3], sizes = [8, 1], strides = [1, 1]} : vector<8x9xf32> to vector<8x1xf32>
    %17 = vector.broadcast %16 : vector<8x1xf32> to vector<8x256xf32>
    %18 = arith.mulf %17, %15 : vector<8x256xf32>
    %19 = arith.addf %14, %18 : vector<8x256xf32>
    %c0_11 = arith.constant 0 : index
    %c143 = arith.constant 143 : index
    %20 = vector.load %arg22[%c0_11, %c143] : memref<8x512xf32, #tpu.memory_space<vmem>>, vector<8x256xf32>
    %21 = vector.extract_strided_slice %9 {offsets = [0, 6], sizes = [8, 1], strides = [1, 1]} : vector<8x9xf32> to vector<8x1xf32>
    %22 = vector.broadcast %21 : vector<8x1xf32> to vector<8x256xf32>
    %23 = arith.mulf %22, %20 : vector<8x256xf32>
    %24 = arith.addf %19, %23 : vector<8x256xf32>
    %c1_i32 = arith.constant 1 : i32
    %25 = vector.broadcast %c1_i32 : i32 to vector<1x256xi32>
    %26 = arith.cmpi sge, %2, %25 : vector<1x256xi32>
    %c16_i32 = arith.constant 16 : i32
    %27 = vector.broadcast %c16_i32 : i32 to vector<1x256xi32>
    %28 = arith.cmpi slt, %2, %27 : vector<1x256xi32>
    %29 = arith.andi %26, %28 : vector<1x256xi1>
    %cst_12 = arith.constant 0.000000e+00 : f32
    %30 = vector.shape_cast %29 : vector<1x256xi1> to vector<1x256xi1>
    %31 = vector.broadcast %30 : vector<1x256xi1> to vector<8x256xi1>
    %32 = vector.broadcast %cst_12 : f32 to vector<8x256xf32>
    %33 = arith.select %31, %24, %32 : vector<8x256xi1>, vector<8x256xf32>
    %34 = arith.addf %10, %33 : vector<8x256xf32>
    %c0_13 = arith.constant 0 : index
    %c112 = arith.constant 112 : index
    %35 = vector.load %arg22[%c0_13, %c112] : memref<8x512xf32, #tpu.memory_space<vmem>>, vector<8x256xf32>
    %36 = vector.extract_strided_slice %9 {offsets = [0, 1], sizes = [8, 1], strides = [1, 1]} : vector<8x9xf32> to vector<8x1xf32>
    %37 = vector.broadcast %36 : vector<8x1xf32> to vector<8x256xf32>
    %38 = arith.mulf %37, %35 : vector<8x256xf32>
    %c0_14 = arith.constant 0 : index
    %c128_15 = arith.constant 128 : index
    %39 = vector.load %arg22[%c0_14, %c128_15] : memref<8x512xf32, #tpu.memory_space<vmem>>, vector<8x256xf32>
    %40 = vector.extract_strided_slice %9 {offsets = [0, 4], sizes = [8, 1], strides = [1, 1]} : vector<8x9xf32> to vector<8x1xf32>
    %41 = vector.broadcast %40 : vector<8x1xf32> to vector<8x256xf32>
    %42 = arith.mulf %41, %39 : vector<8x256xf32>
    %43 = arith.addf %38, %42 : vector<8x256xf32>
    %c0_16 = arith.constant 0 : index
    %c144 = arith.constant 144 : index
    %44 = vector.load %arg22[%c0_16, %c144] : memref<8x512xf32, #tpu.memory_space<vmem>>, vector<8x256xf32>
    %45 = vector.extract_strided_slice %9 {offsets = [0, 7], sizes = [8, 1], strides = [1, 1]} : vector<8x9xf32> to vector<8x1xf32>
    %46 = vector.broadcast %45 : vector<8x1xf32> to vector<8x256xf32>
    %47 = arith.mulf %46, %44 : vector<8x256xf32>
    %48 = arith.addf %43, %47 : vector<8x256xf32>
    %49 = arith.addf %34, %48 : vector<8x256xf32>
    %c0_17 = arith.constant 0 : index
    %c113 = arith.constant 113 : index
    %50 = vector.load %arg22[%c0_17, %c113] : memref<8x512xf32, #tpu.memory_space<vmem>>, vector<8x256xf32>
    %51 = vector.extract_strided_slice %9 {offsets = [0, 2], sizes = [8, 1], strides = [1, 1]} : vector<8x9xf32> to vector<8x1xf32>
    %52 = vector.broadcast %51 : vector<8x1xf32> to vector<8x256xf32>
    %53 = arith.mulf %52, %50 : vector<8x256xf32>
    %c0_18 = arith.constant 0 : index
    %c129 = arith.constant 129 : index
    %54 = vector.load %arg22[%c0_18, %c129] : memref<8x512xf32, #tpu.memory_space<vmem>>, vector<8x256xf32>
    %55 = vector.extract_strided_slice %9 {offsets = [0, 5], sizes = [8, 1], strides = [1, 1]} : vector<8x9xf32> to vector<8x1xf32>
    %56 = vector.broadcast %55 : vector<8x1xf32> to vector<8x256xf32>
    %57 = arith.mulf %56, %54 : vector<8x256xf32>
    %58 = arith.addf %53, %57 : vector<8x256xf32>
    %c0_19 = arith.constant 0 : index
    %c145 = arith.constant 145 : index
    %59 = vector.load %arg22[%c0_19, %c145] : memref<8x512xf32, #tpu.memory_space<vmem>>, vector<8x256xf32>
    %60 = vector.extract_strided_slice %9 {offsets = [0, 8], sizes = [8, 1], strides = [1, 1]} : vector<8x9xf32> to vector<8x1xf32>
    %61 = vector.broadcast %60 : vector<8x1xf32> to vector<8x256xf32>
    %62 = arith.mulf %61, %59 : vector<8x256xf32>
    %63 = arith.addf %58, %62 : vector<8x256xf32>
    %c0_i32 = arith.constant 0 : i32
    %64 = vector.broadcast %c0_i32 : i32 to vector<1x256xi32>
    %65 = arith.cmpi sge, %2, %64 : vector<1x256xi32>
    %c15_i32_20 = arith.constant 15 : i32
    %66 = vector.broadcast %c15_i32_20 : i32 to vector<1x256xi32>
    %67 = arith.cmpi slt, %2, %66 : vector<1x256xi32>
    %68 = arith.andi %65, %67 : vector<1x256xi1>
    %cst_21 = arith.constant 0.000000e+00 : f32
    %69 = vector.shape_cast %68 : vector<1x256xi1> to vector<1x256xi1>
    %70 = vector.broadcast %69 : vector<1x256xi1> to vector<8x256xi1>
    %71 = vector.broadcast %cst_21 : f32 to vector<8x256xf32>
    %72 = arith.select %70, %63, %71 : vector<8x256xi1>, vector<8x256xf32>
    %73 = arith.addf %49, %72 : vector<8x256xf32>
    %c0_22 = arith.constant 0 : index
    %c0_23 = arith.constant 0 : index
    %74 = vector.load %arg2[%c0_22, %c0_23] : memref<8x1xf32, #tpu.memory_space<vmem>>, vector<8x1xf32>
    %75 = vector.broadcast %74 : vector<8x1xf32> to vector<8x256xf32>
    %76 = arith.addf %73, %75 : vector<8x256xf32>
    %c0_24 = arith.constant 0 : index
    %c128_25 = arith.constant 128 : index
    %77 = vector.load %arg22[%c0_24, %c128_25] : memref<8x512xf32, #tpu.memory_space<vmem>>, vector<8x256xf32>
    tpu.vector_store %arg22[%c0_24, %c128_25], %76 {strides = array<i32>} : memref<8x512xf32, #tpu.memory_space<vmem>>, vector<8x256xf32>,
    %c0_26 = arith.constant 0 : index
    %c0_27 = arith.constant 0 : index
    %78 = vector.load %arg3[%c0_26, %c0_27] : memref<8x25xf32, #tpu.memory_space<vmem>>, vector<8x25xf32>
    %cst_28 = arith.constant 0.000000e+00 : f32
    %79 = vector.broadcast %cst_28 : f32 to vector<8x256xf32>
    %c0_29 = arith.constant 0 : index
    %c60 = arith.constant 60 : index
    %80 = vector.load %arg22[%c0_29, %c60] : memref<8x512xf32, #tpu.memory_space<vmem>>, vector<8x256xf32>
    %81 = vector.extract_strided_slice %78 {offsets = [0, 0], sizes = [8, 1], strides = [1, 1]} : vector<8x25xf32> to vector<8x1xf32>
    %82 = vector.broadcast %81 : vector<8x1xf32> to vector<8x256xf32>
    %83 = arith.mulf %82, %80 : vector<8x256xf32>
    %c0_30 = arith.constant 0 : index
    %c92 = arith.constant 92 : index
    %84 = vector.load %arg22[%c0_30, %c92] : memref<8x512xf32, #tpu.memory_space<vmem>>, vector<8x256xf32>
    %85 = vector.extract_strided_slice %78 {offsets = [0, 5], sizes = [8, 1], strides = [1, 1]} : vector<8x25xf32> to vector<8x1xf32>
    %86 = vector.broadcast %85 : vector<8x1xf32> to vector<8x256xf32>
    %87 = arith.mulf %86, %84 : vector<8x256xf32>
    %88 = arith.addf %83, %87 : vector<8x256xf32>
    %c0_31 = arith.constant 0 : index
    %c124 = arith.constant 124 : index
    %89 = vector.load %arg22[%c0_31, %c124] : memref<8x512xf32, #tpu.memory_space<vmem>>, vector<8x256xf32>
    %90 = vector.extract_strided_slice %78 {offsets = [0, 10], sizes = [8, 1], strides = [1, 1]} : vector<8x25xf32> to vector<8x1xf32>
    %91 = vector.broadcast %90 : vector<8x1xf32> to vector<8x256xf32>
    %92 = arith.mulf %91, %89 : vector<8x256xf32>
    %93 = arith.addf %88, %92 : vector<8x256xf32>
    %c0_32 = arith.constant 0 : index
    %c156 = arith.constant 156 : index
    %94 = vector.load %arg22[%c0_32, %c156] : memref<8x512xf32, #tpu.memory_space<vmem>>, vector<8x256xf32>
    %95 = vector.extract_strided_slice %78 {offsets = [0, 15], sizes = [8, 1], strides = [1, 1]} : vector<8x25xf32> to vector<8x1xf32>
    %96 = vector.broadcast %95 : vector<8x1xf32> to vector<8x256xf32>
    %97 = arith.mulf %96, %94 : vector<8x256xf32>
    %98 = arith.addf %93, %97 : vector<8x256xf32>
    %c0_33 = arith.constant 0 : index
    %c188 = arith.constant 188 : index
    %99 = vector.load %arg22[%c0_33, %c188] : memref<8x512xf32, #tpu.memory_space<vmem>>, vector<8x256xf32>
    %100 = vector.extract_strided_slice %78 {offsets = [0, 20], sizes = [8, 1], strides = [1, 1]} : vector<8x25xf32> to vector<8x1xf32>
    %101 = vector.broadcast %100 : vector<8x1xf32> to vector<8x256xf32>
    %102 = arith.mulf %101, %99 : vector<8x256xf32>
    %103 = arith.addf %98, %102 : vector<8x256xf32>
    %c4_i32 = arith.constant 4 : i32
    %104 = vector.broadcast %c4_i32 : i32 to vector<1x256xi32>
    %105 = arith.cmpi sge, %2, %104 : vector<1x256xi32>
    %c16_i32_34 = arith.constant 16 : i32
    %106 = vector.broadcast %c16_i32_34 : i32 to vector<1x256xi32>
    %107 = arith.cmpi slt, %2, %106 : vector<1x256xi32>
    %108 = arith.andi %105, %107 : vector<1x256xi1>
    %cst_35 = arith.constant 0.000000e+00 : f32
    %109 = vector.shape_cast %108 : vector<1x256xi1> to vector<1x256xi1>
    %110 = vector.broadcast %109 : vector<1x256xi1> to vector<8x256xi1>
    %111 = vector.broadcast %cst_35 : f32 to vector<8x256xf32>
    %112 = arith.select %110, %103, %111 : vector<8x256xi1>, vector<8x256xf32>
    %113 = arith.addf %79, %112 : vector<8x256xf32>
    %c0_36 = arith.constant 0 : index
    %c62 = arith.constant 62 : index
    %114 = vector.load %arg22[%c0_36, %c62] : memref<8x512xf32, #tpu.memory_space<vmem>>, vector<8x256xf32>
    %115 = vector.extract_strided_slice %78 {offsets = [0, 1], sizes = [8, 1], strides = [1, 1]} : vector<8x25xf32> to vector<8x1xf32>
    %116 = vector.broadcast %115 : vector<8x1xf32> to vector<8x256xf32>
    %117 = arith.mulf %116, %114 : vector<8x256xf32>
    %c0_37 = arith.constant 0 : index
    %c94 = arith.constant 94 : index
    %118 = vector.load %arg22[%c0_37, %c94] : memref<8x512xf32, #tpu.memory_space<vmem>>, vector<8x256xf32>
    %119 = vector.extract_strided_slice %78 {offsets = [0, 6], sizes = [8, 1], strides = [1, 1]} : vector<8x25xf32> to vector<8x1xf32>
    %120 = vector.broadcast %119 : vector<8x1xf32> to vector<8x256xf32>
    %121 = arith.mulf %120, %118 : vector<8x256xf32>
    %122 = arith.addf %117, %121 : vector<8x256xf32>
    %c0_38 = arith.constant 0 : index
    %c126 = arith.constant 126 : index
    %123 = vector.load %arg22[%c0_38, %c126] : memref<8x512xf32, #tpu.memory_space<vmem>>, vector<8x256xf32>
    %124 = vector.extract_strided_slice %78 {offsets = [0, 11], sizes = [8, 1], strides = [1, 1]} : vector<8x25xf32> to vector<8x1xf32>
    %125 = vector.broadcast %124 : vector<8x1xf32> to vector<8x256xf32>
    %126 = arith.mulf %125, %123 : vector<8x256xf32>
    %127 = arith.addf %122, %126 : vector<8x256xf32>
    %c0_39 = arith.constant 0 : index
    %c158 = arith.constant 158 : index
    %128 = vector.load %arg22[%c0_39, %c158] : memref<8x512xf32, #tpu.memory_space<vmem>>, vector<8x256xf32>
    %129 = vector.extract_strided_slice %78 {offsets = [0, 16], sizes = [8, 1], strides = [1, 1]} : vector<8x25xf32> to vector<8x1xf32>
    %130 = vector.broadcast %129 : vector<8x1xf32> to vector<8x256xf32>
    %131 = arith.mulf %130, %128 : vector<8x256xf32>
    %132 = arith.addf %127, %131 : vector<8x256xf32>
    %c0_40 = arith.constant 0 : index
    %c190 = arith.constant 190 : index
    %133 = vector.load %arg22[%c0_40, %c190] : memref<8x512xf32, #tpu.memory_space<vmem>>, vector<8x256xf32>
    %134 = vector.extract_strided_slice %78 {offsets = [0, 21], sizes = [8, 1], strides = [1, 1]} : vector<8x25xf32> to vector<8x1xf32>
    %135 = vector.broadcast %134 : vector<8x1xf32> to vector<8x256xf32>
    %136 = arith.mulf %135, %133 : vector<8x256xf32>
    %137 = arith.addf %132, %136 : vector<8x256xf32>
    %c2_i32 = arith.constant 2 : i32
    %138 = vector.broadcast %c2_i32 : i32 to vector<1x256xi32>
    %139 = arith.cmpi sge, %2, %138 : vector<1x256xi32>
    %c16_i32_41 = arith.constant 16 : i32
    %140 = vector.broadcast %c16_i32_41 : i32 to vector<1x256xi32>
    %141 = arith.cmpi slt, %2, %140 : vector<1x256xi32>
    %142 = arith.andi %139, %141 : vector<1x256xi1>
    %cst_42 = arith.constant 0.000000e+00 : f32
    %143 = vector.shape_cast %142 : vector<1x256xi1> to vector<1x256xi1>
    %144 = vector.broadcast %143 : vector<1x256xi1> to vector<8x256xi1>
    %145 = vector.broadcast %cst_42 : f32 to vector<8x256xf32>
    %146 = arith.select %144, %137, %145 : vector<8x256xi1>, vector<8x256xf32>
    %147 = arith.addf %113, %146 : vector<8x256xf32>
    %c0_43 = arith.constant 0 : index
    %c64 = arith.constant 64 : index
    %148 = vector.load %arg22[%c0_43, %c64] : memref<8x512xf32, #tpu.memory_space<vmem>>, vector<8x256xf32>
    %149 = vector.extract_strided_slice %78 {offsets = [0, 2], sizes = [8, 1], strides = [1, 1]} : vector<8x25xf32> to vector<8x1xf32>
    %150 = vector.broadcast %149 : vector<8x1xf32> to vector<8x256xf32>
    %151 = arith.mulf %150, %148 : vector<8x256xf32>
    %c0_44 = arith.constant 0 : index
    %c96 = arith.constant 96 : index
    %152 = vector.load %arg22[%c0_44, %c96] : memref<8x512xf32, #tpu.memory_space<vmem>>, vector<8x256xf32>
    %153 = vector.extract_strided_slice %78 {offsets = [0, 7], sizes = [8, 1], strides = [1, 1]} : vector<8x25xf32> to vector<8x1xf32>
    %154 = vector.broadcast %153 : vector<8x1xf32> to vector<8x256xf32>
    %155 = arith.mulf %154, %152 : vector<8x256xf32>
    %156 = arith.addf %151, %155 : vector<8x256xf32>
    %c0_45 = arith.constant 0 : index
    %c128_46 = arith.constant 128 : index
    %157 = vector.load %arg22[%c0_45, %c128_46] : memref<8x512xf32, #tpu.memory_space<vmem>>, vector<8x256xf32>
    %158 = vector.extract_strided_slice %78 {offsets = [0, 12], sizes = [8, 1], strides = [1, 1]} : vector<8x25xf32> to vector<8x1xf32>
    %159 = vector.broadcast %158 : vector<8x1xf32> to vector<8x256xf32>
    %160 = arith.mulf %159, %157 : vector<8x256xf32>
    %161 = arith.addf %156, %160 : vector<8x256xf32>
    %c0_47 = arith.constant 0 : index
    %c160 = arith.constant 160 : index
    %162 = vector.load %arg22[%c0_47, %c160] : memref<8x512xf32, #tpu.memory_space<vmem>>, vector<8x256xf32>
    %163 = vector.extract_strided_slice %78 {offsets = [0, 17], sizes = [8, 1], strides = [1, 1]} : vector<8x25xf32> to vector<8x1xf32>
    %164 = vector.broadcast %163 : vector<8x1xf32> to vector<8x256xf32>
    %165 = arith.mulf %164, %162 : vector<8x256xf32>
    %166 = arith.addf %161, %165 : vector<8x256xf32>
    %c0_48 = arith.constant 0 : index
    %c192 = arith.constant 192 : index
    %167 = vector.load %arg22[%c0_48, %c192] : memref<8x512xf32, #tpu.memory_space<vmem>>, vector<8x256xf32>
    %168 = vector.extract_strided_slice %78 {offsets = [0, 22], sizes = [8, 1], strides = [1, 1]} : vector<8x25xf32> to vector<8x1xf32>
    %169 = vector.broadcast %168 : vector<8x1xf32> to vector<8x256xf32>
    %170 = arith.mulf %169, %167 : vector<8x256xf32>
    %171 = arith.addf %166, %170 : vector<8x256xf32>
    %172 = arith.addf %147, %171 : vector<8x256xf32>
    %c0_49 = arith.constant 0 : index
    %c66 = arith.constant 66 : index
    %173 = vector.load %arg22[%c0_49, %c66] : memref<8x512xf32, #tpu.memory_space<vmem>>, vector<8x256xf32>
    %174 = vector.extract_strided_slice %78 {offsets = [0, 3], sizes = [8, 1], strides = [1, 1]} : vector<8x25xf32> to vector<8x1xf32>
    %175 = vector.broadcast %174 : vector<8x1xf32> to vector<8x256xf32>
    %176 = arith.mulf %175, %173 : vector<8x256xf32>
    %c0_50 = arith.constant 0 : index
    %c98 = arith.constant 98 : index
    %177 = vector.load %arg22[%c0_50, %c98] : memref<8x512xf32, #tpu.memory_space<vmem>>, vector<8x256xf32>
    %178 = vector.extract_strided_slice %78 {offsets = [0, 8], sizes = [8, 1], strides = [1, 1]} : vector<8x25xf32> to vector<8x1xf32>
    %179 = vector.broadcast %178 : vector<8x1xf32> to vector<8x256xf32>
    %180 = arith.mulf %179, %177 : vector<8x256xf32>
    %181 = arith.addf %176, %180 : vector<8x256xf32>
    %c0_51 = arith.constant 0 : index
    %c130 = arith.constant 130 : index
    %182 = vector.load %arg22[%c0_51, %c130] : memref<8x512xf32, #tpu.memory_space<vmem>>, vector<8x256xf32>
    %183 = vector.extract_strided_slice %78 {offsets = [0, 13], sizes = [8, 1], strides = [1, 1]} : vector<8x25xf32> to vector<8x1xf32>
    %184 = vector.broadcast %183 : vector<8x1xf32> to vector<8x256xf32>
    %185 = arith.mulf %184, %182 : vector<8x256xf32>
    %186 = arith.addf %181, %185 : vector<8x256xf32>
    %c0_52 = arith.constant 0 : index
    %c162 = arith.constant 162 : index
    %187 = vector.load %arg22[%c0_52, %c162] : memref<8x512xf32, #tpu.memory_space<vmem>>, vector<8x256xf32>
    %188 = vector.extract_strided_slice %78 {offsets = [0, 18], sizes = [8, 1], strides = [1, 1]} : vector<8x25xf32> to vector<8x1xf32>
    %189 = vector.broadcast %188 : vector<8x1xf32> to vector<8x256xf32>
    %190 = arith.mulf %189, %187 : vector<8x256xf32>
    %191 = arith.addf %186, %190 : vector<8x256xf32>
    %c0_53 = arith.constant 0 : index
    %c194 = arith.constant 194 : index
    %192 = vector.load %arg22[%c0_53, %c194] : memref<8x512xf32, #tpu.memory_space<vmem>>, vector<8x256xf32>
    %193 = vector.extract_strided_slice %78 {offsets = [0, 23], sizes = [8, 1], strides = [1, 1]} : vector<8x25xf32> to vector<8x1xf32>
    %194 = vector.broadcast %193 : vector<8x1xf32> to vector<8x256xf32>
    %195 = arith.mulf %194, %192 : vector<8x256xf32>
    %196 = arith.addf %191, %195 : vector<8x256xf32>
    %c0_i32_54 = arith.constant 0 : i32
    %197 = vector.broadcast %c0_i32_54 : i32 to vector<1x256xi32>
    %198 = arith.cmpi sge, %2, %197 : vector<1x256xi32>
    %c14_i32 = arith.constant 14 : i32
    %199 = vector.broadcast %c14_i32 : i32 to vector<1x256xi32>
    %200 = arith.cmpi slt, %2, %199 : vector<1x256xi32>
    %201 = arith.andi %198, %200 : vector<1x256xi1>
    %cst_55 = arith.constant 0.000000e+00 : f32
    %202 = vector.shape_cast %201 : vector<1x256xi1> to vector<1x256xi1>
    %203 = vector.broadcast %202 : vector<1x256xi1> to vector<8x256xi1>
    %204 = vector.broadcast %cst_55 : f32 to vector<8x256xf32>
    %205 = arith.select %203, %196, %204 : vector<8x256xi1>, vector<8x256xf32>
    %206 = arith.addf %172, %205 : vector<8x256xf32>
    %c0_56 = arith.constant 0 : index
    %c68 = arith.constant 68 : index
    %207 = vector.load %arg22[%c0_56, %c68] : memref<8x512xf32, #tpu.memory_space<vmem>>, vector<8x256xf32>
    %208 = vector.extract_strided_slice %78 {offsets = [0, 4], sizes = [8, 1], strides = [1, 1]} : vector<8x25xf32> to vector<8x1xf32>
    %209 = vector.broadcast %208 : vector<8x1xf32> to vector<8x256xf32>
    %210 = arith.mulf %209, %207 : vector<8x256xf32>
    %c0_57 = arith.constant 0 : index
    %c100 = arith.constant 100 : index
    %211 = vector.load %arg22[%c0_57, %c100] : memref<8x512xf32, #tpu.memory_space<vmem>>, vector<8x256xf32>
    %212 = vector.extract_strided_slice %78 {offsets = [0, 9], sizes = [8, 1], strides = [1, 1]} : vector<8x25xf32> to vector<8x1xf32>
    %213 = vector.broadcast %212 : vector<8x1xf32> to vector<8x256xf32>
    %214 = arith.mulf %213, %211 : vector<8x256xf32>
    %215 = arith.addf %210, %214 : vector<8x256xf32>
    %c0_58 = arith.constant 0 : index
    %c132 = arith.constant 132 : index
    %216 = vector.load %arg22[%c0_58, %c132] : memref<8x512xf32, #tpu.memory_space<vmem>>, vector<8x256xf32>
    %217 = vector.extract_strided_slice %78 {offsets = [0, 14], sizes = [8, 1], strides = [1, 1]} : vector<8x25xf32> to vector<8x1xf32>
    %218 = vector.broadcast %217 : vector<8x1xf32> to vector<8x256xf32>
    %219 = arith.mulf %218, %216 : vector<8x256xf32>
    %220 = arith.addf %215, %219 : vector<8x256xf32>
    %c0_59 = arith.constant 0 : index
    %c164 = arith.constant 164 : index
    %221 = vector.load %arg22[%c0_59, %c164] : memref<8x512xf32, #tpu.memory_space<vmem>>, vector<8x256xf32>
    %222 = vector.extract_strided_slice %78 {offsets = [0, 19], sizes = [8, 1], strides = [1, 1]} : vector<8x25xf32> to vector<8x1xf32>
    %223 = vector.broadcast %222 : vector<8x1xf32> to vector<8x256xf32>
    %224 = arith.mulf %223, %221 : vector<8x256xf32>
    %225 = arith.addf %220, %224 : vector<8x256xf32>
    %c0_60 = arith.constant 0 : index
    %c196 = arith.constant 196 : index
    %226 = vector.load %arg22[%c0_60, %c196] : memref<8x512xf32, #tpu.memory_space<vmem>>, vector<8x256xf32>
    %227 = vector.extract_strided_slice %78 {offsets = [0, 24], sizes = [8, 1], strides = [1, 1]} : vector<8x25xf32> to vector<8x1xf32>
    %228 = vector.broadcast %227 : vector<8x1xf32> to vector<8x256xf32>
    %229 = arith.mulf %228, %226 : vector<8x256xf32>
    %230 = arith.addf %225, %229 : vector<8x256xf32>
    %c0_i32_61 = arith.constant 0 : i32
    %231 = vector.broadcast %c0_i32_61 : i32 to vector<1x256xi32>
    %232 = arith.cmpi sge, %2, %231 : vector<1x256xi32>
    %c12_i32 = arith.constant 12 : i32
    %233 = vector.broadcast %c12_i32 : i32 to vector<1x256xi32>
    %234 = arith.cmpi slt, %2, %233 : vector<1x256xi32>
    %235 = arith.andi %232, %234 : vector<1x256xi1>
    %cst_62 = arith.constant 0.000000e+00 : f32
    %236 = vector.shape_cast %235 : vector<1x256xi1> to vector<1x256xi1>
    %237 = vector.broadcast %236 : vector<1x256xi1> to vector<8x256xi1>
    %238 = vector.broadcast %cst_62 : f32 to vector<8x256xf32>
    %239 = arith.select %237, %230, %238 : vector<8x256xi1>, vector<8x256xf32>
    %240 = arith.addf %206, %239 : vector<8x256xf32>
    %c0_63 = arith.constant 0 : index
    %c0_64 = arith.constant 0 : index
    %241 = vector.load %arg4[%c0_63, %c0_64] : memref<8x1xf32, #tpu.memory_space<vmem>>, vector<8x1xf32>
    %242 = vector.broadcast %241 : vector<8x1xf32> to vector<8x256xf32>
    %243 = arith.addf %240, %242 : vector<8x256xf32>
    %244 = vector.extract_strided_slice %76 {offsets = [0, 0], sizes = [1, 256], strides = [1, 1]} : vector<8x256xf32> to vector<1x256xf32>
    %245 = vector.extract_strided_slice %76 {offsets = [1, 0], sizes = [1, 256], strides = [1, 1]} : vector<8x256xf32> to vector<1x256xf32>
    %246 = vector.extract_strided_slice %76 {offsets = [2, 0], sizes = [1, 256], strides = [1, 1]} : vector<8x256xf32> to vector<1x256xf32>
    %247 = vector.extract_strided_slice %76 {offsets = [3, 0], sizes = [1, 256], strides = [1, 1]} : vector<8x256xf32> to vector<1x256xf32>
    %c0_65 = arith.constant 0 : index
    %248 = memref.load %arg11[%c0_65] : memref<8xf32, #tpu.memory_space<smem>>
    %249 = vector.broadcast %248 : f32 to vector<1x256xf32>
    %250 = arith.mulf %249, %244 : vector<1x256xf32>
    %c1 = arith.constant 1 : index
    %251 = memref.load %arg11[%c1] : memref<8xf32, #tpu.memory_space<smem>>
    %252 = vector.broadcast %251 : f32 to vector<1x256xf32>
    %253 = arith.mulf %252, %245 : vector<1x256xf32>
    %254 = arith.addf %250, %253 : vector<1x256xf32>
    %c2 = arith.constant 2 : index
    %255 = memref.load %arg11[%c2] : memref<8xf32, #tpu.memory_space<smem>>
    %256 = vector.broadcast %255 : f32 to vector<1x256xf32>
    %257 = arith.mulf %256, %246 : vector<1x256xf32>
    %258 = arith.addf %254, %257 : vector<1x256xf32>
    %c3 = arith.constant 3 : index
    %259 = memref.load %arg11[%c3] : memref<8xf32, #tpu.memory_space<smem>>
    %260 = vector.broadcast %259 : f32 to vector<1x256xf32>
    %261 = arith.mulf %260, %247 : vector<1x256xf32>
    %262 = arith.addf %258, %261 : vector<1x256xf32>
    %c0_66 = arith.constant 0 : index
    %263 = memref.load %arg12[%c0_66] : memref<2xf32, #tpu.memory_space<smem>>
    %264 = vector.broadcast %263 : f32 to vector<1x256xf32>
    %265 = arith.addf %262, %264 : vector<1x256xf32>
    %c4 = arith.constant 4 : index
    %266 = memref.load %arg11[%c4] : memref<8xf32, #tpu.memory_space<smem>>
    %267 = vector.broadcast %266 : f32 to vector<1x256xf32>
    %268 = arith.mulf %267, %244 : vector<1x256xf32>
    %c5 = arith.constant 5 : index
    %269 = memref.load %arg11[%c5] : memref<8xf32, #tpu.memory_space<smem>>
    %270 = vector.broadcast %269 : f32 to vector<1x256xf32>
    %271 = arith.mulf %270, %245 : vector<1x256xf32>
    %272 = arith.addf %268, %271 : vector<1x256xf32>
    %c6 = arith.constant 6 : index
    %273 = memref.load %arg11[%c6] : memref<8xf32, #tpu.memory_space<smem>>
    %274 = vector.broadcast %273 : f32 to vector<1x256xf32>
    %275 = arith.mulf %274, %246 : vector<1x256xf32>
    %276 = arith.addf %272, %275 : vector<1x256xf32>
    %c7 = arith.constant 7 : index
    %277 = memref.load %arg11[%c7] : memref<8xf32, #tpu.memory_space<smem>>
    %278 = vector.broadcast %277 : f32 to vector<1x256xf32>
    %279 = arith.mulf %278, %247 : vector<1x256xf32>
    %280 = arith.addf %276, %279 : vector<1x256xf32>
    %c1_67 = arith.constant 1 : index
    %281 = memref.load %arg12[%c1_67] : memref<2xf32, #tpu.memory_space<smem>>
    %282 = vector.broadcast %281 : f32 to vector<1x256xf32>
    %283 = arith.addf %280, %282 : vector<1x256xf32>
    %284 = vector.extract_strided_slice %76 {offsets = [4, 0], sizes = [1, 256], strides = [1, 1]} : vector<8x256xf32> to vector<1x256xf32>
    %285 = vector.extract_strided_slice %76 {offsets = [5, 0], sizes = [1, 256], strides = [1, 1]} : vector<8x256xf32> to vector<1x256xf32>
    %286 = vector.extract_strided_slice %76 {offsets = [6, 0], sizes = [1, 256], strides = [1, 1]} : vector<8x256xf32> to vector<1x256xf32>
    %287 = vector.extract_strided_slice %76 {offsets = [7, 0], sizes = [1, 256], strides = [1, 1]} : vector<8x256xf32> to vector<1x256xf32>
    %c0_68 = arith.constant 0 : index
    %288 = memref.load %arg11[%c0_68] : memref<8xf32, #tpu.memory_space<smem>>
    %289 = vector.broadcast %288 : f32 to vector<1x256xf32>
    %290 = arith.mulf %289, %284 : vector<1x256xf32>
    %c1_69 = arith.constant 1 : index
    %291 = memref.load %arg11[%c1_69] : memref<8xf32, #tpu.memory_space<smem>>
    %292 = vector.broadcast %291 : f32 to vector<1x256xf32>
    %293 = arith.mulf %292, %285 : vector<1x256xf32>
    %294 = arith.addf %290, %293 : vector<1x256xf32>
    %c2_70 = arith.constant 2 : index
    %295 = memref.load %arg11[%c2_70] : memref<8xf32, #tpu.memory_space<smem>>
    %296 = vector.broadcast %295 : f32 to vector<1x256xf32>
    %297 = arith.mulf %296, %286 : vector<1x256xf32>
    %298 = arith.addf %294, %297 : vector<1x256xf32>
    %c3_71 = arith.constant 3 : index
    %299 = memref.load %arg11[%c3_71] : memref<8xf32, #tpu.memory_space<smem>>
    %300 = vector.broadcast %299 : f32 to vector<1x256xf32>
    %301 = arith.mulf %300, %287 : vector<1x256xf32>
    %302 = arith.addf %298, %301 : vector<1x256xf32>
    %c0_72 = arith.constant 0 : index
    %303 = memref.load %arg12[%c0_72] : memref<2xf32, #tpu.memory_space<smem>>
    %304 = vector.broadcast %303 : f32 to vector<1x256xf32>
    %305 = arith.addf %302, %304 : vector<1x256xf32>
    %c4_73 = arith.constant 4 : index
    %306 = memref.load %arg11[%c4_73] : memref<8xf32, #tpu.memory_space<smem>>
    %307 = vector.broadcast %306 : f32 to vector<1x256xf32>
    %308 = arith.mulf %307, %284 : vector<1x256xf32>
    %c5_74 = arith.constant 5 : index
    %309 = memref.load %arg11[%c5_74] : memref<8xf32, #tpu.memory_space<smem>>
    %310 = vector.broadcast %309 : f32 to vector<1x256xf32>
    %311 = arith.mulf %310, %285 : vector<1x256xf32>
    %312 = arith.addf %308, %311 : vector<1x256xf32>
    %c6_75 = arith.constant 6 : index
    %313 = memref.load %arg11[%c6_75] : memref<8xf32, #tpu.memory_space<smem>>
    %314 = vector.broadcast %313 : f32 to vector<1x256xf32>
    %315 = arith.mulf %314, %286 : vector<1x256xf32>
    %316 = arith.addf %312, %315 : vector<1x256xf32>
    %c7_76 = arith.constant 7 : index
    %317 = memref.load %arg11[%c7_76] : memref<8xf32, #tpu.memory_space<smem>>
    %318 = vector.broadcast %317 : f32 to vector<1x256xf32>
    %319 = arith.mulf %318, %287 : vector<1x256xf32>
    %320 = arith.addf %316, %319 : vector<1x256xf32>
    %c1_77 = arith.constant 1 : index
    %321 = memref.load %arg12[%c1_77] : memref<2xf32, #tpu.memory_space<smem>>
    %322 = vector.broadcast %321 : f32 to vector<1x256xf32>
    %323 = arith.addf %320, %322 : vector<1x256xf32>
    %324 = tpu.concatenate %265, %283, %305, %323 in 0 : vector<1x256xf32>, vector<1x256xf32>, vector<1x256xf32>, vector<1x256xf32> -> vector<4x256xf32>
    %325 = vector.extract_strided_slice %243 {offsets = [0, 0], sizes = [1, 256], strides = [1, 1]} : vector<8x256xf32> to vector<1x256xf32>
    %326 = vector.extract_strided_slice %243 {offsets = [1, 0], sizes = [1, 256], strides = [1, 1]} : vector<8x256xf32> to vector<1x256xf32>
    %327 = vector.extract_strided_slice %243 {offsets = [2, 0], sizes = [1, 256], strides = [1, 1]} : vector<8x256xf32> to vector<1x256xf32>
    %328 = vector.extract_strided_slice %243 {offsets = [3, 0], sizes = [1, 256], strides = [1, 1]} : vector<8x256xf32> to vector<1x256xf32>
    %c0_78 = arith.constant 0 : index
    %329 = memref.load %arg13[%c0_78] : memref<8xf32, #tpu.memory_space<smem>>
    %330 = vector.broadcast %329 : f32 to vector<1x256xf32>
    %331 = arith.mulf %330, %325 : vector<1x256xf32>
    %c1_79 = arith.constant 1 : index
    %332 = memref.load %arg13[%c1_79] : memref<8xf32, #tpu.memory_space<smem>>
    %333 = vector.broadcast %332 : f32 to vector<1x256xf32>
    %334 = arith.mulf %333, %326 : vector<1x256xf32>
    %335 = arith.addf %331, %334 : vector<1x256xf32>
    %c2_80 = arith.constant 2 : index
    %336 = memref.load %arg13[%c2_80] : memref<8xf32, #tpu.memory_space<smem>>
    %337 = vector.broadcast %336 : f32 to vector<1x256xf32>
    %338 = arith.mulf %337, %327 : vector<1x256xf32>
    %339 = arith.addf %335, %338 : vector<1x256xf32>
    %c3_81 = arith.constant 3 : index
    %340 = memref.load %arg13[%c3_81] : memref<8xf32, #tpu.memory_space<smem>>
    %341 = vector.broadcast %340 : f32 to vector<1x256xf32>
    %342 = arith.mulf %341, %328 : vector<1x256xf32>
    %343 = arith.addf %339, %342 : vector<1x256xf32>
    %c0_82 = arith.constant 0 : index
    %344 = memref.load %arg14[%c0_82] : memref<2xf32, #tpu.memory_space<smem>>
    %345 = vector.broadcast %344 : f32 to vector<1x256xf32>
    %346 = arith.addf %343, %345 : vector<1x256xf32>
    %c4_83 = arith.constant 4 : index
    %347 = memref.load %arg13[%c4_83] : memref<8xf32, #tpu.memory_space<smem>>
    %348 = vector.broadcast %347 : f32 to vector<1x256xf32>
    %349 = arith.mulf %348, %325 : vector<1x256xf32>
    %c5_84 = arith.constant 5 : index
    %350 = memref.load %arg13[%c5_84] : memref<8xf32, #tpu.memory_space<smem>>
    %351 = vector.broadcast %350 : f32 to vector<1x256xf32>
    %352 = arith.mulf %351, %326 : vector<1x256xf32>
    %353 = arith.addf %349, %352 : vector<1x256xf32>
    %c6_85 = arith.constant 6 : index
    %354 = memref.load %arg13[%c6_85] : memref<8xf32, #tpu.memory_space<smem>>
    %355 = vector.broadcast %354 : f32 to vector<1x256xf32>
    %356 = arith.mulf %355, %327 : vector<1x256xf32>
    %357 = arith.addf %353, %356 : vector<1x256xf32>
    %c7_86 = arith.constant 7 : index
    %358 = memref.load %arg13[%c7_86] : memref<8xf32, #tpu.memory_space<smem>>
    %359 = vector.broadcast %358 : f32 to vector<1x256xf32>
    %360 = arith.mulf %359, %328 : vector<1x256xf32>
    %361 = arith.addf %357, %360 : vector<1x256xf32>
    %c1_87 = arith.constant 1 : index
    %362 = memref.load %arg14[%c1_87] : memref<2xf32, #tpu.memory_space<smem>>
    %363 = vector.broadcast %362 : f32 to vector<1x256xf32>
    %364 = arith.addf %361, %363 : vector<1x256xf32>
    %365 = vector.extract_strided_slice %243 {offsets = [4, 0], sizes = [1, 256], strides = [1, 1]} : vector<8x256xf32> to vector<1x256xf32>
    %366 = vector.extract_strided_slice %243 {offsets = [5, 0], sizes = [1, 256], strides = [1, 1]} : vector<8x256xf32> to vector<1x256xf32>
    %367 = vector.extract_strided_slice %243 {offsets = [6, 0], sizes = [1, 256], strides = [1, 1]} : vector<8x256xf32> to vector<1x256xf32>
    %368 = vector.extract_strided_slice %243 {offsets = [7, 0], sizes = [1, 256], strides = [1, 1]} : vector<8x256xf32> to vector<1x256xf32>
    %c0_88 = arith.constant 0 : index
    %369 = memref.load %arg13[%c0_88] : memref<8xf32, #tpu.memory_space<smem>>
    %370 = vector.broadcast %369 : f32 to vector<1x256xf32>
    %371 = arith.mulf %370, %365 : vector<1x256xf32>
    %c1_89 = arith.constant 1 : index
    %372 = memref.load %arg13[%c1_89] : memref<8xf32, #tpu.memory_space<smem>>
    %373 = vector.broadcast %372 : f32 to vector<1x256xf32>
    %374 = arith.mulf %373, %366 : vector<1x256xf32>
    %375 = arith.addf %371, %374 : vector<1x256xf32>
    %c2_90 = arith.constant 2 : index
    %376 = memref.load %arg13[%c2_90] : memref<8xf32, #tpu.memory_space<smem>>
    %377 = vector.broadcast %376 : f32 to vector<1x256xf32>
    %378 = arith.mulf %377, %367 : vector<1x256xf32>
    %379 = arith.addf %375, %378 : vector<1x256xf32>
    %c3_91 = arith.constant 3 : index
    %380 = memref.load %arg13[%c3_91] : memref<8xf32, #tpu.memory_space<smem>>
    %381 = vector.broadcast %380 : f32 to vector<1x256xf32>
    %382 = arith.mulf %381, %368 : vector<1x256xf32>
    %383 = arith.addf %379, %382 : vector<1x256xf32>
    %c0_92 = arith.constant 0 : index
    %384 = memref.load %arg14[%c0_92] : memref<2xf32, #tpu.memory_space<smem>>
    %385 = vector.broadcast %384 : f32 to vector<1x256xf32>
    %386 = arith.addf %383, %385 : vector<1x256xf32>
    %c4_93 = arith.constant 4 : index
    %387 = memref.load %arg13[%c4_93] : memref<8xf32, #tpu.memory_space<smem>>
    %388 = vector.broadcast %387 : f32 to vector<1x256xf32>
    %389 = arith.mulf %388, %365 : vector<1x256xf32>
    %c5_94 = arith.constant 5 : index
    %390 = memref.load %arg13[%c5_94] : memref<8xf32, #tpu.memory_space<smem>>
    %391 = vector.broadcast %390 : f32 to vector<1x256xf32>
    %392 = arith.mulf %391, %366 : vector<1x256xf32>
    %393 = arith.addf %389, %392 : vector<1x256xf32>
    %c6_95 = arith.constant 6 : index
    %394 = memref.load %arg13[%c6_95] : memref<8xf32, #tpu.memory_space<smem>>
    %395 = vector.broadcast %394 : f32 to vector<1x256xf32>
    %396 = arith.mulf %395, %367 : vector<1x256xf32>
    %397 = arith.addf %393, %396 : vector<1x256xf32>
    %c7_96 = arith.constant 7 : index
    %398 = memref.load %arg13[%c7_96] : memref<8xf32, #tpu.memory_space<smem>>
    %399 = vector.broadcast %398 : f32 to vector<1x256xf32>
    %400 = arith.mulf %399, %368 : vector<1x256xf32>
    %401 = arith.addf %397, %400 : vector<1x256xf32>
    %c1_97 = arith.constant 1 : index
    %402 = memref.load %arg14[%c1_97] : memref<2xf32, #tpu.memory_space<smem>>
    %403 = vector.broadcast %402 : f32 to vector<1x256xf32>
    %404 = arith.addf %401, %403 : vector<1x256xf32>
    %405 = tpu.concatenate %346, %364, %386, %404 in 0 : vector<1x256xf32>, vector<1x256xf32>, vector<1x256xf32>, vector<1x256xf32> -> vector<4x256xf32>
    %c0_98 = arith.constant 0 : index
    %c128_99 = arith.constant 128 : index
    %406 = vector.load %arg22[%c0_98, %c128_99] : memref<8x512xf32, #tpu.memory_space<vmem>>, vector<8x256xf32>
    tpu.vector_store %arg22[%c0_98, %c128_99], %7 {strides = array<i32>} : memref<8x512xf32, #tpu.memory_space<vmem>>, vector<8x256xf32>,
    %c0_100 = arith.constant 0 : index
    %c0_101 = arith.constant 0 : index
    %407 = vector.load %arg5[%c0_100, %c0_101] : memref<8x49xf32, #tpu.memory_space<vmem>>, vector<8x49xf32>
    %cst_102 = arith.constant 0.000000e+00 : f32
    %408 = vector.broadcast %cst_102 : f32 to vector<8x256xf32>
    %c0_103 = arith.constant 0 : index
    %c77 = arith.constant 77 : index
    %409 = vector.load %arg22[%c0_103, %c77] : memref<8x512xf32, #tpu.memory_space<vmem>>, vector<8x256xf32>
    %410 = vector.extract_strided_slice %407 {offsets = [0, 0], sizes = [8, 1], strides = [1, 1]} : vector<8x49xf32> to vector<8x1xf32>
    %411 = vector.broadcast %410 : vector<8x1xf32> to vector<8x256xf32>
    %412 = arith.mulf %411, %409 : vector<8x256xf32>
    %c0_104 = arith.constant 0 : index
    %c93 = arith.constant 93 : index
    %413 = vector.load %arg22[%c0_104, %c93] : memref<8x512xf32, #tpu.memory_space<vmem>>, vector<8x256xf32>
    %414 = vector.extract_strided_slice %407 {offsets = [0, 7], sizes = [8, 1], strides = [1, 1]} : vector<8x49xf32> to vector<8x1xf32>
    %415 = vector.broadcast %414 : vector<8x1xf32> to vector<8x256xf32>
    %416 = arith.mulf %415, %413 : vector<8x256xf32>
    %417 = arith.addf %412, %416 : vector<8x256xf32>
    %c0_105 = arith.constant 0 : index
    %c109 = arith.constant 109 : index
    %418 = vector.load %arg22[%c0_105, %c109] : memref<8x512xf32, #tpu.memory_space<vmem>>, vector<8x256xf32>
    %419 = vector.extract_strided_slice %407 {offsets = [0, 14], sizes = [8, 1], strides = [1, 1]} : vector<8x49xf32> to vector<8x1xf32>
    %420 = vector.broadcast %419 : vector<8x1xf32> to vector<8x256xf32>
    %421 = arith.mulf %420, %418 : vector<8x256xf32>
    %422 = arith.addf %417, %421 : vector<8x256xf32>
    %c0_106 = arith.constant 0 : index
    %c125 = arith.constant 125 : index
    %423 = vector.load %arg22[%c0_106, %c125] : memref<8x512xf32, #tpu.memory_space<vmem>>, vector<8x256xf32>
    %424 = vector.extract_strided_slice %407 {offsets = [0, 21], sizes = [8, 1], strides = [1, 1]} : vector<8x49xf32> to vector<8x1xf32>
    %425 = vector.broadcast %424 : vector<8x1xf32> to vector<8x256xf32>
    %426 = arith.mulf %425, %423 : vector<8x256xf32>
    %427 = arith.addf %422, %426 : vector<8x256xf32>
    %c0_107 = arith.constant 0 : index
    %c141 = arith.constant 141 : index
    %428 = vector.load %arg22[%c0_107, %c141] : memref<8x512xf32, #tpu.memory_space<vmem>>, vector<8x256xf32>
    %429 = vector.extract_strided_slice %407 {offsets = [0, 28], sizes = [8, 1], strides = [1, 1]} : vector<8x49xf32> to vector<8x1xf32>
    %430 = vector.broadcast %429 : vector<8x1xf32> to vector<8x256xf32>
    %431 = arith.mulf %430, %428 : vector<8x256xf32>
    %432 = arith.addf %427, %431 : vector<8x256xf32>
    %c0_108 = arith.constant 0 : index
    %c157 = arith.constant 157 : index
    %433 = vector.load %arg22[%c0_108, %c157] : memref<8x512xf32, #tpu.memory_space<vmem>>, vector<8x256xf32>
    %434 = vector.extract_strided_slice %407 {offsets = [0, 35], sizes = [8, 1], strides = [1, 1]} : vector<8x49xf32> to vector<8x1xf32>
    %435 = vector.broadcast %434 : vector<8x1xf32> to vector<8x256xf32>
    %436 = arith.mulf %435, %433 : vector<8x256xf32>
    %437 = arith.addf %432, %436 : vector<8x256xf32>
    %c0_109 = arith.constant 0 : index
    %c173 = arith.constant 173 : index
    %438 = vector.load %arg22[%c0_109, %c173] : memref<8x512xf32, #tpu.memory_space<vmem>>, vector<8x256xf32>
    %439 = vector.extract_strided_slice %407 {offsets = [0, 42], sizes = [8, 1], strides = [1, 1]} : vector<8x49xf32> to vector<8x1xf32>
    %440 = vector.broadcast %439 : vector<8x1xf32> to vector<8x256xf32>
    %441 = arith.mulf %440, %438 : vector<8x256xf32>
    %442 = arith.addf %437, %441 : vector<8x256xf32>
    %c3_i32 = arith.constant 3 : i32
    %443 = vector.broadcast %c3_i32 : i32 to vector<1x256xi32>
    %444 = arith.cmpi sge, %2, %443 : vector<1x256xi32>
    %c16_i32_110 = arith.constant 16 : i32
    %445 = vector.broadcast %c16_i32_110 : i32 to vector<1x256xi32>
    %446 = arith.cmpi slt, %2, %445 : vector<1x256xi32>
    %447 = arith.andi %444, %446 : vector<1x256xi1>
    %cst_111 = arith.constant 0.000000e+00 : f32
    %448 = vector.shape_cast %447 : vector<1x256xi1> to vector<1x256xi1>
    %449 = vector.broadcast %448 : vector<1x256xi1> to vector<8x256xi1>
    %450 = vector.broadcast %cst_111 : f32 to vector<8x256xf32>
    %451 = arith.select %449, %442, %450 : vector<8x256xi1>, vector<8x256xf32>
    %452 = arith.addf %408, %451 : vector<8x256xf32>
    %c0_112 = arith.constant 0 : index
    %c78 = arith.constant 78 : index
    %453 = vector.load %arg22[%c0_112, %c78] : memref<8x512xf32, #tpu.memory_space<vmem>>, vector<8x256xf32>
    %454 = vector.extract_strided_slice %407 {offsets = [0, 1], sizes = [8, 1], strides = [1, 1]} : vector<8x49xf32> to vector<8x1xf32>
    %455 = vector.broadcast %454 : vector<8x1xf32> to vector<8x256xf32>
    %456 = arith.mulf %455, %453 : vector<8x256xf32>
    %c0_113 = arith.constant 0 : index
    %c94_114 = arith.constant 94 : index
    %457 = vector.load %arg22[%c0_113, %c94_114] : memref<8x512xf32, #tpu.memory_space<vmem>>, vector<8x256xf32>
    %458 = vector.extract_strided_slice %407 {offsets = [0, 8], sizes = [8, 1], strides = [1, 1]} : vector<8x49xf32> to vector<8x1xf32>
    %459 = vector.broadcast %458 : vector<8x1xf32> to vector<8x256xf32>
    %460 = arith.mulf %459, %457 : vector<8x256xf32>
    %461 = arith.addf %456, %460 : vector<8x256xf32>
    %c0_115 = arith.constant 0 : index
    %c110 = arith.constant 110 : index
    %462 = vector.load %arg22[%c0_115, %c110] : memref<8x512xf32, #tpu.memory_space<vmem>>, vector<8x256xf32>
    %463 = vector.extract_strided_slice %407 {offsets = [0, 15], sizes = [8, 1], strides = [1, 1]} : vector<8x49xf32> to vector<8x1xf32>
    %464 = vector.broadcast %463 : vector<8x1xf32> to vector<8x256xf32>
    %465 = arith.mulf %464, %462 : vector<8x256xf32>
    %466 = arith.addf %461, %465 : vector<8x256xf32>
    %c0_116 = arith.constant 0 : index
    %c126_117 = arith.constant 126 : index
    %467 = vector.load %arg22[%c0_116, %c126_117] : memref<8x512xf32, #tpu.memory_space<vmem>>, vector<8x256xf32>
    %468 = vector.extract_strided_slice %407 {offsets = [0, 22], sizes = [8, 1], strides = [1, 1]} : vector<8x49xf32> to vector<8x1xf32>
    %469 = vector.broadcast %468 : vector<8x1xf32> to vector<8x256xf32>
    %470 = arith.mulf %469, %467 : vector<8x256xf32>
    %471 = arith.addf %466, %470 : vector<8x256xf32>
    %c0_118 = arith.constant 0 : index
    %c142 = arith.constant 142 : index
    %472 = vector.load %arg22[%c0_118, %c142] : memref<8x512xf32, #tpu.memory_space<vmem>>, vector<8x256xf32>
    %473 = vector.extract_strided_slice %407 {offsets = [0, 29], sizes = [8, 1], strides = [1, 1]} : vector<8x49xf32> to vector<8x1xf32>
    %474 = vector.broadcast %473 : vector<8x1xf32> to vector<8x256xf32>
    %475 = arith.mulf %474, %472 : vector<8x256xf32>
    %476 = arith.addf %471, %475 : vector<8x256xf32>
    %c0_119 = arith.constant 0 : index
    %c158_120 = arith.constant 158 : index
    %477 = vector.load %arg22[%c0_119, %c158_120] : memref<8x512xf32, #tpu.memory_space<vmem>>, vector<8x256xf32>
    %478 = vector.extract_strided_slice %407 {offsets = [0, 36], sizes = [8, 1], strides = [1, 1]} : vector<8x49xf32> to vector<8x1xf32>
    %479 = vector.broadcast %478 : vector<8x1xf32> to vector<8x256xf32>
    %480 = arith.mulf %479, %477 : vector<8x256xf32>
    %481 = arith.addf %476, %480 : vector<8x256xf32>
    %c0_121 = arith.constant 0 : index
    %c174 = arith.constant 174 : index
    %482 = vector.load %arg22[%c0_121, %c174] : memref<8x512xf32, #tpu.memory_space<vmem>>, vector<8x256xf32>
    %483 = vector.extract_strided_slice %407 {offsets = [0, 43], sizes = [8, 1], strides = [1, 1]} : vector<8x49xf32> to vector<8x1xf32>
    %484 = vector.broadcast %483 : vector<8x1xf32> to vector<8x256xf32>
    %485 = arith.mulf %484, %482 : vector<8x256xf32>
    %486 = arith.addf %481, %485 : vector<8x256xf32>
    %c2_i32_122 = arith.constant 2 : i32
    %487 = vector.broadcast %c2_i32_122 : i32 to vector<1x256xi32>
    %488 = arith.cmpi sge, %2, %487 : vector<1x256xi32>
    %c16_i32_123 = arith.constant 16 : i32
    %489 = vector.broadcast %c16_i32_123 : i32 to vector<1x256xi32>
    %490 = arith.cmpi slt, %2, %489 : vector<1x256xi32>
    %491 = arith.andi %488, %490 : vector<1x256xi1>
    %cst_124 = arith.constant 0.000000e+00 : f32
    %492 = vector.shape_cast %491 : vector<1x256xi1> to vector<1x256xi1>
    %493 = vector.broadcast %492 : vector<1x256xi1> to vector<8x256xi1>
    %494 = vector.broadcast %cst_124 : f32 to vector<8x256xf32>
    %495 = arith.select %493, %486, %494 : vector<8x256xi1>, vector<8x256xf32>
    %496 = arith.addf %452, %495 : vector<8x256xf32>
    %c0_125 = arith.constant 0 : index
    %c79 = arith.constant 79 : index
    %497 = vector.load %arg22[%c0_125, %c79] : memref<8x512xf32, #tpu.memory_space<vmem>>, vector<8x256xf32>
    %498 = vector.extract_strided_slice %407 {offsets = [0, 2], sizes = [8, 1], strides = [1, 1]} : vector<8x49xf32> to vector<8x1xf32>
    %499 = vector.broadcast %498 : vector<8x1xf32> to vector<8x256xf32>
    %500 = arith.mulf %499, %497 : vector<8x256xf32>
    %c0_126 = arith.constant 0 : index
    %c95 = arith.constant 95 : index
    %501 = vector.load %arg22[%c0_126, %c95] : memref<8x512xf32, #tpu.memory_space<vmem>>, vector<8x256xf32>
    %502 = vector.extract_strided_slice %407 {offsets = [0, 9], sizes = [8, 1], strides = [1, 1]} : vector<8x49xf32> to vector<8x1xf32>
    %503 = vector.broadcast %502 : vector<8x1xf32> to vector<8x256xf32>
    %504 = arith.mulf %503, %501 : vector<8x256xf32>
    %505 = arith.addf %500, %504 : vector<8x256xf32>
    %c0_127 = arith.constant 0 : index
    %c111_128 = arith.constant 111 : index
    %506 = vector.load %arg22[%c0_127, %c111_128] : memref<8x512xf32, #tpu.memory_space<vmem>>, vector<8x256xf32>
    %507 = vector.extract_strided_slice %407 {offsets = [0, 16], sizes = [8, 1], strides = [1, 1]} : vector<8x49xf32> to vector<8x1xf32>
    %508 = vector.broadcast %507 : vector<8x1xf32> to vector<8x256xf32>
    %509 = arith.mulf %508, %506 : vector<8x256xf32>
    %510 = arith.addf %505, %509 : vector<8x256xf32>
    %c0_129 = arith.constant 0 : index
    %c127_130 = arith.constant 127 : index
    %511 = vector.load %arg22[%c0_129, %c127_130] : memref<8x512xf32, #tpu.memory_space<vmem>>, vector<8x256xf32>
    %512 = vector.extract_strided_slice %407 {offsets = [0, 23], sizes = [8, 1], strides = [1, 1]} : vector<8x49xf32> to vector<8x1xf32>
    %513 = vector.broadcast %512 : vector<8x1xf32> to vector<8x256xf32>
    %514 = arith.mulf %513, %511 : vector<8x256xf32>
    %515 = arith.addf %510, %514 : vector<8x256xf32>
    %c0_131 = arith.constant 0 : index
    %c143_132 = arith.constant 143 : index
    %516 = vector.load %arg22[%c0_131, %c143_132] : memref<8x512xf32, #tpu.memory_space<vmem>>, vector<8x256xf32>
    %517 = vector.extract_strided_slice %407 {offsets = [0, 30], sizes = [8, 1], strides = [1, 1]} : vector<8x49xf32> to vector<8x1xf32>
    %518 = vector.broadcast %517 : vector<8x1xf32> to vector<8x256xf32>
    %519 = arith.mulf %518, %516 : vector<8x256xf32>
    %520 = arith.addf %515, %519 : vector<8x256xf32>
    %c0_133 = arith.constant 0 : index
    %c159 = arith.constant 159 : index
    %521 = vector.load %arg22[%c0_133, %c159] : memref<8x512xf32, #tpu.memory_space<vmem>>, vector<8x256xf32>
    %522 = vector.extract_strided_slice %407 {offsets = [0, 37], sizes = [8, 1], strides = [1, 1]} : vector<8x49xf32> to vector<8x1xf32>
    %523 = vector.broadcast %522 : vector<8x1xf32> to vector<8x256xf32>
    %524 = arith.mulf %523, %521 : vector<8x256xf32>
    %525 = arith.addf %520, %524 : vector<8x256xf32>
    %c0_134 = arith.constant 0 : index
    %c175 = arith.constant 175 : index
    %526 = vector.load %arg22[%c0_134, %c175] : memref<8x512xf32, #tpu.memory_space<vmem>>, vector<8x256xf32>
    %527 = vector.extract_strided_slice %407 {offsets = [0, 44], sizes = [8, 1], strides = [1, 1]} : vector<8x49xf32> to vector<8x1xf32>
    %528 = vector.broadcast %527 : vector<8x1xf32> to vector<8x256xf32>
    %529 = arith.mulf %528, %526 : vector<8x256xf32>
    %530 = arith.addf %525, %529 : vector<8x256xf32>
    %c1_i32_135 = arith.constant 1 : i32
    %531 = vector.broadcast %c1_i32_135 : i32 to vector<1x256xi32>
    %532 = arith.cmpi sge, %2, %531 : vector<1x256xi32>
    %c16_i32_136 = arith.constant 16 : i32
    %533 = vector.broadcast %c16_i32_136 : i32 to vector<1x256xi32>
    %534 = arith.cmpi slt, %2, %533 : vector<1x256xi32>
    %535 = arith.andi %532, %534 : vector<1x256xi1>
    %cst_137 = arith.constant 0.000000e+00 : f32
    %536 = vector.shape_cast %535 : vector<1x256xi1> to vector<1x256xi1>
    %537 = vector.broadcast %536 : vector<1x256xi1> to vector<8x256xi1>
    %538 = vector.broadcast %cst_137 : f32 to vector<8x256xf32>
    %539 = arith.select %537, %530, %538 : vector<8x256xi1>, vector<8x256xf32>
    %540 = arith.addf %496, %539 : vector<8x256xf32>
    %c0_138 = arith.constant 0 : index
    %c80 = arith.constant 80 : index
    %541 = vector.load %arg22[%c0_138, %c80] : memref<8x512xf32, #tpu.memory_space<vmem>>, vector<8x256xf32>
    %542 = vector.extract_strided_slice %407 {offsets = [0, 3], sizes = [8, 1], strides = [1, 1]} : vector<8x49xf32> to vector<8x1xf32>
    %543 = vector.broadcast %542 : vector<8x1xf32> to vector<8x256xf32>
    %544 = arith.mulf %543, %541 : vector<8x256xf32>
    %c0_139 = arith.constant 0 : index
    %c96_140 = arith.constant 96 : index
    %545 = vector.load %arg22[%c0_139, %c96_140] : memref<8x512xf32, #tpu.memory_space<vmem>>, vector<8x256xf32>
    %546 = vector.extract_strided_slice %407 {offsets = [0, 10], sizes = [8, 1], strides = [1, 1]} : vector<8x49xf32> to vector<8x1xf32>
    %547 = vector.broadcast %546 : vector<8x1xf32> to vector<8x256xf32>
    %548 = arith.mulf %547, %545 : vector<8x256xf32>
    %549 = arith.addf %544, %548 : vector<8x256xf32>
    %c0_141 = arith.constant 0 : index
    %c112_142 = arith.constant 112 : index
    %550 = vector.load %arg22[%c0_141, %c112_142] : memref<8x512xf32, #tpu.memory_space<vmem>>, vector<8x256xf32>
    %551 = vector.extract_strided_slice %407 {offsets = [0, 17], sizes = [8, 1], strides = [1, 1]} : vector<8x49xf32> to vector<8x1xf32>
    %552 = vector.broadcast %551 : vector<8x1xf32> to vector<8x256xf32>
    %553 = arith.mulf %552, %550 : vector<8x256xf32>
    %554 = arith.addf %549, %553 : vector<8x256xf32>
    %c0_143 = arith.constant 0 : index
    %c128_144 = arith.constant 128 : index
    %555 = vector.load %arg22[%c0_143, %c128_144] : memref<8x512xf32, #tpu.memory_space<vmem>>, vector<8x256xf32>
    %556 = vector.extract_strided_slice %407 {offsets = [0, 24], sizes = [8, 1], strides = [1, 1]} : vector<8x49xf32> to vector<8x1xf32>
    %557 = vector.broadcast %556 : vector<8x1xf32> to vector<8x256xf32>
    %558 = arith.mulf %557, %555 : vector<8x256xf32>
    %559 = arith.addf %554, %558 : vector<8x256xf32>
    %c0_145 = arith.constant 0 : index
    %c144_146 = arith.constant 144 : index
    %560 = vector.load %arg22[%c0_145, %c144_146] : memref<8x512xf32, #tpu.memory_space<vmem>>, vector<8x256xf32>
    %561 = vector.extract_strided_slice %407 {offsets = [0, 31], sizes = [8, 1], strides = [1, 1]} : vector<8x49xf32> to vector<8x1xf32>
    %562 = vector.broadcast %561 : vector<8x1xf32> to vector<8x256xf32>
    %563 = arith.mulf %562, %560 : vector<8x256xf32>
    %564 = arith.addf %559, %563 : vector<8x256xf32>
    %c0_147 = arith.constant 0 : index
    %c160_148 = arith.constant 160 : index
    %565 = vector.load %arg22[%c0_147, %c160_148] : memref<8x512xf32, #tpu.memory_space<vmem>>, vector<8x256xf32>
    %566 = vector.extract_strided_slice %407 {offsets = [0, 38], sizes = [8, 1], strides = [1, 1]} : vector<8x49xf32> to vector<8x1xf32>
    %567 = vector.broadcast %566 : vector<8x1xf32> to vector<8x256xf32>
    %568 = arith.mulf %567, %565 : vector<8x256xf32>
    %569 = arith.addf %564, %568 : vector<8x256xf32>
    %c0_149 = arith.constant 0 : index
    %c176 = arith.constant 176 : index
    %570 = vector.load %arg22[%c0_149, %c176] : memref<8x512xf32, #tpu.memory_space<vmem>>, vector<8x256xf32>
    %571 = vector.extract_strided_slice %407 {offsets = [0, 45], sizes = [8, 1], strides = [1, 1]} : vector<8x49xf32> to vector<8x1xf32>
    %572 = vector.broadcast %571 : vector<8x1xf32> to vector<8x256xf32>
    %573 = arith.mulf %572, %570 : vector<8x256xf32>
    %574 = arith.addf %569, %573 : vector<8x256xf32>
    %575 = arith.addf %540, %574 : vector<8x256xf32>
    %c0_150 = arith.constant 0 : index
    %c81 = arith.constant 81 : index
    %576 = vector.load %arg22[%c0_150, %c81] : memref<8x512xf32, #tpu.memory_space<vmem>>, vector<8x256xf32>
    %577 = vector.extract_strided_slice %407 {offsets = [0, 4], sizes = [8, 1], strides = [1, 1]} : vector<8x49xf32> to vector<8x1xf32>
    %578 = vector.broadcast %577 : vector<8x1xf32> to vector<8x256xf32>
    %579 = arith.mulf %578, %576 : vector<8x256xf32>
    %c0_151 = arith.constant 0 : index
    %c97 = arith.constant 97 : index
    %580 = vector.load %arg22[%c0_151, %c97] : memref<8x512xf32, #tpu.memory_space<vmem>>, vector<8x256xf32>
    %581 = vector.extract_strided_slice %407 {offsets = [0, 11], sizes = [8, 1], strides = [1, 1]} : vector<8x49xf32> to vector<8x1xf32>
    %582 = vector.broadcast %581 : vector<8x1xf32> to vector<8x256xf32>
    %583 = arith.mulf %582, %580 : vector<8x256xf32>
    %584 = arith.addf %579, %583 : vector<8x256xf32>
    %c0_152 = arith.constant 0 : index
    %c113_153 = arith.constant 113 : index
    %585 = vector.load %arg22[%c0_152, %c113_153] : memref<8x512xf32, #tpu.memory_space<vmem>>, vector<8x256xf32>
    %586 = vector.extract_strided_slice %407 {offsets = [0, 18], sizes = [8, 1], strides = [1, 1]} : vector<8x49xf32> to vector<8x1xf32>
    %587 = vector.broadcast %586 : vector<8x1xf32> to vector<8x256xf32>
    %588 = arith.mulf %587, %585 : vector<8x256xf32>
    %589 = arith.addf %584, %588 : vector<8x256xf32>
    %c0_154 = arith.constant 0 : index
    %c129_155 = arith.constant 129 : index
    %590 = vector.load %arg22[%c0_154, %c129_155] : memref<8x512xf32, #tpu.memory_space<vmem>>, vector<8x256xf32>
    %591 = vector.extract_strided_slice %407 {offsets = [0, 25], sizes = [8, 1], strides = [1, 1]} : vector<8x49xf32> to vector<8x1xf32>
    %592 = vector.broadcast %591 : vector<8x1xf32> to vector<8x256xf32>
    %593 = arith.mulf %592, %590 : vector<8x256xf32>
    %594 = arith.addf %589, %593 : vector<8x256xf32>
    %c0_156 = arith.constant 0 : index
    %c145_157 = arith.constant 145 : index
    %595 = vector.load %arg22[%c0_156, %c145_157] : memref<8x512xf32, #tpu.memory_space<vmem>>, vector<8x256xf32>
    %596 = vector.extract_strided_slice %407 {offsets = [0, 32], sizes = [8, 1], strides = [1, 1]} : vector<8x49xf32> to vector<8x1xf32>
    %597 = vector.broadcast %596 : vector<8x1xf32> to vector<8x256xf32>
    %598 = arith.mulf %597, %595 : vector<8x256xf32>
    %599 = arith.addf %594, %598 : vector<8x256xf32>
    %c0_158 = arith.constant 0 : index
    %c161 = arith.constant 161 : index
    %600 = vector.load %arg22[%c0_158, %c161] : memref<8x512xf32, #tpu.memory_space<vmem>>, vector<8x256xf32>
    %601 = vector.extract_strided_slice %407 {offsets = [0, 39], sizes = [8, 1], strides = [1, 1]} : vector<8x49xf32> to vector<8x1xf32>
    %602 = vector.broadcast %601 : vector<8x1xf32> to vector<8x256xf32>
    %603 = arith.mulf %602, %600 : vector<8x256xf32>
    %604 = arith.addf %599, %603 : vector<8x256xf32>
    %c0_159 = arith.constant 0 : index
    %c177 = arith.constant 177 : index
    %605 = vector.load %arg22[%c0_159, %c177] : memref<8x512xf32, #tpu.memory_space<vmem>>, vector<8x256xf32>
    %606 = vector.extract_strided_slice %407 {offsets = [0, 46], sizes = [8, 1], strides = [1, 1]} : vector<8x49xf32> to vector<8x1xf32>
    %607 = vector.broadcast %606 : vector<8x1xf32> to vector<8x256xf32>
    %608 = arith.mulf %607, %605 : vector<8x256xf32>
    %609 = arith.addf %604, %608 : vector<8x256xf32>
    %c0_i32_160 = arith.constant 0 : i32
    %610 = vector.broadcast %c0_i32_160 : i32 to vector<1x256xi32>
    %611 = arith.cmpi sge, %2, %610 : vector<1x256xi32>
    %c15_i32_161 = arith.constant 15 : i32
    %612 = vector.broadcast %c15_i32_161 : i32 to vector<1x256xi32>
    %613 = arith.cmpi slt, %2, %612 : vector<1x256xi32>
    %614 = arith.andi %611, %613 : vector<1x256xi1>
    %cst_162 = arith.constant 0.000000e+00 : f32
    %615 = vector.shape_cast %614 : vector<1x256xi1> to vector<1x256xi1>
    %616 = vector.broadcast %615 : vector<1x256xi1> to vector<8x256xi1>
    %617 = vector.broadcast %cst_162 : f32 to vector<8x256xf32>
    %618 = arith.select %616, %609, %617 : vector<8x256xi1>, vector<8x256xf32>
    %619 = arith.addf %575, %618 : vector<8x256xf32>
    %c0_163 = arith.constant 0 : index
    %c82 = arith.constant 82 : index
    %620 = vector.load %arg22[%c0_163, %c82] : memref<8x512xf32, #tpu.memory_space<vmem>>, vector<8x256xf32>
    %621 = vector.extract_strided_slice %407 {offsets = [0, 5], sizes = [8, 1], strides = [1, 1]} : vector<8x49xf32> to vector<8x1xf32>
    %622 = vector.broadcast %621 : vector<8x1xf32> to vector<8x256xf32>
    %623 = arith.mulf %622, %620 : vector<8x256xf32>
    %c0_164 = arith.constant 0 : index
    %c98_165 = arith.constant 98 : index
    %624 = vector.load %arg22[%c0_164, %c98_165] : memref<8x512xf32, #tpu.memory_space<vmem>>, vector<8x256xf32>
    %625 = vector.extract_strided_slice %407 {offsets = [0, 12], sizes = [8, 1], strides = [1, 1]} : vector<8x49xf32> to vector<8x1xf32>
    %626 = vector.broadcast %625 : vector<8x1xf32> to vector<8x256xf32>
    %627 = arith.mulf %626, %624 : vector<8x256xf32>
    %628 = arith.addf %623, %627 : vector<8x256xf32>
    %c0_166 = arith.constant 0 : index
    %c114 = arith.constant 114 : index
    %629 = vector.load %arg22[%c0_166, %c114] : memref<8x512xf32, #tpu.memory_space<vmem>>, vector<8x256xf32>
    %630 = vector.extract_strided_slice %407 {offsets = [0, 19], sizes = [8, 1], strides = [1, 1]} : vector<8x49xf32> to vector<8x1xf32>
    %631 = vector.broadcast %630 : vector<8x1xf32> to vector<8x256xf32>
    %632 = arith.mulf %631, %629 : vector<8x256xf32>
    %633 = arith.addf %628, %632 : vector<8x256xf32>
    %c0_167 = arith.constant 0 : index
    %c130_168 = arith.constant 130 : index
    %634 = vector.load %arg22[%c0_167, %c130_168] : memref<8x512xf32, #tpu.memory_space<vmem>>, vector<8x256xf32>
    %635 = vector.extract_strided_slice %407 {offsets = [0, 26], sizes = [8, 1], strides = [1, 1]} : vector<8x49xf32> to vector<8x1xf32>
    %636 = vector.broadcast %635 : vector<8x1xf32> to vector<8x256xf32>
    %637 = arith.mulf %636, %634 : vector<8x256xf32>
    %638 = arith.addf %633, %637 : vector<8x256xf32>
    %c0_169 = arith.constant 0 : index
    %c146 = arith.constant 146 : index
    %639 = vector.load %arg22[%c0_169, %c146] : memref<8x512xf32, #tpu.memory_space<vmem>>, vector<8x256xf32>
    %640 = vector.extract_strided_slice %407 {offsets = [0, 33], sizes = [8, 1], strides = [1, 1]} : vector<8x49xf32> to vector<8x1xf32>
    %641 = vector.broadcast %640 : vector<8x1xf32> to vector<8x256xf32>
    %642 = arith.mulf %641, %639 : vector<8x256xf32>
    %643 = arith.addf %638, %642 : vector<8x256xf32>
    %c0_170 = arith.constant 0 : index
    %c162_171 = arith.constant 162 : index
    %644 = vector.load %arg22[%c0_170, %c162_171] : memref<8x512xf32, #tpu.memory_space<vmem>>, vector<8x256xf32>
    %645 = vector.extract_strided_slice %407 {offsets = [0, 40], sizes = [8, 1], strides = [1, 1]} : vector<8x49xf32> to vector<8x1xf32>
    %646 = vector.broadcast %645 : vector<8x1xf32> to vector<8x256xf32>
    %647 = arith.mulf %646, %644 : vector<8x256xf32>
    %648 = arith.addf %643, %647 : vector<8x256xf32>
    %c0_172 = arith.constant 0 : index
    %c178 = arith.constant 178 : index
    %649 = vector.load %arg22[%c0_172, %c178] : memref<8x512xf32, #tpu.memory_space<vmem>>, vector<8x256xf32>
    %650 = vector.extract_strided_slice %407 {offsets = [0, 47], sizes = [8, 1], strides = [1, 1]} : vector<8x49xf32> to vector<8x1xf32>
    %651 = vector.broadcast %650 : vector<8x1xf32> to vector<8x256xf32>
    %652 = arith.mulf %651, %649 : vector<8x256xf32>
    %653 = arith.addf %648, %652 : vector<8x256xf32>
    %c0_i32_173 = arith.constant 0 : i32
    %654 = vector.broadcast %c0_i32_173 : i32 to vector<1x256xi32>
    %655 = arith.cmpi sge, %2, %654 : vector<1x256xi32>
    %c14_i32_174 = arith.constant 14 : i32
    %656 = vector.broadcast %c14_i32_174 : i32 to vector<1x256xi32>
    %657 = arith.cmpi slt, %2, %656 : vector<1x256xi32>
    %658 = arith.andi %655, %657 : vector<1x256xi1>
    %cst_175 = arith.constant 0.000000e+00 : f32
    %659 = vector.shape_cast %658 : vector<1x256xi1> to vector<1x256xi1>
    %660 = vector.broadcast %659 : vector<1x256xi1> to vector<8x256xi1>
    %661 = vector.broadcast %cst_175 : f32 to vector<8x256xf32>
    %662 = arith.select %660, %653, %661 : vector<8x256xi1>, vector<8x256xf32>
    %663 = arith.addf %619, %662 : vector<8x256xf32>
    %c0_176 = arith.constant 0 : index
    %c83 = arith.constant 83 : index
    %664 = vector.load %arg22[%c0_176, %c83] : memref<8x512xf32, #tpu.memory_space<vmem>>, vector<8x256xf32>
    %665 = vector.extract_strided_slice %407 {offsets = [0, 6], sizes = [8, 1], strides = [1, 1]} : vector<8x49xf32> to vector<8x1xf32>
    %666 = vector.broadcast %665 : vector<8x1xf32> to vector<8x256xf32>
    %667 = arith.mulf %666, %664 : vector<8x256xf32>
    %c0_177 = arith.constant 0 : index
    %c99 = arith.constant 99 : index
    %668 = vector.load %arg22[%c0_177, %c99] : memref<8x512xf32, #tpu.memory_space<vmem>>, vector<8x256xf32>
    %669 = vector.extract_strided_slice %407 {offsets = [0, 13], sizes = [8, 1], strides = [1, 1]} : vector<8x49xf32> to vector<8x1xf32>
    %670 = vector.broadcast %669 : vector<8x1xf32> to vector<8x256xf32>
    %671 = arith.mulf %670, %668 : vector<8x256xf32>
    %672 = arith.addf %667, %671 : vector<8x256xf32>
    %c0_178 = arith.constant 0 : index
    %c115 = arith.constant 115 : index
    %673 = vector.load %arg22[%c0_178, %c115] : memref<8x512xf32, #tpu.memory_space<vmem>>, vector<8x256xf32>
    %674 = vector.extract_strided_slice %407 {offsets = [0, 20], sizes = [8, 1], strides = [1, 1]} : vector<8x49xf32> to vector<8x1xf32>
    %675 = vector.broadcast %674 : vector<8x1xf32> to vector<8x256xf32>
    %676 = arith.mulf %675, %673 : vector<8x256xf32>
    %677 = arith.addf %672, %676 : vector<8x256xf32>
    %c0_179 = arith.constant 0 : index
    %c131 = arith.constant 131 : index
    %678 = vector.load %arg22[%c0_179, %c131] : memref<8x512xf32, #tpu.memory_space<vmem>>, vector<8x256xf32>
    %679 = vector.extract_strided_slice %407 {offsets = [0, 27], sizes = [8, 1], strides = [1, 1]} : vector<8x49xf32> to vector<8x1xf32>
    %680 = vector.broadcast %679 : vector<8x1xf32> to vector<8x256xf32>
    %681 = arith.mulf %680, %678 : vector<8x256xf32>
    %682 = arith.addf %677, %681 : vector<8x256xf32>
    %c0_180 = arith.constant 0 : index
    %c147 = arith.constant 147 : index
    %683 = vector.load %arg22[%c0_180, %c147] : memref<8x512xf32, #tpu.memory_space<vmem>>, vector<8x256xf32>
    %684 = vector.extract_strided_slice %407 {offsets = [0, 34], sizes = [8, 1], strides = [1, 1]} : vector<8x49xf32> to vector<8x1xf32>
    %685 = vector.broadcast %684 : vector<8x1xf32> to vector<8x256xf32>
    %686 = arith.mulf %685, %683 : vector<8x256xf32>
    %687 = arith.addf %682, %686 : vector<8x256xf32>
    %c0_181 = arith.constant 0 : index
    %c163 = arith.constant 163 : index
    %688 = vector.load %arg22[%c0_181, %c163] : memref<8x512xf32, #tpu.memory_space<vmem>>, vector<8x256xf32>
    %689 = vector.extract_strided_slice %407 {offsets = [0, 41], sizes = [8, 1], strides = [1, 1]} : vector<8x49xf32> to vector<8x1xf32>
    %690 = vector.broadcast %689 : vector<8x1xf32> to vector<8x256xf32>
    %691 = arith.mulf %690, %688 : vector<8x256xf32>
    %692 = arith.addf %687, %691 : vector<8x256xf32>
    %c0_182 = arith.constant 0 : index
    %c179 = arith.constant 179 : index
    %693 = vector.load %arg22[%c0_182, %c179] : memref<8x512xf32, #tpu.memory_space<vmem>>, vector<8x256xf32>
    %694 = vector.extract_strided_slice %407 {offsets = [0, 48], sizes = [8, 1], strides = [1, 1]} : vector<8x49xf32> to vector<8x1xf32>
    %695 = vector.broadcast %694 : vector<8x1xf32> to vector<8x256xf32>
    %696 = arith.mulf %695, %693 : vector<8x256xf32>
    %697 = arith.addf %692, %696 : vector<8x256xf32>
    %c0_i32_183 = arith.constant 0 : i32
    %698 = vector.broadcast %c0_i32_183 : i32 to vector<1x256xi32>
    %699 = arith.cmpi sge, %2, %698 : vector<1x256xi32>
    %c13_i32 = arith.constant 13 : i32
    %700 = vector.broadcast %c13_i32 : i32 to vector<1x256xi32>
    %701 = arith.cmpi slt, %2, %700 : vector<1x256xi32>
    %702 = arith.andi %699, %701 : vector<1x256xi1>
    %cst_184 = arith.constant 0.000000e+00 : f32
    %703 = vector.shape_cast %702 : vector<1x256xi1> to vector<1x256xi1>
    %704 = vector.broadcast %703 : vector<1x256xi1> to vector<8x256xi1>
    %705 = vector.broadcast %cst_184 : f32 to vector<8x256xf32>
    %706 = arith.select %704, %697, %705 : vector<8x256xi1>, vector<8x256xf32>
    %707 = arith.addf %663, %706 : vector<8x256xf32>
    %c0_185 = arith.constant 0 : index
    %c0_186 = arith.constant 0 : index
    %708 = vector.load %arg6[%c0_185, %c0_186] : memref<8x1xf32, #tpu.memory_space<vmem>>, vector<8x1xf32>
    %709 = vector.broadcast %708 : vector<8x1xf32> to vector<8x256xf32>
    %710 = arith.addf %707, %709 : vector<8x256xf32>
    %c0_187 = arith.constant 0 : index
    %c128_188 = arith.constant 128 : index
    %711 = vector.load %arg22[%c0_187, %c128_188] : memref<8x512xf32, #tpu.memory_space<vmem>>, vector<8x256xf32>
    tpu.vector_store %arg22[%c0_187, %c128_188], %710 {strides = array<i32>} : memref<8x512xf32, #tpu.memory_space<vmem>>, vector<8x256xf32>,
    %c0_189 = arith.constant 0 : index
    %c0_190 = arith.constant 0 : index
    %712 = vector.load %arg7[%c0_189, %c0_190] : memref<8x25xf32, #tpu.memory_space<vmem>>, vector<8x25xf32>
    %cst_191 = arith.constant 0.000000e+00 : f32
    %713 = vector.broadcast %cst_191 : f32 to vector<8x256xf32>
    %c0_192 = arith.constant 0 : index
    %c60_193 = arith.constant 60 : index
    %714 = vector.load %arg22[%c0_192, %c60_193] : memref<8x512xf32, #tpu.memory_space<vmem>>, vector<8x256xf32>
    %715 = vector.extract_strided_slice %712 {offsets = [0, 0], sizes = [8, 1], strides = [1, 1]} : vector<8x25xf32> to vector<8x1xf32>
    %716 = vector.broadcast %715 : vector<8x1xf32> to vector<8x256xf32>
    %717 = arith.mulf %716, %714 : vector<8x256xf32>
    %c0_194 = arith.constant 0 : index
    %c92_195 = arith.constant 92 : index
    %718 = vector.load %arg22[%c0_194, %c92_195] : memref<8x512xf32, #tpu.memory_space<vmem>>, vector<8x256xf32>
    %719 = vector.extract_strided_slice %712 {offsets = [0, 5], sizes = [8, 1], strides = [1, 1]} : vector<8x25xf32> to vector<8x1xf32>
    %720 = vector.broadcast %719 : vector<8x1xf32> to vector<8x256xf32>
    %721 = arith.mulf %720, %718 : vector<8x256xf32>
    %722 = arith.addf %717, %721 : vector<8x256xf32>
    %c0_196 = arith.constant 0 : index
    %c124_197 = arith.constant 124 : index
    %723 = vector.load %arg22[%c0_196, %c124_197] : memref<8x512xf32, #tpu.memory_space<vmem>>, vector<8x256xf32>
    %724 = vector.extract_strided_slice %712 {offsets = [0, 10], sizes = [8, 1], strides = [1, 1]} : vector<8x25xf32> to vector<8x1xf32>
    %725 = vector.broadcast %724 : vector<8x1xf32> to vector<8x256xf32>
    %726 = arith.mulf %725, %723 : vector<8x256xf32>
    %727 = arith.addf %722, %726 : vector<8x256xf32>
    %c0_198 = arith.constant 0 : index
    %c156_199 = arith.constant 156 : index
    %728 = vector.load %arg22[%c0_198, %c156_199] : memref<8x512xf32, #tpu.memory_space<vmem>>, vector<8x256xf32>
    %729 = vector.extract_strided_slice %712 {offsets = [0, 15], sizes = [8, 1], strides = [1, 1]} : vector<8x25xf32> to vector<8x1xf32>
    %730 = vector.broadcast %729 : vector<8x1xf32> to vector<8x256xf32>
    %731 = arith.mulf %730, %728 : vector<8x256xf32>
    %732 = arith.addf %727, %731 : vector<8x256xf32>
    %c0_200 = arith.constant 0 : index
    %c188_201 = arith.constant 188 : index
    %733 = vector.load %arg22[%c0_200, %c188_201] : memref<8x512xf32, #tpu.memory_space<vmem>>, vector<8x256xf32>
    %734 = vector.extract_strided_slice %712 {offsets = [0, 20], sizes = [8, 1], strides = [1, 1]} : vector<8x25xf32> to vector<8x1xf32>
    %735 = vector.broadcast %734 : vector<8x1xf32> to vector<8x256xf32>
    %736 = arith.mulf %735, %733 : vector<8x256xf32>
    %737 = arith.addf %732, %736 : vector<8x256xf32>
    %c4_i32_202 = arith.constant 4 : i32
    %738 = vector.broadcast %c4_i32_202 : i32 to vector<1x256xi32>
    %739 = arith.cmpi sge, %2, %738 : vector<1x256xi32>
    %c16_i32_203 = arith.constant 16 : i32
    %740 = vector.broadcast %c16_i32_203 : i32 to vector<1x256xi32>
    %741 = arith.cmpi slt, %2, %740 : vector<1x256xi32>
    %742 = arith.andi %739, %741 : vector<1x256xi1>
    %cst_204 = arith.constant 0.000000e+00 : f32
    %743 = vector.shape_cast %742 : vector<1x256xi1> to vector<1x256xi1>
    %744 = vector.broadcast %743 : vector<1x256xi1> to vector<8x256xi1>
    %745 = vector.broadcast %cst_204 : f32 to vector<8x256xf32>
    %746 = arith.select %744, %737, %745 : vector<8x256xi1>, vector<8x256xf32>
    %747 = arith.addf %713, %746 : vector<8x256xf32>
    %c0_205 = arith.constant 0 : index
    %c62_206 = arith.constant 62 : index
    %748 = vector.load %arg22[%c0_205, %c62_206] : memref<8x512xf32, #tpu.memory_space<vmem>>, vector<8x256xf32>
    %749 = vector.extract_strided_slice %712 {offsets = [0, 1], sizes = [8, 1], strides = [1, 1]} : vector<8x25xf32> to vector<8x1xf32>
    %750 = vector.broadcast %749 : vector<8x1xf32> to vector<8x256xf32>
    %751 = arith.mulf %750, %748 : vector<8x256xf32>
    %c0_207 = arith.constant 0 : index
    %c94_208 = arith.constant 94 : index
    %752 = vector.load %arg22[%c0_207, %c94_208] : memref<8x512xf32, #tpu.memory_space<vmem>>, vector<8x256xf32>
    %753 = vector.extract_strided_slice %712 {offsets = [0, 6], sizes = [8, 1], strides = [1, 1]} : vector<8x25xf32> to vector<8x1xf32>
    %754 = vector.broadcast %753 : vector<8x1xf32> to vector<8x256xf32>
    %755 = arith.mulf %754, %752 : vector<8x256xf32>
    %756 = arith.addf %751, %755 : vector<8x256xf32>
    %c0_209 = arith.constant 0 : index
    %c126_210 = arith.constant 126 : index
    %757 = vector.load %arg22[%c0_209, %c126_210] : memref<8x512xf32, #tpu.memory_space<vmem>>, vector<8x256xf32>
    %758 = vector.extract_strided_slice %712 {offsets = [0, 11], sizes = [8, 1], strides = [1, 1]} : vector<8x25xf32> to vector<8x1xf32>
    %759 = vector.broadcast %758 : vector<8x1xf32> to vector<8x256xf32>
    %760 = arith.mulf %759, %757 : vector<8x256xf32>
    %761 = arith.addf %756, %760 : vector<8x256xf32>
    %c0_211 = arith.constant 0 : index
    %c158_212 = arith.constant 158 : index
    %762 = vector.load %arg22[%c0_211, %c158_212] : memref<8x512xf32, #tpu.memory_space<vmem>>, vector<8x256xf32>
    %763 = vector.extract_strided_slice %712 {offsets = [0, 16], sizes = [8, 1], strides = [1, 1]} : vector<8x25xf32> to vector<8x1xf32>
    %764 = vector.broadcast %763 : vector<8x1xf32> to vector<8x256xf32>
    %765 = arith.mulf %764, %762 : vector<8x256xf32>
    %766 = arith.addf %761, %765 : vector<8x256xf32>
    %c0_213 = arith.constant 0 : index
    %c190_214 = arith.constant 190 : index
    %767 = vector.load %arg22[%c0_213, %c190_214] : memref<8x512xf32, #tpu.memory_space<vmem>>, vector<8x256xf32>
    %768 = vector.extract_strided_slice %712 {offsets = [0, 21], sizes = [8, 1], strides = [1, 1]} : vector<8x25xf32> to vector<8x1xf32>
    %769 = vector.broadcast %768 : vector<8x1xf32> to vector<8x256xf32>
    %770 = arith.mulf %769, %767 : vector<8x256xf32>
    %771 = arith.addf %766, %770 : vector<8x256xf32>
    %c2_i32_215 = arith.constant 2 : i32
    %772 = vector.broadcast %c2_i32_215 : i32 to vector<1x256xi32>
    %773 = arith.cmpi sge, %2, %772 : vector<1x256xi32>
    %c16_i32_216 = arith.constant 16 : i32
    %774 = vector.broadcast %c16_i32_216 : i32 to vector<1x256xi32>
    %775 = arith.cmpi slt, %2, %774 : vector<1x256xi32>
    %776 = arith.andi %773, %775 : vector<1x256xi1>
    %cst_217 = arith.constant 0.000000e+00 : f32
    %777 = vector.shape_cast %776 : vector<1x256xi1> to vector<1x256xi1>
    %778 = vector.broadcast %777 : vector<1x256xi1> to vector<8x256xi1>
    %779 = vector.broadcast %cst_217 : f32 to vector<8x256xf32>
    %780 = arith.select %778, %771, %779 : vector<8x256xi1>, vector<8x256xf32>
    %781 = arith.addf %747, %780 : vector<8x256xf32>
    %c0_218 = arith.constant 0 : index
    %c64_219 = arith.constant 64 : index
    %782 = vector.load %arg22[%c0_218, %c64_219] : memref<8x512xf32, #tpu.memory_space<vmem>>, vector<8x256xf32>
    %783 = vector.extract_strided_slice %712 {offsets = [0, 2], sizes = [8, 1], strides = [1, 1]} : vector<8x25xf32> to vector<8x1xf32>
    %784 = vector.broadcast %783 : vector<8x1xf32> to vector<8x256xf32>
    %785 = arith.mulf %784, %782 : vector<8x256xf32>
    %c0_220 = arith.constant 0 : index
    %c96_221 = arith.constant 96 : index
    %786 = vector.load %arg22[%c0_220, %c96_221] : memref<8x512xf32, #tpu.memory_space<vmem>>, vector<8x256xf32>
    %787 = vector.extract_strided_slice %712 {offsets = [0, 7], sizes = [8, 1], strides = [1, 1]} : vector<8x25xf32> to vector<8x1xf32>
    %788 = vector.broadcast %787 : vector<8x1xf32> to vector<8x256xf32>
    %789 = arith.mulf %788, %786 : vector<8x256xf32>
    %790 = arith.addf %785, %789 : vector<8x256xf32>
    %c0_222 = arith.constant 0 : index
    %c128_223 = arith.constant 128 : index
    %791 = vector.load %arg22[%c0_222, %c128_223] : memref<8x512xf32, #tpu.memory_space<vmem>>, vector<8x256xf32>
    %792 = vector.extract_strided_slice %712 {offsets = [0, 12], sizes = [8, 1], strides = [1, 1]} : vector<8x25xf32> to vector<8x1xf32>
    %793 = vector.broadcast %792 : vector<8x1xf32> to vector<8x256xf32>
    %794 = arith.mulf %793, %791 : vector<8x256xf32>
    %795 = arith.addf %790, %794 : vector<8x256xf32>
    %c0_224 = arith.constant 0 : index
    %c160_225 = arith.constant 160 : index
    %796 = vector.load %arg22[%c0_224, %c160_225] : memref<8x512xf32, #tpu.memory_space<vmem>>, vector<8x256xf32>
    %797 = vector.extract_strided_slice %712 {offsets = [0, 17], sizes = [8, 1], strides = [1, 1]} : vector<8x25xf32> to vector<8x1xf32>
    %798 = vector.broadcast %797 : vector<8x1xf32> to vector<8x256xf32>
    %799 = arith.mulf %798, %796 : vector<8x256xf32>
    %800 = arith.addf %795, %799 : vector<8x256xf32>
    %c0_226 = arith.constant 0 : index
    %c192_227 = arith.constant 192 : index
    %801 = vector.load %arg22[%c0_226, %c192_227] : memref<8x512xf32, #tpu.memory_space<vmem>>, vector<8x256xf32>
    %802 = vector.extract_strided_slice %712 {offsets = [0, 22], sizes = [8, 1], strides = [1, 1]} : vector<8x25xf32> to vector<8x1xf32>
    %803 = vector.broadcast %802 : vector<8x1xf32> to vector<8x256xf32>
    %804 = arith.mulf %803, %801 : vector<8x256xf32>
    %805 = arith.addf %800, %804 : vector<8x256xf32>
    %806 = arith.addf %781, %805 : vector<8x256xf32>
    %c0_228 = arith.constant 0 : index
    %c66_229 = arith.constant 66 : index
    %807 = vector.load %arg22[%c0_228, %c66_229] : memref<8x512xf32, #tpu.memory_space<vmem>>, vector<8x256xf32>
    %808 = vector.extract_strided_slice %712 {offsets = [0, 3], sizes = [8, 1], strides = [1, 1]} : vector<8x25xf32> to vector<8x1xf32>
    %809 = vector.broadcast %808 : vector<8x1xf32> to vector<8x256xf32>
    %810 = arith.mulf %809, %807 : vector<8x256xf32>
    %c0_230 = arith.constant 0 : index
    %c98_231 = arith.constant 98 : index
    %811 = vector.load %arg22[%c0_230, %c98_231] : memref<8x512xf32, #tpu.memory_space<vmem>>, vector<8x256xf32>
    %812 = vector.extract_strided_slice %712 {offsets = [0, 8], sizes = [8, 1], strides = [1, 1]} : vector<8x25xf32> to vector<8x1xf32>
    %813 = vector.broadcast %812 : vector<8x1xf32> to vector<8x256xf32>
    %814 = arith.mulf %813, %811 : vector<8x256xf32>
    %815 = arith.addf %810, %814 : vector<8x256xf32>
    %c0_232 = arith.constant 0 : index
    %c130_233 = arith.constant 130 : index
    %816 = vector.load %arg22[%c0_232, %c130_233] : memref<8x512xf32, #tpu.memory_space<vmem>>, vector<8x256xf32>
    %817 = vector.extract_strided_slice %712 {offsets = [0, 13], sizes = [8, 1], strides = [1, 1]} : vector<8x25xf32> to vector<8x1xf32>
    %818 = vector.broadcast %817 : vector<8x1xf32> to vector<8x256xf32>
    %819 = arith.mulf %818, %816 : vector<8x256xf32>
    %820 = arith.addf %815, %819 : vector<8x256xf32>
    %c0_234 = arith.constant 0 : index
    %c162_235 = arith.constant 162 : index
    %821 = vector.load %arg22[%c0_234, %c162_235] : memref<8x512xf32, #tpu.memory_space<vmem>>, vector<8x256xf32>
    %822 = vector.extract_strided_slice %712 {offsets = [0, 18], sizes = [8, 1], strides = [1, 1]} : vector<8x25xf32> to vector<8x1xf32>
    %823 = vector.broadcast %822 : vector<8x1xf32> to vector<8x256xf32>
    %824 = arith.mulf %823, %821 : vector<8x256xf32>
    %825 = arith.addf %820, %824 : vector<8x256xf32>
    %c0_236 = arith.constant 0 : index
    %c194_237 = arith.constant 194 : index
    %826 = vector.load %arg22[%c0_236, %c194_237] : memref<8x512xf32, #tpu.memory_space<vmem>>, vector<8x256xf32>
    %827 = vector.extract_strided_slice %712 {offsets = [0, 23], sizes = [8, 1], strides = [1, 1]} : vector<8x25xf32> to vector<8x1xf32>
    %828 = vector.broadcast %827 : vector<8x1xf32> to vector<8x256xf32>
    %829 = arith.mulf %828, %826 : vector<8x256xf32>
    %830 = arith.addf %825, %829 : vector<8x256xf32>
    %c0_i32_238 = arith.constant 0 : i32
    %831 = vector.broadcast %c0_i32_238 : i32 to vector<1x256xi32>
    %832 = arith.cmpi sge, %2, %831 : vector<1x256xi32>
    %c14_i32_239 = arith.constant 14 : i32
    %833 = vector.broadcast %c14_i32_239 : i32 to vector<1x256xi32>
    %834 = arith.cmpi slt, %2, %833 : vector<1x256xi32>
    %835 = arith.andi %832, %834 : vector<1x256xi1>
    %cst_240 = arith.constant 0.000000e+00 : f32
    %836 = vector.shape_cast %835 : vector<1x256xi1> to vector<1x256xi1>
    %837 = vector.broadcast %836 : vector<1x256xi1> to vector<8x256xi1>
    %838 = vector.broadcast %cst_240 : f32 to vector<8x256xf32>
    %839 = arith.select %837, %830, %838 : vector<8x256xi1>, vector<8x256xf32>
    %840 = arith.addf %806, %839 : vector<8x256xf32>
    %c0_241 = arith.constant 0 : index
    %c68_242 = arith.constant 68 : index
    %841 = vector.load %arg22[%c0_241, %c68_242] : memref<8x512xf32, #tpu.memory_space<vmem>>, vector<8x256xf32>
    %842 = vector.extract_strided_slice %712 {offsets = [0, 4], sizes = [8, 1], strides = [1, 1]} : vector<8x25xf32> to vector<8x1xf32>
    %843 = vector.broadcast %842 : vector<8x1xf32> to vector<8x256xf32>
    %844 = arith.mulf %843, %841 : vector<8x256xf32>
    %c0_243 = arith.constant 0 : index
    %c100_244 = arith.constant 100 : index
    %845 = vector.load %arg22[%c0_243, %c100_244] : memref<8x512xf32, #tpu.memory_space<vmem>>, vector<8x256xf32>
    %846 = vector.extract_strided_slice %712 {offsets = [0, 9], sizes = [8, 1], strides = [1, 1]} : vector<8x25xf32> to vector<8x1xf32>
    %847 = vector.broadcast %846 : vector<8x1xf32> to vector<8x256xf32>
    %848 = arith.mulf %847, %845 : vector<8x256xf32>
    %849 = arith.addf %844, %848 : vector<8x256xf32>
    %c0_245 = arith.constant 0 : index
    %c132_246 = arith.constant 132 : index
    %850 = vector.load %arg22[%c0_245, %c132_246] : memref<8x512xf32, #tpu.memory_space<vmem>>, vector<8x256xf32>
    %851 = vector.extract_strided_slice %712 {offsets = [0, 14], sizes = [8, 1], strides = [1, 1]} : vector<8x25xf32> to vector<8x1xf32>
    %852 = vector.broadcast %851 : vector<8x1xf32> to vector<8x256xf32>
    %853 = arith.mulf %852, %850 : vector<8x256xf32>
    %854 = arith.addf %849, %853 : vector<8x256xf32>
    %c0_247 = arith.constant 0 : index
    %c164_248 = arith.constant 164 : index
    %855 = vector.load %arg22[%c0_247, %c164_248] : memref<8x512xf32, #tpu.memory_space<vmem>>, vector<8x256xf32>
    %856 = vector.extract_strided_slice %712 {offsets = [0, 19], sizes = [8, 1], strides = [1, 1]} : vector<8x25xf32> to vector<8x1xf32>
    %857 = vector.broadcast %856 : vector<8x1xf32> to vector<8x256xf32>
    %858 = arith.mulf %857, %855 : vector<8x256xf32>
    %859 = arith.addf %854, %858 : vector<8x256xf32>
    %c0_249 = arith.constant 0 : index
    %c196_250 = arith.constant 196 : index
    %860 = vector.load %arg22[%c0_249, %c196_250] : memref<8x512xf32, #tpu.memory_space<vmem>>, vector<8x256xf32>
    %861 = vector.extract_strided_slice %712 {offsets = [0, 24], sizes = [8, 1], strides = [1, 1]} : vector<8x25xf32> to vector<8x1xf32>
    %862 = vector.broadcast %861 : vector<8x1xf32> to vector<8x256xf32>
    %863 = arith.mulf %862, %860 : vector<8x256xf32>
    %864 = arith.addf %859, %863 : vector<8x256xf32>
    %c0_i32_251 = arith.constant 0 : i32
    %865 = vector.broadcast %c0_i32_251 : i32 to vector<1x256xi32>
    %866 = arith.cmpi sge, %2, %865 : vector<1x256xi32>
    %c12_i32_252 = arith.constant 12 : i32
    %867 = vector.broadcast %c12_i32_252 : i32 to vector<1x256xi32>
    %868 = arith.cmpi slt, %2, %867 : vector<1x256xi32>
    %869 = arith.andi %866, %868 : vector<1x256xi1>
    %cst_253 = arith.constant 0.000000e+00 : f32
    %870 = vector.shape_cast %869 : vector<1x256xi1> to vector<1x256xi1>
    %871 = vector.broadcast %870 : vector<1x256xi1> to vector<8x256xi1>
    %872 = vector.broadcast %cst_253 : f32 to vector<8x256xf32>
    %873 = arith.select %871, %864, %872 : vector<8x256xi1>, vector<8x256xf32>
    %874 = arith.addf %840, %873 : vector<8x256xf32>
    %c0_254 = arith.constant 0 : index
    %c0_255 = arith.constant 0 : index
    %875 = vector.load %arg8[%c0_254, %c0_255] : memref<8x1xf32, #tpu.memory_space<vmem>>, vector<8x1xf32>
    %876 = vector.broadcast %875 : vector<8x1xf32> to vector<8x256xf32>
    %877 = arith.addf %874, %876 : vector<8x256xf32>
    %878 = vector.extract_strided_slice %710 {offsets = [0, 0], sizes = [1, 256], strides = [1, 1]} : vector<8x256xf32> to vector<1x256xf32>
    %879 = vector.extract_strided_slice %710 {offsets = [1, 0], sizes = [1, 256], strides = [1, 1]} : vector<8x256xf32> to vector<1x256xf32>
    %880 = vector.extract_strided_slice %710 {offsets = [2, 0], sizes = [1, 256], strides = [1, 1]} : vector<8x256xf32> to vector<1x256xf32>
    %881 = vector.extract_strided_slice %710 {offsets = [3, 0], sizes = [1, 256], strides = [1, 1]} : vector<8x256xf32> to vector<1x256xf32>
    %c0_256 = arith.constant 0 : index
    %882 = memref.load %arg15[%c0_256] : memref<8xf32, #tpu.memory_space<smem>>
    %883 = vector.broadcast %882 : f32 to vector<1x256xf32>
    %884 = arith.mulf %883, %878 : vector<1x256xf32>
    %c1_257 = arith.constant 1 : index
    %885 = memref.load %arg15[%c1_257] : memref<8xf32, #tpu.memory_space<smem>>
    %886 = vector.broadcast %885 : f32 to vector<1x256xf32>
    %887 = arith.mulf %886, %879 : vector<1x256xf32>
    %888 = arith.addf %884, %887 : vector<1x256xf32>
    %c2_258 = arith.constant 2 : index
    %889 = memref.load %arg15[%c2_258] : memref<8xf32, #tpu.memory_space<smem>>
    %890 = vector.broadcast %889 : f32 to vector<1x256xf32>
    %891 = arith.mulf %890, %880 : vector<1x256xf32>
    %892 = arith.addf %888, %891 : vector<1x256xf32>
    %c3_259 = arith.constant 3 : index
    %893 = memref.load %arg15[%c3_259] : memref<8xf32, #tpu.memory_space<smem>>
    %894 = vector.broadcast %893 : f32 to vector<1x256xf32>
    %895 = arith.mulf %894, %881 : vector<1x256xf32>
    %896 = arith.addf %892, %895 : vector<1x256xf32>
    %c0_260 = arith.constant 0 : index
    %897 = memref.load %arg16[%c0_260] : memref<2xf32, #tpu.memory_space<smem>>
    %898 = vector.broadcast %897 : f32 to vector<1x256xf32>
    %899 = arith.addf %896, %898 : vector<1x256xf32>
    %c4_261 = arith.constant 4 : index
    %900 = memref.load %arg15[%c4_261] : memref<8xf32, #tpu.memory_space<smem>>
    %901 = vector.broadcast %900 : f32 to vector<1x256xf32>
    %902 = arith.mulf %901, %878 : vector<1x256xf32>
    %c5_262 = arith.constant 5 : index
    %903 = memref.load %arg15[%c5_262] : memref<8xf32, #tpu.memory_space<smem>>
    %904 = vector.broadcast %903 : f32 to vector<1x256xf32>
    %905 = arith.mulf %904, %879 : vector<1x256xf32>
    %906 = arith.addf %902, %905 : vector<1x256xf32>
    %c6_263 = arith.constant 6 : index
    %907 = memref.load %arg15[%c6_263] : memref<8xf32, #tpu.memory_space<smem>>
    %908 = vector.broadcast %907 : f32 to vector<1x256xf32>
    %909 = arith.mulf %908, %880 : vector<1x256xf32>
    %910 = arith.addf %906, %909 : vector<1x256xf32>
    %c7_264 = arith.constant 7 : index
    %911 = memref.load %arg15[%c7_264] : memref<8xf32, #tpu.memory_space<smem>>
    %912 = vector.broadcast %911 : f32 to vector<1x256xf32>
    %913 = arith.mulf %912, %881 : vector<1x256xf32>
    %914 = arith.addf %910, %913 : vector<1x256xf32>
    %c1_265 = arith.constant 1 : index
    %915 = memref.load %arg16[%c1_265] : memref<2xf32, #tpu.memory_space<smem>>
    %916 = vector.broadcast %915 : f32 to vector<1x256xf32>
    %917 = arith.addf %914, %916 : vector<1x256xf32>
    %918 = vector.extract_strided_slice %710 {offsets = [4, 0], sizes = [1, 256], strides = [1, 1]} : vector<8x256xf32> to vector<1x256xf32>
    %919 = vector.extract_strided_slice %710 {offsets = [5, 0], sizes = [1, 256], strides = [1, 1]} : vector<8x256xf32> to vector<1x256xf32>
    %920 = vector.extract_strided_slice %710 {offsets = [6, 0], sizes = [1, 256], strides = [1, 1]} : vector<8x256xf32> to vector<1x256xf32>
    %921 = vector.extract_strided_slice %710 {offsets = [7, 0], sizes = [1, 256], strides = [1, 1]} : vector<8x256xf32> to vector<1x256xf32>
    %c0_266 = arith.constant 0 : index
    %922 = memref.load %arg15[%c0_266] : memref<8xf32, #tpu.memory_space<smem>>
    %923 = vector.broadcast %922 : f32 to vector<1x256xf32>
    %924 = arith.mulf %923, %918 : vector<1x256xf32>
    %c1_267 = arith.constant 1 : index
    %925 = memref.load %arg15[%c1_267] : memref<8xf32, #tpu.memory_space<smem>>
    %926 = vector.broadcast %925 : f32 to vector<1x256xf32>
    %927 = arith.mulf %926, %919 : vector<1x256xf32>
    %928 = arith.addf %924, %927 : vector<1x256xf32>
    %c2_268 = arith.constant 2 : index
    %929 = memref.load %arg15[%c2_268] : memref<8xf32, #tpu.memory_space<smem>>
    %930 = vector.broadcast %929 : f32 to vector<1x256xf32>
    %931 = arith.mulf %930, %920 : vector<1x256xf32>
    %932 = arith.addf %928, %931 : vector<1x256xf32>
    %c3_269 = arith.constant 3 : index
    %933 = memref.load %arg15[%c3_269] : memref<8xf32, #tpu.memory_space<smem>>
    %934 = vector.broadcast %933 : f32 to vector<1x256xf32>
    %935 = arith.mulf %934, %921 : vector<1x256xf32>
    %936 = arith.addf %932, %935 : vector<1x256xf32>
    %c0_270 = arith.constant 0 : index
    %937 = memref.load %arg16[%c0_270] : memref<2xf32, #tpu.memory_space<smem>>
    %938 = vector.broadcast %937 : f32 to vector<1x256xf32>
    %939 = arith.addf %936, %938 : vector<1x256xf32>
    %c4_271 = arith.constant 4 : index
    %940 = memref.load %arg15[%c4_271] : memref<8xf32, #tpu.memory_space<smem>>
    %941 = vector.broadcast %940 : f32 to vector<1x256xf32>
    %942 = arith.mulf %941, %918 : vector<1x256xf32>
    %c5_272 = arith.constant 5 : index
    %943 = memref.load %arg15[%c5_272] : memref<8xf32, #tpu.memory_space<smem>>
    %944 = vector.broadcast %943 : f32 to vector<1x256xf32>
    %945 = arith.mulf %944, %919 : vector<1x256xf32>
    %946 = arith.addf %942, %945 : vector<1x256xf32>
    %c6_273 = arith.constant 6 : index
    %947 = memref.load %arg15[%c6_273] : memref<8xf32, #tpu.memory_space<smem>>
    %948 = vector.broadcast %947 : f32 to vector<1x256xf32>
    %949 = arith.mulf %948, %920 : vector<1x256xf32>
    %950 = arith.addf %946, %949 : vector<1x256xf32>
    %c7_274 = arith.constant 7 : index
    %951 = memref.load %arg15[%c7_274] : memref<8xf32, #tpu.memory_space<smem>>
    %952 = vector.broadcast %951 : f32 to vector<1x256xf32>
    %953 = arith.mulf %952, %921 : vector<1x256xf32>
    %954 = arith.addf %950, %953 : vector<1x256xf32>
    %c1_275 = arith.constant 1 : index
    %955 = memref.load %arg16[%c1_275] : memref<2xf32, #tpu.memory_space<smem>>
    %956 = vector.broadcast %955 : f32 to vector<1x256xf32>
    %957 = arith.addf %954, %956 : vector<1x256xf32>
    %958 = tpu.concatenate %899, %917, %939, %957 in 0 : vector<1x256xf32>, vector<1x256xf32>, vector<1x256xf32>, vector<1x256xf32> -> vector<4x256xf32>
    %959 = vector.extract_strided_slice %877 {offsets = [0, 0], sizes = [1, 256], strides = [1, 1]} : vector<8x256xf32> to vector<1x256xf32>
    %960 = vector.extract_strided_slice %877 {offsets = [1, 0], sizes = [1, 256], strides = [1, 1]} : vector<8x256xf32> to vector<1x256xf32>
    %961 = vector.extract_strided_slice %877 {offsets = [2, 0], sizes = [1, 256], strides = [1, 1]} : vector<8x256xf32> to vector<1x256xf32>
    %962 = vector.extract_strided_slice %877 {offsets = [3, 0], sizes = [1, 256], strides = [1, 1]} : vector<8x256xf32> to vector<1x256xf32>
    %c0_276 = arith.constant 0 : index
    %963 = memref.load %arg17[%c0_276] : memref<8xf32, #tpu.memory_space<smem>>
    %964 = vector.broadcast %963 : f32 to vector<1x256xf32>
    %965 = arith.mulf %964, %959 : vector<1x256xf32>
    %c1_277 = arith.constant 1 : index
    %966 = memref.load %arg17[%c1_277] : memref<8xf32, #tpu.memory_space<smem>>
    %967 = vector.broadcast %966 : f32 to vector<1x256xf32>
    %968 = arith.mulf %967, %960 : vector<1x256xf32>
    %969 = arith.addf %965, %968 : vector<1x256xf32>
    %c2_278 = arith.constant 2 : index
    %970 = memref.load %arg17[%c2_278] : memref<8xf32, #tpu.memory_space<smem>>
    %971 = vector.broadcast %970 : f32 to vector<1x256xf32>
    %972 = arith.mulf %971, %961 : vector<1x256xf32>
    %973 = arith.addf %969, %972 : vector<1x256xf32>
    %c3_279 = arith.constant 3 : index
    %974 = memref.load %arg17[%c3_279] : memref<8xf32, #tpu.memory_space<smem>>
    %975 = vector.broadcast %974 : f32 to vector<1x256xf32>
    %976 = arith.mulf %975, %962 : vector<1x256xf32>
    %977 = arith.addf %973, %976 : vector<1x256xf32>
    %c0_280 = arith.constant 0 : index
    %978 = memref.load %arg18[%c0_280] : memref<2xf32, #tpu.memory_space<smem>>
    %979 = vector.broadcast %978 : f32 to vector<1x256xf32>
    %980 = arith.addf %977, %979 : vector<1x256xf32>
    %c4_281 = arith.constant 4 : index
    %981 = memref.load %arg17[%c4_281] : memref<8xf32, #tpu.memory_space<smem>>
    %982 = vector.broadcast %981 : f32 to vector<1x256xf32>
    %983 = arith.mulf %982, %959 : vector<1x256xf32>
    %c5_282 = arith.constant 5 : index
    %984 = memref.load %arg17[%c5_282] : memref<8xf32, #tpu.memory_space<smem>>
    %985 = vector.broadcast %984 : f32 to vector<1x256xf32>
    %986 = arith.mulf %985, %960 : vector<1x256xf32>
    %987 = arith.addf %983, %986 : vector<1x256xf32>
    %c6_283 = arith.constant 6 : index
    %988 = memref.load %arg17[%c6_283] : memref<8xf32, #tpu.memory_space<smem>>
    %989 = vector.broadcast %988 : f32 to vector<1x256xf32>
    %990 = arith.mulf %989, %961 : vector<1x256xf32>
    %991 = arith.addf %987, %990 : vector<1x256xf32>
    %c7_284 = arith.constant 7 : index
    %992 = memref.load %arg17[%c7_284] : memref<8xf32, #tpu.memory_space<smem>>
    %993 = vector.broadcast %992 : f32 to vector<1x256xf32>
    %994 = arith.mulf %993, %962 : vector<1x256xf32>
    %995 = arith.addf %991, %994 : vector<1x256xf32>
    %c1_285 = arith.constant 1 : index
    %996 = memref.load %arg18[%c1_285] : memref<2xf32, #tpu.memory_space<smem>>
    %997 = vector.broadcast %996 : f32 to vector<1x256xf32>
    %998 = arith.addf %995, %997 : vector<1x256xf32>
    %999 = vector.extract_strided_slice %877 {offsets = [4, 0], sizes = [1, 256], strides = [1, 1]} : vector<8x256xf32> to vector<1x256xf32>
    %1000 = vector.extract_strided_slice %877 {offsets = [5, 0], sizes = [1, 256], strides = [1, 1]} : vector<8x256xf32> to vector<1x256xf32>
    %1001 = vector.extract_strided_slice %877 {offsets = [6, 0], sizes = [1, 256], strides = [1, 1]} : vector<8x256xf32> to vector<1x256xf32>
    %1002 = vector.extract_strided_slice %877 {offsets = [7, 0], sizes = [1, 256], strides = [1, 1]} : vector<8x256xf32> to vector<1x256xf32>
    %c0_286 = arith.constant 0 : index
    %1003 = memref.load %arg17[%c0_286] : memref<8xf32, #tpu.memory_space<smem>>
    %1004 = vector.broadcast %1003 : f32 to vector<1x256xf32>
    %1005 = arith.mulf %1004, %999 : vector<1x256xf32>
    %c1_287 = arith.constant 1 : index
    %1006 = memref.load %arg17[%c1_287] : memref<8xf32, #tpu.memory_space<smem>>
    %1007 = vector.broadcast %1006 : f32 to vector<1x256xf32>
    %1008 = arith.mulf %1007, %1000 : vector<1x256xf32>
    %1009 = arith.addf %1005, %1008 : vector<1x256xf32>
    %c2_288 = arith.constant 2 : index
    %1010 = memref.load %arg17[%c2_288] : memref<8xf32, #tpu.memory_space<smem>>
    %1011 = vector.broadcast %1010 : f32 to vector<1x256xf32>
    %1012 = arith.mulf %1011, %1001 : vector<1x256xf32>
    %1013 = arith.addf %1009, %1012 : vector<1x256xf32>
    %c3_289 = arith.constant 3 : index
    %1014 = memref.load %arg17[%c3_289] : memref<8xf32, #tpu.memory_space<smem>>
    %1015 = vector.broadcast %1014 : f32 to vector<1x256xf32>
    %1016 = arith.mulf %1015, %1002 : vector<1x256xf32>
    %1017 = arith.addf %1013, %1016 : vector<1x256xf32>
    %c0_290 = arith.constant 0 : index
    %1018 = memref.load %arg18[%c0_290] : memref<2xf32, #tpu.memory_space<smem>>
    %1019 = vector.broadcast %1018 : f32 to vector<1x256xf32>
    %1020 = arith.addf %1017, %1019 : vector<1x256xf32>
    %c4_291 = arith.constant 4 : index
    %1021 = memref.load %arg17[%c4_291] : memref<8xf32, #tpu.memory_space<smem>>
    %1022 = vector.broadcast %1021 : f32 to vector<1x256xf32>
    %1023 = arith.mulf %1022, %999 : vector<1x256xf32>
    %c5_292 = arith.constant 5 : index
    %1024 = memref.load %arg17[%c5_292] : memref<8xf32, #tpu.memory_space<smem>>
    %1025 = vector.broadcast %1024 : f32 to vector<1x256xf32>
    %1026 = arith.mulf %1025, %1000 : vector<1x256xf32>
    %1027 = arith.addf %1023, %1026 : vector<1x256xf32>
    %c6_293 = arith.constant 6 : index
    %1028 = memref.load %arg17[%c6_293] : memref<8xf32, #tpu.memory_space<smem>>
    %1029 = vector.broadcast %1028 : f32 to vector<1x256xf32>
    %1030 = arith.mulf %1029, %1001 : vector<1x256xf32>
    %1031 = arith.addf %1027, %1030 : vector<1x256xf32>
    %c7_294 = arith.constant 7 : index
    %1032 = memref.load %arg17[%c7_294] : memref<8xf32, #tpu.memory_space<smem>>
    %1033 = vector.broadcast %1032 : f32 to vector<1x256xf32>
    %1034 = arith.mulf %1033, %1002 : vector<1x256xf32>
    %1035 = arith.addf %1031, %1034 : vector<1x256xf32>
    %c1_295 = arith.constant 1 : index
    %1036 = memref.load %arg18[%c1_295] : memref<2xf32, #tpu.memory_space<smem>>
    %1037 = vector.broadcast %1036 : f32 to vector<1x256xf32>
    %1038 = arith.addf %1035, %1037 : vector<1x256xf32>
    %1039 = tpu.concatenate %980, %998, %1020, %1038 in 0 : vector<1x256xf32>, vector<1x256xf32>, vector<1x256xf32>, vector<1x256xf32> -> vector<4x256xf32>
    %1040 = arith.addf %324, %405 : vector<4x256xf32>
    %1041 = arith.addf %1040, %958 : vector<4x256xf32>
    %1042 = arith.addf %1041, %1039 : vector<4x256xf32>
    %1043 = arith.maximumf %324, %405 : vector<4x256xf32>
    %1044 = arith.maximumf %958, %1039 : vector<4x256xf32>
    %1045 = arith.maximumf %1043, %1044 : vector<4x256xf32>
    %1046 = vector.extract_strided_slice %1042 {offsets = [0, 0], sizes = [1, 256], strides = [1, 1]} : vector<4x256xf32> to vector<1x256xf32>
    %1047 = vector.extract_strided_slice %1045 {offsets = [0, 0], sizes = [1, 256], strides = [1, 1]} : vector<4x256xf32> to vector<1x256xf32>
    %1048 = vector.extract_strided_slice %1042 {offsets = [1, 0], sizes = [1, 256], strides = [1, 1]} : vector<4x256xf32> to vector<1x256xf32>
    %1049 = arith.addf %1046, %1048 : vector<1x256xf32>
    %1050 = vector.extract_strided_slice %1045 {offsets = [1, 0], sizes = [1, 256], strides = [1, 1]} : vector<4x256xf32> to vector<1x256xf32>
    %1051 = arith.maximumf %1047, %1050 : vector<1x256xf32>
    %cst_296 = arith.constant 1.250000e-01 : f32
    %1052 = vector.broadcast %cst_296 : f32 to vector<1x256xf32>
    %1053 = arith.mulf %1049, %1052 : vector<1x256xf32>
    %1054 = vector.extract_strided_slice %1042 {offsets = [2, 0], sizes = [1, 256], strides = [1, 1]} : vector<4x256xf32> to vector<1x256xf32>
    %1055 = vector.extract_strided_slice %1045 {offsets = [2, 0], sizes = [1, 256], strides = [1, 1]} : vector<4x256xf32> to vector<1x256xf32>
    %1056 = vector.extract_strided_slice %1042 {offsets = [3, 0], sizes = [1, 256], strides = [1, 1]} : vector<4x256xf32> to vector<1x256xf32>
    %1057 = arith.addf %1054, %1056 : vector<1x256xf32>
    %1058 = vector.extract_strided_slice %1045 {offsets = [3, 0], sizes = [1, 256], strides = [1, 1]} : vector<4x256xf32> to vector<1x256xf32>
    %1059 = arith.maximumf %1055, %1058 : vector<1x256xf32>
    %cst_297 = arith.constant 1.250000e-01 : f32
    %1060 = vector.broadcast %cst_297 : f32 to vector<1x256xf32>
    %1061 = arith.mulf %1057, %1060 : vector<1x256xf32>
    %1062 = tpu.concatenate %1053, %1053, %1053, %1053, %1061, %1061, %1061, %1061 in 0 : vector<1x256xf32>, vector<1x256xf32>, vector<1x256xf32>, vector<1x256xf32>, vector<1x256xf32>, vector<1x256xf32>, vector<1x256xf32>, vector<1x256xf32> -> vector<8x256xf32>
    %1063 = tpu.concatenate %1051, %1051, %1051, %1051, %1059, %1059, %1059, %1059 in 0 : vector<1x256xf32>, vector<1x256xf32>, vector<1x256xf32>, vector<1x256xf32>, vector<1x256xf32>, vector<1x256xf32>, vector<1x256xf32>, vector<1x256xf32> -> vector<8x256xf32>
    %c0_298 = arith.constant 0 : index
    %c0_299 = arith.constant 0 : index
    %1064 = vector.load %arg9[%c0_298, %c0_299] : memref<8x98xf32, #tpu.memory_space<vmem>>, vector<8x98xf32>
    %cst_300 = arith.constant 0.000000e+00 : f32
    %1065 = vector.broadcast %cst_300 : f32 to vector<8x256xf32>
    %c0_301 = arith.constant 0 : index
    %c128_302 = arith.constant 128 : index
    %1066 = vector.load %arg22[%c0_301, %c128_302] : memref<8x512xf32, #tpu.memory_space<vmem>>, vector<8x256xf32>
    tpu.vector_store %arg22[%c0_301, %c128_302], %1062 {strides = array<i32>} : memref<8x512xf32, #tpu.memory_space<vmem>>, vector<8x256xf32>,
    %c0_303 = arith.constant 0 : index
    %c77_304 = arith.constant 77 : index
    %1067 = vector.load %arg22[%c0_303, %c77_304] : memref<8x512xf32, #tpu.memory_space<vmem>>, vector<8x256xf32>
    %1068 = vector.extract_strided_slice %1064 {offsets = [0, 0], sizes = [8, 1], strides = [1, 1]} : vector<8x98xf32> to vector<8x1xf32>
    %1069 = vector.broadcast %1068 : vector<8x1xf32> to vector<8x256xf32>
    %1070 = arith.mulf %1069, %1067 : vector<8x256xf32>
    %c0_305 = arith.constant 0 : index
    %c93_306 = arith.constant 93 : index
    %1071 = vector.load %arg22[%c0_305, %c93_306] : memref<8x512xf32, #tpu.memory_space<vmem>>, vector<8x256xf32>
    %1072 = vector.extract_strided_slice %1064 {offsets = [0, 7], sizes = [8, 1], strides = [1, 1]} : vector<8x98xf32> to vector<8x1xf32>
    %1073 = vector.broadcast %1072 : vector<8x1xf32> to vector<8x256xf32>
    %1074 = arith.mulf %1073, %1071 : vector<8x256xf32>
    %1075 = arith.addf %1070, %1074 : vector<8x256xf32>
    %c0_307 = arith.constant 0 : index
    %c109_308 = arith.constant 109 : index
    %1076 = vector.load %arg22[%c0_307, %c109_308] : memref<8x512xf32, #tpu.memory_space<vmem>>, vector<8x256xf32>
    %1077 = vector.extract_strided_slice %1064 {offsets = [0, 14], sizes = [8, 1], strides = [1, 1]} : vector<8x98xf32> to vector<8x1xf32>
    %1078 = vector.broadcast %1077 : vector<8x1xf32> to vector<8x256xf32>
    %1079 = arith.mulf %1078, %1076 : vector<8x256xf32>
    %1080 = arith.addf %1075, %1079 : vector<8x256xf32>
    %c0_309 = arith.constant 0 : index
    %c125_310 = arith.constant 125 : index
    %1081 = vector.load %arg22[%c0_309, %c125_310] : memref<8x512xf32, #tpu.memory_space<vmem>>, vector<8x256xf32>
    %1082 = vector.extract_strided_slice %1064 {offsets = [0, 21], sizes = [8, 1], strides = [1, 1]} : vector<8x98xf32> to vector<8x1xf32>
    %1083 = vector.broadcast %1082 : vector<8x1xf32> to vector<8x256xf32>
    %1084 = arith.mulf %1083, %1081 : vector<8x256xf32>
    %1085 = arith.addf %1080, %1084 : vector<8x256xf32>
    %c0_311 = arith.constant 0 : index
    %c141_312 = arith.constant 141 : index
    %1086 = vector.load %arg22[%c0_311, %c141_312] : memref<8x512xf32, #tpu.memory_space<vmem>>, vector<8x256xf32>
    %1087 = vector.extract_strided_slice %1064 {offsets = [0, 28], sizes = [8, 1], strides = [1, 1]} : vector<8x98xf32> to vector<8x1xf32>
    %1088 = vector.broadcast %1087 : vector<8x1xf32> to vector<8x256xf32>
    %1089 = arith.mulf %1088, %1086 : vector<8x256xf32>
    %1090 = arith.addf %1085, %1089 : vector<8x256xf32>
    %c0_313 = arith.constant 0 : index
    %c157_314 = arith.constant 157 : index
    %1091 = vector.load %arg22[%c0_313, %c157_314] : memref<8x512xf32, #tpu.memory_space<vmem>>, vector<8x256xf32>
    %1092 = vector.extract_strided_slice %1064 {offsets = [0, 35], sizes = [8, 1], strides = [1, 1]} : vector<8x98xf32> to vector<8x1xf32>
    %1093 = vector.broadcast %1092 : vector<8x1xf32> to vector<8x256xf32>
    %1094 = arith.mulf %1093, %1091 : vector<8x256xf32>
    %1095 = arith.addf %1090, %1094 : vector<8x256xf32>
    %c0_315 = arith.constant 0 : index
    %c173_316 = arith.constant 173 : index
    %1096 = vector.load %arg22[%c0_315, %c173_316] : memref<8x512xf32, #tpu.memory_space<vmem>>, vector<8x256xf32>
    %1097 = vector.extract_strided_slice %1064 {offsets = [0, 42], sizes = [8, 1], strides = [1, 1]} : vector<8x98xf32> to vector<8x1xf32>
    %1098 = vector.broadcast %1097 : vector<8x1xf32> to vector<8x256xf32>
    %1099 = arith.mulf %1098, %1096 : vector<8x256xf32>
    %1100 = arith.addf %1095, %1099 : vector<8x256xf32>
    %c3_i32_317 = arith.constant 3 : i32
    %1101 = vector.broadcast %c3_i32_317 : i32 to vector<1x256xi32>
    %1102 = arith.cmpi sge, %2, %1101 : vector<1x256xi32>
    %c16_i32_318 = arith.constant 16 : i32
    %1103 = vector.broadcast %c16_i32_318 : i32 to vector<1x256xi32>
    %1104 = arith.cmpi slt, %2, %1103 : vector<1x256xi32>
    %1105 = arith.andi %1102, %1104 : vector<1x256xi1>
    %cst_319 = arith.constant 0.000000e+00 : f32
    %1106 = vector.shape_cast %1105 : vector<1x256xi1> to vector<1x256xi1>
    %1107 = vector.broadcast %1106 : vector<1x256xi1> to vector<8x256xi1>
    %1108 = vector.broadcast %cst_319 : f32 to vector<8x256xf32>
    %1109 = arith.select %1107, %1100, %1108 : vector<8x256xi1>, vector<8x256xf32>
    %1110 = arith.addf %1065, %1109 : vector<8x256xf32>
    %c0_320 = arith.constant 0 : index
    %c78_321 = arith.constant 78 : index
    %1111 = vector.load %arg22[%c0_320, %c78_321] : memref<8x512xf32, #tpu.memory_space<vmem>>, vector<8x256xf32>
    %1112 = vector.extract_strided_slice %1064 {offsets = [0, 1], sizes = [8, 1], strides = [1, 1]} : vector<8x98xf32> to vector<8x1xf32>
    %1113 = vector.broadcast %1112 : vector<8x1xf32> to vector<8x256xf32>
    %1114 = arith.mulf %1113, %1111 : vector<8x256xf32>
    %c0_322 = arith.constant 0 : index
    %c94_323 = arith.constant 94 : index
    %1115 = vector.load %arg22[%c0_322, %c94_323] : memref<8x512xf32, #tpu.memory_space<vmem>>, vector<8x256xf32>
    %1116 = vector.extract_strided_slice %1064 {offsets = [0, 8], sizes = [8, 1], strides = [1, 1]} : vector<8x98xf32> to vector<8x1xf32>
    %1117 = vector.broadcast %1116 : vector<8x1xf32> to vector<8x256xf32>
    %1118 = arith.mulf %1117, %1115 : vector<8x256xf32>
    %1119 = arith.addf %1114, %1118 : vector<8x256xf32>
    %c0_324 = arith.constant 0 : index
    %c110_325 = arith.constant 110 : index
    %1120 = vector.load %arg22[%c0_324, %c110_325] : memref<8x512xf32, #tpu.memory_space<vmem>>, vector<8x256xf32>
    %1121 = vector.extract_strided_slice %1064 {offsets = [0, 15], sizes = [8, 1], strides = [1, 1]} : vector<8x98xf32> to vector<8x1xf32>
    %1122 = vector.broadcast %1121 : vector<8x1xf32> to vector<8x256xf32>
    %1123 = arith.mulf %1122, %1120 : vector<8x256xf32>
    %1124 = arith.addf %1119, %1123 : vector<8x256xf32>
    %c0_326 = arith.constant 0 : index
    %c126_327 = arith.constant 126 : index
    %1125 = vector.load %arg22[%c0_326, %c126_327] : memref<8x512xf32, #tpu.memory_space<vmem>>, vector<8x256xf32>
    %1126 = vector.extract_strided_slice %1064 {offsets = [0, 22], sizes = [8, 1], strides = [1, 1]} : vector<8x98xf32> to vector<8x1xf32>
    %1127 = vector.broadcast %1126 : vector<8x1xf32> to vector<8x256xf32>
    %1128 = arith.mulf %1127, %1125 : vector<8x256xf32>
    %1129 = arith.addf %1124, %1128 : vector<8x256xf32>
    %c0_328 = arith.constant 0 : index
    %c142_329 = arith.constant 142 : index
    %1130 = vector.load %arg22[%c0_328, %c142_329] : memref<8x512xf32, #tpu.memory_space<vmem>>, vector<8x256xf32>
    %1131 = vector.extract_strided_slice %1064 {offsets = [0, 29], sizes = [8, 1], strides = [1, 1]} : vector<8x98xf32> to vector<8x1xf32>
    %1132 = vector.broadcast %1131 : vector<8x1xf32> to vector<8x256xf32>
    %1133 = arith.mulf %1132, %1130 : vector<8x256xf32>
    %1134 = arith.addf %1129, %1133 : vector<8x256xf32>
    %c0_330 = arith.constant 0 : index
    %c158_331 = arith.constant 158 : index
    %1135 = vector.load %arg22[%c0_330, %c158_331] : memref<8x512xf32, #tpu.memory_space<vmem>>, vector<8x256xf32>
    %1136 = vector.extract_strided_slice %1064 {offsets = [0, 36], sizes = [8, 1], strides = [1, 1]} : vector<8x98xf32> to vector<8x1xf32>
    %1137 = vector.broadcast %1136 : vector<8x1xf32> to vector<8x256xf32>
    %1138 = arith.mulf %1137, %1135 : vector<8x256xf32>
    %1139 = arith.addf %1134, %1138 : vector<8x256xf32>
    %c0_332 = arith.constant 0 : index
    %c174_333 = arith.constant 174 : index
    %1140 = vector.load %arg22[%c0_332, %c174_333] : memref<8x512xf32, #tpu.memory_space<vmem>>, vector<8x256xf32>
    %1141 = vector.extract_strided_slice %1064 {offsets = [0, 43], sizes = [8, 1], strides = [1, 1]} : vector<8x98xf32> to vector<8x1xf32>
    %1142 = vector.broadcast %1141 : vector<8x1xf32> to vector<8x256xf32>
    %1143 = arith.mulf %1142, %1140 : vector<8x256xf32>
    %1144 = arith.addf %1139, %1143 : vector<8x256xf32>
    %c2_i32_334 = arith.constant 2 : i32
    %1145 = vector.broadcast %c2_i32_334 : i32 to vector<1x256xi32>
    %1146 = arith.cmpi sge, %2, %1145 : vector<1x256xi32>
    %c16_i32_335 = arith.constant 16 : i32
    %1147 = vector.broadcast %c16_i32_335 : i32 to vector<1x256xi32>
    %1148 = arith.cmpi slt, %2, %1147 : vector<1x256xi32>
    %1149 = arith.andi %1146, %1148 : vector<1x256xi1>
    %cst_336 = arith.constant 0.000000e+00 : f32
    %1150 = vector.shape_cast %1149 : vector<1x256xi1> to vector<1x256xi1>
    %1151 = vector.broadcast %1150 : vector<1x256xi1> to vector<8x256xi1>
    %1152 = vector.broadcast %cst_336 : f32 to vector<8x256xf32>
    %1153 = arith.select %1151, %1144, %1152 : vector<8x256xi1>, vector<8x256xf32>
    %1154 = arith.addf %1110, %1153 : vector<8x256xf32>
    %c0_337 = arith.constant 0 : index
    %c79_338 = arith.constant 79 : index
    %1155 = vector.load %arg22[%c0_337, %c79_338] : memref<8x512xf32, #tpu.memory_space<vmem>>, vector<8x256xf32>
    %1156 = vector.extract_strided_slice %1064 {offsets = [0, 2], sizes = [8, 1], strides = [1, 1]} : vector<8x98xf32> to vector<8x1xf32>
    %1157 = vector.broadcast %1156 : vector<8x1xf32> to vector<8x256xf32>
    %1158 = arith.mulf %1157, %1155 : vector<8x256xf32>
    %c0_339 = arith.constant 0 : index
    %c95_340 = arith.constant 95 : index
    %1159 = vector.load %arg22[%c0_339, %c95_340] : memref<8x512xf32, #tpu.memory_space<vmem>>, vector<8x256xf32>
    %1160 = vector.extract_strided_slice %1064 {offsets = [0, 9], sizes = [8, 1], strides = [1, 1]} : vector<8x98xf32> to vector<8x1xf32>
    %1161 = vector.broadcast %1160 : vector<8x1xf32> to vector<8x256xf32>
    %1162 = arith.mulf %1161, %1159 : vector<8x256xf32>
    %1163 = arith.addf %1158, %1162 : vector<8x256xf32>
    %c0_341 = arith.constant 0 : index
    %c111_342 = arith.constant 111 : index
    %1164 = vector.load %arg22[%c0_341, %c111_342] : memref<8x512xf32, #tpu.memory_space<vmem>>, vector<8x256xf32>
    %1165 = vector.extract_strided_slice %1064 {offsets = [0, 16], sizes = [8, 1], strides = [1, 1]} : vector<8x98xf32> to vector<8x1xf32>
    %1166 = vector.broadcast %1165 : vector<8x1xf32> to vector<8x256xf32>
    %1167 = arith.mulf %1166, %1164 : vector<8x256xf32>
    %1168 = arith.addf %1163, %1167 : vector<8x256xf32>
    %c0_343 = arith.constant 0 : index
    %c127_344 = arith.constant 127 : index
    %1169 = vector.load %arg22[%c0_343, %c127_344] : memref<8x512xf32, #tpu.memory_space<vmem>>, vector<8x256xf32>
    %1170 = vector.extract_strided_slice %1064 {offsets = [0, 23], sizes = [8, 1], strides = [1, 1]} : vector<8x98xf32> to vector<8x1xf32>
    %1171 = vector.broadcast %1170 : vector<8x1xf32> to vector<8x256xf32>
    %1172 = arith.mulf %1171, %1169 : vector<8x256xf32>
    %1173 = arith.addf %1168, %1172 : vector<8x256xf32>
    %c0_345 = arith.constant 0 : index
    %c143_346 = arith.constant 143 : index
    %1174 = vector.load %arg22[%c0_345, %c143_346] : memref<8x512xf32, #tpu.memory_space<vmem>>, vector<8x256xf32>
    %1175 = vector.extract_strided_slice %1064 {offsets = [0, 30], sizes = [8, 1], strides = [1, 1]} : vector<8x98xf32> to vector<8x1xf32>
    %1176 = vector.broadcast %1175 : vector<8x1xf32> to vector<8x256xf32>
    %1177 = arith.mulf %1176, %1174 : vector<8x256xf32>
    %1178 = arith.addf %1173, %1177 : vector<8x256xf32>
    %c0_347 = arith.constant 0 : index
    %c159_348 = arith.constant 159 : index
    %1179 = vector.load %arg22[%c0_347, %c159_348] : memref<8x512xf32, #tpu.memory_space<vmem>>, vector<8x256xf32>
    %1180 = vector.extract_strided_slice %1064 {offsets = [0, 37], sizes = [8, 1], strides = [1, 1]} : vector<8x98xf32> to vector<8x1xf32>
    %1181 = vector.broadcast %1180 : vector<8x1xf32> to vector<8x256xf32>
    %1182 = arith.mulf %1181, %1179 : vector<8x256xf32>
    %1183 = arith.addf %1178, %1182 : vector<8x256xf32>
    %c0_349 = arith.constant 0 : index
    %c175_350 = arith.constant 175 : index
    %1184 = vector.load %arg22[%c0_349, %c175_350] : memref<8x512xf32, #tpu.memory_space<vmem>>, vector<8x256xf32>
    %1185 = vector.extract_strided_slice %1064 {offsets = [0, 44], sizes = [8, 1], strides = [1, 1]} : vector<8x98xf32> to vector<8x1xf32>
    %1186 = vector.broadcast %1185 : vector<8x1xf32> to vector<8x256xf32>
    %1187 = arith.mulf %1186, %1184 : vector<8x256xf32>
    %1188 = arith.addf %1183, %1187 : vector<8x256xf32>
    %c1_i32_351 = arith.constant 1 : i32
    %1189 = vector.broadcast %c1_i32_351 : i32 to vector<1x256xi32>
    %1190 = arith.cmpi sge, %2, %1189 : vector<1x256xi32>
    %c16_i32_352 = arith.constant 16 : i32
    %1191 = vector.broadcast %c16_i32_352 : i32 to vector<1x256xi32>
    %1192 = arith.cmpi slt, %2, %1191 : vector<1x256xi32>
    %1193 = arith.andi %1190, %1192 : vector<1x256xi1>
    %cst_353 = arith.constant 0.000000e+00 : f32
    %1194 = vector.shape_cast %1193 : vector<1x256xi1> to vector<1x256xi1>
    %1195 = vector.broadcast %1194 : vector<1x256xi1> to vector<8x256xi1>
    %1196 = vector.broadcast %cst_353 : f32 to vector<8x256xf32>
    %1197 = arith.select %1195, %1188, %1196 : vector<8x256xi1>, vector<8x256xf32>
    %1198 = arith.addf %1154, %1197 : vector<8x256xf32>
    %c0_354 = arith.constant 0 : index
    %c80_355 = arith.constant 80 : index
    %1199 = vector.load %arg22[%c0_354, %c80_355] : memref<8x512xf32, #tpu.memory_space<vmem>>, vector<8x256xf32>
    %1200 = vector.extract_strided_slice %1064 {offsets = [0, 3], sizes = [8, 1], strides = [1, 1]} : vector<8x98xf32> to vector<8x1xf32>
    %1201 = vector.broadcast %1200 : vector<8x1xf32> to vector<8x256xf32>
    %1202 = arith.mulf %1201, %1199 : vector<8x256xf32>
    %c0_356 = arith.constant 0 : index
    %c96_357 = arith.constant 96 : index
    %1203 = vector.load %arg22[%c0_356, %c96_357] : memref<8x512xf32, #tpu.memory_space<vmem>>, vector<8x256xf32>
    %1204 = vector.extract_strided_slice %1064 {offsets = [0, 10], sizes = [8, 1], strides = [1, 1]} : vector<8x98xf32> to vector<8x1xf32>
    %1205 = vector.broadcast %1204 : vector<8x1xf32> to vector<8x256xf32>
    %1206 = arith.mulf %1205, %1203 : vector<8x256xf32>
    %1207 = arith.addf %1202, %1206 : vector<8x256xf32>
    %c0_358 = arith.constant 0 : index
    %c112_359 = arith.constant 112 : index
    %1208 = vector.load %arg22[%c0_358, %c112_359] : memref<8x512xf32, #tpu.memory_space<vmem>>, vector<8x256xf32>
    %1209 = vector.extract_strided_slice %1064 {offsets = [0, 17], sizes = [8, 1], strides = [1, 1]} : vector<8x98xf32> to vector<8x1xf32>
    %1210 = vector.broadcast %1209 : vector<8x1xf32> to vector<8x256xf32>
    %1211 = arith.mulf %1210, %1208 : vector<8x256xf32>
    %1212 = arith.addf %1207, %1211 : vector<8x256xf32>
    %c0_360 = arith.constant 0 : index
    %c128_361 = arith.constant 128 : index
    %1213 = vector.load %arg22[%c0_360, %c128_361] : memref<8x512xf32, #tpu.memory_space<vmem>>, vector<8x256xf32>
    %1214 = vector.extract_strided_slice %1064 {offsets = [0, 24], sizes = [8, 1], strides = [1, 1]} : vector<8x98xf32> to vector<8x1xf32>
    %1215 = vector.broadcast %1214 : vector<8x1xf32> to vector<8x256xf32>
    %1216 = arith.mulf %1215, %1213 : vector<8x256xf32>
    %1217 = arith.addf %1212, %1216 : vector<8x256xf32>
    %c0_362 = arith.constant 0 : index
    %c144_363 = arith.constant 144 : index
    %1218 = vector.load %arg22[%c0_362, %c144_363] : memref<8x512xf32, #tpu.memory_space<vmem>>, vector<8x256xf32>
    %1219 = vector.extract_strided_slice %1064 {offsets = [0, 31], sizes = [8, 1], strides = [1, 1]} : vector<8x98xf32> to vector<8x1xf32>
    %1220 = vector.broadcast %1219 : vector<8x1xf32> to vector<8x256xf32>
    %1221 = arith.mulf %1220, %1218 : vector<8x256xf32>
    %1222 = arith.addf %1217, %1221 : vector<8x256xf32>
    %c0_364 = arith.constant 0 : index
    %c160_365 = arith.constant 160 : index
    %1223 = vector.load %arg22[%c0_364, %c160_365] : memref<8x512xf32, #tpu.memory_space<vmem>>, vector<8x256xf32>
    %1224 = vector.extract_strided_slice %1064 {offsets = [0, 38], sizes = [8, 1], strides = [1, 1]} : vector<8x98xf32> to vector<8x1xf32>
    %1225 = vector.broadcast %1224 : vector<8x1xf32> to vector<8x256xf32>
    %1226 = arith.mulf %1225, %1223 : vector<8x256xf32>
    %1227 = arith.addf %1222, %1226 : vector<8x256xf32>
    %c0_366 = arith.constant 0 : index
    %c176_367 = arith.constant 176 : index
    %1228 = vector.load %arg22[%c0_366, %c176_367] : memref<8x512xf32, #tpu.memory_space<vmem>>, vector<8x256xf32>
    %1229 = vector.extract_strided_slice %1064 {offsets = [0, 45], sizes = [8, 1], strides = [1, 1]} : vector<8x98xf32> to vector<8x1xf32>
    %1230 = vector.broadcast %1229 : vector<8x1xf32> to vector<8x256xf32>
    %1231 = arith.mulf %1230, %1228 : vector<8x256xf32>
    %1232 = arith.addf %1227, %1231 : vector<8x256xf32>
    %1233 = arith.addf %1198, %1232 : vector<8x256xf32>
    %c0_368 = arith.constant 0 : index
    %c81_369 = arith.constant 81 : index
    %1234 = vector.load %arg22[%c0_368, %c81_369] : memref<8x512xf32, #tpu.memory_space<vmem>>, vector<8x256xf32>
    %1235 = vector.extract_strided_slice %1064 {offsets = [0, 4], sizes = [8, 1], strides = [1, 1]} : vector<8x98xf32> to vector<8x1xf32>
    %1236 = vector.broadcast %1235 : vector<8x1xf32> to vector<8x256xf32>
    %1237 = arith.mulf %1236, %1234 : vector<8x256xf32>
    %c0_370 = arith.constant 0 : index
    %c97_371 = arith.constant 97 : index
    %1238 = vector.load %arg22[%c0_370, %c97_371] : memref<8x512xf32, #tpu.memory_space<vmem>>, vector<8x256xf32>
    %1239 = vector.extract_strided_slice %1064 {offsets = [0, 11], sizes = [8, 1], strides = [1, 1]} : vector<8x98xf32> to vector<8x1xf32>
    %1240 = vector.broadcast %1239 : vector<8x1xf32> to vector<8x256xf32>
    %1241 = arith.mulf %1240, %1238 : vector<8x256xf32>
    %1242 = arith.addf %1237, %1241 : vector<8x256xf32>
    %c0_372 = arith.constant 0 : index
    %c113_373 = arith.constant 113 : index
    %1243 = vector.load %arg22[%c0_372, %c113_373] : memref<8x512xf32, #tpu.memory_space<vmem>>, vector<8x256xf32>
    %1244 = vector.extract_strided_slice %1064 {offsets = [0, 18], sizes = [8, 1], strides = [1, 1]} : vector<8x98xf32> to vector<8x1xf32>
    %1245 = vector.broadcast %1244 : vector<8x1xf32> to vector<8x256xf32>
    %1246 = arith.mulf %1245, %1243 : vector<8x256xf32>
    %1247 = arith.addf %1242, %1246 : vector<8x256xf32>
    %c0_374 = arith.constant 0 : index
    %c129_375 = arith.constant 129 : index
    %1248 = vector.load %arg22[%c0_374, %c129_375] : memref<8x512xf32, #tpu.memory_space<vmem>>, vector<8x256xf32>
    %1249 = vector.extract_strided_slice %1064 {offsets = [0, 25], sizes = [8, 1], strides = [1, 1]} : vector<8x98xf32> to vector<8x1xf32>
    %1250 = vector.broadcast %1249 : vector<8x1xf32> to vector<8x256xf32>
    %1251 = arith.mulf %1250, %1248 : vector<8x256xf32>
    %1252 = arith.addf %1247, %1251 : vector<8x256xf32>
    %c0_376 = arith.constant 0 : index
    %c145_377 = arith.constant 145 : index
    %1253 = vector.load %arg22[%c0_376, %c145_377] : memref<8x512xf32, #tpu.memory_space<vmem>>, vector<8x256xf32>
    %1254 = vector.extract_strided_slice %1064 {offsets = [0, 32], sizes = [8, 1], strides = [1, 1]} : vector<8x98xf32> to vector<8x1xf32>
    %1255 = vector.broadcast %1254 : vector<8x1xf32> to vector<8x256xf32>
    %1256 = arith.mulf %1255, %1253 : vector<8x256xf32>
    %1257 = arith.addf %1252, %1256 : vector<8x256xf32>
    %c0_378 = arith.constant 0 : index
    %c161_379 = arith.constant 161 : index
    %1258 = vector.load %arg22[%c0_378, %c161_379] : memref<8x512xf32, #tpu.memory_space<vmem>>, vector<8x256xf32>
    %1259 = vector.extract_strided_slice %1064 {offsets = [0, 39], sizes = [8, 1], strides = [1, 1]} : vector<8x98xf32> to vector<8x1xf32>
    %1260 = vector.broadcast %1259 : vector<8x1xf32> to vector<8x256xf32>
    %1261 = arith.mulf %1260, %1258 : vector<8x256xf32>
    %1262 = arith.addf %1257, %1261 : vector<8x256xf32>
    %c0_380 = arith.constant 0 : index
    %c177_381 = arith.constant 177 : index
    %1263 = vector.load %arg22[%c0_380, %c177_381] : memref<8x512xf32, #tpu.memory_space<vmem>>, vector<8x256xf32>
    %1264 = vector.extract_strided_slice %1064 {offsets = [0, 46], sizes = [8, 1], strides = [1, 1]} : vector<8x98xf32> to vector<8x1xf32>
    %1265 = vector.broadcast %1264 : vector<8x1xf32> to vector<8x256xf32>
    %1266 = arith.mulf %1265, %1263 : vector<8x256xf32>
    %1267 = arith.addf %1262, %1266 : vector<8x256xf32>
    %c0_i32_382 = arith.constant 0 : i32
    %1268 = vector.broadcast %c0_i32_382 : i32 to vector<1x256xi32>
    %1269 = arith.cmpi sge, %2, %1268 : vector<1x256xi32>
    %c15_i32_383 = arith.constant 15 : i32
    %1270 = vector.broadcast %c15_i32_383 : i32 to vector<1x256xi32>
    %1271 = arith.cmpi slt, %2, %1270 : vector<1x256xi32>
    %1272 = arith.andi %1269, %1271 : vector<1x256xi1>
    %cst_384 = arith.constant 0.000000e+00 : f32
    %1273 = vector.shape_cast %1272 : vector<1x256xi1> to vector<1x256xi1>
    %1274 = vector.broadcast %1273 : vector<1x256xi1> to vector<8x256xi1>
    %1275 = vector.broadcast %cst_384 : f32 to vector<8x256xf32>
    %1276 = arith.select %1274, %1267, %1275 : vector<8x256xi1>, vector<8x256xf32>
    %1277 = arith.addf %1233, %1276 : vector<8x256xf32>
    %c0_385 = arith.constant 0 : index
    %c82_386 = arith.constant 82 : index
    %1278 = vector.load %arg22[%c0_385, %c82_386] : memref<8x512xf32, #tpu.memory_space<vmem>>, vector<8x256xf32>
    %1279 = vector.extract_strided_slice %1064 {offsets = [0, 5], sizes = [8, 1], strides = [1, 1]} : vector<8x98xf32> to vector<8x1xf32>
    %1280 = vector.broadcast %1279 : vector<8x1xf32> to vector<8x256xf32>
    %1281 = arith.mulf %1280, %1278 : vector<8x256xf32>
    %c0_387 = arith.constant 0 : index
    %c98_388 = arith.constant 98 : index
    %1282 = vector.load %arg22[%c0_387, %c98_388] : memref<8x512xf32, #tpu.memory_space<vmem>>, vector<8x256xf32>
    %1283 = vector.extract_strided_slice %1064 {offsets = [0, 12], sizes = [8, 1], strides = [1, 1]} : vector<8x98xf32> to vector<8x1xf32>
    %1284 = vector.broadcast %1283 : vector<8x1xf32> to vector<8x256xf32>
    %1285 = arith.mulf %1284, %1282 : vector<8x256xf32>
    %1286 = arith.addf %1281, %1285 : vector<8x256xf32>
    %c0_389 = arith.constant 0 : index
    %c114_390 = arith.constant 114 : index
    %1287 = vector.load %arg22[%c0_389, %c114_390] : memref<8x512xf32, #tpu.memory_space<vmem>>, vector<8x256xf32>
    %1288 = vector.extract_strided_slice %1064 {offsets = [0, 19], sizes = [8, 1], strides = [1, 1]} : vector<8x98xf32> to vector<8x1xf32>
    %1289 = vector.broadcast %1288 : vector<8x1xf32> to vector<8x256xf32>
    %1290 = arith.mulf %1289, %1287 : vector<8x256xf32>
    %1291 = arith.addf %1286, %1290 : vector<8x256xf32>
    %c0_391 = arith.constant 0 : index
    %c130_392 = arith.constant 130 : index
    %1292 = vector.load %arg22[%c0_391, %c130_392] : memref<8x512xf32, #tpu.memory_space<vmem>>, vector<8x256xf32>
    %1293 = vector.extract_strided_slice %1064 {offsets = [0, 26], sizes = [8, 1], strides = [1, 1]} : vector<8x98xf32> to vector<8x1xf32>
    %1294 = vector.broadcast %1293 : vector<8x1xf32> to vector<8x256xf32>
    %1295 = arith.mulf %1294, %1292 : vector<8x256xf32>
    %1296 = arith.addf %1291, %1295 : vector<8x256xf32>
    %c0_393 = arith.constant 0 : index
    %c146_394 = arith.constant 146 : index
    %1297 = vector.load %arg22[%c0_393, %c146_394] : memref<8x512xf32, #tpu.memory_space<vmem>>, vector<8x256xf32>
    %1298 = vector.extract_strided_slice %1064 {offsets = [0, 33], sizes = [8, 1], strides = [1, 1]} : vector<8x98xf32> to vector<8x1xf32>
    %1299 = vector.broadcast %1298 : vector<8x1xf32> to vector<8x256xf32>
    %1300 = arith.mulf %1299, %1297 : vector<8x256xf32>
    %1301 = arith.addf %1296, %1300 : vector<8x256xf32>
    %c0_395 = arith.constant 0 : index
    %c162_396 = arith.constant 162 : index
    %1302 = vector.load %arg22[%c0_395, %c162_396] : memref<8x512xf32, #tpu.memory_space<vmem>>, vector<8x256xf32>
    %1303 = vector.extract_strided_slice %1064 {offsets = [0, 40], sizes = [8, 1], strides = [1, 1]} : vector<8x98xf32> to vector<8x1xf32>
    %1304 = vector.broadcast %1303 : vector<8x1xf32> to vector<8x256xf32>
    %1305 = arith.mulf %1304, %1302 : vector<8x256xf32>
    %1306 = arith.addf %1301, %1305 : vector<8x256xf32>
    %c0_397 = arith.constant 0 : index
    %c178_398 = arith.constant 178 : index
    %1307 = vector.load %arg22[%c0_397, %c178_398] : memref<8x512xf32, #tpu.memory_space<vmem>>, vector<8x256xf32>
    %1308 = vector.extract_strided_slice %1064 {offsets = [0, 47], sizes = [8, 1], strides = [1, 1]} : vector<8x98xf32> to vector<8x1xf32>
    %1309 = vector.broadcast %1308 : vector<8x1xf32> to vector<8x256xf32>
    %1310 = arith.mulf %1309, %1307 : vector<8x256xf32>
    %1311 = arith.addf %1306, %1310 : vector<8x256xf32>
    %c0_i32_399 = arith.constant 0 : i32
    %1312 = vector.broadcast %c0_i32_399 : i32 to vector<1x256xi32>
    %1313 = arith.cmpi sge, %2, %1312 : vector<1x256xi32>
    %c14_i32_400 = arith.constant 14 : i32
    %1314 = vector.broadcast %c14_i32_400 : i32 to vector<1x256xi32>
    %1315 = arith.cmpi slt, %2, %1314 : vector<1x256xi32>
    %1316 = arith.andi %1313, %1315 : vector<1x256xi1>
    %cst_401 = arith.constant 0.000000e+00 : f32
    %1317 = vector.shape_cast %1316 : vector<1x256xi1> to vector<1x256xi1>
    %1318 = vector.broadcast %1317 : vector<1x256xi1> to vector<8x256xi1>
    %1319 = vector.broadcast %cst_401 : f32 to vector<8x256xf32>
    %1320 = arith.select %1318, %1311, %1319 : vector<8x256xi1>, vector<8x256xf32>
    %1321 = arith.addf %1277, %1320 : vector<8x256xf32>
    %c0_402 = arith.constant 0 : index
    %c83_403 = arith.constant 83 : index
    %1322 = vector.load %arg22[%c0_402, %c83_403] : memref<8x512xf32, #tpu.memory_space<vmem>>, vector<8x256xf32>
    %1323 = vector.extract_strided_slice %1064 {offsets = [0, 6], sizes = [8, 1], strides = [1, 1]} : vector<8x98xf32> to vector<8x1xf32>
    %1324 = vector.broadcast %1323 : vector<8x1xf32> to vector<8x256xf32>
    %1325 = arith.mulf %1324, %1322 : vector<8x256xf32>
    %c0_404 = arith.constant 0 : index
    %c99_405 = arith.constant 99 : index
    %1326 = vector.load %arg22[%c0_404, %c99_405] : memref<8x512xf32, #tpu.memory_space<vmem>>, vector<8x256xf32>
    %1327 = vector.extract_strided_slice %1064 {offsets = [0, 13], sizes = [8, 1], strides = [1, 1]} : vector<8x98xf32> to vector<8x1xf32>
    %1328 = vector.broadcast %1327 : vector<8x1xf32> to vector<8x256xf32>
    %1329 = arith.mulf %1328, %1326 : vector<8x256xf32>
    %1330 = arith.addf %1325, %1329 : vector<8x256xf32>
    %c0_406 = arith.constant 0 : index
    %c115_407 = arith.constant 115 : index
    %1331 = vector.load %arg22[%c0_406, %c115_407] : memref<8x512xf32, #tpu.memory_space<vmem>>, vector<8x256xf32>
    %1332 = vector.extract_strided_slice %1064 {offsets = [0, 20], sizes = [8, 1], strides = [1, 1]} : vector<8x98xf32> to vector<8x1xf32>
    %1333 = vector.broadcast %1332 : vector<8x1xf32> to vector<8x256xf32>
    %1334 = arith.mulf %1333, %1331 : vector<8x256xf32>
    %1335 = arith.addf %1330, %1334 : vector<8x256xf32>
    %c0_408 = arith.constant 0 : index
    %c131_409 = arith.constant 131 : index
    %1336 = vector.load %arg22[%c0_408, %c131_409] : memref<8x512xf32, #tpu.memory_space<vmem>>, vector<8x256xf32>
    %1337 = vector.extract_strided_slice %1064 {offsets = [0, 27], sizes = [8, 1], strides = [1, 1]} : vector<8x98xf32> to vector<8x1xf32>
    %1338 = vector.broadcast %1337 : vector<8x1xf32> to vector<8x256xf32>
    %1339 = arith.mulf %1338, %1336 : vector<8x256xf32>
    %1340 = arith.addf %1335, %1339 : vector<8x256xf32>
    %c0_410 = arith.constant 0 : index
    %c147_411 = arith.constant 147 : index
    %1341 = vector.load %arg22[%c0_410, %c147_411] : memref<8x512xf32, #tpu.memory_space<vmem>>, vector<8x256xf32>
    %1342 = vector.extract_strided_slice %1064 {offsets = [0, 34], sizes = [8, 1], strides = [1, 1]} : vector<8x98xf32> to vector<8x1xf32>
    %1343 = vector.broadcast %1342 : vector<8x1xf32> to vector<8x256xf32>
    %1344 = arith.mulf %1343, %1341 : vector<8x256xf32>
    %1345 = arith.addf %1340, %1344 : vector<8x256xf32>
    %c0_412 = arith.constant 0 : index
    %c163_413 = arith.constant 163 : index
    %1346 = vector.load %arg22[%c0_412, %c163_413] : memref<8x512xf32, #tpu.memory_space<vmem>>, vector<8x256xf32>
    %1347 = vector.extract_strided_slice %1064 {offsets = [0, 41], sizes = [8, 1], strides = [1, 1]} : vector<8x98xf32> to vector<8x1xf32>
    %1348 = vector.broadcast %1347 : vector<8x1xf32> to vector<8x256xf32>
    %1349 = arith.mulf %1348, %1346 : vector<8x256xf32>
    %1350 = arith.addf %1345, %1349 : vector<8x256xf32>
    %c0_414 = arith.constant 0 : index
    %c179_415 = arith.constant 179 : index
    %1351 = vector.load %arg22[%c0_414, %c179_415] : memref<8x512xf32, #tpu.memory_space<vmem>>, vector<8x256xf32>
    %1352 = vector.extract_strided_slice %1064 {offsets = [0, 48], sizes = [8, 1], strides = [1, 1]} : vector<8x98xf32> to vector<8x1xf32>
    %1353 = vector.broadcast %1352 : vector<8x1xf32> to vector<8x256xf32>
    %1354 = arith.mulf %1353, %1351 : vector<8x256xf32>
    %1355 = arith.addf %1350, %1354 : vector<8x256xf32>
    %c0_i32_416 = arith.constant 0 : i32
    %1356 = vector.broadcast %c0_i32_416 : i32 to vector<1x256xi32>
    %1357 = arith.cmpi sge, %2, %1356 : vector<1x256xi32>
    %c13_i32_417 = arith.constant 13 : i32
    %1358 = vector.broadcast %c13_i32_417 : i32 to vector<1x256xi32>
    %1359 = arith.cmpi slt, %2, %1358 : vector<1x256xi32>
    %1360 = arith.andi %1357, %1359 : vector<1x256xi1>
    %cst_418 = arith.constant 0.000000e+00 : f32
    %1361 = vector.shape_cast %1360 : vector<1x256xi1> to vector<1x256xi1>
    %1362 = vector.broadcast %1361 : vector<1x256xi1> to vector<8x256xi1>
    %1363 = vector.broadcast %cst_418 : f32 to vector<8x256xf32>
    %1364 = arith.select %1362, %1355, %1363 : vector<8x256xi1>, vector<8x256xf32>
    %1365 = arith.addf %1321, %1364 : vector<8x256xf32>
    %c0_419 = arith.constant 0 : index
    %c128_420 = arith.constant 128 : index
    %1366 = vector.load %arg22[%c0_419, %c128_420] : memref<8x512xf32, #tpu.memory_space<vmem>>, vector<8x256xf32>
    tpu.vector_store %arg22[%c0_419, %c128_420], %1063 {strides = array<i32>} : memref<8x512xf32, #tpu.memory_space<vmem>>, vector<8x256xf32>,
    %c0_421 = arith.constant 0 : index
    %c77_422 = arith.constant 77 : index
    %1367 = vector.load %arg22[%c0_421, %c77_422] : memref<8x512xf32, #tpu.memory_space<vmem>>, vector<8x256xf32>
    %1368 = vector.extract_strided_slice %1064 {offsets = [0, 49], sizes = [8, 1], strides = [1, 1]} : vector<8x98xf32> to vector<8x1xf32>
    %1369 = vector.broadcast %1368 : vector<8x1xf32> to vector<8x256xf32>
    %1370 = arith.mulf %1369, %1367 : vector<8x256xf32>
    %c0_423 = arith.constant 0 : index
    %c93_424 = arith.constant 93 : index
    %1371 = vector.load %arg22[%c0_423, %c93_424] : memref<8x512xf32, #tpu.memory_space<vmem>>, vector<8x256xf32>
    %1372 = vector.extract_strided_slice %1064 {offsets = [0, 56], sizes = [8, 1], strides = [1, 1]} : vector<8x98xf32> to vector<8x1xf32>
    %1373 = vector.broadcast %1372 : vector<8x1xf32> to vector<8x256xf32>
    %1374 = arith.mulf %1373, %1371 : vector<8x256xf32>
    %1375 = arith.addf %1370, %1374 : vector<8x256xf32>
    %c0_425 = arith.constant 0 : index
    %c109_426 = arith.constant 109 : index
    %1376 = vector.load %arg22[%c0_425, %c109_426] : memref<8x512xf32, #tpu.memory_space<vmem>>, vector<8x256xf32>
    %1377 = vector.extract_strided_slice %1064 {offsets = [0, 63], sizes = [8, 1], strides = [1, 1]} : vector<8x98xf32> to vector<8x1xf32>
    %1378 = vector.broadcast %1377 : vector<8x1xf32> to vector<8x256xf32>
    %1379 = arith.mulf %1378, %1376 : vector<8x256xf32>
    %1380 = arith.addf %1375, %1379 : vector<8x256xf32>
    %c0_427 = arith.constant 0 : index
    %c125_428 = arith.constant 125 : index
    %1381 = vector.load %arg22[%c0_427, %c125_428] : memref<8x512xf32, #tpu.memory_space<vmem>>, vector<8x256xf32>
    %1382 = vector.extract_strided_slice %1064 {offsets = [0, 70], sizes = [8, 1], strides = [1, 1]} : vector<8x98xf32> to vector<8x1xf32>
    %1383 = vector.broadcast %1382 : vector<8x1xf32> to vector<8x256xf32>
    %1384 = arith.mulf %1383, %1381 : vector<8x256xf32>
    %1385 = arith.addf %1380, %1384 : vector<8x256xf32>
    %c0_429 = arith.constant 0 : index
    %c141_430 = arith.constant 141 : index
    %1386 = vector.load %arg22[%c0_429, %c141_430] : memref<8x512xf32, #tpu.memory_space<vmem>>, vector<8x256xf32>
    %1387 = vector.extract_strided_slice %1064 {offsets = [0, 77], sizes = [8, 1], strides = [1, 1]} : vector<8x98xf32> to vector<8x1xf32>
    %1388 = vector.broadcast %1387 : vector<8x1xf32> to vector<8x256xf32>
    %1389 = arith.mulf %1388, %1386 : vector<8x256xf32>
    %1390 = arith.addf %1385, %1389 : vector<8x256xf32>
    %c0_431 = arith.constant 0 : index
    %c157_432 = arith.constant 157 : index
    %1391 = vector.load %arg22[%c0_431, %c157_432] : memref<8x512xf32, #tpu.memory_space<vmem>>, vector<8x256xf32>
    %1392 = vector.extract_strided_slice %1064 {offsets = [0, 84], sizes = [8, 1], strides = [1, 1]} : vector<8x98xf32> to vector<8x1xf32>
    %1393 = vector.broadcast %1392 : vector<8x1xf32> to vector<8x256xf32>
    %1394 = arith.mulf %1393, %1391 : vector<8x256xf32>
    %1395 = arith.addf %1390, %1394 : vector<8x256xf32>
    %c0_433 = arith.constant 0 : index
    %c173_434 = arith.constant 173 : index
    %1396 = vector.load %arg22[%c0_433, %c173_434] : memref<8x512xf32, #tpu.memory_space<vmem>>, vector<8x256xf32>
    %1397 = vector.extract_strided_slice %1064 {offsets = [0, 91], sizes = [8, 1], strides = [1, 1]} : vector<8x98xf32> to vector<8x1xf32>
    %1398 = vector.broadcast %1397 : vector<8x1xf32> to vector<8x256xf32>
    %1399 = arith.mulf %1398, %1396 : vector<8x256xf32>
    %1400 = arith.addf %1395, %1399 : vector<8x256xf32>
    %c3_i32_435 = arith.constant 3 : i32
    %1401 = vector.broadcast %c3_i32_435 : i32 to vector<1x256xi32>
    %1402 = arith.cmpi sge, %2, %1401 : vector<1x256xi32>
    %c16_i32_436 = arith.constant 16 : i32
    %1403 = vector.broadcast %c16_i32_436 : i32 to vector<1x256xi32>
    %1404 = arith.cmpi slt, %2, %1403 : vector<1x256xi32>
    %1405 = arith.andi %1402, %1404 : vector<1x256xi1>
    %cst_437 = arith.constant 0.000000e+00 : f32
    %1406 = vector.shape_cast %1405 : vector<1x256xi1> to vector<1x256xi1>
    %1407 = vector.broadcast %1406 : vector<1x256xi1> to vector<8x256xi1>
    %1408 = vector.broadcast %cst_437 : f32 to vector<8x256xf32>
    %1409 = arith.select %1407, %1400, %1408 : vector<8x256xi1>, vector<8x256xf32>
    %1410 = arith.addf %1365, %1409 : vector<8x256xf32>
    %c0_438 = arith.constant 0 : index
    %c78_439 = arith.constant 78 : index
    %1411 = vector.load %arg22[%c0_438, %c78_439] : memref<8x512xf32, #tpu.memory_space<vmem>>, vector<8x256xf32>
    %1412 = vector.extract_strided_slice %1064 {offsets = [0, 50], sizes = [8, 1], strides = [1, 1]} : vector<8x98xf32> to vector<8x1xf32>
    %1413 = vector.broadcast %1412 : vector<8x1xf32> to vector<8x256xf32>
    %1414 = arith.mulf %1413, %1411 : vector<8x256xf32>
    %c0_440 = arith.constant 0 : index
    %c94_441 = arith.constant 94 : index
    %1415 = vector.load %arg22[%c0_440, %c94_441] : memref<8x512xf32, #tpu.memory_space<vmem>>, vector<8x256xf32>
    %1416 = vector.extract_strided_slice %1064 {offsets = [0, 57], sizes = [8, 1], strides = [1, 1]} : vector<8x98xf32> to vector<8x1xf32>
    %1417 = vector.broadcast %1416 : vector<8x1xf32> to vector<8x256xf32>
    %1418 = arith.mulf %1417, %1415 : vector<8x256xf32>
    %1419 = arith.addf %1414, %1418 : vector<8x256xf32>
    %c0_442 = arith.constant 0 : index
    %c110_443 = arith.constant 110 : index
    %1420 = vector.load %arg22[%c0_442, %c110_443] : memref<8x512xf32, #tpu.memory_space<vmem>>, vector<8x256xf32>
    %1421 = vector.extract_strided_slice %1064 {offsets = [0, 64], sizes = [8, 1], strides = [1, 1]} : vector<8x98xf32> to vector<8x1xf32>
    %1422 = vector.broadcast %1421 : vector<8x1xf32> to vector<8x256xf32>
    %1423 = arith.mulf %1422, %1420 : vector<8x256xf32>
    %1424 = arith.addf %1419, %1423 : vector<8x256xf32>
    %c0_444 = arith.constant 0 : index
    %c126_445 = arith.constant 126 : index
    %1425 = vector.load %arg22[%c0_444, %c126_445] : memref<8x512xf32, #tpu.memory_space<vmem>>, vector<8x256xf32>
    %1426 = vector.extract_strided_slice %1064 {offsets = [0, 71], sizes = [8, 1], strides = [1, 1]} : vector<8x98xf32> to vector<8x1xf32>
    %1427 = vector.broadcast %1426 : vector<8x1xf32> to vector<8x256xf32>
    %1428 = arith.mulf %1427, %1425 : vector<8x256xf32>
    %1429 = arith.addf %1424, %1428 : vector<8x256xf32>
    %c0_446 = arith.constant 0 : index
    %c142_447 = arith.constant 142 : index
    %1430 = vector.load %arg22[%c0_446, %c142_447] : memref<8x512xf32, #tpu.memory_space<vmem>>, vector<8x256xf32>
    %1431 = vector.extract_strided_slice %1064 {offsets = [0, 78], sizes = [8, 1], strides = [1, 1]} : vector<8x98xf32> to vector<8x1xf32>
    %1432 = vector.broadcast %1431 : vector<8x1xf32> to vector<8x256xf32>
    %1433 = arith.mulf %1432, %1430 : vector<8x256xf32>
    %1434 = arith.addf %1429, %1433 : vector<8x256xf32>
    %c0_448 = arith.constant 0 : index
    %c158_449 = arith.constant 158 : index
    %1435 = vector.load %arg22[%c0_448, %c158_449] : memref<8x512xf32, #tpu.memory_space<vmem>>, vector<8x256xf32>
    %1436 = vector.extract_strided_slice %1064 {offsets = [0, 85], sizes = [8, 1], strides = [1, 1]} : vector<8x98xf32> to vector<8x1xf32>
    %1437 = vector.broadcast %1436 : vector<8x1xf32> to vector<8x256xf32>
    %1438 = arith.mulf %1437, %1435 : vector<8x256xf32>
    %1439 = arith.addf %1434, %1438 : vector<8x256xf32>
    %c0_450 = arith.constant 0 : index
    %c174_451 = arith.constant 174 : index
    %1440 = vector.load %arg22[%c0_450, %c174_451] : memref<8x512xf32, #tpu.memory_space<vmem>>, vector<8x256xf32>
    %1441 = vector.extract_strided_slice %1064 {offsets = [0, 92], sizes = [8, 1], strides = [1, 1]} : vector<8x98xf32> to vector<8x1xf32>
    %1442 = vector.broadcast %1441 : vector<8x1xf32> to vector<8x256xf32>
    %1443 = arith.mulf %1442, %1440 : vector<8x256xf32>
    %1444 = arith.addf %1439, %1443 : vector<8x256xf32>
    %c2_i32_452 = arith.constant 2 : i32
    %1445 = vector.broadcast %c2_i32_452 : i32 to vector<1x256xi32>
    %1446 = arith.cmpi sge, %2, %1445 : vector<1x256xi32>
    %c16_i32_453 = arith.constant 16 : i32
    %1447 = vector.broadcast %c16_i32_453 : i32 to vector<1x256xi32>
    %1448 = arith.cmpi slt, %2, %1447 : vector<1x256xi32>
    %1449 = arith.andi %1446, %1448 : vector<1x256xi1>
    %cst_454 = arith.constant 0.000000e+00 : f32
    %1450 = vector.shape_cast %1449 : vector<1x256xi1> to vector<1x256xi1>
    %1451 = vector.broadcast %1450 : vector<1x256xi1> to vector<8x256xi1>
    %1452 = vector.broadcast %cst_454 : f32 to vector<8x256xf32>
    %1453 = arith.select %1451, %1444, %1452 : vector<8x256xi1>, vector<8x256xf32>
    %1454 = arith.addf %1410, %1453 : vector<8x256xf32>
    %c0_455 = arith.constant 0 : index
    %c79_456 = arith.constant 79 : index
    %1455 = vector.load %arg22[%c0_455, %c79_456] : memref<8x512xf32, #tpu.memory_space<vmem>>, vector<8x256xf32>
    %1456 = vector.extract_strided_slice %1064 {offsets = [0, 51], sizes = [8, 1], strides = [1, 1]} : vector<8x98xf32> to vector<8x1xf32>
    %1457 = vector.broadcast %1456 : vector<8x1xf32> to vector<8x256xf32>
    %1458 = arith.mulf %1457, %1455 : vector<8x256xf32>
    %c0_457 = arith.constant 0 : index
    %c95_458 = arith.constant 95 : index
    %1459 = vector.load %arg22[%c0_457, %c95_458] : memref<8x512xf32, #tpu.memory_space<vmem>>, vector<8x256xf32>
    %1460 = vector.extract_strided_slice %1064 {offsets = [0, 58], sizes = [8, 1], strides = [1, 1]} : vector<8x98xf32> to vector<8x1xf32>
    %1461 = vector.broadcast %1460 : vector<8x1xf32> to vector<8x256xf32>
    %1462 = arith.mulf %1461, %1459 : vector<8x256xf32>
    %1463 = arith.addf %1458, %1462 : vector<8x256xf32>
    %c0_459 = arith.constant 0 : index
    %c111_460 = arith.constant 111 : index
    %1464 = vector.load %arg22[%c0_459, %c111_460] : memref<8x512xf32, #tpu.memory_space<vmem>>, vector<8x256xf32>
    %1465 = vector.extract_strided_slice %1064 {offsets = [0, 65], sizes = [8, 1], strides = [1, 1]} : vector<8x98xf32> to vector<8x1xf32>
    %1466 = vector.broadcast %1465 : vector<8x1xf32> to vector<8x256xf32>
    %1467 = arith.mulf %1466, %1464 : vector<8x256xf32>
    %1468 = arith.addf %1463, %1467 : vector<8x256xf32>
    %c0_461 = arith.constant 0 : index
    %c127_462 = arith.constant 127 : index
    %1469 = vector.load %arg22[%c0_461, %c127_462] : memref<8x512xf32, #tpu.memory_space<vmem>>, vector<8x256xf32>
    %1470 = vector.extract_strided_slice %1064 {offsets = [0, 72], sizes = [8, 1], strides = [1, 1]} : vector<8x98xf32> to vector<8x1xf32>
    %1471 = vector.broadcast %1470 : vector<8x1xf32> to vector<8x256xf32>
    %1472 = arith.mulf %1471, %1469 : vector<8x256xf32>
    %1473 = arith.addf %1468, %1472 : vector<8x256xf32>
    %c0_463 = arith.constant 0 : index
    %c143_464 = arith.constant 143 : index
    %1474 = vector.load %arg22[%c0_463, %c143_464] : memref<8x512xf32, #tpu.memory_space<vmem>>, vector<8x256xf32>
    %1475 = vector.extract_strided_slice %1064 {offsets = [0, 79], sizes = [8, 1], strides = [1, 1]} : vector<8x98xf32> to vector<8x1xf32>
    %1476 = vector.broadcast %1475 : vector<8x1xf32> to vector<8x256xf32>
    %1477 = arith.mulf %1476, %1474 : vector<8x256xf32>
    %1478 = arith.addf %1473, %1477 : vector<8x256xf32>
    %c0_465 = arith.constant 0 : index
    %c159_466 = arith.constant 159 : index
    %1479 = vector.load %arg22[%c0_465, %c159_466] : memref<8x512xf32, #tpu.memory_space<vmem>>, vector<8x256xf32>
    %1480 = vector.extract_strided_slice %1064 {offsets = [0, 86], sizes = [8, 1], strides = [1, 1]} : vector<8x98xf32> to vector<8x1xf32>
    %1481 = vector.broadcast %1480 : vector<8x1xf32> to vector<8x256xf32>
    %1482 = arith.mulf %1481, %1479 : vector<8x256xf32>
    %1483 = arith.addf %1478, %1482 : vector<8x256xf32>
    %c0_467 = arith.constant 0 : index
    %c175_468 = arith.constant 175 : index
    %1484 = vector.load %arg22[%c0_467, %c175_468] : memref<8x512xf32, #tpu.memory_space<vmem>>, vector<8x256xf32>
    %1485 = vector.extract_strided_slice %1064 {offsets = [0, 93], sizes = [8, 1], strides = [1, 1]} : vector<8x98xf32> to vector<8x1xf32>
    %1486 = vector.broadcast %1485 : vector<8x1xf32> to vector<8x256xf32>
    %1487 = arith.mulf %1486, %1484 : vector<8x256xf32>
    %1488 = arith.addf %1483, %1487 : vector<8x256xf32>
    %c1_i32_469 = arith.constant 1 : i32
    %1489 = vector.broadcast %c1_i32_469 : i32 to vector<1x256xi32>
    %1490 = arith.cmpi sge, %2, %1489 : vector<1x256xi32>
    %c16_i32_470 = arith.constant 16 : i32
    %1491 = vector.broadcast %c16_i32_470 : i32 to vector<1x256xi32>
    %1492 = arith.cmpi slt, %2, %1491 : vector<1x256xi32>
    %1493 = arith.andi %1490, %1492 : vector<1x256xi1>
    %cst_471 = arith.constant 0.000000e+00 : f32
    %1494 = vector.shape_cast %1493 : vector<1x256xi1> to vector<1x256xi1>
    %1495 = vector.broadcast %1494 : vector<1x256xi1> to vector<8x256xi1>
    %1496 = vector.broadcast %cst_471 : f32 to vector<8x256xf32>
    %1497 = arith.select %1495, %1488, %1496 : vector<8x256xi1>, vector<8x256xf32>
    %1498 = arith.addf %1454, %1497 : vector<8x256xf32>
    %c0_472 = arith.constant 0 : index
    %c80_473 = arith.constant 80 : index
    %1499 = vector.load %arg22[%c0_472, %c80_473] : memref<8x512xf32, #tpu.memory_space<vmem>>, vector<8x256xf32>
    %1500 = vector.extract_strided_slice %1064 {offsets = [0, 52], sizes = [8, 1], strides = [1, 1]} : vector<8x98xf32> to vector<8x1xf32>
    %1501 = vector.broadcast %1500 : vector<8x1xf32> to vector<8x256xf32>
    %1502 = arith.mulf %1501, %1499 : vector<8x256xf32>
    %c0_474 = arith.constant 0 : index
    %c96_475 = arith.constant 96 : index
    %1503 = vector.load %arg22[%c0_474, %c96_475] : memref<8x512xf32, #tpu.memory_space<vmem>>, vector<8x256xf32>
    %1504 = vector.extract_strided_slice %1064 {offsets = [0, 59], sizes = [8, 1], strides = [1, 1]} : vector<8x98xf32> to vector<8x1xf32>
    %1505 = vector.broadcast %1504 : vector<8x1xf32> to vector<8x256xf32>
    %1506 = arith.mulf %1505, %1503 : vector<8x256xf32>
    %1507 = arith.addf %1502, %1506 : vector<8x256xf32>
    %c0_476 = arith.constant 0 : index
    %c112_477 = arith.constant 112 : index
    %1508 = vector.load %arg22[%c0_476, %c112_477] : memref<8x512xf32, #tpu.memory_space<vmem>>, vector<8x256xf32>
    %1509 = vector.extract_strided_slice %1064 {offsets = [0, 66], sizes = [8, 1], strides = [1, 1]} : vector<8x98xf32> to vector<8x1xf32>
    %1510 = vector.broadcast %1509 : vector<8x1xf32> to vector<8x256xf32>
    %1511 = arith.mulf %1510, %1508 : vector<8x256xf32>
    %1512 = arith.addf %1507, %1511 : vector<8x256xf32>
    %c0_478 = arith.constant 0 : index
    %c128_479 = arith.constant 128 : index
    %1513 = vector.load %arg22[%c0_478, %c128_479] : memref<8x512xf32, #tpu.memory_space<vmem>>, vector<8x256xf32>
    %1514 = vector.extract_strided_slice %1064 {offsets = [0, 73], sizes = [8, 1], strides = [1, 1]} : vector<8x98xf32> to vector<8x1xf32>
    %1515 = vector.broadcast %1514 : vector<8x1xf32> to vector<8x256xf32>
    %1516 = arith.mulf %1515, %1513 : vector<8x256xf32>
    %1517 = arith.addf %1512, %1516 : vector<8x256xf32>
    %c0_480 = arith.constant 0 : index
    %c144_481 = arith.constant 144 : index
    %1518 = vector.load %arg22[%c0_480, %c144_481] : memref<8x512xf32, #tpu.memory_space<vmem>>, vector<8x256xf32>
    %1519 = vector.extract_strided_slice %1064 {offsets = [0, 80], sizes = [8, 1], strides = [1, 1]} : vector<8x98xf32> to vector<8x1xf32>
    %1520 = vector.broadcast %1519 : vector<8x1xf32> to vector<8x256xf32>
    %1521 = arith.mulf %1520, %1518 : vector<8x256xf32>
    %1522 = arith.addf %1517, %1521 : vector<8x256xf32>
    %c0_482 = arith.constant 0 : index
    %c160_483 = arith.constant 160 : index
    %1523 = vector.load %arg22[%c0_482, %c160_483] : memref<8x512xf32, #tpu.memory_space<vmem>>, vector<8x256xf32>
    %1524 = vector.extract_strided_slice %1064 {offsets = [0, 87], sizes = [8, 1], strides = [1, 1]} : vector<8x98xf32> to vector<8x1xf32>
    %1525 = vector.broadcast %1524 : vector<8x1xf32> to vector<8x256xf32>
    %1526 = arith.mulf %1525, %1523 : vector<8x256xf32>
    %1527 = arith.addf %1522, %1526 : vector<8x256xf32>
    %c0_484 = arith.constant 0 : index
    %c176_485 = arith.constant 176 : index
    %1528 = vector.load %arg22[%c0_484, %c176_485] : memref<8x512xf32, #tpu.memory_space<vmem>>, vector<8x256xf32>
    %1529 = vector.extract_strided_slice %1064 {offsets = [0, 94], sizes = [8, 1], strides = [1, 1]} : vector<8x98xf32> to vector<8x1xf32>
    %1530 = vector.broadcast %1529 : vector<8x1xf32> to vector<8x256xf32>
    %1531 = arith.mulf %1530, %1528 : vector<8x256xf32>
    %1532 = arith.addf %1527, %1531 : vector<8x256xf32>
    %1533 = arith.addf %1498, %1532 : vector<8x256xf32>
    %c0_486 = arith.constant 0 : index
    %c81_487 = arith.constant 81 : index
    %1534 = vector.load %arg22[%c0_486, %c81_487] : memref<8x512xf32, #tpu.memory_space<vmem>>, vector<8x256xf32>
    %1535 = vector.extract_strided_slice %1064 {offsets = [0, 53], sizes = [8, 1], strides = [1, 1]} : vector<8x98xf32> to vector<8x1xf32>
    %1536 = vector.broadcast %1535 : vector<8x1xf32> to vector<8x256xf32>
    %1537 = arith.mulf %1536, %1534 : vector<8x256xf32>
    %c0_488 = arith.constant 0 : index
    %c97_489 = arith.constant 97 : index
    %1538 = vector.load %arg22[%c0_488, %c97_489] : memref<8x512xf32, #tpu.memory_space<vmem>>, vector<8x256xf32>
    %1539 = vector.extract_strided_slice %1064 {offsets = [0, 60], sizes = [8, 1], strides = [1, 1]} : vector<8x98xf32> to vector<8x1xf32>
    %1540 = vector.broadcast %1539 : vector<8x1xf32> to vector<8x256xf32>
    %1541 = arith.mulf %1540, %1538 : vector<8x256xf32>
    %1542 = arith.addf %1537, %1541 : vector<8x256xf32>
    %c0_490 = arith.constant 0 : index
    %c113_491 = arith.constant 113 : index
    %1543 = vector.load %arg22[%c0_490, %c113_491] : memref<8x512xf32, #tpu.memory_space<vmem>>, vector<8x256xf32>
    %1544 = vector.extract_strided_slice %1064 {offsets = [0, 67], sizes = [8, 1], strides = [1, 1]} : vector<8x98xf32> to vector<8x1xf32>
    %1545 = vector.broadcast %1544 : vector<8x1xf32> to vector<8x256xf32>
    %1546 = arith.mulf %1545, %1543 : vector<8x256xf32>
    %1547 = arith.addf %1542, %1546 : vector<8x256xf32>
    %c0_492 = arith.constant 0 : index
    %c129_493 = arith.constant 129 : index
    %1548 = vector.load %arg22[%c0_492, %c129_493] : memref<8x512xf32, #tpu.memory_space<vmem>>, vector<8x256xf32>
    %1549 = vector.extract_strided_slice %1064 {offsets = [0, 74], sizes = [8, 1], strides = [1, 1]} : vector<8x98xf32> to vector<8x1xf32>
    %1550 = vector.broadcast %1549 : vector<8x1xf32> to vector<8x256xf32>
    %1551 = arith.mulf %1550, %1548 : vector<8x256xf32>
    %1552 = arith.addf %1547, %1551 : vector<8x256xf32>
    %c0_494 = arith.constant 0 : index
    %c145_495 = arith.constant 145 : index
    %1553 = vector.load %arg22[%c0_494, %c145_495] : memref<8x512xf32, #tpu.memory_space<vmem>>, vector<8x256xf32>
    %1554 = vector.extract_strided_slice %1064 {offsets = [0, 81], sizes = [8, 1], strides = [1, 1]} : vector<8x98xf32> to vector<8x1xf32>
    %1555 = vector.broadcast %1554 : vector<8x1xf32> to vector<8x256xf32>
    %1556 = arith.mulf %1555, %1553 : vector<8x256xf32>
    %1557 = arith.addf %1552, %1556 : vector<8x256xf32>
    %c0_496 = arith.constant 0 : index
    %c161_497 = arith.constant 161 : index
    %1558 = vector.load %arg22[%c0_496, %c161_497] : memref<8x512xf32, #tpu.memory_space<vmem>>, vector<8x256xf32>
    %1559 = vector.extract_strided_slice %1064 {offsets = [0, 88], sizes = [8, 1], strides = [1, 1]} : vector<8x98xf32> to vector<8x1xf32>
    %1560 = vector.broadcast %1559 : vector<8x1xf32> to vector<8x256xf32>
    %1561 = arith.mulf %1560, %1558 : vector<8x256xf32>
    %1562 = arith.addf %1557, %1561 : vector<8x256xf32>
    %c0_498 = arith.constant 0 : index
    %c177_499 = arith.constant 177 : index
    %1563 = vector.load %arg22[%c0_498, %c177_499] : memref<8x512xf32, #tpu.memory_space<vmem>>, vector<8x256xf32>
    %1564 = vector.extract_strided_slice %1064 {offsets = [0, 95], sizes = [8, 1], strides = [1, 1]} : vector<8x98xf32> to vector<8x1xf32>
    %1565 = vector.broadcast %1564 : vector<8x1xf32> to vector<8x256xf32>
    %1566 = arith.mulf %1565, %1563 : vector<8x256xf32>
    %1567 = arith.addf %1562, %1566 : vector<8x256xf32>
    %c0_i32_500 = arith.constant 0 : i32
    %1568 = vector.broadcast %c0_i32_500 : i32 to vector<1x256xi32>
    %1569 = arith.cmpi sge, %2, %1568 : vector<1x256xi32>
    %c15_i32_501 = arith.constant 15 : i32
    %1570 = vector.broadcast %c15_i32_501 : i32 to vector<1x256xi32>
    %1571 = arith.cmpi slt, %2, %1570 : vector<1x256xi32>
    %1572 = arith.andi %1569, %1571 : vector<1x256xi1>
    %cst_502 = arith.constant 0.000000e+00 : f32
    %1573 = vector.shape_cast %1572 : vector<1x256xi1> to vector<1x256xi1>
    %1574 = vector.broadcast %1573 : vector<1x256xi1> to vector<8x256xi1>
    %1575 = vector.broadcast %cst_502 : f32 to vector<8x256xf32>
    %1576 = arith.select %1574, %1567, %1575 : vector<8x256xi1>, vector<8x256xf32>
    %1577 = arith.addf %1533, %1576 : vector<8x256xf32>
    %c0_503 = arith.constant 0 : index
    %c82_504 = arith.constant 82 : index
    %1578 = vector.load %arg22[%c0_503, %c82_504] : memref<8x512xf32, #tpu.memory_space<vmem>>, vector<8x256xf32>
    %1579 = vector.extract_strided_slice %1064 {offsets = [0, 54], sizes = [8, 1], strides = [1, 1]} : vector<8x98xf32> to vector<8x1xf32>
    %1580 = vector.broadcast %1579 : vector<8x1xf32> to vector<8x256xf32>
    %1581 = arith.mulf %1580, %1578 : vector<8x256xf32>
    %c0_505 = arith.constant 0 : index
    %c98_506 = arith.constant 98 : index
    %1582 = vector.load %arg22[%c0_505, %c98_506] : memref<8x512xf32, #tpu.memory_space<vmem>>, vector<8x256xf32>
    %1583 = vector.extract_strided_slice %1064 {offsets = [0, 61], sizes = [8, 1], strides = [1, 1]} : vector<8x98xf32> to vector<8x1xf32>
    %1584 = vector.broadcast %1583 : vector<8x1xf32> to vector<8x256xf32>
    %1585 = arith.mulf %1584, %1582 : vector<8x256xf32>
    %1586 = arith.addf %1581, %1585 : vector<8x256xf32>
    %c0_507 = arith.constant 0 : index
    %c114_508 = arith.constant 114 : index
    %1587 = vector.load %arg22[%c0_507, %c114_508] : memref<8x512xf32, #tpu.memory_space<vmem>>, vector<8x256xf32>
    %1588 = vector.extract_strided_slice %1064 {offsets = [0, 68], sizes = [8, 1], strides = [1, 1]} : vector<8x98xf32> to vector<8x1xf32>
    %1589 = vector.broadcast %1588 : vector<8x1xf32> to vector<8x256xf32>
    %1590 = arith.mulf %1589, %1587 : vector<8x256xf32>
    %1591 = arith.addf %1586, %1590 : vector<8x256xf32>
    %c0_509 = arith.constant 0 : index
    %c130_510 = arith.constant 130 : index
    %1592 = vector.load %arg22[%c0_509, %c130_510] : memref<8x512xf32, #tpu.memory_space<vmem>>, vector<8x256xf32>
    %1593 = vector.extract_strided_slice %1064 {offsets = [0, 75], sizes = [8, 1], strides = [1, 1]} : vector<8x98xf32> to vector<8x1xf32>
    %1594 = vector.broadcast %1593 : vector<8x1xf32> to vector<8x256xf32>
    %1595 = arith.mulf %1594, %1592 : vector<8x256xf32>
    %1596 = arith.addf %1591, %1595 : vector<8x256xf32>
    %c0_511 = arith.constant 0 : index
    %c146_512 = arith.constant 146 : index
    %1597 = vector.load %arg22[%c0_511, %c146_512] : memref<8x512xf32, #tpu.memory_space<vmem>>, vector<8x256xf32>
    %1598 = vector.extract_strided_slice %1064 {offsets = [0, 82], sizes = [8, 1], strides = [1, 1]} : vector<8x98xf32> to vector<8x1xf32>
    %1599 = vector.broadcast %1598 : vector<8x1xf32> to vector<8x256xf32>
    %1600 = arith.mulf %1599, %1597 : vector<8x256xf32>
    %1601 = arith.addf %1596, %1600 : vector<8x256xf32>
    %c0_513 = arith.constant 0 : index
    %c162_514 = arith.constant 162 : index
    %1602 = vector.load %arg22[%c0_513, %c162_514] : memref<8x512xf32, #tpu.memory_space<vmem>>, vector<8x256xf32>
    %1603 = vector.extract_strided_slice %1064 {offsets = [0, 89], sizes = [8, 1], strides = [1, 1]} : vector<8x98xf32> to vector<8x1xf32>
    %1604 = vector.broadcast %1603 : vector<8x1xf32> to vector<8x256xf32>
    %1605 = arith.mulf %1604, %1602 : vector<8x256xf32>
    %1606 = arith.addf %1601, %1605 : vector<8x256xf32>
    %c0_515 = arith.constant 0 : index
    %c178_516 = arith.constant 178 : index
    %1607 = vector.load %arg22[%c0_515, %c178_516] : memref<8x512xf32, #tpu.memory_space<vmem>>, vector<8x256xf32>
    %1608 = vector.extract_strided_slice %1064 {offsets = [0, 96], sizes = [8, 1], strides = [1, 1]} : vector<8x98xf32> to vector<8x1xf32>
    %1609 = vector.broadcast %1608 : vector<8x1xf32> to vector<8x256xf32>
    %1610 = arith.mulf %1609, %1607 : vector<8x256xf32>
    %1611 = arith.addf %1606, %1610 : vector<8x256xf32>
    %c0_i32_517 = arith.constant 0 : i32
    %1612 = vector.broadcast %c0_i32_517 : i32 to vector<1x256xi32>
    %1613 = arith.cmpi sge, %2, %1612 : vector<1x256xi32>
    %c14_i32_518 = arith.constant 14 : i32
    %1614 = vector.broadcast %c14_i32_518 : i32 to vector<1x256xi32>
    %1615 = arith.cmpi slt, %2, %1614 : vector<1x256xi32>
    %1616 = arith.andi %1613, %1615 : vector<1x256xi1>
    %cst_519 = arith.constant 0.000000e+00 : f32
    %1617 = vector.shape_cast %1616 : vector<1x256xi1> to vector<1x256xi1>
    %1618 = vector.broadcast %1617 : vector<1x256xi1> to vector<8x256xi1>
    %1619 = vector.broadcast %cst_519 : f32 to vector<8x256xf32>
    %1620 = arith.select %1618, %1611, %1619 : vector<8x256xi1>, vector<8x256xf32>
    %1621 = arith.addf %1577, %1620 : vector<8x256xf32>
    %c0_520 = arith.constant 0 : index
    %c83_521 = arith.constant 83 : index
    %1622 = vector.load %arg22[%c0_520, %c83_521] : memref<8x512xf32, #tpu.memory_space<vmem>>, vector<8x256xf32>
    %1623 = vector.extract_strided_slice %1064 {offsets = [0, 55], sizes = [8, 1], strides = [1, 1]} : vector<8x98xf32> to vector<8x1xf32>
    %1624 = vector.broadcast %1623 : vector<8x1xf32> to vector<8x256xf32>
    %1625 = arith.mulf %1624, %1622 : vector<8x256xf32>
    %c0_522 = arith.constant 0 : index
    %c99_523 = arith.constant 99 : index
    %1626 = vector.load %arg22[%c0_522, %c99_523] : memref<8x512xf32, #tpu.memory_space<vmem>>, vector<8x256xf32>
    %1627 = vector.extract_strided_slice %1064 {offsets = [0, 62], sizes = [8, 1], strides = [1, 1]} : vector<8x98xf32> to vector<8x1xf32>
    %1628 = vector.broadcast %1627 : vector<8x1xf32> to vector<8x256xf32>
    %1629 = arith.mulf %1628, %1626 : vector<8x256xf32>
    %1630 = arith.addf %1625, %1629 : vector<8x256xf32>
    %c0_524 = arith.constant 0 : index
    %c115_525 = arith.constant 115 : index
    %1631 = vector.load %arg22[%c0_524, %c115_525] : memref<8x512xf32, #tpu.memory_space<vmem>>, vector<8x256xf32>
    %1632 = vector.extract_strided_slice %1064 {offsets = [0, 69], sizes = [8, 1], strides = [1, 1]} : vector<8x98xf32> to vector<8x1xf32>
    %1633 = vector.broadcast %1632 : vector<8x1xf32> to vector<8x256xf32>
    %1634 = arith.mulf %1633, %1631 : vector<8x256xf32>
    %1635 = arith.addf %1630, %1634 : vector<8x256xf32>
    %c0_526 = arith.constant 0 : index
    %c131_527 = arith.constant 131 : index
    %1636 = vector.load %arg22[%c0_526, %c131_527] : memref<8x512xf32, #tpu.memory_space<vmem>>, vector<8x256xf32>
    %1637 = vector.extract_strided_slice %1064 {offsets = [0, 76], sizes = [8, 1], strides = [1, 1]} : vector<8x98xf32> to vector<8x1xf32>
    %1638 = vector.broadcast %1637 : vector<8x1xf32> to vector<8x256xf32>
    %1639 = arith.mulf %1638, %1636 : vector<8x256xf32>
    %1640 = arith.addf %1635, %1639 : vector<8x256xf32>
    %c0_528 = arith.constant 0 : index
    %c147_529 = arith.constant 147 : index
    %1641 = vector.load %arg22[%c0_528, %c147_529] : memref<8x512xf32, #tpu.memory_space<vmem>>, vector<8x256xf32>
    %1642 = vector.extract_strided_slice %1064 {offsets = [0, 83], sizes = [8, 1], strides = [1, 1]} : vector<8x98xf32> to vector<8x1xf32>
    %1643 = vector.broadcast %1642 : vector<8x1xf32> to vector<8x256xf32>
    %1644 = arith.mulf %1643, %1641 : vector<8x256xf32>
    %1645 = arith.addf %1640, %1644 : vector<8x256xf32>
    %c0_530 = arith.constant 0 : index
    %c163_531 = arith.constant 163 : index
    %1646 = vector.load %arg22[%c0_530, %c163_531] : memref<8x512xf32, #tpu.memory_space<vmem>>, vector<8x256xf32>
    %1647 = vector.extract_strided_slice %1064 {offsets = [0, 90], sizes = [8, 1], strides = [1, 1]} : vector<8x98xf32> to vector<8x1xf32>
    %1648 = vector.broadcast %1647 : vector<8x1xf32> to vector<8x256xf32>
    %1649 = arith.mulf %1648, %1646 : vector<8x256xf32>
    %1650 = arith.addf %1645, %1649 : vector<8x256xf32>
    %c0_532 = arith.constant 0 : index
    %c179_533 = arith.constant 179 : index
    %1651 = vector.load %arg22[%c0_532, %c179_533] : memref<8x512xf32, #tpu.memory_space<vmem>>, vector<8x256xf32>
    %1652 = vector.extract_strided_slice %1064 {offsets = [0, 97], sizes = [8, 1], strides = [1, 1]} : vector<8x98xf32> to vector<8x1xf32>
    %1653 = vector.broadcast %1652 : vector<8x1xf32> to vector<8x256xf32>
    %1654 = arith.mulf %1653, %1651 : vector<8x256xf32>
    %1655 = arith.addf %1650, %1654 : vector<8x256xf32>
    %c0_i32_534 = arith.constant 0 : i32
    %1656 = vector.broadcast %c0_i32_534 : i32 to vector<1x256xi32>
    %1657 = arith.cmpi sge, %2, %1656 : vector<1x256xi32>
    %c13_i32_535 = arith.constant 13 : i32
    %1658 = vector.broadcast %c13_i32_535 : i32 to vector<1x256xi32>
    %1659 = arith.cmpi slt, %2, %1658 : vector<1x256xi32>
    %1660 = arith.andi %1657, %1659 : vector<1x256xi1>
    %cst_536 = arith.constant 0.000000e+00 : f32
    %1661 = vector.shape_cast %1660 : vector<1x256xi1> to vector<1x256xi1>
    %1662 = vector.broadcast %1661 : vector<1x256xi1> to vector<8x256xi1>
    %1663 = vector.broadcast %cst_536 : f32 to vector<8x256xf32>
    %1664 = arith.select %1662, %1655, %1663 : vector<8x256xi1>, vector<8x256xf32>
    %1665 = arith.addf %1621, %1664 : vector<8x256xf32>
    %c0_537 = arith.constant 0 : index
    %c0_538 = arith.constant 0 : index
    %1666 = vector.load %arg10[%c0_537, %c0_538] : memref<8x1xf32, #tpu.memory_space<vmem>>, vector<8x1xf32>
    %1667 = vector.broadcast %1666 : vector<8x1xf32> to vector<8x256xf32>
    %1668 = arith.addf %1665, %1667 : vector<8x256xf32>
    %cst_539 = arith.constant 0.000000e+00 : f32
    %1669 = vector.broadcast %cst_539 : f32 to vector<8x256xf32>
    %1670 = arith.subf %1669, %1668 : vector<8x256xf32>
    %1671 = math.exp %1670 : vector<8x256xf32>
    %cst_540 = arith.constant 1.000000e+00 : f32
    %1672 = vector.broadcast %cst_540 : f32 to vector<8x256xf32>
    %1673 = arith.addf %1672, %1671 : vector<8x256xf32>
    %cst_541 = arith.constant 1.000000e+00 : f32
    %1674 = vector.broadcast %cst_541 : f32 to vector<8x256xf32>
    %1675 = arith.divf %1674, %1673 : vector<8x256xf32>
    %1676 = vector.extract_strided_slice %1675 {offsets = [0, 0], sizes = [1, 256], strides = [1, 1]} : vector<8x256xf32> to vector<1x256xf32>
    %1677 = vector.extract_strided_slice %1675 {offsets = [1, 0], sizes = [1, 256], strides = [1, 1]} : vector<8x256xf32> to vector<1x256xf32>
    %1678 = vector.extract_strided_slice %1675 {offsets = [2, 0], sizes = [1, 256], strides = [1, 1]} : vector<8x256xf32> to vector<1x256xf32>
    %1679 = vector.extract_strided_slice %1675 {offsets = [3, 0], sizes = [1, 256], strides = [1, 1]} : vector<8x256xf32> to vector<1x256xf32>
    %1680 = vector.extract_strided_slice %324 {offsets = [0, 0], sizes = [1, 256], strides = [1, 1]} : vector<4x256xf32> to vector<1x256xf32>
    %1681 = arith.mulf %1680, %1676 : vector<1x256xf32>
    %1682 = vector.extract_strided_slice %958 {offsets = [0, 0], sizes = [1, 256], strides = [1, 1]} : vector<4x256xf32> to vector<1x256xf32>
    %1683 = arith.mulf %1682, %1677 : vector<1x256xf32>
    %1684 = arith.addf %1681, %1683 : vector<1x256xf32>
    %1685 = vector.extract_strided_slice %405 {offsets = [0, 0], sizes = [1, 256], strides = [1, 1]} : vector<4x256xf32> to vector<1x256xf32>
    %1686 = arith.mulf %1685, %1678 : vector<1x256xf32>
    %1687 = arith.addf %1684, %1686 : vector<1x256xf32>
    %1688 = vector.extract_strided_slice %1039 {offsets = [0, 0], sizes = [1, 256], strides = [1, 1]} : vector<4x256xf32> to vector<1x256xf32>
    %1689 = arith.mulf %1688, %1679 : vector<1x256xf32>
    %1690 = arith.addf %1687, %1689 : vector<1x256xf32>
    %1691 = vector.extract_strided_slice %324 {offsets = [1, 0], sizes = [1, 256], strides = [1, 1]} : vector<4x256xf32> to vector<1x256xf32>
    %1692 = arith.mulf %1691, %1676 : vector<1x256xf32>
    %1693 = vector.extract_strided_slice %958 {offsets = [1, 0], sizes = [1, 256], strides = [1, 1]} : vector<4x256xf32> to vector<1x256xf32>
    %1694 = arith.mulf %1693, %1677 : vector<1x256xf32>
    %1695 = arith.addf %1692, %1694 : vector<1x256xf32>
    %1696 = vector.extract_strided_slice %405 {offsets = [1, 0], sizes = [1, 256], strides = [1, 1]} : vector<4x256xf32> to vector<1x256xf32>
    %1697 = arith.mulf %1696, %1678 : vector<1x256xf32>
    %1698 = arith.addf %1695, %1697 : vector<1x256xf32>
    %1699 = vector.extract_strided_slice %1039 {offsets = [1, 0], sizes = [1, 256], strides = [1, 1]} : vector<4x256xf32> to vector<1x256xf32>
    %1700 = arith.mulf %1699, %1679 : vector<1x256xf32>
    %1701 = arith.addf %1698, %1700 : vector<1x256xf32>
    %1702 = vector.extract_strided_slice %1675 {offsets = [4, 0], sizes = [1, 256], strides = [1, 1]} : vector<8x256xf32> to vector<1x256xf32>
    %1703 = vector.extract_strided_slice %1675 {offsets = [5, 0], sizes = [1, 256], strides = [1, 1]} : vector<8x256xf32> to vector<1x256xf32>
    %1704 = vector.extract_strided_slice %1675 {offsets = [6, 0], sizes = [1, 256], strides = [1, 1]} : vector<8x256xf32> to vector<1x256xf32>
    %1705 = vector.extract_strided_slice %1675 {offsets = [7, 0], sizes = [1, 256], strides = [1, 1]} : vector<8x256xf32> to vector<1x256xf32>
    %1706 = vector.extract_strided_slice %324 {offsets = [2, 0], sizes = [1, 256], strides = [1, 1]} : vector<4x256xf32> to vector<1x256xf32>
    %1707 = arith.mulf %1706, %1702 : vector<1x256xf32>
    %1708 = vector.extract_strided_slice %958 {offsets = [2, 0], sizes = [1, 256], strides = [1, 1]} : vector<4x256xf32> to vector<1x256xf32>
    %1709 = arith.mulf %1708, %1703 : vector<1x256xf32>
    %1710 = arith.addf %1707, %1709 : vector<1x256xf32>
    %1711 = vector.extract_strided_slice %405 {offsets = [2, 0], sizes = [1, 256], strides = [1, 1]} : vector<4x256xf32> to vector<1x256xf32>
    %1712 = arith.mulf %1711, %1704 : vector<1x256xf32>
    %1713 = arith.addf %1710, %1712 : vector<1x256xf32>
    %1714 = vector.extract_strided_slice %1039 {offsets = [2, 0], sizes = [1, 256], strides = [1, 1]} : vector<4x256xf32> to vector<1x256xf32>
    %1715 = arith.mulf %1714, %1705 : vector<1x256xf32>
    %1716 = arith.addf %1713, %1715 : vector<1x256xf32>
    %1717 = vector.extract_strided_slice %324 {offsets = [3, 0], sizes = [1, 256], strides = [1, 1]} : vector<4x256xf32> to vector<1x256xf32>
    %1718 = arith.mulf %1717, %1702 : vector<1x256xf32>
    %1719 = vector.extract_strided_slice %958 {offsets = [3, 0], sizes = [1, 256], strides = [1, 1]} : vector<4x256xf32> to vector<1x256xf32>
    %1720 = arith.mulf %1719, %1703 : vector<1x256xf32>
    %1721 = arith.addf %1718, %1720 : vector<1x256xf32>
    %1722 = vector.extract_strided_slice %405 {offsets = [3, 0], sizes = [1, 256], strides = [1, 1]} : vector<4x256xf32> to vector<1x256xf32>
    %1723 = arith.mulf %1722, %1704 : vector<1x256xf32>
    %1724 = arith.addf %1721, %1723 : vector<1x256xf32>
    %1725 = vector.extract_strided_slice %1039 {offsets = [3, 0], sizes = [1, 256], strides = [1, 1]} : vector<4x256xf32> to vector<1x256xf32>
    %1726 = arith.mulf %1725, %1705 : vector<1x256xf32>
    %1727 = arith.addf %1724, %1726 : vector<1x256xf32>
    %1728 = tpu.concatenate %1690, %1701, %1716, %1727 in 0 : vector<1x256xf32>, vector<1x256xf32>, vector<1x256xf32>, vector<1x256xf32> -> vector<4x256xf32>
    %1729 = vector.extract_strided_slice %1728 {offsets = [0, 0], sizes = [1, 256], strides = [1, 1]} : vector<4x256xf32> to vector<1x256xf32>
    %1730 = vector.extract_strided_slice %1728 {offsets = [1, 0], sizes = [1, 256], strides = [1, 1]} : vector<4x256xf32> to vector<1x256xf32>
    %c0_542 = arith.constant 0 : index
    %1731 = memref.load %arg19[%c0_542] : memref<8xf32, #tpu.memory_space<smem>>
    %1732 = vector.broadcast %1731 : f32 to vector<1x256xf32>
    %1733 = arith.mulf %1732, %1729 : vector<1x256xf32>
    %c1_543 = arith.constant 1 : index
    %1734 = memref.load %arg19[%c1_543] : memref<8xf32, #tpu.memory_space<smem>>
    %1735 = vector.broadcast %1734 : f32 to vector<1x256xf32>
    %1736 = arith.mulf %1735, %1730 : vector<1x256xf32>
    %1737 = arith.addf %1733, %1736 : vector<1x256xf32>
    %c0_544 = arith.constant 0 : index
    %1738 = memref.load %arg20[%c0_544] : memref<4xf32, #tpu.memory_space<smem>>
    %1739 = vector.broadcast %1738 : f32 to vector<1x256xf32>
    %1740 = arith.addf %1737, %1739 : vector<1x256xf32>
    %c2_545 = arith.constant 2 : index
    %1741 = memref.load %arg19[%c2_545] : memref<8xf32, #tpu.memory_space<smem>>
    %1742 = vector.broadcast %1741 : f32 to vector<1x256xf32>
    %1743 = arith.mulf %1742, %1729 : vector<1x256xf32>
    %c3_546 = arith.constant 3 : index
    %1744 = memref.load %arg19[%c3_546] : memref<8xf32, #tpu.memory_space<smem>>
    %1745 = vector.broadcast %1744 : f32 to vector<1x256xf32>
    %1746 = arith.mulf %1745, %1730 : vector<1x256xf32>
    %1747 = arith.addf %1743, %1746 : vector<1x256xf32>
    %c1_547 = arith.constant 1 : index
    %1748 = memref.load %arg20[%c1_547] : memref<4xf32, #tpu.memory_space<smem>>
    %1749 = vector.broadcast %1748 : f32 to vector<1x256xf32>
    %1750 = arith.addf %1747, %1749 : vector<1x256xf32>
    %c4_548 = arith.constant 4 : index
    %1751 = memref.load %arg19[%c4_548] : memref<8xf32, #tpu.memory_space<smem>>
    %1752 = vector.broadcast %1751 : f32 to vector<1x256xf32>
    %1753 = arith.mulf %1752, %1729 : vector<1x256xf32>
    %c5_549 = arith.constant 5 : index
    %1754 = memref.load %arg19[%c5_549] : memref<8xf32, #tpu.memory_space<smem>>
    %1755 = vector.broadcast %1754 : f32 to vector<1x256xf32>
    %1756 = arith.mulf %1755, %1730 : vector<1x256xf32>
    %1757 = arith.addf %1753, %1756 : vector<1x256xf32>
    %c2_550 = arith.constant 2 : index
    %1758 = memref.load %arg20[%c2_550] : memref<4xf32, #tpu.memory_space<smem>>
    %1759 = vector.broadcast %1758 : f32 to vector<1x256xf32>
    %1760 = arith.addf %1757, %1759 : vector<1x256xf32>
    %c6_551 = arith.constant 6 : index
    %1761 = memref.load %arg19[%c6_551] : memref<8xf32, #tpu.memory_space<smem>>
    %1762 = vector.broadcast %1761 : f32 to vector<1x256xf32>
    %1763 = arith.mulf %1762, %1729 : vector<1x256xf32>
    %c7_552 = arith.constant 7 : index
    %1764 = memref.load %arg19[%c7_552] : memref<8xf32, #tpu.memory_space<smem>>
    %1765 = vector.broadcast %1764 : f32 to vector<1x256xf32>
    %1766 = arith.mulf %1765, %1730 : vector<1x256xf32>
    %1767 = arith.addf %1763, %1766 : vector<1x256xf32>
    %c3_553 = arith.constant 3 : index
    %1768 = memref.load %arg20[%c3_553] : memref<4xf32, #tpu.memory_space<smem>>
    %1769 = vector.broadcast %1768 : f32 to vector<1x256xf32>
    %1770 = arith.addf %1767, %1769 : vector<1x256xf32>
    %1771 = vector.extract_strided_slice %1728 {offsets = [2, 0], sizes = [1, 256], strides = [1, 1]} : vector<4x256xf32> to vector<1x256xf32>
    %1772 = vector.extract_strided_slice %1728 {offsets = [3, 0], sizes = [1, 256], strides = [1, 1]} : vector<4x256xf32> to vector<1x256xf32>
    %c0_554 = arith.constant 0 : index
    %1773 = memref.load %arg19[%c0_554] : memref<8xf32, #tpu.memory_space<smem>>
    %1774 = vector.broadcast %1773 : f32 to vector<1x256xf32>
    %1775 = arith.mulf %1774, %1771 : vector<1x256xf32>
    %c1_555 = arith.constant 1 : index
    %1776 = memref.load %arg19[%c1_555] : memref<8xf32, #tpu.memory_space<smem>>
    %1777 = vector.broadcast %1776 : f32 to vector<1x256xf32>
    %1778 = arith.mulf %1777, %1772 : vector<1x256xf32>
    %1779 = arith.addf %1775, %1778 : vector<1x256xf32>
    %c0_556 = arith.constant 0 : index
    %1780 = memref.load %arg20[%c0_556] : memref<4xf32, #tpu.memory_space<smem>>
    %1781 = vector.broadcast %1780 : f32 to vector<1x256xf32>
    %1782 = arith.addf %1779, %1781 : vector<1x256xf32>
    %c2_557 = arith.constant 2 : index
    %1783 = memref.load %arg19[%c2_557] : memref<8xf32, #tpu.memory_space<smem>>
    %1784 = vector.broadcast %1783 : f32 to vector<1x256xf32>
    %1785 = arith.mulf %1784, %1771 : vector<1x256xf32>
    %c3_558 = arith.constant 3 : index
    %1786 = memref.load %arg19[%c3_558] : memref<8xf32, #tpu.memory_space<smem>>
    %1787 = vector.broadcast %1786 : f32 to vector<1x256xf32>
    %1788 = arith.mulf %1787, %1772 : vector<1x256xf32>
    %1789 = arith.addf %1785, %1788 : vector<1x256xf32>
    %c1_559 = arith.constant 1 : index
    %1790 = memref.load %arg20[%c1_559] : memref<4xf32, #tpu.memory_space<smem>>
    %1791 = vector.broadcast %1790 : f32 to vector<1x256xf32>
    %1792 = arith.addf %1789, %1791 : vector<1x256xf32>
    %c4_560 = arith.constant 4 : index
    %1793 = memref.load %arg19[%c4_560] : memref<8xf32, #tpu.memory_space<smem>>
    %1794 = vector.broadcast %1793 : f32 to vector<1x256xf32>
    %1795 = arith.mulf %1794, %1771 : vector<1x256xf32>
    %c5_561 = arith.constant 5 : index
    %1796 = memref.load %arg19[%c5_561] : memref<8xf32, #tpu.memory_space<smem>>
    %1797 = vector.broadcast %1796 : f32 to vector<1x256xf32>
    %1798 = arith.mulf %1797, %1772 : vector<1x256xf32>
    %1799 = arith.addf %1795, %1798 : vector<1x256xf32>
    %c2_562 = arith.constant 2 : index
    %1800 = memref.load %arg20[%c2_562] : memref<4xf32, #tpu.memory_space<smem>>
    %1801 = vector.broadcast %1800 : f32 to vector<1x256xf32>
    %1802 = arith.addf %1799, %1801 : vector<1x256xf32>
    %c6_563 = arith.constant 6 : index
    %1803 = memref.load %arg19[%c6_563] : memref<8xf32, #tpu.memory_space<smem>>
    %1804 = vector.broadcast %1803 : f32 to vector<1x256xf32>
    %1805 = arith.mulf %1804, %1771 : vector<1x256xf32>
    %c7_564 = arith.constant 7 : index
    %1806 = memref.load %arg19[%c7_564] : memref<8xf32, #tpu.memory_space<smem>>
    %1807 = vector.broadcast %1806 : f32 to vector<1x256xf32>
    %1808 = arith.mulf %1807, %1772 : vector<1x256xf32>
    %1809 = arith.addf %1805, %1808 : vector<1x256xf32>
    %c3_565 = arith.constant 3 : index
    %1810 = memref.load %arg20[%c3_565] : memref<4xf32, #tpu.memory_space<smem>>
    %1811 = vector.broadcast %1810 : f32 to vector<1x256xf32>
    %1812 = arith.addf %1809, %1811 : vector<1x256xf32>
    %1813 = tpu.concatenate %1740, %1750, %1760, %1770, %1782, %1792, %1802, %1812 in 0 : vector<1x256xf32>, vector<1x256xf32>, vector<1x256xf32>, vector<1x256xf32>, vector<1x256xf32>, vector<1x256xf32>, vector<1x256xf32>, vector<1x256xf32> -> vector<8x256xf32>
    %1814 = arith.mulf %7, %1813 : vector<8x256xf32>
    %c0_566 = arith.constant 0 : index
    %c0_567 = arith.constant 0 : index
    %1815 = vector.load %arg21[%c0_566, %c0_567] : memref<8x256xf32, #tpu.memory_space<vmem>>, vector<8x256xf32>
    tpu.vector_store %arg21[%c0_566, %c0_567], %1814 {strides = array<i32>} : memref<8x256xf32, #tpu.memory_space<vmem>>, vector<8x256xf32>,
    return
  }
}

</mosaic_0001>

<bundles_post_ra>
// kernel: lsk_block_pallas.1
= control target key start
LH: loop header
LB: loop body
LE: loop exit
PB: predicated region body
PF: predicated region fallthrough
CT: control target
= control target key end

     0   :  { %s10123_s0 = inlined_call_operand.vmem [shape: f32[8,256], index: 0, kind: input, shape index: {}]   ;;  %s10124_s1 = inlined_call_operand.vmem [shape: f32[8,9], index: 1, kind: input, shape index: {}]   ;;  %s10125_s2 = inlined_call_operand.vmem [shape: f32[8,1], index: 2, kind: input, shape index: {}]   ;;  %s10126_s3 = inlined_call_operand.vmem [shape: f32[8,25], index: 3, kind: input, shape index: {}]   ;;  %s10127_s4 = inlined_call_operand.vmem [shape: f32[8,1], index: 4, kind: input, shape index: {}]   ;;  %s10128_s5 = inlined_call_operand.vmem [shape: f32[8,49], index: 5, kind: input, shape index: {}]   ;;  %s10129_s6 = inlined_call_operand.vmem [shape: f32[8,1], index: 6, kind: input, shape index: {}]   ;;  %s10130_s7 = inlined_call_operand.vmem [shape: f32[8,25], index: 7, kind: input, shape index: {}]   ;;  %s10131_s8 = inlined_call_operand.vmem [shape: f32[8,1], index: 8, kind: input, shape index: {}]   ;;  %s10132_s9 = inlined_call_operand.vmem [shape: f32[8,98], index: 9, kind: input, shape index: {}]   ;;  %s10133_s10 = inlined_call_operand.vmem [shape: f32[8,1], index: 10, kind: input, shape index: {}]   ;;  %s10134_s11 = inlined_call_operand.vmem [shape: f32[8], index: 11, kind: input, shape index: {}]   ;;  %s10135_s12 = inlined_call_operand.vmem [shape: f32[2], index: 12, kind: input, shape index: {}]   ;;  %s10136_s13 = inlined_call_operand.vmem [shape: f32[8], index: 13, kind: input, shape index: {}]   ;;  %s10137_s14 = inlined_call_operand.vmem [shape: f32[2], index: 14, kind: input, shape index: {}]   ;;  %s10138_s15 = inlined_call_operand.vmem [shape: f32[8], index: 15, kind: input, shape index: {}]   ;;  %s10139_s16 = inlined_call_operand.vmem [shape: f32[2], index: 16, kind: input, shape index: {}]   ;;  %s10140_s17 = inlined_call_operand.vmem [shape: f32[8], index: 17, kind: input, shape index: {}]   ;;  %s10141_s18 = inlined_call_operand.vmem [shape: f32[2], index: 18, kind: input, shape index: {}]   ;;  %s10142_s19 = inlined_call_operand.vmem [shape: f32[8], index: 19, kind: input, shape index: {}]   ;;  %s10143_s20 = inlined_call_operand.vmem [shape: f32[4], index: 20, kind: input, shape index: {}]   ;;  %s10144_s21 = inlined_call_operand.vmem [shape: f32[8,256], index: 21, kind: output, shape index: {}]  }
   0x1   :  { %10294 = sst [smem:[#allocation49_spill]] %s10123_s0 }
   0x2   :  { %10295 = sst [smem:[#allocation50_spill]] %s10124_s1 }
   0x3   :  { %10296 = sst [smem:[#allocation51_spill]] %s10125_s2 }
   0x4   :  { %10297 = sst [smem:[#allocation52_spill]] %s10126_s3 }
   0x5   :  { %10298 = sst [smem:[#allocation53_spill]] %s10127_s4 }
   0x6   :  { %10299 = sst [smem:[#allocation54_spill]] %s10128_s5 }
   0x7   :  { %26 = vsyncpa [#allocation4], 0 }
   0x8   :  { %27 = vsyncpa [#allocation6], 0 }
   0x9   :  { %28 = vsyncpa [#allocation9], 0 }
   0xa   :  { %29 = vsyncpa [#allocation12], 0 }
   0xb   :  { %30 = vsyncpa [#allocation15], 0  ;;  %s68_s26 = sshll.u32 %s10135_s12, 4  ;;  %s69_s26 = int_to_ptr.vmem [resolvable:$true] %s68_s26 }
   0xc   :  { %31 = vsyncpa [#allocation18], 0  ;;  %s86_s28 = sshll.u32 %s10137_s14, 4  ;;  %s6489_s29 = smov [#allocation5]   ;;  %s87_s28 = int_to_ptr.vmem [resolvable:$true] %s86_s28 }
   0xd   :  { %71 = dma.vmem_to_smem %s69_s26, 16, %s6489_s29, [#allocation6]  }
   0xe   :  { %s6490_s0 = smov [#allocation8]   ;;  %s104_s5 = sshll.u32 %s10139_s16, 4  ;;  %s105_s5 = int_to_ptr.vmem [resolvable:$true] %s104_s5 }
   0xf   :  { %89 = dma.vmem_to_smem %s87_s28, 16, %s6490_s0, [#allocation9]  }
  0x10   :  { %s122_s12 = sshll.u32 %s10141_s18, 4  ;;  %s6491_s1 = smov [#allocation11]   ;;  %s123_s12 = int_to_ptr.vmem [resolvable:$true] %s122_s12 }
  0x11   :  { %107 = dma.vmem_to_smem %s105_s5, 16, %s6491_s1, [#allocation12]  }
  0x12   :  { %s6492_s24 = smov [#allocation14]   ;;  %s59_s25 = sshll.u32 %s10134_s11, 4  ;;  %s60_s25 = int_to_ptr.vmem [resolvable:$true] %s59_s25 }
  0x13   :  { %125 = dma.vmem_to_smem %s123_s12, 16, %s6492_s24, [#allocation15]  }
  0x14   :  { %s77_s3 = sshll.u32 %s10136_s13, 4  ;;  %s6493_s16 = smov [#allocation3]   ;;  %s78_s3 = int_to_ptr.vmem [resolvable:$true] %s77_s3 }
  0x15   :  { %62 = dma.vmem_to_smem %s60_s25, 16, %s6493_s16, [#allocation4]  }
  0x16   :  { %s6494_s28 = smov [#allocation7]   ;;  %s95_s0 = sshll.u32 %s10138_s15, 4  ;;  %s96_s0 = int_to_ptr.vmem [resolvable:$true] %s95_s0 }
  0x17   :  { %80 = dma.vmem_to_smem %s78_s3, 16, %s6494_s28, [#allocation6]  }
  0x18   :  { %s113_s5 = sshll.u32 %s10140_s17, 4  ;;  %s6495_s11 = smov [#allocation10]   ;;  %s114_s5 = int_to_ptr.vmem [resolvable:$true] %s113_s5 }
  0x19   :  { %98 = dma.vmem_to_smem %s96_s0, 16, %s6495_s11, [#allocation9]  }
  0x1a   :  { %s6496_s22 = smov [#allocation13]   ;;  %s131_s12 = sshll.u32 %s10142_s19, 4  ;;  %s132_s12 = int_to_ptr.vmem [resolvable:$true] %s131_s12 }
  0x1b   :  { %116 = dma.vmem_to_smem %s114_s5, 16, %s6496_s22, [#allocation12]  }
  0x1c   :  { %s140_s14 = sshll.u32 %s10143_s20, 4  ;;  %s6497_s15 = smov [#allocation16]   ;;  %s141_s14 = int_to_ptr.vmem [resolvable:$true] %s140_s14 }
  0x1d   :  { %134 = dma.vmem_to_smem %s132_s12, 16, %s6497_s15, [#allocation15]  }
  0x1e   :  { %s6498_s2 = smov [#allocation17]  }
  0x1f   :  { %143 = dma.vmem_to_smem %s141_s14, 16, %s6498_s2, [#allocation18]  }
  0x20   :  { %6477 = dma.done.wait [#allocation4], 16  }
  0x21   :  { %6478 = vsyncadd [#allocation4], 4294967280 }
  0x22   :  { %6479 = dma.done.wait [#allocation6], 32  }
  0x23   :  { %6480 = vsyncadd [#allocation6], 4294967264 }
  0x24   :  { %6481 = dma.done.wait [#allocation9], 32  }
  0x25   :  { %6482 = vsyncadd [#allocation9], 4294967264 }
  0x26   :  { %6483 = dma.done.wait [#allocation12], 32  }
  0x27   :  { %6484 = vsyncadd [#allocation12], 4294967264 }
  0x28   :  { %6485 = dma.done.wait [#allocation15], 32  }
  0x29   :  { %6486 = vsyncadd [#allocation15], 4294967264 }
  0x2a   :  { %6487 = dma.done.wait [#allocation18], 16  }
  0x2b   :  { %6488 = vsyncadd [#allocation18], 4294967280 }
  0x2c   :  { %184 = sfence }
  0x2d   :  { %s10300_s20 = sld [smem:[#allocation50_spill]]  ;;  %v10172_v1 = vmov 3   ;;  %v10152_v2 = vmov 6   ;;  %v10196_v3 = vmov 1   ;;  %v10186_v4 = vmov 2   ;;  %s6510_s18 = smov 96  }
  0x2e   :  { %6129 = vset.pattern.permute.xlu0 %v10172_v1  ;;  %6130 = vset.pattern.permute.xlu2 %v10152_v2  ;;  %v10162_v5 = vmov 4   ;;  %v10154_v6 = vmov 5   ;;  %s10301_s27 = sld [smem:[#allocation52_spill]]  ;;  %v10194_v8 = vmov 8   ;;  %v10176_v9 = vmov 7   ;;  %s6511_s30 = smov 112  }
  0x2f   :  { %6131 = vset.pattern.permute.xlu1 %v10196_v3  ;;  %v10156_v10 = vmov 0   ;;  %v10170_v11 = vmov 10   ;;  %s10302_s28 = sld [smem:[#allocation51_spill]]  ;;  %v10190_v13 = vmov 15   ;;  %v10160_v30 = vmov 11   ;;  %s6514_s22 = smov 32  }
  0x30   :  { %s10303_s4 = sld [smem:[#allocation49_spill]]  ;;  %v10148_v46 = vmov 20   ;;  %v10174_v49 = vmov 16   ;;  %s6516_s13 = smov 64   ;;  %v10164_v60 = vmov 12   ;;  %vm10286_vm0 = vcmask 785408  }
  0x31   :  { %s6519_s23 = smov 17   ;;  %vm224_vm1 = vcmask 916480   ;;  %s6520_s12 = smov 16   ;;  %vm280_vm2 = vcmask 138240   ;;  %vm348_vm4 = vcmask 130048   ;;  %vm429_vm5 = vcmask 121856  }
  0x32   :  { %s6521_s1 = smov 15   ;;  %s10307_s15 = sld [smem:[#allocation54_spill]]  ;;  %vm10251_vm9 = vcmask 654336   ;;  %vm500_vm10 = vcmask 523264   ;;  %vm10285_vm11 = vcmask 392192   ;;  %vm10270_vm12 = vcmask 261120  }
  0x33   :  { %v196_v0 = vld [vmem:[%s10300_s20] sm:$0xff]  ;;  %s6532_s2 = smov 80   ;;  %s6535_s17 = smov 48   ;;  %vm10252_vm13 = vcmask 408576   ;;  %vm10266_vm14 = vcmask 416768   ;;  %vm10253_vm15 = vcmask 400384  }
  0x34   :  { %209 = vperm.xlu0 %6129, %v196_v0   ;;  %237 = vperm.xlu2 %6130, %v196_v0   ;;  %v6768_v7 = vld [vmem:[%s10301_s27] sm:$0xff]  ;;  %s6536_s19 = smov 51   ;;  %s6539_s16 = smov 66  }
  0x35   :  { %290 = vperm.xlu1 %6131, %v196_v0   ;;  %v438_v12 = vld [vmem:[%s10302_s28] sm:$0xff]  ;;  %s6540_s28 = smov 68   ;;  %s6541_s29 = smov 62  }
  0x36   :  { %v6789_v16 = vld [vmem:[%s10303_s4] sm:$0xff]  ;;  %v6796_v19 = vld [vmem:[%s10303_s4 + $0x8] sm:$0xff]  ;;  %s6544_s11 = smov 50   ;;  %s6556_s26 = smov 47  }
  0x37   :  { %s10273_s3 = smov 46   ;;  %s10385_s24 = sld [smem:[#allocation53_spill]] }
  0x38   :  { %s8398_s5 = sld [smem:[#allocation3 + $0x2]] }
  0x39   :  { %s8431_s14 = sld [smem:[#allocation3 + $0x7]] }
  0x3a   :  { %s8466_s20 = sld [smem:[#allocation7 + $0x5]] }
  0x3b   :  { %s8483_s25 = sld [smem:[#allocation5]] }
  0x3c   :  { %6134 = vset.pattern.permute.xlu0 %v10186_v4  ;;  %6132 = vset.pattern.permute.xlu2 %v10162_v5  ;;  %s8488_s0 = sld [smem:[#allocation7 + $0x1]] }
  0x3d   :  { %356 = vperm.xlu0 %6134, %v196_v0   ;;  %297 = vperm.xlu2 %6132, %v196_v0  }
  0x3e   :  { %6135 = vset.pattern.permute.xlu1 %v10154_v6 }
  0x3f   :  { %363 = vperm.xlu1 %6135, %v196_v0  }
  0x45   :  { %6136 = vset.pattern.permute.xlu0 %v10194_v8  ;;  %6133 = vset.pattern.permute.xlu2 %v10176_v9 }
  0x46   :  { %387 = vperm.xlu0 %6136, %v196_v0   ;;  %316 = vperm.xlu2 %6133, %v196_v0  }
  0x47   :  { %461 = vperm.xlu1 %6135, %v6768_v7  }
  0x4e   :  { %6137 = vset.pattern.permute.xlu0 %v10156_v10  ;;  %6138 = vset.pattern.permute.xlu2 %v10156_v10 }
  0x4f   :  { %202 = vperm.xlu0 %6137, %v196_v0   ;;  %6147 = vset.pattern.permute.xlu1 %v10176_v9 }
  0x50   :  { %441 = vperm.xlu2 %6138, %v438_v12  }
  0x57   :  { %454 = vperm.xlu0 %6137, %v6768_v7  }
  0x58   :  { %6140 = vset.pattern.permute.xlu2 %v10190_v13 }
  0x59   :  { %513 = vperm.xlu2 %6140, %v6768_v7  }
  0x5f   :  { %6139 = vset.pattern.permute.xlu0 %v10170_v11 }
  0x60   :  { %485 = vperm.xlu0 %6139, %v6768_v7  }
  0x61   :  { %6142 = vset.pattern.permute.xlu2 %v10196_v3  ;;  %v185_v3 = vlaneseq }
  0x68   :  { %6141 = vset.pattern.permute.xlu0 %v10148_v46 }
  0x8e   :  { %v238_v14 = vpop.permute.xlu2 %237 }
  0x8f   :  { %v242_v15 = vmul.f32 0.0, %v238_v14  ;;  %v241_v23 = vmul.f32 %v238_v14, %v6796_v19  ;;  %v240_v25 = vmul.f32 %v238_v14, %v6789_v16 }
  0x91   :  { %250 = vrot.lane.b32.xlu0 %v242_v15, %s6510_s18  ;;  %v10150_v15 = vmov 13  }
  0x97   :  { %v298_v17 = vpop.permute.xlu2 %297 }
  0x98   :  { %v300_v18 = vmul.f32 %v298_v17, %v6789_v16  ;;  %v301_v28 = vmul.f32 %v298_v17, %v6796_v19 }
  0x9a   :  { %304 = vrot.lane.b32.xlu0 %v300_v18, %s6511_s30 }
  0xa0   :  { %v317_v26 = vpop.permute.xlu2 %316 }
  0xa1   :  { %v319_v27 = vmul.f32 %v317_v26, %v6789_v16  ;;  %v320_v31 = vmul.f32 %v317_v26, %v6796_v19  ;;  %v321_v32 = vmul.f32 0.0, %v317_v26 }
  0xa3   :  { %325 = vrot.lane.b32.xlu0 %v319_v27, %s6510_s18 }
  0xa6   :  { %v210_v20 = vpop.permute.xlu0 %209 }
  0xa7   :  { %v212_v21 = vmul.f32 0.0, %v210_v20  ;;  %v214_v22 = vmul.f32 %v210_v20, %v6796_v19  ;;  %v213_v24 = vmul.f32 %v210_v20, %v6789_v16  ;;  %v6811_v29 = vpop.permute.xlu1 %290 }
  0xa9   :  { %218 = vrot.lane.b32.xlu1 %v212_v21, %s6511_s30  ;;  %222 = vrot.lane.b32.xlu2 %v214_v22, %s6511_s30  ;;  %v293_v22 = vmul.f32 0.0, %v6811_v29 }
  0xaa   :  { %v6830_v42 = vpop.permute.xlu2 %441 }
  0xab   :  { %538 = vperm.xlu0 %6141, %v6768_v7  }
  0xaf   :  { %v6817_v33 = vpop.permute.xlu0 %356 }
  0xb0   :  { %v359_v11 = vmul.f32 0.0, %v6817_v33 }
  0xb1   :  { %248 = vrot.lane.b32.xlu2 %v241_v23, %s6510_s18  ;;  %220 = vrot.lane.b32.xlu1 %v213_v24, %s6511_s30  ;;  %v364_v34 = vpop.permute.xlu1 %363 }
  0xb2   :  { %v367_v35 = vmul.f32 %v364_v34, %v6796_v19  ;;  %v366_v36 = vmul.f32 %v364_v34, %v6789_v16  ;;  %v368_v39 = vmul.f32 0.0, %v364_v34  ;;  %v360_v34 = vmul.f32 %v6817_v33, %v6789_v16 }
  0xb3   :  { %v6837_v45 = vpop.permute.xlu2 %513  ;;  %6143 = vset.pattern.permute.xlu0 %v10152_v2 }
  0xb4   :  { %v518_v47 = vmul.f32 0.0, %v6837_v45  ;;  %581 = vperm.xlu0 %6143, %v6768_v7  }
  0xb8   :  { %v388_v37 = vpop.permute.xlu0 %387 }
  0xb9   :  { %574 = vperm.xlu2 %6142, %v6768_v7   ;;  %246 = vrot.lane.b32.xlu1 %v240_v25, %s6510_s18  ;;  %v390_v38 = vmul.f32 %v388_v37, %v6789_v16  ;;  %v392_v40 = vmul.f32 0.0, %v388_v37  ;;  %v391_v41 = vmul.f32 %v388_v37, %v6796_v19  ;;  %v6833_v43 = vpop.permute.xlu1 %461 }
  0xba   :  { %v464_v44 = vmul.f32 0.0, %v6833_v43 }
  0xbc   :  { %6145 = vset.pattern.permute.xlu0 %v10174_v49 }
  0xc1   :  { %6144 = vset.pattern.permute.xlu2 %v10160_v30  ;;  %306 = vrot.lane.b32.xlu1 %v301_v28, %s6511_s30  ;;  %v6852_v52 = vpop.permute.xlu0 %202  ;;  %v295_v30 = vmul.f32 %v6811_v29, %v6796_v19 }
  0xc2   :  { %605 = vperm.xlu2 %6144, %v6768_v7   ;;  %v207_v18 = vmul.f32 %v6852_v52, %v6796_v19 }
  0xc9   :  { %327 = vrot.lane.b32.xlu1 %v320_v31, %s6510_s18  ;;  %v6862_v57 = vpop.permute.xlu0 %454 }
  0xca   :  { %329 = vrot.lane.b32.xlu2 %v321_v32, %s6510_s18 }
  0xd1   :  { %374 = vrot.lane.b32.xlu1 %v367_v35, %s6511_s30 }
  0xd2   :  { %372 = vrot.lane.b32.xlu2 %v366_v36, %s6511_s30  ;;  %v6867_v59 = vpop.permute.xlu0 %485 }
  0xd3   :  { %v488_v0 = vmul.f32 0.0, %v6867_v59 }
  0xd9   :  { %396 = vrot.lane.b32.xlu1 %v390_v38, %s6510_s18 }
  0xda   :  { %376 = vrot.lane.b32.xlu2 %v368_v39, %s6511_s30 }
  0xe1   :  { %400 = vrot.lane.b32.xlu1 %v392_v40, %s6510_s18 }
  0xe2   :  { %398 = vrot.lane.b32.xlu2 %v391_v41, %s6510_s18 }
  0xe9   :  { %494 = vrot.lane.b32.xlu1 %v488_v0, %s6516_s13  ;;  %v10178_v0 = vmov 21  }
  0xea   :  { %470 = vrot.lane.b32.xlu2 %v464_v44, %s6510_s18  ;;  %v10168_v44 = vmov 17  }
  0xeb   :  { %6146 = vset.pattern.permute.xlu2 %v10178_v0 }
  0xf2   :  { %526 = vrot.lane.b32.xlu2 %v518_v47, %s6514_s22 }
  0xfa   :  { %653 = vperm.xlu2 %6146, %v6768_v7  }
 0x103   :  { %v6845_v48 = vpop.permute.xlu2 %222  ;;  %v251_v63 = vpop.permute.xlu0 %250 }
 0x104   :  { %v232_v21 = vadd.f32 %v6845_v48, %v207_v18 }
 0x10b   :  { %v6848_v50 = vpop.permute.xlu2 %248 }
 0x10c   :  { %v6884_v17 = vpop.permute.xlu0 %304  ;;  %v254_v20 = vsel %vm10286_vm0, %v6848_v50, %v251_v63 }
 0x10d   :  { %v260_v24 = vadd.f32 %v254_v20, %v232_v21  ;;  %v312_v26 = vadd.f32 %v6884_v17, %v293_v22 }
 0x113   :  { %v6850_v51 = vpop.permute.xlu2 %574 }
 0x115   :  { %v326_v27 = vpop.permute.xlu0 %325 }
 0x116   :  { %v336_v28 = vadd.f32 %v326_v27, %v312_v26 }
 0x11b   :  { %v6854_v53 = vpop.permute.xlu1 %218 }
 0x11c   :  { %v6856_v54 = vpop.permute.xlu2 %605 }
 0x11d   :  { %v608_v55 = vmul.f32 0.0, %v6856_v54  ;;  %v6913_v39 = vpop.permute.xlu0 %538 }
 0x11f   :  { %614 = vrot.lane.b32.xlu0 %v608_v55, %s6516_s13 }
 0x123   :  { %v6860_v56 = vpop.permute.xlu1 %220 }
 0x124   :  { %v6873_v62 = vpop.permute.xlu2 %329 }
 0x126   :  { %v6915_v40 = vpop.permute.xlu0 %581 }
 0x127   :  { %629 = vperm.xlu0 %6145, %v6768_v7   ;;  %v584_v41 = vmul.f32 0.0, %v6915_v40 }
 0x129   :  { %590 = vrot.lane.b32.xlu1 %v584_v41, %s6510_s18  ;;  %v205_v41 = vmul.f32 0.0, %v6852_v52 }
 0x12b   :  { %v6865_v58 = vpop.permute.xlu1 %246 }
 0x12c   :  { %v6881_v14 = vpop.permute.xlu2 %372 }
 0x12f   :  { %6148 = vset.pattern.permute.xlu0 %v10164_v60 }
 0x130   :  { %720 = vperm.xlu0 %6148, %v6768_v7  }
 0x131   :  { %696 = vperm.xlu1 %6147, %v6768_v7  }
 0x133   :  { %v6871_v61 = vpop.permute.xlu1 %306 }
 0x134   :  { %v6895_v25 = vpop.permute.xlu2 %376  ;;  %v314_v60 = vadd.f32 %v6871_v61, %v295_v30  ;;  %v253_v30 = vsel %vm10286_vm0, %v6865_v58, %v6848_v50 }
 0x138   :  { %6151 = vset.pattern.permute.xlu0 %v10172_v1  ;;  %v383_v1 = vadd.f32 %v6881_v14, %v359_v11 }
 0x139   :  { %788 = vperm.xlu0 %6151, %v6768_v7   ;;  %6149 = vset.pattern.permute.xlu1 %v10168_v44 }
 0x13b   :  { %v6879_v12 = vpop.permute.xlu1 %327 }
 0x13c   :  { %v6907_v35 = vpop.permute.xlu2 %398 }
 0x141   :  { %6153 = vset.pattern.permute.xlu0 %v10150_v15  ;;  %v308_v15 = vsel %vm224_vm1, %v6884_v17, %v6871_v61 }
 0x142   :  { %819 = vperm.xlu0 %6153, %v6768_v7  }
 0x143   :  { %v6893_v23 = vpop.permute.xlu1 %374 }
 0x144   :  { %v378_v32 = vsel %vm224_vm1, %v6881_v14, %v6893_v23 }
 0x145   :  { %v384_v37 = vadd.f32 %v378_v32, %v360_v34 }
 0x14a   :  { %278 = vrot.lane.b32.xlu0 %v260_v24, %s6519_s23 }
 0x14b   :  { %v6899_v31 = vpop.permute.xlu1 %396 }
 0x14c   :  { %v402_v36 = vsel %vm10286_vm0, %v6899_v31, %v6907_v35  ;;  %v407_v49 = vadd.f32 %v6899_v31, %v383_v1  ;;  %v10180_v1 = vmov 14  }
 0x14d   :  { %v408_v38 = vadd.f32 %v402_v36, %v384_v37 }
 0x152   :  { %342 = vrot.lane.b32.xlu0 %v336_v28, %s6520_s12 }
 0x153   :  { %v6931_v18 = vpop.permute.xlu1 %400 }
 0x15a   :  { %425 = vrot.lane.b32.xlu0 %v408_v38, %s6521_s1 }
 0x15b   :  { %v6933_v20 = vpop.permute.xlu1 %494 }
 0x191   :  { %v6921_v47 = vpop.permute.xlu0 %614 }
 0x199   :  { %v6923_v55 = vpop.permute.xlu0 %629 }
 0x19a   :  { %v634_v63 = vmul.f32 0.0, %v6923_v55 }
 0x19b   :  { %v6935_v21 = vpop.permute.xlu1 %590 }
 0x19c   :  { %642 = vrot.lane.b32.xlu1 %v634_v63, %s6514_s22  ;;  %v225_v63 = vsel %vm224_vm1, %v6854_v53, %v6860_v56  ;;  %v10188_v53 = vmov 22  }
 0x19d   :  { %6150 = vset.pattern.permute.xlu2 %v10188_v53 }
 0x1a2   :  { %v6943_v28 = vpop.permute.xlu0 %720 }
 0x1a3   :  { %v6937_v22 = vpop.permute.xlu1 %696 }
 0x1a4   :  { %739 = vperm.xlu1 %6149, %v6768_v7   ;;  %v699_v24 = vmul.f32 0.0, %v6937_v22 }
 0x1a6   :  { %705 = vrot.lane.b32.xlu2 %v699_v24, %s6510_s18  ;;  %v230_v24 = vadd.f32 %v225_v63, %v205_v41  ;;  %v10158_v41 = vmov 18  }
 0x1a8   :  { %v258_v46 = vadd.f32 %v6865_v58, %v230_v24  ;;  %v10192_v24 = vmov 9  }
 0x1ab   :  { %v6949_v36 = vpop.permute.xlu0 %788 }
 0x1ac   :  { %6152 = vset.pattern.permute.xlu1 %v10194_v8 }
 0x1ae   :  { %763 = vperm.xlu2 %6150, %v6768_v7  }
 0x1b4   :  { %v6952_v37 = vpop.permute.xlu0 %819 }
 0x1b5   :  { %v824_v38 = vmul.f32 0.0, %v6952_v37 }
 0x1b6   :  { %6154 = vset.pattern.permute.xlu2 %v10158_v41 }
 0x1bc   :  { %v7027_v11 = vpop.permute.xlu0 %278 }
 0x20e   :  { %v6941_v26 = vpop.permute.xlu1 %642 }
 0x216   :  { %v6945_v32 = vpop.permute.xlu1 %739 }
 0x217   :  { %v744_v34 = vmul.f32 0.0, %v6945_v32 }
 0x219   :  { %752 = vrot.lane.b32.xlu1 %v744_v34, %s6514_s22  ;;  %v294_v34 = vmul.f32 %v6811_v29, %v6789_v16  ;;  %v206_v29 = vmul.f32 %v6852_v52, %v6789_v16 }
 0x21b   :  { %v313_v2 = vadd.f32 %v308_v15, %v294_v34 }
 0x221   :  { %795 = vperm.xlu1 %6152, %v6768_v7  }
 0x229   :  { %832 = vrot.lane.b32.xlu1 %v824_v38, %s6516_s13  ;;  %v331_v38 = vsel %vm10286_vm0, %v326_v27, %v6879_v12 }
 0x22a   :  { %6161 = vset.pattern.permute.xlu1 %v10156_v10  ;;  %v337_v6 = vadd.f32 %v331_v38, %v313_v2  ;;  %v10184_v2 = vmov 23   ;;  %v10166_v38 = vmov 19  }
 0x22b   :  { %6155 = vset.pattern.permute.xlu0 %v10184_v2 }
 0x22c   :  { %867 = vperm.xlu0 %6155, %v6768_v7  }
 0x231   :  { %274 = vrot.lane.b32.xlu1 %v258_v46, %s6519_s23 }
 0x234   :  { %6157 = vset.pattern.permute.xlu0 %v10192_v24 }
 0x235   :  { %910 = vperm.xlu0 %6157, %v6768_v7  }
 0x239   :  { %344 = vrot.lane.b32.xlu1 %v337_v6, %s6520_s12  ;;  %v6984_v6 = vpop.permute.xlu2 %470 }
 0x23d   :  { %6159 = vset.pattern.permute.xlu0 %v10166_v38  ;;  %v332_v38 = vsel %vm10286_vm0, %v6879_v12, %v6873_v62 }
 0x23e   :  { %958 = vperm.xlu0 %6159, %v6768_v7   ;;  %v338_v44 = vadd.f32 %v332_v38, %v314_v60 }
 0x241   :  { %v6986_v15 = vpop.permute.xlu2 %526 }
 0x249   :  { %v6988_v27 = vpop.permute.xlu2 %653 }
 0x251   :  { %v6992_v34 = vpop.permute.xlu2 %705 }
 0x28b   :  { %v6974_v63 = vpop.permute.xlu1 %752 }
 0x28c   :  { %10304 = vst [vmem:[#allocation25_spill] sm:$0xff] %v6974_v63 }
 0x293   :  { %v6976_v17 = vpop.permute.xlu1 %795 }
 0x294   :  { %v798_v46 = vmul.f32 0.0, %v6976_v17 }
 0x296   :  { %804 = vrot.lane.b32.xlu2 %v798_v46, %s6510_s18  ;;  %v6996_v46 = vpop.permute.xlu2 %763 }
 0x29e   :  { %843 = vperm.xlu2 %6154, %v6768_v7  }
 0x2a6   :  { %6156 = vset.pattern.permute.xlu2 %v10162_v5 }
 0x2f0   :  { %v6998_v10 = vpop.permute.xlu2 %804 }
 0x2f1   :  { %10305 = vst [vmem:[#allocation26_spill] sm:$0xff] %v6998_v10 }
 0x2f8   :  { %v7000_v41 = vpop.permute.xlu2 %843 }
 0x2f9   :  { %v848_v5 = vmul.f32 0.0, %v7000_v41 }
 0x2fb   :  { %856 = vrot.lane.b32.xlu2 %v848_v5, %s6514_s22  ;;  %v226_v5 = vsel %vm224_vm1, %v6860_v56, %v6845_v48  ;;  %v10182_v56 = vmov 24  }
 0x2fc   :  { %v231_v60 = vadd.f32 %v226_v5, %v206_v29  ;;  %v7058_v5 = vld [vmem:[%s10307_s15] sm:$0xff] }
 0x2fe   :  { %v259_v61 = vadd.f32 %v253_v30, %v231_v60 }
 0x303   :  { %346 = vrot.lane.b32.xlu2 %v338_v44, %s6520_s12  ;;  %s8404_s12 = sld [smem:[#allocation3 + $0x4]] }
 0x30b   :  { %423 = vrot.lane.b32.xlu2 %v407_v49, %s6521_s1  ;;  %v7029_v49 = vpop.permute.xlu0 %342 }
 0x313   :  { %276 = vrot.lane.b32.xlu2 %v259_v61, %s6519_s23  ;;  %v7035_v50 = vpop.permute.xlu0 %425  ;;  %s8402_s23 = sld [smem:[#allocation3 + $0x3]] }
 0x31b   :  { %903 = vperm.xlu2 %6156, %v6768_v7   ;;  %v7040_v62 = vpop.permute.xlu0 %867 }
 0x323   :  { %6158 = vset.pattern.permute.xlu2 %v10180_v1  ;;  %v7044_v14 = vpop.permute.xlu0 %910 }
 0x324   :  { %934 = vperm.xlu2 %6158, %v6768_v7   ;;  %v913_v31 = vmul.f32 0.0, %v7044_v14 }
 0x326   :  { %919 = vrot.lane.b32.xlu1 %v913_v31, %s6510_s18 }
 0x32b   :  { %v7063_v30 = vpop.permute.xlu0 %958 }
 0x32c   :  { %6160 = vset.pattern.permute.xlu2 %v10182_v56  ;;  %v963_v60 = vmul.f32 0.0, %v7063_v30 }
 0x32e   :  { %971 = vrot.lane.b32.xlu1 %v963_v60, %s6514_s22  ;;  %v7080_v60 = vpop.permute.xlu1 %832 }
 0x336   :  { %1256 = vperm.xlu1 %6161, %v7058_v5  }
 0x33e   :  { %6163 = vset.pattern.permute.xlu1 %v10180_v1  ;;  %v275_v1 = vpop.permute.xlu1 %274 }
 0x346   :  { %v7082_v56 = vpop.permute.xlu1 %344 }
 0x355   :  { %v7031_v48 = vpop.permute.xlu2 %856 }
 0x35d   :  { %v7033_v52 = vpop.permute.xlu2 %346 }
 0x365   :  { %v7038_v58 = vpop.permute.xlu2 %423 }
 0x36d   :  { %v7042_v12 = vpop.permute.xlu2 %276 }
 0x375   :  { %v7048_v44 = vpop.permute.xlu2 %903 }
 0x376   :  { %10306 = vst [vmem:[#allocation27_spill] sm:$0xff] %v7048_v44 }
 0x37e   :  { %v7050_v38 = vpop.permute.xlu2 %934 }
 0x37f   :  { %v939_v29 = vmul.f32 0.0, %v7050_v38 }
 0x381   :  { %947 = vrot.lane.b32.xlu2 %v939_v29, %s6516_s13 }
 0x389   :  { %982 = vperm.xlu2 %6160, %v6768_v7  }
 0x391   :  { %6162 = vset.pattern.permute.xlu2 %v10176_v9 }
 0x392   :  { %1263 = vperm.xlu2 %6162, %v7058_v5  }
 0x398   :  { %v7084_v2 = vpop.permute.xlu1 %919 }
 0x399   :  { %10310 = vst [vmem:[#allocation30_spill] sm:$0xff] %v7084_v2 }
 0x39a   :  { %6164 = vset.pattern.permute.xlu2 %v10178_v0 }
 0x3a0   :  { %v7086_v4 = vpop.permute.xlu1 %971 }
 0x3a1   :  { %10311 = vst [vmem:[#allocation31_spill] sm:$0xff] %v7086_v4  ;;  %v186_v4 = vand.u32 127, %v185_v3  ;;  %v349_v3 = vsel %vm348_vm4, %v7029_v49, %v7082_v56 }
 0x3db   :  { %v7069_v7 = vpop.permute.xlu2 %947 }
 0x3dc   :  { %10308 = vst [vmem:[#allocation28_spill] sm:$0xff] %v7069_v7  ;;  %v7103_v7 = vand.u32 15, %v186_v4 }
 0x3de   :  { %10312 = vst [vmem:[#allocation32_spill] sm:$0xff] %v7103_v7  ;;  %vm10257_vm3 = vcmp.ge.s32.totalorder %v7103_v7, 1  ;;  %vm10264_vm6 = vcmp.lt.s32.totalorder %v7103_v7, 15 }
 0x3e3   :  { %v7071_v61 = vpop.permute.xlu2 %982 }
 0x3e4   :  { %10309 = vst [vmem:[#allocation29_spill] sm:$0xff] %v7071_v61 }
 0x3ec   :  { %v1264_v31 = vpop.permute.xlu2 %1263 }
 0x3ed   :  { %v1266_v29 = vmul.f32 0.0, %v1264_v31  ;;  %v1268_v9 = vmul.f32 %v1264_v31, %v6796_v19  ;;  %v1267_v0 = vmul.f32 %v1264_v31, %v6789_v16  ;;  %v7088_v31 = vpop.permute.xlu1 %1256 }
 0x3ef   :  { %1272 = vrot.lane.b32.xlu1 %v1266_v29, %s6511_s30  ;;  %1276 = vrot.lane.b32.xlu0 %v1268_v9, %s6511_s30 }
 0x3f0   :  { %1274 = vrot.lane.b32.xlu2 %v1267_v0, %s6511_s30 }
 0x3f7   :  { %1287 = vperm.xlu1 %6163, %v7058_v5  }
 0x3ff   :  { %6176 = vset.pattern.permute.xlu1 %v10192_v24  ;;  %v10199_v24 = vmov 28  }
 0x400   :  { %6165 = vset.pattern.permute.xlu0 %v10199_v24 }
 0x44a   :  { %v7099_v8 = vpop.permute.xlu2 %1274 }
 0x461   :  { %v7090_v29 = vpop.permute.xlu1 %1272 }
 0x469   :  { %v1288_v9 = vpop.permute.xlu1 %1287 }
 0x46a   :  { %v1292_v0 = vmul.f32 %v1288_v9, %v6796_v19  ;;  %v1291_v53 = vmul.f32 %v1288_v9, %v6789_v16  ;;  %v1290_v13 = vmul.f32 0.0, %v1288_v9 }
 0x46c   :  { %1300 = vrot.lane.b32.xlu1 %v1292_v0, %s6510_s18  ;;  %1298 = vrot.lane.b32.xlu0 %v1291_v53, %s6510_s18  ;;  %v281_v53 = vsel %vm280_vm2, %v275_v1, %v7042_v12  ;;  %v430_v1 = vsel %vm429_vm5, %v7038_v58, %v7035_v50 }
 0x46d   :  { %1296 = vrot.lane.b32.xlu2 %v1290_v13, %s6510_s18  ;;  %v285_v63 = vsel %vm10257_vm3, %v281_v53, 0.0  ;;  %v434_v53 = vsel %vm10264_vm6, %v430_v1, 0.0 }
 0x475   :  { %1311 = vperm.xlu2 %6164, %v7058_v5  }
 0x4c7   :  { %v7101_v61 = vpop.permute.xlu2 %1296 }
 0x4cf   :  { %v1312_v13 = vpop.permute.xlu2 %1311 }
 0x4d0   :  { %v1314_v9 = vmul.f32 0.0, %v1312_v13  ;;  %v1316_v0 = vmul.f32 %v1312_v13, %v6796_v19  ;;  %v1315_v24 = vmul.f32 %v1312_v13, %v6789_v16  ;;  %v353_v13 = vadd.f32 %v349_v3, %v285_v63 }
 0x4d2   :  { %1320 = vrot.lane.b32.xlu0 %v1314_v9, %s6532_s2  ;;  %1324 = vrot.lane.b32.xlu2 %v1316_v0, %s6532_s2  ;;  %v436_v10 = vadd.f32 %v434_v53, %v353_v13  ;;  %v361_v13 = vmul.f32 %v6817_v33, %v6796_v19  ;;  %v403_v53 = vsel %vm10286_vm0, %v6907_v35, %v6931_v18  ;;  %v187_v33 = vadd.s32 128, %v186_v4 }
 0x4d3   :  { %1322 = vrot.lane.b32.xlu1 %v1315_v24, %s6532_s2  ;;  %v7131_v24 = vpop.permute.xlu0 %1276  ;;  %v282_v18 = vsel %vm280_vm2, %v7042_v12, %v7027_v11 }
 0x4d4   :  { %v7126_v9 = vadd.f32 %v6830_v42, %v436_v10  ;;  %v379_v10 = vsel %vm224_vm1, %v6893_v23, %v6895_v25 }
 0x4d6   :  { %10313 = vst [vmem:[#allocation33_spill] sm:$0xff] %v7126_v9  ;;  %v516_v49 = vmul.f32 %v6837_v45, %v7126_v9 }
 0x4da   :  { %1339 = vperm.xlu0 %6165, %v7058_v5  }
 0x4de   :  { %v7133_v0 = vpop.permute.xlu0 %1298  ;;  %v7154_v23 = vpop.permute.xlu1 %1300 }
 0x4e2   :  { %522 = vrot.lane.b32.xlu0 %v516_v49, %s6514_s22  ;;  %v385_v49 = vadd.f32 %v379_v10, %v361_v13 }
 0x4e4   :  { %v409_v7 = vadd.f32 %v403_v53, %v385_v49 }
 0x544   :  { %v7135_v58 = vpop.permute.xlu0 %1320 }
 0x545   :  { %v7156_v25 = vpop.permute.xlu1 %1322 }
 0x54c   :  { %v1340_v63 = vpop.permute.xlu0 %1339 }
 0x54d   :  { %v1343_v3 = vmul.f32 %v1340_v63, %v6796_v19  ;;  %v1342_v1 = vmul.f32 %v1340_v63, %v6789_v16  ;;  %v1344_v44 = vmul.f32 0.0, %v1340_v63 }
 0x54f   :  { %1350 = vrot.lane.b32.xlu2 %v1343_v3, %s6516_s13  ;;  %1348 = vrot.lane.b32.xlu1 %v1342_v1, %s6516_s13  ;;  %v465_v3 = vmul.f32 %v6833_v43, %v7126_v9  ;;  %v7158_v1 = vand.u32 15, %v187_v33  ;;  %v585_v33 = vmul.f32 %v6915_v40, %v7126_v9 }
 0x551   :  { %10314 = vst [vmem:[#allocation34_spill] sm:$0xff] %v7158_v1  ;;  %vm10255_vm7 = vcmp.ge.s32.totalorder %v7158_v1, 1  ;;  %vm10261_vm8 = vcmp.lt.s32.totalorder %v7158_v1, 15 }
 0x557   :  { %427 = vrot.lane.b32.xlu1 %v409_v7, %s6521_s1  ;;  %v350_v7 = vsel %vm348_vm4, %v7082_v56, %v7033_v52  ;;  %v489_v56 = vmul.f32 %v6867_v59, %v7126_v9  ;;  %s6548_s1 = smov 49  }
 0x55f   :  { %1352 = vrot.lane.b32.xlu1 %v1344_v44, %s6516_s13  ;;  %v286_v44 = vsel %vm10255_vm7, %v282_v18, 0.0  ;;  %v632_v18 = vmul.f32 %v6923_v55, %v7126_v9 }
 0x560   :  { %v354_v63 = vadd.f32 %v350_v7, %v286_v44  ;;  %v700_v44 = vmul.f32 %v6937_v22, %v7126_v9  ;;  %v723_v7 = vmul.f32 %v6943_v28, %v7126_v9 }
 0x567   :  { %472 = vrot.lane.b32.xlu1 %v465_v3, %s6510_s18 }
 0x5c1   :  { %v7160_v35 = vpop.permute.xlu1 %1348 }
 0x5c9   :  { %v428_v4 = vpop.permute.xlu1 %427 }
 0x5ca   :  { %v431_v10 = vsel %vm429_vm5, %v7035_v50, %v428_v4  ;;  %v846_v50 = vmul.f32 %v7000_v41, %v7126_v9  ;;  %v799_v4 = vmul.f32 %v6976_v17, %v7126_v9 }
 0x5cb   :  { %v435_v13 = vsel %vm10261_vm8, %v431_v10, 0.0  ;;  %v10204_v10 = vmov 35  }
 0x5cc   :  { %v437_v53 = vadd.f32 %v435_v13, %v354_v63  ;;  %v822_v63 = vmul.f32 %v6952_v37, %v7126_v9  ;;  %6166 = vset.pattern.permute.xlu2 %v10204_v10 }
 0x5ce   :  { %v7177_v11 = vadd.f32 %v6830_v42, %v437_v53  ;;  %v7249_v53 = vpop.permute.xlu2 %1324 }
 0x5cf   :  { %v1328_v2 = vsel %vm10251_vm9, %v7156_v25, %v7249_v53 }
 0x5d0   :  { %10315 = vst [vmem:[#allocation35_spill] sm:$0xff] %v7177_v11  ;;  %v743_v12 = vmul.f32 %v6945_v32, %v7177_v11  ;;  %v490_v49 = vmul.f32 %v6867_v59, %v7177_v11  ;;  %v466_v52 = vmul.f32 %v6833_v43, %v7177_v11  ;;  %v517_v42 = vmul.f32 %v6837_v45, %v7177_v11 }
 0x5d1   :  { %v937_v43 = vmul.f32 %v7050_v38, %v7126_v9  ;;  %v586_v3 = vmul.f32 %v6915_v40, %v7177_v11  ;;  %v609_v45 = vmul.f32 %v6856_v54, %v7126_v9  ;;  %v610_v59 = vmul.f32 %v6856_v54, %v7177_v11 }
 0x5d2   :  { %750 = vrot.lane.b32.xlu0 %v743_v12, %s6514_s22  ;;  %498 = vrot.lane.b32.xlu1 %v490_v49, %s6516_s13  ;;  %v633_v40 = vmul.f32 %v6923_v55, %v7177_v11  ;;  %v701_v54 = vmul.f32 %v6937_v22, %v7177_v11  ;;  %v724_v55 = vmul.f32 %v6943_v28, %v7177_v11 }
 0x5d3   :  { %474 = vrot.lane.b32.xlu2 %v466_v52, %s6510_s18  ;;  %v742_v22 = vmul.f32 %v6945_v32, %v7126_v9  ;;  %v800_v28 = vmul.f32 %v6976_v17, %v7177_v11  ;;  %v847_v32 = vmul.f32 %v7000_v41, %v7177_v11  ;;  %v823_v13 = vmul.f32 %v6952_v37, %v7177_v11 }
 0x5d4   :  { %v915_v12 = vmul.f32 %v7044_v14, %v7177_v11  ;;  %v914_v17 = vmul.f32 %v7044_v14, %v7126_v9  ;;  %v938_v37 = vmul.f32 %v7050_v38, %v7177_v11  ;;  %v962_v49 = vmul.f32 %v7063_v30, %v7177_v11 }
 0x5d5   :  { %v961_v14 = vmul.f32 %v7063_v30, %v7126_v9 }
 0x5d6   :  { %v7257_v41 = vpop.permute.xlu2 %1350 }
 0x5da   :  { %852 = vrot.lane.b32.xlu0 %v846_v50, %s6514_s22  ;;  %524 = vrot.lane.b32.xlu1 %v517_v42, %s6514_s22  ;;  %v10316_v42 = vmov 1  }
 0x5db   :  { %496 = vrot.lane.b32.xlu2 %v489_v56, %s6516_s13 }
 0x5e2   :  { %943 = vrot.lane.b32.xlu0 %v937_v43, %s6516_s13  ;;  %594 = vrot.lane.b32.xlu1 %v586_v3, %s6510_s18 }
 0x5e3   :  { %592 = vrot.lane.b32.xlu2 %v585_v33, %s6510_s18 }
 0x5ea   :  { %616 = vrot.lane.b32.xlu1 %v609_v45, %s6516_s13 }
 0x5eb   :  { %618 = vrot.lane.b32.xlu2 %v610_v59, %s6516_s13 }
 0x5f2   :  { %638 = vrot.lane.b32.xlu1 %v632_v18, %s6514_s22  ;;  %v10203_v18 = vmov 42  }
 0x5f3   :  { %640 = vrot.lane.b32.xlu2 %v633_v40, %s6514_s22  ;;  %6167 = vset.pattern.permute.xlu0 %v10203_v18 }
 0x5fa   :  { %707 = vrot.lane.b32.xlu1 %v700_v44, %s6510_s18 }
 0x5fb   :  { %709 = vrot.lane.b32.xlu2 %v701_v54, %s6510_s18 }
 0x602   :  { %727 = vrot.lane.b32.xlu1 %v723_v7, %s6516_s13 }
 0x603   :  { %729 = vrot.lane.b32.xlu2 %v724_v55, %s6516_s13 }
 0x60a   :  { %806 = vrot.lane.b32.xlu1 %v799_v4, %s6510_s18 }
 0x60b   :  { %748 = vrot.lane.b32.xlu2 %v742_v22, %s6514_s22  ;;  %v10321_v22 = vmov 8  }
 0x612   :  { %828 = vrot.lane.b32.xlu1 %v822_v63, %s6516_s13  ;;  %v7302_v63 = vpop.permute.xlu0 %522 }
 0x613   :  { %808 = vrot.lane.b32.xlu2 %v800_v28, %s6510_s18  ;;  %v1353_v28 = vpop.permute.xlu1 %1352 }
 0x61a   :  { %854 = vrot.lane.b32.xlu1 %v847_v32, %s6514_s22 }
 0x61b   :  { %830 = vrot.lane.b32.xlu2 %v823_v13, %s6516_s13  ;;  %v7306_v13 = vpop.permute.xlu1 %472 }
 0x622   :  { %923 = vrot.lane.b32.xlu1 %v915_v12, %s6510_s18 }
 0x623   :  { %921 = vrot.lane.b32.xlu2 %v914_v17, %s6510_s18 }
 0x62a   :  { %945 = vrot.lane.b32.xlu1 %v938_v37, %s6516_s13 }
 0x62b   :  { %969 = vrot.lane.b32.xlu2 %v962_v49, %s6514_s22 }
 0x62d   :  { %v7265_v52 = vpop.permute.xlu2 %474 }
 0x632   :  { %967 = vrot.lane.b32.xlu1 %v961_v14, %s6514_s22 }
 0x633   :  { %1363 = vperm.xlu2 %6166, %v7058_v5  }
 0x635   :  { %v7271_v50 = vpop.permute.xlu2 %496 }
 0x63b   :  { %6168 = vset.pattern.permute.xlu2 %v10316_v42 }
 0x63d   :  { %v7274_v38 = vpop.permute.xlu2 %592 }
 0x644   :  { %v7304_v32 = vpop.permute.xlu0 %750  ;;  %v7310_v17 = vpop.permute.xlu1 %498 }
 0x645   :  { %v7276_v56 = vpop.permute.xlu2 %618  ;;  %10322 = vst [vmem:[#allocation40_spill] sm:$0xff] %v7304_v32  ;;  %v1279_v32 = vsel %vm224_vm1, %v7099_v8, %v7131_v24 }
 0x64c   :  { %v7308_v12 = vpop.permute.xlu0 %852  ;;  %v7314_v49 = vpop.permute.xlu1 %524 }
 0x64d   :  { %v7278_v43 = vpop.permute.xlu2 %640  ;;  %10323 = vst [vmem:[#allocation41_spill] sm:$0xff] %v7308_v12 }
 0x654   :  { %v7312_v37 = vpop.permute.xlu0 %943 }
 0x655   :  { %v7280_v3 = vpop.permute.xlu2 %709  ;;  %10324 = vst [vmem:[#allocation42_spill] sm:$0xff] %v7312_v37 }
 0x65d   :  { %v7282_v33 = vpop.permute.xlu2 %729 }
 0x65e   :  { %10317 = vst [vmem:[#allocation36_spill] sm:$0xff] %v7282_v33 }
 0x665   :  { %v7284_v45 = vpop.permute.xlu2 %748 }
 0x666   :  { %10318 = vst [vmem:[#allocation37_spill] sm:$0xff] %v7284_v45  ;;  %v1259_v45 = vmul.f32 0.0, %v7088_v31 }
 0x66d   :  { %v7286_v30 = vpop.permute.xlu2 %808 }
 0x675   :  { %v7288_v59 = vpop.permute.xlu2 %830 }
 0x67d   :  { %v7291_v40 = vpop.permute.xlu2 %921 }
 0x67e   :  { %10319 = vst [vmem:[#allocation38_spill] sm:$0xff] %v7291_v40 }
 0x685   :  { %v7293_v44 = vpop.permute.xlu2 %969 }
 0x686   :  { %10320 = vst [vmem:[#allocation39_spill] sm:$0xff] %v7293_v44 }
 0x68d   :  { %v1364_v54 = vpop.permute.xlu2 %1363 }
 0x68e   :  { %v1368_v7 = vmul.f32 0.0, %v1364_v54  ;;  %v1367_v55 = vmul.f32 %v1364_v54, %v6796_v19  ;;  %v1366_v4 = vmul.f32 %v1364_v54, %v6789_v16 }
 0x690   :  { %1376 = vrot.lane.b32.xlu2 %v1368_v7, %s6535_s17  ;;  %1374 = vrot.lane.b32.xlu1 %v1367_v55, %s6535_s17  ;;  %v7316_v7 = vpop.permute.xlu1 %594 }
 0x691   :  { %1372 = vrot.lane.b32.xlu0 %v1366_v4, %s6535_s17 }
 0x698   :  { %v7322_v10 = vpop.permute.xlu1 %616 }
 0x699   :  { %1388 = vperm.xlu0 %6167, %v7058_v5  }
 0x6a1   :  { %6169 = vset.pattern.permute.xlu0 %v10321_v22  ;;  %v7325_v22 = vpop.permute.xlu1 %638 }
 0x6a9   :  { %v7327_v42 = vpop.permute.xlu1 %707 }
 0x6b1   :  { %v7329_v1 = vpop.permute.xlu1 %727 }
 0x6b2   :  { %10325 = vst [vmem:[#allocation43_spill] sm:$0xff] %v7329_v1 }
 0x6b9   :  { %v7331_v12 = vpop.permute.xlu1 %806 }
 0x6ba   :  { %10326 = vst [vmem:[#allocation44_spill] sm:$0xff] %v7331_v12  ;;  %v1327_v12 = vsel %vm10251_vm9, %v7135_v58, %v7156_v25 }
 0x6c1   :  { %v7333_v44 = vpop.permute.xlu1 %828 }
 0x6c2   :  { %10327 = vst [vmem:[#allocation45_spill] sm:$0xff] %v7333_v44  ;;  %v1260_v44 = vmul.f32 %v7088_v31, %v6789_v16 }
 0x6c9   :  { %v7335_v37 = vpop.permute.xlu1 %854 }
 0x703   :  { %v1373_v14 = vpop.permute.xlu0 %1372 }
 0x70b   :  { %v1389_v54 = vpop.permute.xlu0 %1388 }
 0x70c   :  { %v1392_v55 = vmul.f32 %v1389_v54, %v6796_v19  ;;  %v1391_v4 = vmul.f32 %v1389_v54, %v6789_v16  ;;  %v1393_v18 = vmul.f32 0.0, %v1389_v54 }
 0x70e   :  { %1399 = vrot.lane.b32.xlu2 %v1392_v55, %s6514_s22  ;;  %1397 = vrot.lane.b32.xlu1 %v1391_v4, %s6514_s22  ;;  %v7337_v55 = vpop.permute.xlu1 %923 }
 0x70f   :  { %10328 = vst [vmem:[#allocation46_spill] sm:$0xff] %v7337_v55  ;;  %v1302_v55 = vsel %vm10286_vm0, %v7101_v61, %v7133_v0 }
 0x716   :  { %1401 = vrot.lane.b32.xlu1 %v1393_v18, %s6514_s22  ;;  %v7339_v4 = vpop.permute.xlu1 %945  ;;  %v1278_v18 = vsel %vm224_vm1, %v7090_v29, %v7099_v8  ;;  %v1284_v29 = vadd.f32 %v1279_v32, %v1260_v44  ;;  %v1377_v8 = vpop.permute.xlu2 %1376  ;;  %v1261_v32 = vmul.f32 %v7088_v31, %v6796_v19 }
 0x717   :  { %10329 = vst [vmem:[#allocation47_spill] sm:$0xff] %v7339_v4  ;;  %v1283_v4 = vadd.f32 %v1278_v18, %v1259_v45 }
 0x718   :  { %v1285_v18 = vadd.f32 %v7131_v24, %v1261_v32 }
 0x719   :  { %v1307_v33 = vadd.f32 %v1302_v55, %v1283_v4 }
 0x71b   :  { %v1332_v61 = vadd.f32 %v1327_v12, %v1307_v33 }
 0x71d   :  { %v1359_v44 = vadd.f32 %v7160_v35, %v1332_v61 }
 0x71e   :  { %v7341_v54 = vpop.permute.xlu1 %967 }
 0x71f   :  { %10330 = vst [vmem:[#allocation48_spill] sm:$0xff] %v7341_v54  ;;  %v1303_v54 = vsel %vm10286_vm0, %v7133_v0, %v7154_v23  ;;  %v1354_v0 = vsel %vm500_vm10, %v7160_v35, %v7257_v41  ;;  %v1384_v4 = vadd.f32 %v1373_v14, %v1359_v44  ;;  %v1355_v35 = vsel %vm500_vm10, %v7257_v41, %v1353_v28 }
 0x720   :  { %v1308_v40 = vadd.f32 %v1303_v54, %v1284_v29  ;;  %v10332_v41 = vmov 22  }
 0x722   :  { %v1333_v45 = vadd.f32 %v1328_v2, %v1308_v40  ;;  %v1309_v2 = vadd.f32 %v7154_v23, %v1285_v18  ;;  %v10331_v23 = vmov 15  }
 0x724   :  { %v1360_v55 = vadd.f32 %v1354_v0, %v1333_v45  ;;  %v1334_v31 = vadd.f32 %v7249_v53, %v1309_v2 }
 0x726   :  { %v1375_v1 = vpop.permute.xlu1 %1374 }
 0x727   :  { %v1379_v58 = vsel %vm10285_vm11, %v1373_v14, %v1375_v1  ;;  %v1380_v24 = vsel %vm10285_vm11, %v1375_v1, %v1377_v8  ;;  %v1361_v14 = vadd.f32 %v1355_v35, %v1334_v31  ;;  %v7420_v35 = vld [vmem:[%s10303_s4 + $0x8] sm:$0xff] }
 0x728   :  { %v1385_v25 = vadd.f32 %v1379_v58, %v1360_v55 }
 0x729   :  { %v1386_v61 = vadd.f32 %v1380_v24, %v1361_v14  ;;  %v10220_v24 = vmov 36  }
 0x768   :  { %v1400_v54 = vpop.permute.xlu2 %1399 }
 0x780   :  { %v1398_v33 = vpop.permute.xlu1 %1397 }
 0x781   :  { %v1403_v12 = vsel %vm10270_vm12, %v1398_v33, %v1400_v54  ;;  %v1408_v29 = vadd.f32 %v1398_v33, %v1384_v4 }
 0x782   :  { %v1409_v40 = vadd.f32 %v1403_v12, %v1385_v25  ;;  %v10221_v12 = vmov 29  }
 0x783   :  { %1422 = vrot.lane.b32.xlu2 %v1408_v29, %s6536_s19 }
 0x784   :  { %1424 = vrot.lane.b32.xlu0 %v1409_v40, %s6536_s19 }
 0x788   :  { %v1402_v0 = vpop.permute.xlu1 %1401 }
 0x789   :  { %v1404_v45 = vsel %vm10270_vm12, %v1400_v54, %v1402_v0  ;;  %v579_v0 = vmul.f32 %v6850_v51, %v7177_v11 }
 0x78a   :  { %v1410_v44 = vadd.f32 %v1404_v45, %v1386_v61 }
 0x78b   :  { %1438 = vperm.xlu2 %6168, %v7058_v5   ;;  %v603_v45 = vadd.f32 %v7316_v7, %v579_v0  ;;  %v543_v0 = vmul.f32 0.0, %v6913_v39 }
 0x78c   :  { %1445 = vperm.xlu0 %6169, %v7058_v5   ;;  %1426 = vrot.lane.b32.xlu1 %v1410_v44, %s6536_s19  ;;  %v459_v44 = vmul.f32 %v6862_v57, %v7177_v11 }
 0x793   :  { %6170 = vset.pattern.permute.xlu2 %v10331_v23 }
 0x794   :  { %6171 = vset.pattern.permute.xlu0 %v10332_v41  ;;  %v10348_v41 = vld [vmem:[#allocation42_spill] sm:$0xff] }
 0x7dd   :  { %v7394_v32 = vpop.permute.xlu2 %1422 }
 0x7e5   :  { %v7396_v55 = vpop.permute.xlu2 %1438 }
 0x7f6   :  { %v7386_v53 = vpop.permute.xlu0 %1424 }
 0x7fe   :  { %v1446_v28 = vpop.permute.xlu0 %1445 }
 0x7ff   :  { %v1448_v1 = vmul.f32 0.0, %v1446_v28  ;;  %v1449_v8 = vmul.f32 %v1446_v28, %v6789_v16  ;;  %v1450_v58 = vmul.f32 %v1446_v28, %v6796_v19 }
 0x801   :  { %1456 = vrot.lane.b32.xlu2 %v1449_v8, %s6511_s30  ;;  %1454 = vrot.lane.b32.xlu1 %v1448_v1, %s6511_s30  ;;  %v627_v1 = vadd.f32 %v7276_v56, %v603_v45  ;;  %v835_v45 = vsel %vm500_vm10, %v7288_v59, %v7080_v60  ;;  %v476_v60 = vsel %vm10286_vm0, %v6984_v6, %v7306_v13 }
 0x802   :  { %v620_v6 = vsel %vm500_vm10, %v6921_v47, %v7322_v10  ;;  %v597_v47 = vsel %vm10286_vm0, %v7274_v38, %v7316_v7 }
 0x809   :  { %1469 = vperm.xlu2 %6170, %v7058_v5   ;;  %1458 = vrot.lane.b32.xlu1 %v1450_v58, %s6511_s30 }
 0x811   :  { %6172 = vset.pattern.permute.xlu2 %v10221_v12 }
 0x85b   :  { %v7398_v4 = vpop.permute.xlu2 %1456 }
 0x863   :  { %v1470_v18 = vpop.permute.xlu2 %1469 }
 0x864   :  { %v1473_v25 = vmul.f32 %v1470_v18, %v6789_v16  ;;  %v1474_v54 = vmul.f32 %v1470_v18, %v6796_v19  ;;  %v1472_v33 = vmul.f32 0.0, %v1470_v18  ;;  %v7412_v16 = vld [vmem:[%s10303_s4] sm:$0xff] }
 0x866   :  { %1478 = vrot.lane.b32.xlu0 %v1472_v33, %s6510_s18  ;;  %1482 = vrot.lane.b32.xlu2 %v1474_v54, %s6510_s18  ;;  %v530_v54 = vsel %vm10270_vm12, %v7314_v49, %v6986_v15  ;;  %v793_v15 = vmul.f32 %v6949_v36, %v7177_v11 }
 0x867   :  { %1480 = vrot.lane.b32.xlu1 %v1473_v25, %s6510_s18  ;;  %v483_v25 = vadd.f32 %v7265_v52, %v459_v44 }
 0x869   :  { %v508_v33 = vadd.f32 %v7310_v17, %v483_v25  ;;  %v596_v25 = vsel %vm10286_vm0, %v6935_v21, %v7274_v38  ;;  %v644_v38 = vsel %vm10270_vm12, %v7325_v22, %v7278_v43 }
 0x86e   :  { %1493 = vperm.xlu0 %6171, %v7058_v5  }
 0x876   :  { %6173 = vset.pattern.permute.xlu0 %v10220_v24  ;;  %v10347_v24 = vld [vmem:[#allocation45_spill] sm:$0xff] }
 0x8c0   :  { %v7426_v14 = vpop.permute.xlu2 %1482 }
 0x8d8   :  { %v7407_v29 = vpop.permute.xlu0 %1478 }
 0x8e0   :  { %v1494_v2 = vpop.permute.xlu0 %1493 }
 0x8e1   :  { %v1496_v40 = vmul.f32 0.0, %v1494_v2  ;;  %v1497_v19 = vmul.f32 %v7412_v16, %v1494_v2  ;;  %v1498_v31 = vmul.f32 %v7420_v35, %v1494_v2  ;;  %v645_v2 = vsel %vm10270_vm12, %v7278_v43, %v6941_v26 }
 0x8e2   :  { %v859_v26 = vsel %vm10270_vm12, %v7335_v37, %v7031_v48  ;;  %v501_v48 = vsel %vm500_vm10, %v6933_v20, %v7271_v50  ;;  %v6347_v20 = vld [vmem:[%s10301_s27] sm:$0xff]  ;;  %s6543_s27 = smov 60  }
 0x8e3   :  { %1504 = vrot.lane.b32.xlu2 %v1497_v19, %s6532_s2  ;;  %1502 = vrot.lane.b32.xlu1 %v1496_v40, %s6532_s2  ;;  %v651_v40 = vadd.f32 %v645_v2, %v627_v1  ;;  %v536_v19 = vadd.f32 %v530_v54, %v508_v33  ;;  %v577_v54 = vmul.f32 0.0, %v6850_v51  ;;  %v872_v33 = vmul.f32 0.0, %v7040_v62 }
 0x8eb   :  { %1517 = vperm.xlu2 %6172, %v7058_v5   ;;  %1506 = vrot.lane.b32.xlu1 %v1498_v31, %s6532_s2  ;;  %v658_v31 = vmul.f32 0.0, %v6988_v27 }
 0x8ed   :  { %v661_v44 = vadd.f32 %v658_v31, %v651_v40 }
 0x93d   :  { %v7428_v61 = vpop.permute.xlu2 %1504 }
 0x945   :  { %v1518_v28 = vpop.permute.xlu2 %1517 }
 0x946   :  { %v1521_v8 = vmul.f32 %v7420_v35, %v1518_v28  ;;  %v1522_v58 = vmul.f32 0.0, %v1518_v28  ;;  %v1520_v18 = vmul.f32 %v7412_v16, %v1518_v28  ;;  %v546_v28 = vadd.f32 %v543_v0, %v536_v19 }
 0x947   :  { %v601_v19 = vadd.f32 %v596_v25, %v577_v54  ;;  %v10333_v0 = vmov 2   ;;  %v791_v54 = vmul.f32 0.0, %v6949_v36 }
 0x948   :  { %1530 = vrot.lane.b32.xlu2 %v1522_v58, %s6516_s13  ;;  %1526 = vrot.lane.b32.xlu0 %v1520_v18, %s6516_s13  ;;  %v817_v58 = vadd.f32 %v7286_v30, %v793_v15 }
 0x949   :  { %1528 = vrot.lane.b32.xlu1 %v1521_v8, %s6516_s13  ;;  %v457_v8 = vmul.f32 0.0, %v6862_v57  ;;  %v625_v15 = vadd.f32 %v620_v6, %v601_v19  ;;  %v711_v6 = vsel %vm10286_vm0, %v6992_v34, %v7327_v42  ;;  %v10334_v19 = vld [vmem:[#allocation38_spill] sm:$0xff] }
 0x94a   :  { %v841_v1 = vadd.f32 %v835_v45, %v817_v58  ;;  %v656_v58 = vmul.f32 %v6988_v27, %v7126_v9 }
 0x94b   :  { %v481_v2 = vadd.f32 %v476_v60, %v457_v8  ;;  %v649_v45 = vadd.f32 %v7325_v22, %v625_v15 }
 0x94c   :  { %v865_v18 = vadd.f32 %v859_v26, %v841_v1  ;;  %v621_v26 = vsel %vm500_vm10, %v7322_v10, %v7276_v56 }
 0x94d   :  { %v506_v40 = vadd.f32 %v501_v48, %v481_v2  ;;  %v659_v8 = vadd.f32 %v656_v58, %v649_v45  ;;  %v768_v2 = vmul.f32 0.0, %v6996_v46  ;;  %v10337_v58 = vld [vmem:[#allocation36_spill] sm:$0xff] }
 0x94e   :  { %v875_v31 = vadd.f32 %v872_v33, %v865_v18  ;;  %v657_v18 = vmul.f32 %v6988_v27, %v7177_v11  ;;  %v766_v27 = vmul.f32 %v6996_v46, %v7126_v9 }
 0x94f   :  { %v534_v21 = vadd.f32 %v7302_v63, %v506_v40  ;;  %v712_v40 = vsel %vm10286_vm0, %v7327_v42, %v7280_v3 }
 0x950   :  { %677 = vrot.lane.b32.xlu2 %v661_v44, %s6539_s16  ;;  %1541 = vperm.xlu0 %6173, %v7058_v5   ;;  %v541_v44 = vmul.f32 %v6913_v39, %v7126_v9 }
 0x951   :  { %562 = vrot.lane.b32.xlu1 %v546_v28, %s6540_s28  ;;  %v578_v28 = vmul.f32 %v6850_v51, %v7126_v9 }
 0x952   :  { %v544_v60 = vadd.f32 %v541_v44, %v534_v21 }
 0x953   :  { %v602_v1 = vadd.f32 %v597_v47, %v578_v28  ;;  %v10336_v47 = vld [vmem:[#allocation27_spill] sm:$0xff]  ;;  %v767_v28 = vmul.f32 %v6996_v46, %v7177_v11 }
 0x954   :  { %v906_v44 = vmul.f32 0.0, %v10336_v47  ;;  %v908_v42 = vmul.f32 %v10336_v47, %v7177_v11 }
 0x955   :  { %v626_v7 = vadd.f32 %v621_v26, %v602_v1  ;;  %v10338_v26 = vld [vmem:[#allocation43_spill] sm:$0xff]  ;;  %v10339_v1 = vld [vmem:[#allocation44_spill] sm:$0xff] }
 0x956   :  { %v731_v34 = vsel %vm500_vm10, %v10338_v26, %v10337_v58 }
 0x957   :  { %v650_v51 = vadd.f32 %v644_v38, %v626_v7 }
 0x958   :  { %6174 = vset.pattern.permute.xlu0 %v10333_v0 }
 0x959   :  { %891 = vrot.lane.b32.xlu1 %v875_v31, %s6541_s29  ;;  %689 = vperm.xlu0 %6174, %v6347_v20   ;;  %v660_v48 = vadd.f32 %v657_v18, %v650_v51  ;;  %v10335_v31 = vld [vmem:[#allocation30_spill] sm:$0xff]  ;;  %v10341_v51 = vld [vmem:[#allocation25_spill] sm:$0xff]  ;;  %v10342_v18 = vld [vmem:[#allocation40_spill] sm:$0xff] }
 0x95a   :  { %v925_v15 = vsel %vm10286_vm0, %v10335_v31, %v10334_v19  ;;  %v755_v46 = vsel %vm10270_vm12, %v10342_v18, %v10341_v51 }
 0x961   :  { %558 = vrot.lane.b32.xlu1 %v544_v60, %s6540_s28  ;;  %673 = vrot.lane.b32.xlu0 %v659_v8, %s6539_s16  ;;  %v10340_v60 = vld [vmem:[#allocation26_spill] sm:$0xff] }
 0x962   :  { %v810_v8 = vsel %vm10286_vm0, %v10340_v60, %v10339_v1 }
 0x969   :  { %675 = vrot.lane.b32.xlu1 %v660_v48, %s6539_s16  ;;  %v10343_v48 = vld [vmem:[#allocation37_spill] sm:$0xff] }
 0x9ba   :  { %v7505_v10 = vpop.permute.xlu0 %1526 }
 0x9c2   :  { %v7507_v56 = vpop.permute.xlu0 %1541 }
 0x9cb   :  { %v690_v25 = vpop.permute.xlu0 %689 }
 0x9cc   :  { %v692_v43 = vmul.f32 0.0, %v690_v25  ;;  %v693_v22 = vmul.f32 %v690_v25, %v7126_v9  ;;  %v694_v33 = vmul.f32 %v690_v25, %v7177_v11  ;;  %v754_v25 = vsel %vm10270_vm12, %v10343_v48, %v10342_v18 }
 0x9ce   :  { %v716_v20 = vadd.f32 %v711_v6, %v692_v43  ;;  %v717_v21 = vadd.f32 %v712_v40, %v693_v22  ;;  %v718_v45 = vadd.f32 %v7280_v3, %v694_v33  ;;  %v930_v43 = vadd.f32 %v925_v15, %v906_v44  ;;  %v10344_v22 = vld [vmem:[#allocation28_spill] sm:$0xff]  ;;  %v10345_v33 = vld [vmem:[#allocation47_spill] sm:$0xff]  ;;  %v10346_v40 = vld [vmem:[#allocation46_spill] sm:$0xff] }
 0x9cf   :  { %v950_v6 = vsel %vm500_vm10, %v10345_v33, %v10344_v22  ;;  %v932_v31 = vadd.f32 %v10346_v40, %v908_v42  ;;  %v10349_v15 = vld [vmem:[#allocation31_spill] sm:$0xff]  ;;  %v870_v22 = vmul.f32 %v7040_v62, %v7126_v9 }
 0x9d0   :  { %v736_v38 = vadd.f32 %v731_v34, %v717_v21  ;;  %v737_v7 = vadd.f32 %v10337_v58, %v718_v45  ;;  %v735_v3 = vadd.f32 %v10338_v26, %v716_v20  ;;  %v815_v20 = vadd.f32 %v810_v8, %v791_v54  ;;  %v10350_v44 = vld [vmem:[#allocation39_spill] sm:$0xff]  ;;  %v10351_v54 = vld [vmem:[#allocation48_spill] sm:$0xff] }
 0x9d1   :  { %v956_v26 = vadd.f32 %v950_v6, %v932_v31  ;;  %v954_v18 = vadd.f32 %v10348_v41, %v930_v43  ;;  %v974_v42 = vsel %vm10270_vm12, %v10350_v44, %v10349_v15  ;;  %v926_v43 = vsel %vm10286_vm0, %v10334_v19, %v10346_v40 }
 0x9d2   :  { %v759_v21 = vadd.f32 %v10343_v48, %v735_v3  ;;  %v761_v45 = vadd.f32 %v755_v46, %v737_v7  ;;  %v760_v58 = vadd.f32 %v754_v25, %v736_v38  ;;  %v839_v12 = vadd.f32 %v10347_v24, %v815_v20  ;;  %v10353_v46 = vld [vmem:[#allocation29_spill] sm:$0xff] }
 0x9d3   :  { %v980_v38 = vadd.f32 %v974_v42, %v956_v26  ;;  %v978_v8 = vadd.f32 %v10351_v54, %v954_v18  ;;  %v458_v3 = vmul.f32 %v6862_v57, %v7126_v9  ;;  %v985_v48 = vmul.f32 %v10353_v46, %v7126_v9  ;;  %v1531_v18 = vpop.permute.xlu2 %1530 }
 0x9d4   :  { %v769_v34 = vadd.f32 %v766_v27, %v759_v21  ;;  %v771_v60 = vadd.f32 %v768_v2, %v761_v45  ;;  %v770_v51 = vadd.f32 %v767_v28, %v760_v58  ;;  %v10228_v27 = vmov 43   ;;  %v10352_v28 = vld [vmem:[#allocation41_spill] sm:$0xff] }
 0x9d5   :  { %6175 = vset.pattern.permute.xlu2 %v10228_v27  ;;  %v477_v2 = vsel %vm10286_vm0, %v7306_v13, %v7265_v52  ;;  %v863_v7 = vadd.f32 %v10352_v28, %v839_v12  ;;  %v987_v25 = vmul.f32 0.0, %v10353_v46  ;;  %v907_v52 = vmul.f32 %v10336_v47, %v7126_v9 }
 0x9d6   :  { %775 = vrot.lane.b32.xlu0 %v769_v34, %s6516_s13  ;;  %779 = vrot.lane.b32.xlu2 %v771_v60, %s6516_s13  ;;  %v502_v13 = vsel %vm500_vm10, %v7271_v50, %v7310_v17  ;;  %v482_v57 = vadd.f32 %v477_v2, %v458_v3  ;;  %v949_v12 = vsel %vm500_vm10, %v10348_v41, %v10345_v33 }
 0x9d7   :  { %777 = vrot.lane.b32.xlu1 %v770_v51, %s6516_s13  ;;  %v988_v6 = vadd.f32 %v985_v48, %v978_v8  ;;  %v990_v31 = vadd.f32 %v987_v25, %v980_v38  ;;  %v529_v19 = vsel %vm10270_vm12, %v7302_v63, %v7314_v49  ;;  %v931_v40 = vadd.f32 %v926_v43, %v907_v52  ;;  %v7626_v38 = vpop.permute.xlu1 %1426 }
 0x9d8   :  { %v873_v21 = vadd.f32 %v870_v22, %v863_v7  ;;  %v507_v45 = vadd.f32 %v502_v13, %v482_v57  ;;  %v973_v47 = vsel %vm10270_vm12, %v10351_v54, %v10350_v44  ;;  %v811_v63 = vsel %vm10286_vm0, %v10339_v1, %v7286_v30 }
 0x9d9   :  { %v955_v50 = vadd.f32 %v949_v12, %v931_v40  ;;  %v792_v41 = vmul.f32 %v6949_v36, %v7126_v9  ;;  %v542_v33 = vmul.f32 %v6913_v39, %v7177_v11  ;;  %v986_v58 = vmul.f32 %v10353_v46, %v7177_v11  ;;  %v7651_v40 = vpop.permute.xlu0 %673 }
 0x9da   :  { %v535_v17 = vadd.f32 %v529_v19, %v507_v45  ;;  %v834_v20 = vsel %vm500_vm10, %v10347_v24, %v7288_v59  ;;  %v858_v30 = vsel %vm10270_vm12, %v10352_v28, %v7335_v37  ;;  %v871_v36 = vmul.f32 %v7040_v62, %v7177_v11  ;;  %10367 = vst [vmem:[#allocation46_spill] sm:$0xff] %v7651_v40 }
 0x9db   :  { %v979_v49 = vadd.f32 %v973_v47, %v955_v50  ;;  %v816_v34 = vadd.f32 %v811_v63, %v792_v41  ;;  %v1544_v59 = vmul.f32 %v7412_v16, %v7507_v56  ;;  %v1545_v37 = vmul.f32 %v7420_v35, %v7507_v56  ;;  %v7620_v15 = vpop.permute.xlu2 %677 }
 0x9dc   :  { %v545_v26 = vadd.f32 %v542_v33, %v535_v17  ;;  %v1546_v24 = vmul.f32 0.0, %v7507_v56  ;;  %v10354_v62 = vmov 23   ;;  %10355 = vst [vmem:[#allocation38_spill] sm:$0xff] %v7620_v15  ;;  %v1441_v50 = vmul.f32 0.0, %v7396_v55 }
 0x9dd   :  { %v989_v1 = vadd.f32 %v986_v58, %v979_v49  ;;  %v840_v60 = vadd.f32 %v834_v20, %v816_v34  ;;  %v1442_v49 = vmul.f32 %v7412_v16, %v7396_v55  ;;  %v1443_v33 = vmul.f32 %v7420_v35, %v7396_v55 }
 0x9de   :  { %1002 = vrot.lane.b32.xlu0 %v988_v6, %s6543_s27  ;;  %1006 = vrot.lane.b32.xlu2 %v990_v31, %s6543_s27 }
 0x9df   :  { %887 = vrot.lane.b32.xlu1 %v873_v21, %s6541_s29  ;;  %v864_v39 = vadd.f32 %v858_v30, %v840_v60  ;;  %v1455_v56 = vpop.permute.xlu1 %1454 }
 0x9e0   :  { %v1460_v47 = vsel %vm224_vm1, %v1455_v56, %v7398_v4 }
 0x9e1   :  { %v874_v51 = vadd.f32 %v871_v36, %v864_v39  ;;  %v1465_v41 = vadd.f32 %v1460_v47, %v1441_v50 }
 0x9e6   :  { %560 = vrot.lane.b32.xlu2 %v545_v26, %s6540_s28 }
 0x9e7   :  { %1004 = vrot.lane.b32.xlu1 %v989_v1, %s6543_s27  ;;  %v1459_v2 = vpop.permute.xlu1 %1458 }
 0x9e8   :  { %v1461_v17 = vsel %vm224_vm1, %v7398_v4, %v1459_v2  ;;  %v1467_v4 = vadd.f32 %v1459_v2, %v1443_v33 }
 0x9e9   :  { %v1466_v34 = vadd.f32 %v1461_v17, %v1442_v49 }
 0x9ea   :  { %v1491_v60 = vadd.f32 %v7426_v14, %v1467_v4 }
 0x9ee   :  { %889 = vrot.lane.b32.xlu2 %v874_v51, %s6541_s29 }
 0x9ef   :  { %1550 = vrot.lane.b32.xlu1 %v1544_v59, %s6535_s17  ;;  %v1481_v7 = vpop.permute.xlu1 %1480 }
 0x9f0   :  { %v1484_v63 = vsel %vm10286_vm0, %v7407_v29, %v1481_v7  ;;  %v1485_v58 = vsel %vm10286_vm0, %v1481_v7, %v7426_v14 }
 0x9f1   :  { %v1489_v30 = vadd.f32 %v1484_v63, %v1465_v41  ;;  %v1490_v39 = vadd.f32 %v1485_v58, %v1466_v34 }
 0x9f6   :  { %1552 = vrot.lane.b32.xlu2 %v1545_v37, %s6535_s17 }
 0x9f7   :  { %1554 = vrot.lane.b32.xlu1 %v1546_v24, %s6535_s17  ;;  %v1503_v25 = vpop.permute.xlu1 %1502 }
 0x9f8   :  { %v1508_v20 = vsel %vm10251_vm9, %v1503_v25, %v7428_v61 }
 0x9f9   :  { %v1513_v36 = vadd.f32 %v1508_v20, %v1489_v30 }
 0x9fb   :  { %v1537_v24 = vadd.f32 %v7505_v10, %v1513_v36 }
 0x9fe   :  { %1565 = vperm.xlu2 %6175, %v7058_v5  }
 0x9ff   :  { %v1507_v43 = vpop.permute.xlu1 %1506 }
 0xa00   :  { %v1509_v29 = vsel %vm10251_vm9, %v7428_v61, %v1507_v43  ;;  %v1515_v37 = vadd.f32 %v1507_v43, %v1491_v60  ;;  %v10224_v60 = vmov 30  }
 0xa01   :  { %v1514_v59 = vadd.f32 %v1509_v29, %v1490_v39 }
 0xa06   :  { %6178 = vset.pattern.permute.xlu2 %v10354_v62 }
 0xa07   :  { %v1529_v22 = vpop.permute.xlu1 %1528 }
 0xa08   :  { %v1532_v55 = vsel %vm500_vm10, %v7505_v10, %v1529_v22  ;;  %v1533_v51 = vsel %vm500_vm10, %v1529_v22, %v1531_v18  ;;  %v7689_v10 = vld [vmem:[%s10307_s15] sm:$0xff] }
 0xa09   :  { %v1538_v7 = vadd.f32 %v1532_v55, %v1514_v59 }
 0xa0f   :  { %v7637_v52 = vpop.permute.xlu1 %562 }
 0xa10   :  { %10360 = vst [vmem:[#allocation44_spill] sm:$0xff] %v7637_v52 }
 0xa17   :  { %v7639_v13 = vpop.permute.xlu1 %891 }
 0xa18   :  { %10361 = vst [vmem:[#allocation26_spill] sm:$0xff] %v7639_v13 }
 0xa1f   :  { %v7641_v57 = vpop.permute.xlu1 %558 }
 0xa20   :  { %10362 = vst [vmem:[#allocation25_spill] sm:$0xff] %v7641_v57 }
 0xa27   :  { %v7643_v12 = vpop.permute.xlu1 %675 }
 0xa28   :  { %10363 = vst [vmem:[#allocation40_spill] sm:$0xff] %v7643_v12 }
 0xa30   :  { %v7622_v44 = vpop.permute.xlu2 %779 }
 0xa31   :  { %10356 = vst [vmem:[#allocation30_spill] sm:$0xff] %v7622_v44 }
 0xa38   :  { %v7624_v42 = vpop.permute.xlu2 %1006 }
 0xa39   :  { %10357 = vst [vmem:[#allocation27_spill] sm:$0xff] %v7624_v42 }
 0xa40   :  { %v7628_v54 = vpop.permute.xlu2 %560 }
 0xa41   :  { %10358 = vst [vmem:[#allocation36_spill] sm:$0xff] %v7628_v54 }
 0xa48   :  { %v7630_v8 = vpop.permute.xlu2 %889  ;;  %v7653_v21 = vpop.permute.xlu0 %775 }
 0xa49   :  { %10359 = vst [vmem:[#allocation43_spill] sm:$0xff] %v7630_v8  ;;  %v7645_v6 = vpop.permute.xlu1 %777 }
 0xa4a   :  { %10364 = vst [vmem:[#allocation37_spill] sm:$0xff] %v7645_v6 }
 0xa4b   :  { %10368 = vst [vmem:[#allocation45_spill] sm:$0xff] %v7653_v21 }
 0xa50   :  { %v1553_v28 = vpop.permute.xlu2 %1552  ;;  %v7670_v26 = vpop.permute.xlu0 %1002 }
 0xa51   :  { %v7647_v31 = vpop.permute.xlu1 %887  ;;  %10369 = vst [vmem:[#allocation42_spill] sm:$0xff] %v7670_v26 }
 0xa52   :  { %10365 = vst [vmem:[#allocation28_spill] sm:$0xff] %v7647_v31 }
 0xa58   :  { %v1566_v5 = vpop.permute.xlu2 %1565 }
 0xa59   :  { %v1569_v3 = vmul.f32 %v7420_v35, %v1566_v5  ;;  %v1570_v46 = vmul.f32 0.0, %v1566_v5  ;;  %v1568_v48 = vmul.f32 %v7412_v16, %v1566_v5  ;;  %v7649_v19 = vpop.permute.xlu1 %1004  ;;  %v1539_v5 = vadd.f32 %v1533_v51, %v1515_v37 }
 0xa5a   :  { %10366 = vst [vmem:[#allocation47_spill] sm:$0xff] %v7649_v19 }
 0xa5b   :  { %1578 = vrot.lane.b32.xlu2 %v1570_v46, %s6514_s22  ;;  %1574 = vrot.lane.b32.xlu0 %v1568_v48, %s6514_s22 }
 0xa5c   :  { %1576 = vrot.lane.b32.xlu1 %v1569_v3, %s6514_s22 }
 0xa61   :  { %v1551_v45 = vpop.permute.xlu1 %1550 }
 0xa62   :  { %v1556_v56 = vsel %vm10285_vm11, %v1551_v45, %v1553_v28  ;;  %v1561_v61 = vadd.f32 %v1551_v45, %v1537_v24  ;;  %v10223_v24 = vmov 37  }
 0xa63   :  { %v1562_v14 = vadd.f32 %v1556_v56, %v1538_v7 }
 0xa69   :  { %v1555_v1 = vpop.permute.xlu1 %1554 }
 0xa6a   :  { %v1557_v2 = vsel %vm10285_vm11, %v1553_v28, %v1555_v1  ;;  %v10370_v28 = vmov 16  }
 0xa6b   :  { %v1563_v46 = vadd.f32 %v1557_v2, %v1539_v5 }
 0xab5   :  { %v1579_v48 = vpop.permute.xlu2 %1578 }
 0xacd   :  { %v1575_v3 = vpop.permute.xlu0 %1574 }
 0xace   :  { %v1585_v25 = vadd.f32 %v1575_v3, %v1561_v61  ;;  %v1577_v47 = vpop.permute.xlu1 %1576 }
 0xacf   :  { %v1580_v50 = vsel %vm10270_vm12, %v1575_v3, %v1577_v47  ;;  %v1581_v18 = vsel %vm10270_vm12, %v1577_v47, %v1579_v48  ;;  %v10371_v3 = vmov 3  }
 0xad0   :  { %v1586_v43 = vadd.f32 %v1580_v50, %v1562_v14  ;;  %v1587_v22 = vadd.f32 %v1581_v18, %v1563_v46  ;;  %1591 = vrot.lane.b32.xlu0 %v1585_v25, %s6544_s11  ;;  %v10222_v14 = vmov 44  }
 0xad2   :  { %1595 = vrot.lane.b32.xlu2 %v1587_v22, %s6544_s11  ;;  %1593 = vrot.lane.b32.xlu1 %v1586_v43, %s6544_s11  ;;  %v10372_v43 = vmov 10  }
 0xad8   :  { %1607 = vperm.xlu0 %6174, %v7689_v10  }
 0xada   :  { %1614 = vperm.xlu1 %6176, %v7689_v10  }
 0xae0   :  { %6177 = vset.pattern.permute.xlu0 %v10370_v28 }
 0xae1   :  { %1638 = vperm.xlu0 %6177, %v7689_v10  }
 0xae9   :  { %6179 = vset.pattern.permute.xlu0 %v10224_v60 }
 0xb2c   :  { %v7712_v1 = vpop.permute.xlu2 %1595 }
 0xb42   :  { %v7695_v45 = vpop.permute.xlu0 %1591 }
 0xb44   :  { %v7697_v17 = vpop.permute.xlu1 %1593 }
 0xb4a   :  { %v7699_v63 = vpop.permute.xlu0 %1607 }
 0xb4c   :  { %v1615_v49 = vpop.permute.xlu1 %1614 }
 0xb4d   :  { %v1617_v41 = vmul.f32 0.0, %v1615_v49  ;;  %v1618_v33 = vmul.f32 %v7412_v16, %v1615_v49  ;;  %v1619_v34 = vmul.f32 %v7420_v35, %v1615_v49 }
 0xb4f   :  { %1623 = vrot.lane.b32.xlu2 %v1617_v41, %s6511_s30  ;;  %1625 = vrot.lane.b32.xlu1 %v1618_v33, %s6511_s30 }
 0xb53   :  { %v1639_v58 = vpop.permute.xlu0 %1638 }
 0xb54   :  { %v1641_v20 = vmul.f32 0.0, %v1639_v58  ;;  %v1642_v4 = vmul.f32 %v7412_v16, %v1639_v58  ;;  %v1643_v30 = vmul.f32 %v7420_v35, %v1639_v58 }
 0xb57   :  { %1627 = vrot.lane.b32.xlu2 %v1619_v34, %s6511_s30  ;;  %1647 = vrot.lane.b32.xlu1 %v1641_v20, %s6510_s18 }
 0xb5f   :  { %1649 = vrot.lane.b32.xlu2 %v1642_v4, %s6510_s18  ;;  %1651 = vrot.lane.b32.xlu1 %v1643_v30, %s6510_s18 }
 0xb67   :  { %1662 = vperm.xlu2 %6178, %v7689_v10  }
 0xb6f   :  { %6180 = vset.pattern.permute.xlu2 %v10223_v24 }
 0xba9   :  { %v1624_v29 = vpop.permute.xlu2 %1623 }
 0xbb1   :  { %v7715_v39 = vpop.permute.xlu2 %1627 }
 0xbb9   :  { %v1650_v36 = vpop.permute.xlu2 %1649 }
 0xbc1   :  { %v1663_v55 = vpop.permute.xlu2 %1662  ;;  %v1626_v20 = vpop.permute.xlu1 %1625 }
 0xbc2   :  { %v1666_v51 = vmul.f32 %v7412_v16, %v1663_v55  ;;  %v1667_v59 = vmul.f32 %v7420_v35, %v1663_v55  ;;  %v1665_v37 = vmul.f32 0.0, %v1663_v55 }
 0xbc4   :  { %1675 = vrot.lane.b32.xlu2 %v1667_v59, %s6532_s2  ;;  %1673 = vrot.lane.b32.xlu1 %v1666_v51, %s6532_s2  ;;  %v1629_v59 = vsel %vm224_vm1, %v1624_v29, %v1626_v20 }
 0xbc5   :  { %1671 = vrot.lane.b32.xlu0 %v1665_v37, %s6532_s2  ;;  %v1610_v37 = vmul.f32 0.0, %v7699_v63 }
 0xbc9   :  { %v1648_v34 = vpop.permute.xlu1 %1647 }
 0xbcd   :  { %1686 = vperm.xlu0 %6179, %v7689_v10  }
 0xbd1   :  { %v1652_v4 = vpop.permute.xlu1 %1651 }
 0xbd5   :  { %6181 = vset.pattern.permute.xlu0 %v10222_v14 }
 0xc1e   :  { %v1676_v46 = vpop.permute.xlu2 %1675 }
 0xc36   :  { %v1674_v30 = vpop.permute.xlu1 %1673 }
 0xc37   :  { %v1672_v56 = vpop.permute.xlu0 %1671  ;;  %v1678_v29 = vsel %vm10251_vm9, %v1674_v30, %v1676_v46 }
 0xc3f   :  { %v1687_v2 = vpop.permute.xlu0 %1686 }
 0xc40   :  { %v1689_v7 = vmul.f32 %v7412_v16, %v1687_v2  ;;  %v1690_v5 = vmul.f32 %v7420_v35, %v1687_v2  ;;  %v1691_v61 = vmul.f32 0.0, %v1687_v2  ;;  %v1630_v2 = vsel %vm224_vm1, %v1626_v20, %v7715_v39 }
 0xc42   :  { %1697 = vrot.lane.b32.xlu2 %v1690_v5, %s6516_s13  ;;  %1695 = vrot.lane.b32.xlu1 %v1689_v7, %s6516_s13  ;;  %v1611_v7 = vmul.f32 %v7412_v16, %v7699_v63  ;;  %v1653_v5 = vsel %vm10286_vm0, %v1648_v34, %v1650_v36  ;;  %v1612_v34 = vmul.f32 %v7420_v35, %v7699_v63 }
 0xc4a   :  { %1710 = vperm.xlu2 %6180, %v7689_v10   ;;  %1699 = vrot.lane.b32.xlu1 %v1691_v61, %s6516_s13  ;;  %v1634_v61 = vadd.f32 %v1629_v59, %v1610_v37 }
 0xc52   :  { %6182 = vset.pattern.permute.xlu2 %v10371_v3 }
 0xc9c   :  { %v1698_v48 = vpop.permute.xlu2 %1697 }
 0xca4   :  { %v1711_v25 = vpop.permute.xlu2 %1710 }
 0xca5   :  { %v1714_v47 = vmul.f32 %v7420_v35, %v1711_v25  ;;  %v1715_v50 = vmul.f32 0.0, %v1711_v25  ;;  %v1713_v18 = vmul.f32 %v7412_v16, %v1711_v25  ;;  %v1654_v25 = vsel %vm10286_vm0, %v1650_v36, %v1652_v4 }
 0xca7   :  { %1723 = vrot.lane.b32.xlu2 %v1715_v50, %s6535_s17  ;;  %1719 = vrot.lane.b32.xlu0 %v1713_v18, %s6535_s17  ;;  %v1677_v50 = vsel %vm10251_vm9, %v1672_v56, %v1674_v30  ;;  %v1636_v56 = vadd.f32 %v7715_v39, %v1612_v34 }
 0xca8   :  { %1721 = vrot.lane.b32.xlu1 %v1714_v47, %s6535_s17  ;;  %v1635_v47 = vadd.f32 %v1630_v2, %v1611_v7 }
 0xcaf   :  { %1734 = vperm.xlu0 %6181, %v7689_v10  }
 0xcb4   :  { %v1696_v55 = vpop.permute.xlu1 %1695 }
 0xcb5   :  { %v1701_v20 = vsel %vm500_vm10, %v1696_v55, %v1698_v48 }
 0xcb7   :  { %6183 = vset.pattern.permute.xlu0 %v10372_v43 }
 0xcbc   :  { %v1700_v51 = vpop.permute.xlu1 %1699 }
 0xd01   :  { %v1724_v18 = vpop.permute.xlu2 %1723 }
 0xd19   :  { %v1720_v22 = vpop.permute.xlu0 %1719 }
 0xd21   :  { %v1735_v49 = vpop.permute.xlu0 %1734 }
 0xd22   :  { %v1737_v41 = vmul.f32 %v7412_v16, %v1735_v49  ;;  %v1738_v33 = vmul.f32 %v7420_v35, %v1735_v49  ;;  %v1739_v58 = vmul.f32 0.0, %v1735_v49  ;;  %v1722_v49 = vpop.permute.xlu1 %1721 }
 0xd23   :  { %v1725_v60 = vsel %vm10285_vm11, %v1720_v22, %v1722_v49  ;;  %v1726_v63 = vsel %vm10285_vm11, %v1722_v49, %v1724_v18 }
 0xd24   :  { %1745 = vrot.lane.b32.xlu2 %v1738_v33, %s6514_s22  ;;  %1743 = vrot.lane.b32.xlu1 %v1737_v41, %s6514_s22  ;;  %v1658_v41 = vadd.f32 %v1653_v5, %v1634_v61  ;;  %v1659_v33 = vadd.f32 %v1654_v25, %v1635_v47  ;;  %v1660_v61 = vadd.f32 %v1652_v4, %v1636_v56  ;;  %v10374_v4 = vmov 24  }
 0xd25   :  { %v1702_v47 = vsel %vm500_vm10, %v1698_v48, %v1700_v51  ;;  %v10373_v48 = vmov 17  }
 0xd26   :  { %v1683_v14 = vadd.f32 %v1678_v29, %v1659_v33 }
 0xd28   :  { %v1707_v36 = vadd.f32 %v1701_v20, %v1683_v14 }
 0xd2a   :  { %v1731_v37 = vadd.f32 %v1725_v60, %v1707_v36 }
 0xd2c   :  { %1747 = vrot.lane.b32.xlu1 %v1739_v58, %s6514_s22  ;;  %v1682_v58 = vadd.f32 %v1677_v50, %v1658_v41 }
 0xd2e   :  { %v1706_v24 = vadd.f32 %v1696_v55, %v1682_v58  ;;  %v1684_v55 = vadd.f32 %v1676_v46, %v1660_v61 }
 0xd30   :  { %v1730_v59 = vadd.f32 %v1720_v22, %v1706_v24  ;;  %v1708_v24 = vadd.f32 %v1702_v47, %v1684_v55 }
 0xd32   :  { %v1732_v39 = vadd.f32 %v1726_v63, %v1708_v24 }
 0xd7e   :  { %v1746_v2 = vpop.permute.xlu2 %1745 }
 0xd96   :  { %v1744_v7 = vpop.permute.xlu1 %1743 }
 0xd97   :  { %v1749_v30 = vsel %vm10270_vm12, %v1744_v7, %v1746_v2  ;;  %v1754_v5 = vadd.f32 %v1744_v7, %v1730_v59  ;;  %v10227_v59 = vmov 31  }
 0xd98   :  { %v1755_v25 = vadd.f32 %v1749_v30, %v1731_v37  ;;  %6186 = vset.pattern.permute.xlu1 %v10227_v59  ;;  %v10375_v30 = vmov 12  }
 0xd99   :  { %1760 = vrot.lane.b32.xlu2 %v1754_v5, %s6548_s1 }
 0xd9a   :  { %1762 = vrot.lane.b32.xlu0 %v1755_v25, %s6548_s1  ;;  %v10226_v25 = vmov 38  }
 0xd9e   :  { %v1748_v60 = vpop.permute.xlu1 %1747 }
 0xd9f   :  { %v1750_v14 = vsel %vm10270_vm12, %v1746_v2, %v1748_v60 }
 0xda0   :  { %v1756_v22 = vadd.f32 %v1750_v14, %v1732_v39 }
 0xda1   :  { %1776 = vperm.xlu2 %6182, %v7689_v10  }
 0xda2   :  { %1783 = vperm.xlu0 %6183, %v7689_v10   ;;  %1764 = vrot.lane.b32.xlu1 %v1756_v22, %s6548_s1  ;;  %v10376_v22 = vmov 4  }
 0xda9   :  { %6184 = vset.pattern.permute.xlu2 %v10373_v48 }
 0xdaa   :  { %6185 = vset.pattern.permute.xlu0 %v10374_v4 }
 0xdf3   :  { %v7778_v41 = vpop.permute.xlu2 %1760 }
 0xdfb   :  { %v7780_v29 = vpop.permute.xlu2 %1776 }
 0xe0c   :  { %v7770_v46 = vpop.permute.xlu0 %1762 }
 0xe14   :  { %v1784_v51 = vpop.permute.xlu0 %1783  ;;  %v7795_v5 = vpop.permute.xlu1 %1764 }
 0xe15   :  { %v1786_v50 = vmul.f32 0.0, %v1784_v51  ;;  %v1787_v18 = vmul.f32 %v7412_v16, %v1784_v51  ;;  %v1788_v49 = vmul.f32 %v7420_v35, %v1784_v51  ;;  %v10225_v51 = vmov 45  }
 0xe17   :  { %1794 = vrot.lane.b32.xlu2 %v1787_v18, %s6511_s30  ;;  %1792 = vrot.lane.b32.xlu1 %v1786_v50, %s6511_s30 }
 0xe1f   :  { %1807 = vperm.xlu2 %6184, %v7689_v10   ;;  %1796 = vrot.lane.b32.xlu1 %v1788_v49, %s6511_s30 }
 0xe27   :  { %6187 = vset.pattern.permute.xlu2 %v10226_v25 }
 0xe71   :  { %v1795_v33 = vpop.permute.xlu2 %1794 }
 0xe79   :  { %v1808_v58 = vpop.permute.xlu2 %1807 }
 0xe7a   :  { %v1810_v20 = vmul.f32 0.0, %v1808_v58  ;;  %v1811_v34 = vmul.f32 %v7412_v16, %v1808_v58  ;;  %v1812_v36 = vmul.f32 %v7420_v35, %v1808_v58 }
 0xe7c   :  { %1816 = vrot.lane.b32.xlu0 %v1810_v20, %s6510_s18  ;;  %1820 = vrot.lane.b32.xlu2 %v1812_v36, %s6510_s18 }
 0xe7d   :  { %1818 = vrot.lane.b32.xlu1 %v1811_v34, %s6510_s18 }
 0xe84   :  { %1831 = vperm.xlu0 %6185, %v7689_v10  }
 0xe89   :  { %v1793_v61 = vpop.permute.xlu1 %1792 }
 0xe8c   :  { %6188 = vset.pattern.permute.xlu0 %v10225_v51  ;;  %v1780_v51 = vmul.f32 %v7412_v16, %v7780_v29 }
 0xe91   :  { %v1797_v47 = vpop.permute.xlu1 %1796 }
 0xed6   :  { %v1821_v50 = vpop.permute.xlu2 %1820 }
 0xeee   :  { %v1817_v56 = vpop.permute.xlu0 %1816 }
 0xeef   :  { %v1819_v55 = vpop.permute.xlu1 %1818 }
 0xef0   :  { %v1822_v25 = vsel %vm10286_vm0, %v1817_v56, %v1819_v55  ;;  %v1781_v56 = vmul.f32 %v7420_v35, %v7780_v29 }
 0xef6   :  { %v1832_v37 = vpop.permute.xlu0 %1831 }
 0xef7   :  { %v1834_v2 = vmul.f32 %v7412_v16, %v1832_v37  ;;  %v1835_v7 = vmul.f32 %v7420_v35, %v1832_v37  ;;  %v10377_v37 = vmov 11  }
 0xef9   :  { %1840 = vrot.lane.b32.xlu2 %v1835_v7, %s6532_s2  ;;  %1838 = vrot.lane.b32.xlu1 %v1834_v2, %s6532_s2 }
 0xf01   :  { %1850 = vperm.xlu1 %6186, %v7689_v10  }
 0xf09   :  { %6197 = vset.pattern.permute.xlu1 %v10375_v30 }
 0xf53   :  { %v1841_v18 = vpop.permute.xlu2 %1840 }
 0xf6b   :  { %v1839_v63 = vpop.permute.xlu1 %1838 }
 0xf73   :  { %v1851_v24 = vpop.permute.xlu1 %1850 }
 0xf74   :  { %v1853_v39 = vmul.f32 %v7412_v16, %v1851_v24  ;;  %v1854_v60 = vmul.f32 %v7420_v35, %v1851_v24  ;;  %v1855_v14 = vmul.f32 0.0, %v1851_v24 }
 0xf76   :  { %1863 = vrot.lane.b32.xlu1 %v1855_v14, %s6516_s13  ;;  %1861 = vrot.lane.b32.xlu0 %v1854_v60, %s6516_s13 }
 0xf77   :  { %1859 = vrot.lane.b32.xlu2 %v1853_v39, %s6516_s13 }
 0xf7f   :  { %1874 = vperm.xlu2 %6187, %v7689_v10  }
 0xf87   :  { %6189 = vset.pattern.permute.xlu2 %v10376_v22 }
 0xfd1   :  { %v1860_v49 = vpop.permute.xlu2 %1859 }
 0xfd9   :  { %v1875_v58 = vpop.permute.xlu2 %1874 }
 0xfda   :  { %v1877_v20 = vmul.f32 %v7412_v16, %v1875_v58  ;;  %v1878_v34 = vmul.f32 %v7420_v35, %v1875_v58  ;;  %v1879_v36 = vmul.f32 0.0, %v1875_v58 }
 0xfdc   :  { %1887 = vrot.lane.b32.xlu2 %v1879_v36, %s6535_s17  ;;  %1885 = vrot.lane.b32.xlu1 %v1878_v34, %s6535_s17  ;;  %v1779_v34 = vmul.f32 0.0, %v7780_v29  ;;  %v1799_v36 = vsel %vm224_vm1, %v1795_v33, %v1797_v47 }
 0xfdd   :  { %1883 = vrot.lane.b32.xlu0 %v1877_v20, %s6535_s17  ;;  %v1798_v20 = vsel %vm224_vm1, %v1793_v61, %v1795_v33  ;;  %v1804_v27 = vadd.f32 %v1799_v36, %v1780_v51 }
 0xfde   :  { %v1803_v59 = vadd.f32 %v1798_v20, %v1779_v34 }
 0xfe0   :  { %v1827_v11 = vadd.f32 %v1822_v25, %v1803_v59 }
 0xfe2   :  { %v1846_v61 = vadd.f32 %v1839_v63, %v1827_v11 }
 0xfe4   :  { %v1870_v33 = vadd.f32 %v1860_v49, %v1846_v61 }
 0xfe5   :  { %1898 = vperm.xlu0 %6188, %v7689_v10  }
 0xfe8   :  { %v1862_v2 = vpop.permute.xlu0 %1861  ;;  %v1864_v58 = vpop.permute.xlu1 %1863 }
 0xfe9   :  { %v1865_v13 = vsel %vm500_vm10, %v1860_v49, %v1862_v2 }
 0xfed   :  { %6190 = vset.pattern.permute.xlu0 %v10377_v37 }
0x104f   :  { %v1884_v7 = vpop.permute.xlu0 %1883 }
0x1050   :  { %v1894_v34 = vadd.f32 %v1884_v7, %v1870_v33 }
0x1057   :  { %v1899_v24 = vpop.permute.xlu0 %1898 }
0x1058   :  { %v1901_v39 = vmul.f32 %v7412_v16, %v1899_v24  ;;  %v1902_v60 = vmul.f32 %v7420_v35, %v1899_v24  ;;  %v1903_v14 = vmul.f32 0.0, %v1899_v24  ;;  %v1886_v24 = vpop.permute.xlu1 %1885 }
0x1059   :  { %v1889_v19 = vsel %vm10285_vm11, %v1884_v7, %v1886_v24 }
0x105a   :  { %1909 = vrot.lane.b32.xlu2 %v1902_v60, %s6514_s22  ;;  %1907 = vrot.lane.b32.xlu1 %v1901_v39, %s6514_s22  ;;  %v1823_v60 = vsel %vm10286_vm0, %v1819_v55, %v1821_v50  ;;  %v1888_v39 = vpop.permute.xlu2 %1887  ;;  %v1805_v55 = vadd.f32 %v1797_v47, %v1781_v56 }
0x105b   :  { %v1828_v42 = vadd.f32 %v1823_v60, %v1804_v27  ;;  %v1890_v29 = vsel %vm10285_vm11, %v1886_v24, %v1888_v39  ;;  %v10235_v60 = vmov 25  }
0x105c   :  { %v1829_v27 = vadd.f32 %v1821_v50, %v1805_v55 }
0x1062   :  { %1911 = vrot.lane.b32.xlu1 %v1903_v14, %s6514_s22  ;;  %v1842_v14 = vsel %vm10251_vm9, %v1839_v63, %v1841_v18  ;;  %v1866_v63 = vsel %vm500_vm10, %v1862_v2, %v1864_v58 }
0x1063   :  { %v1847_v26 = vadd.f32 %v1842_v14, %v1828_v42  ;;  %v1848_v42 = vadd.f32 %v1841_v18, %v1829_v27  ;;  %v10233_v27 = vmov 39  }
0x1065   :  { %v1871_v20 = vadd.f32 %v1865_v13, %v1847_v26  ;;  %v1872_v13 = vadd.f32 %v1866_v63, %v1848_v42 }
0x1067   :  { %v1895_v51 = vadd.f32 %v1889_v19, %v1871_v20  ;;  %v1896_v26 = vadd.f32 %v1890_v29, %v1872_v13  ;;  %v7878_v29 = vld [vmem:[%s10303_s4 + $0x8] sm:$0xff] }
0x10b4   :  { %v1910_v36 = vpop.permute.xlu2 %1909 }
0x10cc   :  { %v1908_v44 = vpop.permute.xlu1 %1907 }
0x10cd   :  { %v1913_v59 = vsel %vm10270_vm12, %v1908_v44, %v1910_v36  ;;  %v1918_v25 = vadd.f32 %v1908_v44, %v1894_v34  ;;  %v10378_v44 = vmov 18   ;;  %v10234_v34 = vmov 32  }
0x10ce   :  { %v1919_v11 = vadd.f32 %v1913_v59, %v1895_v51 }
0x10cf   :  { %1924 = vrot.lane.b32.xlu2 %v1918_v25, %s6535_s17 }
0x10d0   :  { %1926 = vrot.lane.b32.xlu0 %v1919_v11, %s6535_s17 }
0x10d4   :  { %v1912_v47 = vpop.permute.xlu1 %1911 }
0x10d5   :  { %v1914_v19 = vsel %vm10270_vm12, %v1910_v36, %v1912_v47  ;;  %v10379_v47 = vmov 5  }
0x10d6   :  { %v1920_v49 = vadd.f32 %v1914_v19, %v1896_v26  ;;  %v10232_v19 = vmov 46  }
0x10d7   :  { %1937 = vperm.xlu2 %6189, %v7689_v10  }
0x10d8   :  { %1944 = vperm.xlu0 %6190, %v7689_v10   ;;  %1928 = vrot.lane.b32.xlu1 %v1920_v49, %s6535_s17 }
0x10df   :  { %6191 = vset.pattern.permute.xlu2 %v10378_v44 }
0x10e0   :  { %6192 = vset.pattern.permute.xlu0 %v10235_v60 }
0x1129   :  { %v7849_v39 = vpop.permute.xlu2 %1924 }
0x1131   :  { %v7851_v24 = vpop.permute.xlu2 %1937 }
0x1142   :  { %v7840_v50 = vpop.permute.xlu0 %1926 }
0x114a   :  { %v1945_v18 = vpop.permute.xlu0 %1944 }
0x114b   :  { %v1947_v2 = vmul.f32 0.0, %v1945_v18  ;;  %v1948_v7 = vmul.f32 %v7412_v16, %v1945_v18  ;;  %v1949_v58 = vmul.f32 %v7420_v35, %v1945_v18 }
0x114d   :  { %1955 = vrot.lane.b32.xlu2 %v1948_v7, %s6511_s30  ;;  %1953 = vrot.lane.b32.xlu1 %v1947_v2, %s6511_s30 }
0x1155   :  { %1968 = vperm.xlu2 %6191, %v7689_v10   ;;  %1957 = vrot.lane.b32.xlu1 %v1949_v58, %s6511_s30 }
0x115d   :  { %6193 = vset.pattern.permute.xlu2 %v10234_v34 }
0x11a7   :  { %v7853_v14 = vpop.permute.xlu2 %1955 }
0x11af   :  { %v1969_v61 = vpop.permute.xlu2 %1968 }
0x11b0   :  { %v1971_v33 = vmul.f32 0.0, %v1969_v61  ;;  %v1972_v56 = vmul.f32 %v7412_v16, %v1969_v61  ;;  %v1973_v20 = vmul.f32 %v7420_v35, %v1969_v61 }
0x11b2   :  { %1977 = vrot.lane.b32.xlu0 %v1971_v33, %s6510_s18  ;;  %1981 = vrot.lane.b32.xlu2 %v1973_v20, %s6510_s18 }
0x11b3   :  { %1979 = vrot.lane.b32.xlu1 %v1972_v56, %s6510_s18 }
0x11ba   :  { %1992 = vperm.xlu0 %6192, %v7689_v10  }
0x11c2   :  { %6194 = vset.pattern.permute.xlu0 %v10233_v27 }
0x120c   :  { %v1982_v11 = vpop.permute.xlu2 %1981 }
0x1224   :  { %v1978_v55 = vpop.permute.xlu0 %1977 }
0x122c   :  { %v1993_v51 = vpop.permute.xlu0 %1992 }
0x122d   :  { %v1995_v36 = vmul.f32 %v7412_v16, %v1993_v51  ;;  %v1996_v59 = vmul.f32 %v7420_v35, %v1993_v51  ;;  %v1997_v25 = vmul.f32 0.0, %v1993_v51  ;;  %v7872_v16 = vld [vmem:[%s10303_s4] sm:$0xff] }
0x122f   :  { %2003 = vrot.lane.b32.xlu2 %v1996_v59, %s6532_s2  ;;  %2001 = vrot.lane.b32.xlu1 %v1995_v36, %s6532_s2  ;;  %v7898_v59 = vpop.permute.xlu1 %1928 }
0x1237   :  { %2016 = vperm.xlu2 %6193, %v7689_v10   ;;  %2005 = vrot.lane.b32.xlu1 %v1997_v25, %s6532_s2  ;;  %v1954_v25 = vpop.permute.xlu1 %1953 }
0x123f   :  { %6195 = vset.pattern.permute.xlu2 %v10232_v19  ;;  %v1942_v19 = vmul.f32 %v7878_v29, %v7851_v24 }
0x1289   :  { %v2004_v63 = vpop.permute.xlu2 %2003 }
0x1291   :  { %v2017_v42 = vpop.permute.xlu2 %2016 }
0x1292   :  { %v2019_v35 = vmul.f32 %v7872_v16, %v2017_v42  ;;  %v2020_v13 = vmul.f32 %v7878_v29, %v2017_v42  ;;  %v2021_v26 = vmul.f32 0.0, %v2017_v42  ;;  %v1958_v42 = vpop.permute.xlu1 %1957 }
0x1293   :  { %v1966_v60 = vadd.f32 %v1958_v42, %v1942_v19 }
0x1294   :  { %2029 = vrot.lane.b32.xlu2 %v2021_v26, %s6516_s13  ;;  %2025 = vrot.lane.b32.xlu0 %v2019_v35, %s6516_s13 }
0x1295   :  { %2027 = vrot.lane.b32.xlu1 %v2020_v13, %s6516_s13 }
0x129a   :  { %v1980_v35 = vpop.permute.xlu1 %1979 }
0x129b   :  { %v1984_v27 = vsel %vm10286_vm0, %v1980_v35, %v1982_v11 }
0x129c   :  { %2040 = vperm.xlu0 %6194, %v7689_v10  }
0x12a2   :  { %v2002_v13 = vpop.permute.xlu1 %2001 }
0x12a3   :  { %v2007_v6 = vsel %vm10251_vm9, %v2002_v13, %v2004_v63 }
0x12a4   :  { %6196 = vset.pattern.permute.xlu0 %v10379_v47 }
0x12aa   :  { %v2006_v26 = vpop.permute.xlu1 %2005 }
0x12ab   :  { %v2008_v31 = vsel %vm10251_vm9, %v2004_v63, %v2006_v26 }
0x12ee   :  { %v2030_v61 = vpop.permute.xlu2 %2029 }
0x1306   :  { %v2026_v49 = vpop.permute.xlu0 %2025 }
0x130e   :  { %v2041_v18 = vpop.permute.xlu0 %2040 }
0x130f   :  { %v2043_v2 = vmul.f32 %v7872_v16, %v2041_v18  ;;  %v2044_v7 = vmul.f32 %v7878_v29, %v2041_v18  ;;  %v2045_v58 = vmul.f32 0.0, %v2041_v18  ;;  %v2028_v18 = vpop.permute.xlu1 %2027 }
0x1310   :  { %v2031_v15 = vsel %vm500_vm10, %v2026_v49, %v2028_v18 }
0x1311   :  { %2051 = vrot.lane.b32.xlu2 %v2044_v7, %s6535_s17  ;;  %2049 = vrot.lane.b32.xlu1 %v2043_v2, %s6535_s17  ;;  %v1959_v7 = vsel %vm224_vm1, %v1954_v25, %v7853_v14 }
0x1319   :  { %2064 = vperm.xlu2 %6195, %v7689_v10   ;;  %2053 = vrot.lane.b32.xlu1 %v2045_v58, %s6535_s17  ;;  %v1940_v58 = vmul.f32 0.0, %v7851_v24 }
0x136b   :  { %v2052_v33 = vpop.permute.xlu2 %2051 }
0x1373   :  { %v2065_v56 = vpop.permute.xlu2 %2064 }
0x1374   :  { %v2067_v20 = vmul.f32 %v7872_v16, %v2065_v56  ;;  %v2068_v51 = vmul.f32 %v7878_v29, %v2065_v56  ;;  %v2069_v36 = vmul.f32 0.0, %v2065_v56  ;;  %v1960_v56 = vsel %vm224_vm1, %v7853_v14, %v1958_v42 }
0x1375   :  { %v1990_v14 = vadd.f32 %v1982_v11, %v1966_v60 }
0x1376   :  { %2077 = vrot.lane.b32.xlu2 %v2069_v36, %s6514_s22  ;;  %2073 = vrot.lane.b32.xlu0 %v2067_v20, %s6514_s22  ;;  %v1983_v20 = vsel %vm10286_vm0, %v1978_v55, %v1980_v35  ;;  %v1964_v36 = vadd.f32 %v1959_v7, %v1940_v58  ;;  %v2032_v7 = vsel %vm500_vm10, %v2028_v18, %v2030_v61 }
0x1377   :  { %2075 = vrot.lane.b32.xlu1 %v2068_v51, %s6514_s22  ;;  %v1941_v51 = vmul.f32 %v7872_v16, %v7851_v24  ;;  %v2014_v40 = vadd.f32 %v2008_v31, %v1990_v14  ;;  %v10381_v31 = vmov 0  }
0x1378   :  { %v1988_v21 = vadd.f32 %v1983_v20, %v1964_v36 }
0x1379   :  { %v1965_v34 = vadd.f32 %v1960_v56, %v1941_v51  ;;  %v2038_v56 = vadd.f32 %v2032_v7, %v2014_v40  ;;  %v10241_v40 = vmov 26  }
0x137a   :  { %v2012_v55 = vadd.f32 %v2002_v13, %v1988_v21  ;;  %6199 = vset.pattern.permute.xlu2 %v10241_v40 }
0x137b   :  { %v1989_v8 = vadd.f32 %v1984_v27, %v1965_v34 }
0x137c   :  { %v2036_v24 = vadd.f32 %v2026_v49, %v2012_v55 }
0x137d   :  { %v2013_v58 = vadd.f32 %v2007_v6, %v1989_v8 }
0x137f   :  { %v2037_v42 = vadd.f32 %v2031_v15, %v2013_v58  ;;  %v10380_v15 = vmov 19  }
0x1383   :  { %v2050_v2 = vpop.permute.xlu1 %2049 }
0x1384   :  { %v2055_v35 = vsel %vm10285_vm11, %v2050_v2, %v2052_v33  ;;  %v2060_v20 = vadd.f32 %v2050_v2, %v2036_v24 }
0x1385   :  { %v2061_v36 = vadd.f32 %v2055_v35, %v2037_v42  ;;  %v10240_v35 = vmov 33  }
0x138b   :  { %v2054_v25 = vpop.permute.xlu1 %2053 }
0x138c   :  { %v2056_v19 = vsel %vm10285_vm11, %v2052_v33, %v2054_v25 }
0x138d   :  { %v2062_v63 = vadd.f32 %v2056_v19, %v2038_v56 }
0x13d0   :  { %v2078_v60 = vpop.permute.xlu2 %2077 }
0x13e8   :  { %v2074_v51 = vpop.permute.xlu0 %2073 }
0x13e9   :  { %v2084_v34 = vadd.f32 %v2074_v51, %v2060_v20  ;;  %v2076_v21 = vpop.permute.xlu1 %2075 }
0x13ea   :  { %v2079_v27 = vsel %vm10270_vm12, %v2074_v51, %v2076_v21  ;;  %v2080_v11 = vsel %vm10270_vm12, %v2076_v21, %v2078_v60 }
0x13eb   :  { %v2085_v8 = vadd.f32 %v2079_v27, %v2061_v36  ;;  %v2086_v6 = vadd.f32 %v2080_v11, %v2062_v63  ;;  %2090 = vrot.lane.b32.xlu0 %v2084_v34, %s6556_s26  ;;  %v10239_v63 = vmov 40  }
0x13ed   :  { %2094 = vrot.lane.b32.xlu2 %v2086_v6, %s6556_s26  ;;  %2092 = vrot.lane.b32.xlu1 %v2085_v8, %s6556_s26  ;;  %v10382_v8 = vmov 6   ;;  %v10238_v6 = vmov 47  }
0x13f3   :  { %2106 = vperm.xlu0 %6196, %v7689_v10  }
0x13f5   :  { %2113 = vperm.xlu1 %6197, %v7689_v10  }
0x13fb   :  { %6198 = vset.pattern.permute.xlu0 %v10380_v15 }
0x13fc   :  { %2137 = vperm.xlu0 %6198, %v7689_v10  }
0x13fd   :  { %6211 = vset.pattern.permute.xlu1 %v10381_v31 }
0x1404   :  { %6200 = vset.pattern.permute.xlu0 %v10240_v35 }
0x1447   :  { %v7945_v58 = vpop.permute.xlu2 %2094 }
0x145d   :  { %v7928_v49 = vpop.permute.xlu0 %2090 }
0x145f   :  { %v7930_v61 = vpop.permute.xlu1 %2092 }
0x1465   :  { %v7932_v33 = vpop.permute.xlu0 %2106 }
0x1467   :  { %v2114_v13 = vpop.permute.xlu1 %2113 }
0x1468   :  { %v2116_v26 = vmul.f32 0.0, %v2114_v13  ;;  %v2117_v18 = vmul.f32 %v7872_v16, %v2114_v13  ;;  %v2118_v14 = vmul.f32 %v7878_v29, %v2114_v13 }
0x146a   :  { %2122 = vrot.lane.b32.xlu2 %v2116_v26, %s6511_s30  ;;  %2124 = vrot.lane.b32.xlu1 %v2117_v18, %s6511_s30 }
0x146e   :  { %v2138_v2 = vpop.permute.xlu0 %2137 }
0x146f   :  { %v2140_v25 = vmul.f32 0.0, %v2138_v2  ;;  %v2141_v55 = vmul.f32 %v7872_v16, %v2138_v2  ;;  %v2142_v7 = vmul.f32 %v7878_v29, %v2138_v2 }
0x1472   :  { %2126 = vrot.lane.b32.xlu2 %v2118_v14, %s6511_s30  ;;  %2146 = vrot.lane.b32.xlu1 %v2140_v25, %s6510_s18 }
0x147a   :  { %2148 = vrot.lane.b32.xlu2 %v2141_v55, %s6510_s18  ;;  %2150 = vrot.lane.b32.xlu1 %v2142_v7, %s6510_s18  ;;  %v10383_v55 = vmov 13  }
0x1482   :  { %2161 = vperm.xlu2 %6199, %v7689_v10  }
0x148a   :  { %6201 = vset.pattern.permute.xlu2 %v10239_v63 }
0x14c4   :  { %v2123_v24 = vpop.permute.xlu2 %2122 }
0x14cc   :  { %v7948_v19 = vpop.permute.xlu2 %2126 }
0x14d4   :  { %v2149_v42 = vpop.permute.xlu2 %2148 }
0x14dc   :  { %v2162_v56 = vpop.permute.xlu2 %2161 }
0x14dd   :  { %v2164_v20 = vmul.f32 %v7872_v16, %v2162_v56  ;;  %v2165_v51 = vmul.f32 %v7878_v29, %v2162_v56  ;;  %v2166_v36 = vmul.f32 0.0, %v2162_v56 }
0x14df   :  { %2174 = vrot.lane.b32.xlu2 %v2166_v36, %s6532_s2  ;;  %2170 = vrot.lane.b32.xlu0 %v2164_v20, %s6532_s2 }
0x14e0   :  { %2172 = vrot.lane.b32.xlu1 %v2165_v51, %s6532_s2 }
0x14e7   :  { %2185 = vperm.xlu0 %6200, %v7689_v10  }
0x14ef   :  { %6202 = vset.pattern.permute.xlu0 %v10238_v6 }
0x1539   :  { %v2175_v13 = vpop.permute.xlu2 %2174 }
0x1551   :  { %v2171_v60 = vpop.permute.xlu0 %2170 }
0x1559   :  { %v2186_v34 = vpop.permute.xlu0 %2185 }
0x155a   :  { %v2188_v21 = vmul.f32 %v7872_v16, %v2186_v34  ;;  %v2189_v27 = vmul.f32 %v7878_v29, %v2186_v34  ;;  %v2190_v11 = vmul.f32 0.0, %v2186_v34  ;;  %v2125_v34 = vpop.permute.xlu1 %2124 }
0x155b   :  { %v2129_v6 = vsel %vm224_vm1, %v2125_v34, %v7948_v19 }
0x155c   :  { %2196 = vrot.lane.b32.xlu2 %v2189_v27, %s6516_s13  ;;  %2194 = vrot.lane.b32.xlu1 %v2188_v21, %s6516_s13 }
0x1562   :  { %v2147_v21 = vpop.permute.xlu1 %2146 }
0x1564   :  { %2209 = vperm.xlu2 %6201, %v7689_v10   ;;  %2198 = vrot.lane.b32.xlu1 %v2190_v11, %s6516_s13 }
0x156a   :  { %v2151_v27 = vpop.permute.xlu1 %2150 }
0x156c   :  { %6203 = vset.pattern.permute.xlu2 %v10382_v8 }
0x1572   :  { %v2173_v11 = vpop.permute.xlu1 %2172 }
0x1573   :  { %v2176_v9 = vsel %vm10251_vm9, %v2171_v60, %v2173_v11 }
0x15b6   :  { %v2197_v26 = vpop.permute.xlu2 %2196 }
0x15be   :  { %v2210_v18 = vpop.permute.xlu2 %2209 }
0x15bf   :  { %v2212_v2 = vmul.f32 %v7872_v16, %v2210_v18  ;;  %v2213_v25 = vmul.f32 %v7878_v29, %v2210_v18  ;;  %v2214_v14 = vmul.f32 0.0, %v2210_v18 }
0x15c1   :  { %2222 = vrot.lane.b32.xlu2 %v2214_v14, %s6535_s17  ;;  %2218 = vrot.lane.b32.xlu0 %v2212_v2, %s6535_s17  ;;  %v2109_v14 = vmul.f32 0.0, %v7932_v33 }
0x15c2   :  { %2220 = vrot.lane.b32.xlu1 %v2213_v25, %s6535_s17  ;;  %v2128_v25 = vsel %vm224_vm1, %v2123_v24, %v2125_v34 }
0x15c9   :  { %2233 = vperm.xlu0 %6202, %v7689_v10  }
0x15ce   :  { %v2195_v18 = vpop.permute.xlu1 %2194 }
0x15cf   :  { %v2200_v57 = vsel %vm500_vm10, %v2195_v18, %v2197_v26 }
0x15d1   :  { %6204 = vset.pattern.permute.xlu0 %v10383_v55 }
0x15d6   :  { %v2199_v2 = vpop.permute.xlu1 %2198 }
0x161b   :  { %v2223_v35 = vpop.permute.xlu2 %2222 }
0x1633   :  { %v2219_v7 = vpop.permute.xlu0 %2218 }
0x1634   :  { %v2221_v40 = vpop.permute.xlu1 %2220 }
0x1635   :  { %v2224_v4 = vsel %vm10285_vm11, %v2219_v7, %v2221_v40 }
0x163b   :  { %v2234_v56 = vpop.permute.xlu0 %2233 }
0x163c   :  { %v2236_v20 = vmul.f32 %v7872_v16, %v2234_v56  ;;  %v2237_v51 = vmul.f32 %v7878_v29, %v2234_v56  ;;  %v2238_v36 = vmul.f32 0.0, %v2234_v56  ;;  %v2152_v56 = vsel %vm10286_vm0, %v2147_v21, %v2149_v42 }
0x163d   :  { %v2111_v21 = vmul.f32 %v7878_v29, %v7932_v33 }
0x163e   :  { %2244 = vrot.lane.b32.xlu2 %v2237_v51, %s6514_s22  ;;  %2242 = vrot.lane.b32.xlu1 %v2236_v20, %s6514_s22  ;;  %v2110_v51 = vmul.f32 %v7872_v16, %v7932_v33  ;;  %v2133_v20 = vadd.f32 %v2128_v25, %v2109_v14 }
0x1640   :  { %v2134_v63 = vadd.f32 %v2129_v6, %v2110_v51  ;;  %v2157_v12 = vadd.f32 %v2152_v56, %v2133_v20  ;;  %v2177_v20 = vsel %vm10251_vm9, %v2173_v11, %v2175_v13 }
0x1642   :  { %v2181_v52 = vadd.f32 %v2171_v60, %v2157_v12 }
0x1644   :  { %v2205_v34 = vadd.f32 %v2195_v18, %v2181_v52  ;;  %v2201_v52 = vsel %vm500_vm10, %v2197_v26, %v2199_v2  ;;  %v10384_v26 = vmov 20   ;;  %v10249_v2 = vmov 27  }
0x1646   :  { %2246 = vrot.lane.b32.xlu1 %v2238_v36, %s6514_s22  ;;  %v2153_v36 = vsel %vm10286_vm0, %v2149_v42, %v2151_v27  ;;  %v2229_v14 = vadd.f32 %v2219_v7, %v2205_v34  ;;  %v2135_v42 = vadd.f32 %v7948_v19, %v2111_v21 }
0x1647   :  { %v2158_v24 = vadd.f32 %v2153_v36, %v2134_v63 }
0x1648   :  { %v2159_v60 = vadd.f32 %v2151_v27, %v2135_v42 }
0x1649   :  { %v2182_v54 = vadd.f32 %v2176_v9, %v2158_v24 }
0x164a   :  { %v2183_v33 = vadd.f32 %v2177_v20, %v2159_v60  ;;  %v10247_v60 = vmov 41  }
0x164b   :  { %v2206_v25 = vadd.f32 %v2200_v57, %v2182_v54  ;;  %v2225_v54 = vsel %vm10285_vm11, %v2221_v40, %v2223_v35 }
0x164c   :  { %v2207_v57 = vadd.f32 %v2201_v52, %v2183_v33 }
0x164d   :  { %v2230_v6 = vadd.f32 %v2224_v4, %v2206_v25 }
0x164e   :  { %v2231_v4 = vadd.f32 %v2225_v54, %v2207_v57 }
0x1698   :  { %v2245_v51 = vpop.permute.xlu2 %2244 }
0x16b0   :  { %v2243_v56 = vpop.permute.xlu1 %2242 }
0x16b1   :  { %v2248_v12 = vsel %vm10270_vm12, %v2243_v56, %v2245_v51  ;;  %v2253_v63 = vadd.f32 %v2243_v56, %v2229_v14 }
0x16b2   :  { %v2254_v9 = vadd.f32 %v2248_v12, %v2230_v6  ;;  %v10248_v6 = vmov 34  }
0x16b3   :  { %2259 = vrot.lane.b32.xlu2 %v2253_v63, %s10273_s3 }
0x16b4   :  { %2261 = vrot.lane.b32.xlu0 %v2254_v9, %s10273_s3 }
0x16b8   :  { %v2247_v19 = vpop.permute.xlu1 %2246 }
0x16b9   :  { %v2249_v13 = vsel %vm10270_vm12, %v2245_v51, %v2247_v19  ;;  %v1017_v19 = vld [vmem:[%s10385_s24] sm:$0xff]  ;;  %s8406_s24 = sld [smem:[#allocation3 + $0x6]] }
0x16ba   :  { %v2255_v7 = vadd.f32 %v2249_v13, %v2231_v4  ;;  %v10246_v13 = vmov 48  }
0x16bb   :  { %2275 = vperm.xlu2 %6203, %v7689_v10  }
0x16bc   :  { %2282 = vperm.xlu0 %6204, %v7689_v10   ;;  %2263 = vrot.lane.b32.xlu1 %v2255_v7, %s10273_s3  ;;  %s8512_s3 = sld [smem:[#allocation7 + $0x7]] }
0x16c3   :  { %6205 = vset.pattern.permute.xlu2 %v10384_v26 }
0x16c4   :  { %6206 = vset.pattern.permute.xlu0 %v10249_v2 }
0x170d   :  { %v8011_v36 = vpop.permute.xlu2 %2259 }
0x1715   :  { %v8013_v24 = vpop.permute.xlu2 %2275 }
0x1726   :  { %v8002_v27 = vpop.permute.xlu0 %2261 }
0x172e   :  { %v2283_v11 = vpop.permute.xlu0 %2282 }
0x172f   :  { %v2285_v18 = vmul.f32 0.0, %v2283_v11  ;;  %v2286_v40 = vmul.f32 %v7872_v16, %v2283_v11  ;;  %v2287_v35 = vmul.f32 %v7878_v29, %v2283_v11 }
0x1731   :  { %2293 = vrot.lane.b32.xlu2 %v2286_v40, %s6511_s30  ;;  %2291 = vrot.lane.b32.xlu1 %v2285_v18, %s6511_s30 }
0x1739   :  { %2306 = vperm.xlu2 %6205, %v7689_v10   ;;  %2295 = vrot.lane.b32.xlu1 %v2287_v35, %s6511_s30 }
0x1741   :  { %6207 = vset.pattern.permute.xlu2 %v10248_v6 }
0x178b   :  { %v8015_v34 = vpop.permute.xlu2 %2293 }
0x1793   :  { %v2307_v21 = vpop.permute.xlu2 %2306 }
0x1794   :  { %v2309_v25 = vmul.f32 0.0, %v2307_v21  ;;  %v2310_v14 = vmul.f32 %v7872_v16, %v2307_v21  ;;  %v2311_v42 = vmul.f32 %v7878_v29, %v2307_v21 }
0x1796   :  { %2315 = vrot.lane.b32.xlu0 %v2309_v25, %s6510_s18  ;;  %2319 = vrot.lane.b32.xlu2 %v2311_v42, %s6510_s18 }
0x1797   :  { %2317 = vrot.lane.b32.xlu1 %v2310_v14, %s6510_s18 }
0x179e   :  { %2330 = vperm.xlu0 %6206, %v7689_v10  }
0x17a6   :  { %6208 = vset.pattern.permute.xlu0 %v10247_v60 }
0x17f0   :  { %v2320_v9 = vpop.permute.xlu2 %2319 }
0x1808   :  { %v2316_v51 = vpop.permute.xlu0 %2315 }
0x1810   :  { %v2331_v56 = vpop.permute.xlu0 %2330 }
0x1811   :  { %v2333_v20 = vmul.f32 %v7872_v16, %v2331_v56  ;;  %v2334_v12 = vmul.f32 %v7878_v29, %v2331_v56  ;;  %v2335_v63 = vmul.f32 0.0, %v2331_v56 }
0x1813   :  { %2341 = vrot.lane.b32.xlu2 %v2334_v12, %s6532_s2  ;;  %2339 = vrot.lane.b32.xlu1 %v2333_v20, %s6532_s2  ;;  %v8055_v12 = vpop.permute.xlu1 %2263 }
0x181b   :  { %2354 = vperm.xlu2 %6207, %v7689_v10   ;;  %2343 = vrot.lane.b32.xlu1 %v2335_v63, %s6532_s2  ;;  %v6351_v10 = vld [vmem:[%s10307_s15] sm:$0xff]  ;;  %v2292_v63 = vpop.permute.xlu1 %2291  ;;  %s10271_s15 = smov 45  }
0x1823   :  { %6210 = vset.pattern.permute.xlu2 %v10246_v13 }
0x186d   :  { %v2342_v52 = vpop.permute.xlu2 %2341 }
0x1875   :  { %v2355_v33 = vpop.permute.xlu2 %2354 }
0x1876   :  { %v2357_v54 = vmul.f32 %v7872_v16, %v2355_v33  ;;  %v2358_v57 = vmul.f32 %v7878_v29, %v2355_v33  ;;  %v2359_v4 = vmul.f32 0.0, %v2355_v33  ;;  %v2296_v33 = vpop.permute.xlu1 %2295 }
0x1878   :  { %2367 = vrot.lane.b32.xlu2 %v2359_v4, %s6516_s13  ;;  %2363 = vrot.lane.b32.xlu0 %v2357_v54, %s6516_s13 }
0x1879   :  { %2365 = vrot.lane.b32.xlu1 %v2358_v57, %s6516_s13 }
0x187e   :  { %v2318_v54 = vpop.permute.xlu1 %2317 }
0x1880   :  { %2378 = vperm.xlu0 %6208, %v6351_v10  }
0x1886   :  { %v2340_v57 = vpop.permute.xlu1 %2339 }
0x1888   :  { %6209 = vset.pattern.permute.xlu0 %v10381_v31 }
0x1889   :  { %1020 = vperm.xlu0 %6209, %v1017_v19  }
0x188e   :  { %v2344_v4 = vpop.permute.xlu1 %2343 }
0x18d2   :  { %v2368_v21 = vpop.permute.xlu2 %2367 }
0x18ea   :  { %v2364_v7 = vpop.permute.xlu0 %2363 }
0x18f2   :  { %v2379_v11 = vpop.permute.xlu0 %2378 }
0x18f3   :  { %v2381_v18 = vmul.f32 %v7872_v16, %v2379_v11  ;;  %v2382_v40 = vmul.f32 %v7878_v29, %v2379_v11  ;;  %v2383_v35 = vmul.f32 0.0, %v2379_v11  ;;  %v2297_v11 = vsel %vm224_vm1, %v2292_v63, %v8015_v34 }
0x18f5   :  { %2389 = vrot.lane.b32.xlu2 %v2382_v40, %s6535_s17  ;;  %2387 = vrot.lane.b32.xlu1 %v2381_v18, %s6535_s17  ;;  %v2278_v18 = vmul.f32 0.0, %v8013_v24  ;;  %v2298_v40 = vsel %vm224_vm1, %v8015_v34, %v2296_v33  ;;  %v2346_v34 = vsel %vm10251_vm9, %v2342_v52, %v2344_v4 }
0x18fb   :  { %v8068_v13 = vpop.permute.xlu0 %1020 }
0x18fd   :  { %2402 = vperm.xlu2 %6210, %v6351_v10   ;;  %2391 = vrot.lane.b32.xlu1 %v2383_v35, %s6535_s17  ;;  %v2366_v10 = vpop.permute.xlu1 %2365  ;;  %v2321_v35 = vsel %vm10286_vm0, %v2316_v51, %v2318_v54 }
0x1905   :  { %6212 = vset.pattern.permute.xlu2 %v10379_v47  ;;  %v2345_v47 = vsel %vm10251_vm9, %v2340_v57, %v2342_v52 }
0x194f   :  { %v2390_v25 = vpop.permute.xlu2 %2389 }
0x1957   :  { %v2403_v14 = vpop.permute.xlu2 %2402 }
0x1958   :  { %v2405_v42 = vmul.f32 %v7872_v16, %v2403_v14  ;;  %v2406_v56 = vmul.f32 %v7878_v29, %v2403_v14  ;;  %v2407_v20 = vmul.f32 0.0, %v2403_v14  ;;  %v2279_v14 = vmul.f32 %v7872_v16, %v8013_v24 }
0x1959   :  { %v2369_v16 = vsel %vm500_vm10, %v2364_v7, %v2366_v10 }
0x195a   :  { %2415 = vrot.lane.b32.xlu2 %v2407_v20, %s6514_s22  ;;  %2411 = vrot.lane.b32.xlu0 %v2405_v42, %s6514_s22  ;;  %v2302_v42 = vadd.f32 %v2297_v11, %v2278_v18  ;;  %v2322_v20 = vsel %vm10286_vm0, %v2318_v54, %v2320_v9  ;;  %v2303_v60 = vadd.f32 %v2298_v40, %v2279_v14 }
0x195b   :  { %2413 = vrot.lane.b32.xlu1 %v2406_v56, %s6514_s22  ;;  %v2280_v56 = vmul.f32 %v7878_v29, %v8013_v24  ;;  %v2370_v11 = vsel %vm500_vm10, %v2366_v10, %v2368_v21  ;;  %v1598_v10 = vsel %vm10252_vm13, %v7695_v45, %v7697_v17  ;;  %v1767_v45 = vsel %vm10253_vm15, %v7778_v41, %v7770_v46 }
0x195c   :  { %v2326_v6 = vadd.f32 %v2321_v35, %v2302_v42  ;;  %v2327_v15 = vadd.f32 %v2322_v20, %v2303_v60  ;;  %v10386_v20 = vld [vmem:[#allocation32_spill] sm:$0xff]  ;;  %v1771_v41 = vsel %vm10257_vm3, %v1767_v45, 0.0 }
0x195d   :  { %v2304_v63 = vadd.f32 %v2296_v33, %v2280_v56  ;;  %vm10258_vm2 = vcmp.ge.s32.totalorder %v10386_v20, 3  ;;  %vm662_vm5 = vcmp.ge.s32.totalorder %v10386_v20, 2  ;;  %vm10262_vm3 = vcmp.lt.s32.totalorder %v10386_v20, 13 }
0x195e   :  { %v2350_v22 = vadd.f32 %v2340_v57, %v2326_v6  ;;  %v2351_v29 = vadd.f32 %v2345_v47, %v2327_v15 }
0x195f   :  { %v2328_v51 = vadd.f32 %v2320_v9, %v2304_v63  ;;  %v1429_v63 = vsel %vm10266_vm14, %v7394_v32, %v7386_v53  ;;  %v1602_v32 = vsel %vm662_vm5, %v1598_v10, 0.0 }
0x1960   :  { %v2374_v54 = vadd.f32 %v2364_v7, %v2350_v22  ;;  %v2375_v40 = vadd.f32 %v2369_v16, %v2351_v29  ;;  %v2451_v22 = vld [vmem:[%s10129_s6] sm:$0xff]  ;;  %s8490_s6 = sld [smem:[#allocation5 + $0x1]] }
0x1961   :  { %v2352_v24 = vadd.f32 %v2346_v34, %v2328_v51  ;;  %v10387_v34 = vld [vmem:[#allocation34_spill] sm:$0xff]  ;;  %v1430_v51 = vsel %vm10266_vm14, %v7386_v53, %v7626_v38  ;;  %v1433_v53 = vsel %vm10258_vm2, %v1429_v63, 0.0  ;;  %vm991_vm14 = vcmp.lt.s32.totalorder %v10386_v20, 12 }
0x1962   :  { %vm10254_vm4 = vcmp.ge.s32.totalorder %v10387_v34, 3  ;;  %vm10288_vm9 = vcmp.ge.s32.totalorder %v10387_v34, 2  ;;  %vm10260_vm2 = vcmp.lt.s32.totalorder %v10387_v34, 13 }
0x1963   :  { %v2376_v35 = vadd.f32 %v2370_v11, %v2352_v24  ;;  %v1434_v38 = vsel %vm10254_vm4, %v1430_v51, 0.0  ;;  %vm10287_vm4 = vcmp.lt.s32.totalorder %v10387_v34, 14  ;;  %v1930_v24 = vsel %vm10285_vm11, %v7849_v39, %v7840_v50 }
0x1967   :  { %v2388_v19 = vpop.permute.xlu1 %2387 }
0x1968   :  { %v2393_v18 = vsel %vm10285_vm11, %v2388_v19, %v2390_v25  ;;  %v2398_v14 = vadd.f32 %v2388_v19, %v2374_v54  ;;  %v1599_v19 = vsel %vm10252_vm13, %v7697_v17, %v7712_v1  ;;  %v1768_v17 = vsel %vm10253_vm15, %v7770_v46, %v7795_v5 }
0x1969   :  { %v2399_v56 = vadd.f32 %v2393_v18, %v2375_v40  ;;  %v1603_v1 = vsel %vm10288_vm9, %v1599_v19, 0.0  ;;  %vm10256_vm13 = vcmask 384000   ;;  %v1772_v16 = vsel %vm10255_vm7, %v1768_v17, 0.0 }
0x196a   :  { %vm10265_vm15 = vcmask 375808   ;;  %v1604_v46 = vadd.f32 %v1602_v32, %v1433_v53  ;;  %v1605_v5 = vadd.f32 %v1603_v1, %v1434_v38  ;;  %v2097_v11 = vsel %vm10256_vm13, %v7928_v49, %v7930_v61 }
0x196b   :  { %v2098_v29 = vsel %vm10256_vm13, %v7930_v61, %v7945_v58  ;;  %v1931_v54 = vsel %vm10285_vm11, %v7840_v50, %v7898_v59  ;;  %v2266_v49 = vsel %vm10265_vm15, %v8011_v36, %v8002_v27  ;;  %v2267_v61 = vsel %vm10265_vm15, %v8002_v27, %v8055_v12 }
0x196c   :  { %v1773_v18 = vadd.f32 %v1771_v41, %v1604_v46  ;;  %vm876_vm7 = vcmp.lt.s32.totalorder %v10386_v20, 14  ;;  %v2101_v58 = vsel %vm10264_vm6, %v2097_v11, 0.0  ;;  %v2102_v39 = vsel %vm10261_vm8, %v2098_v29, 0.0 }
0x196d   :  { %vm10263_vm13 = vcmask 367616   ;;  %v2270_v36 = vsel %vm876_vm7, %v2266_v49, 0.0  ;;  %v2271_v27 = vsel %vm10287_vm4, %v2267_v61, 0.0  ;;  %vm679_vm8 = vcmask 539648  }
0x196e   :  { %v1934_v50 = vadd.f32 %v1930_v24, %v1773_v18  ;;  %vm893_vm6 = vcmask 506880   ;;  %vm1008_vm15 = vcmask 490496  }
0x196f   :  { %v2392_v2 = vpop.permute.xlu1 %2391 }
0x1970   :  { %v2394_v33 = vsel %vm10285_vm11, %v2390_v25, %v2392_v2  ;;  %v8087_v2 = vld [vmem:[%s10130_s7] sm:$0xff]  ;;  %s8497_s7 = sld [smem:[#allocation7 + $0x4]]  ;;  %vm1129_vm11 = vcmask 1040384  }
0x1971   :  { %v2400_v52 = vadd.f32 %v2394_v33, %v2376_v35  ;;  %v1774_v33 = vadd.f32 %v1772_v16, %v1605_v5  ;;  %v2103_v35 = vadd.f32 %v2101_v58, %v1934_v50 }
0x1973   :  { %v1935_v59 = vadd.f32 %v1931_v54, %v1774_v33 }
0x19b4   :  { %v2416_v9 = vpop.permute.xlu2 %2415 }
0x19cc   :  { %v2412_v42 = vpop.permute.xlu0 %2411 }
0x19cd   :  { %v2422_v60 = vadd.f32 %v2412_v42, %v2398_v14  ;;  %v2414_v6 = vpop.permute.xlu1 %2413  ;;  %v2104_v14 = vadd.f32 %v2102_v39, %v1935_v59 }
0x19ce   :  { %v2417_v57 = vsel %vm10270_vm12, %v2412_v42, %v2414_v6  ;;  %v2418_v21 = vsel %vm10270_vm12, %v2414_v6, %v2416_v9 }
0x19cf   :  { %v2423_v47 = vadd.f32 %v2417_v57, %v2399_v56  ;;  %v2424_v15 = vadd.f32 %v2418_v21, %v2400_v52  ;;  %2436 = vrot.lane.b32.xlu0 %v2422_v60, %s10271_s15  ;;  %v2272_v60 = vadd.f32 %v2270_v36, %v2103_v35  ;;  %v2273_v6 = vadd.f32 %v2271_v27, %v2104_v14 }
0x19d0   :  { %v10388_v57 = vmov 7  }
0x19d1   :  { %2440 = vrot.lane.b32.xlu2 %v2424_v15, %s10271_s15  ;;  %2438 = vrot.lane.b32.xlu1 %v2423_v47, %s10271_s15  ;;  %s8510_s15 = sld [smem:[#allocation7 + $0x2]] }
0x19d7   :  { %2454 = vperm.xlu0 %6209, %v2451_v22  }
0x19d9   :  { %2474 = vperm.xlu2 %6212, %v8087_v2   ;;  %2467 = vperm.xlu1 %6211, %v8087_v2  }
0x19df   :  { %6215 = vset.pattern.permute.xlu0 %v10384_v26 }
0x19e1   :  { %6213 = vset.pattern.permute.xlu1 %v10372_v43  ;;  %6214 = vset.pattern.permute.xlu2 %v10331_v23 }
0x1a2b   :  { %v2441_v7 = vpop.permute.xlu2 %2440 }
0x1a33   :  { %v8094_v25 = vpop.permute.xlu2 %2474 }
0x1a34   :  { %v2477_v4 = vmul.f32 0.0, %v8094_v25 }
0x1a36   :  { %2483 = vrot.lane.b32.xlu1 %v2477_v4, %s6510_s18 }
0x1a3e   :  { %2498 = vperm.xlu1 %6213, %v8087_v2  }
0x1a41   :  { %v2437_v40 = vpop.permute.xlu0 %2436 }
0x1a43   :  { %v2439_v12 = vpop.permute.xlu1 %2438 }
0x1a44   :  { %v2443_v42 = vsel %vm10263_vm13, %v2437_v40, %v2439_v12  ;;  %v2444_v56 = vsel %vm10263_vm13, %v2439_v12, %v2441_v7  ;;  %vm548_vm13 = vcmp.ge.s32.totalorder %v10387_v34, 4 }
0x1a45   :  { %v2447_v52 = vsel %vm10262_vm3, %v2443_v42, 0.0  ;;  %v2448_v9 = vsel %vm10260_vm2, %v2444_v56, 0.0  ;;  %vm564_vm2 = vcmask 556032   ;;  %vm547_vm3 = vcmp.ge.s32.totalorder %v10386_v20, 4 }
0x1a46   :  { %6222 = vset.pattern.permute.xlu1 %v10388_v57  ;;  %v2449_v21 = vadd.f32 %v2447_v52, %v2272_v60  ;;  %v2450_v47 = vadd.f32 %v2448_v9, %v2273_v6 }
0x1a49   :  { %v2455_v15 = vpop.permute.xlu0 %2454 }
0x1a4a   :  { %v8170_v22 = vadd.f32 %v2455_v15, %v2449_v21  ;;  %v8172_v4 = vadd.f32 %v2455_v15, %v2450_v47 }
0x1a4b   :  { %v2468_v19 = vpop.permute.xlu1 %2467 }
0x1a4c   :  { %v2478_v7 = vmul.f32 %v8094_v25, %v8170_v22  ;;  %v2479_v10 = vmul.f32 %v8094_v25, %v8172_v4  ;;  %v10389_v25 = vmov 1   ;;  %v2470_v33 = vmul.f32 0.0, %v2468_v19 }
0x1a4d   :  { %v2471_v49 = vmul.f32 %v2468_v19, %v8170_v22  ;;  %v2472_v52 = vmul.f32 %v2468_v19, %v8172_v4 }
0x1a4e   :  { %2487 = vrot.lane.b32.xlu0 %v2479_v10, %s6510_s18  ;;  %2485 = vrot.lane.b32.xlu2 %v2478_v7, %s6510_s18 }
0x1aa8   :  { %v2484_v63 = vpop.permute.xlu1 %2483  ;;  %v2486_v1 = vpop.permute.xlu2 %2485 }
0x1aa9   :  { %v2489_v54 = vsel %vm10286_vm0, %v2484_v63, %v2486_v1 }
0x1aaa   :  { %v2494_v40 = vadd.f32 %v2489_v54, %v2470_v33  ;;  %v10391_v33 = vmov 22  }
0x1ab0   :  { %v2499_v51 = vpop.permute.xlu1 %2498 }
0x1ab1   :  { %v2501_v45 = vmul.f32 0.0, %v2499_v51  ;;  %v2502_v17 = vmul.f32 %v2499_v51, %v8170_v22  ;;  %v2503_v32 = vmul.f32 %v2499_v51, %v8172_v4 }
0x1ab3   :  { %2507 = vrot.lane.b32.xlu2 %v2501_v45, %s6516_s13  ;;  %2511 = vrot.lane.b32.xlu1 %v2503_v32, %s6516_s13  ;;  %v10390_v32 = vmov 21  }
0x1ab4   :  { %2509 = vrot.lane.b32.xlu0 %v2502_v17, %s6516_s13 }
0x1abb   :  { %2525 = vperm.xlu2 %6214, %v8087_v2  }
0x1ac0   :  { %v2488_v5 = vpop.permute.xlu0 %2487 }
0x1ac1   :  { %v2490_v18 = vsel %vm10286_vm0, %v2486_v1, %v2488_v5  ;;  %v2496_v6 = vadd.f32 %v2488_v5, %v2472_v52 }
0x1ac2   :  { %v2495_v50 = vadd.f32 %v2490_v18, %v2471_v49 }
0x1ac3   :  { %6216 = vset.pattern.permute.xlu2 %v10389_v25 }
0x1b0d   :  { %v2508_v53 = vpop.permute.xlu2 %2507 }
0x1b15   :  { %v2526_v38 = vpop.permute.xlu2 %2525 }
0x1b16   :  { %v2528_v41 = vmul.f32 %v2526_v38, %v8170_v22  ;;  %v2529_v16 = vmul.f32 %v2526_v38, %v8172_v4  ;;  %v2530_v46 = vmul.f32 0.0, %v2526_v38 }
0x1b18   :  { %2538 = vrot.lane.b32.xlu2 %v2530_v46, %s6514_s22  ;;  %2536 = vrot.lane.b32.xlu1 %v2529_v16, %s6514_s22 }
0x1b19   :  { %2534 = vrot.lane.b32.xlu0 %v2528_v41, %s6514_s22 }
0x1b21   :  { %2549 = vperm.xlu0 %6215, %v8087_v2  }
0x1b25   :  { %v2512_v29 = vpop.permute.xlu1 %2511 }
0x1b26   :  { %v2510_v11 = vpop.permute.xlu0 %2509  ;;  %v2520_v15 = vadd.f32 %v2512_v29, %v2496_v6 }
0x1b27   :  { %v2513_v58 = vsel %vm500_vm10, %v2508_v53, %v2510_v11  ;;  %v2514_v39 = vsel %vm500_vm10, %v2510_v11, %v2512_v29 }
0x1b28   :  { %v2518_v36 = vadd.f32 %v2513_v58, %v2494_v40  ;;  %v2519_v27 = vadd.f32 %v2514_v39, %v2495_v50 }
0x1b29   :  { %6217 = vset.pattern.permute.xlu0 %v10382_v8 }
0x1b2a   :  { %2583 = vperm.xlu0 %6217, %v8087_v2  }
0x1b32   :  { %6219 = vset.pattern.permute.xlu0 %v10370_v28 }
0x1b72   :  { %v2539_v21 = vpop.permute.xlu2 %2538 }
0x1b8a   :  { %v2537_v61 = vpop.permute.xlu1 %2536 }
0x1b8b   :  { %v2535_v24 = vpop.permute.xlu0 %2534  ;;  %v2541_v47 = vsel %vm10270_vm12, %v2537_v61, %v2539_v21 }
0x1b8c   :  { %v2540_v59 = vsel %vm10270_vm12, %v2535_v24, %v2537_v61  ;;  %v2545_v35 = vadd.f32 %v2535_v24, %v2518_v36  ;;  %v2547_v10 = vadd.f32 %v2541_v47, %v2520_v15 }
0x1b8d   :  { %v2546_v14 = vadd.f32 %v2540_v59, %v2519_v27 }
0x1b93   :  { %v2550_v12 = vpop.permute.xlu0 %2549 }
0x1b94   :  { %v2552_v42 = vmul.f32 %v2550_v12, %v8170_v22  ;;  %v2553_v56 = vmul.f32 %v2550_v12, %v8172_v4  ;;  %v2554_v7 = vmul.f32 0.0, %v2550_v12 }
0x1b96   :  { %v2556_v9 = vadd.f32 %v2553_v56, %v2546_v14  ;;  %v2555_v60 = vadd.f32 %v2552_v42, %v2545_v35  ;;  %v2557_v63 = vadd.f32 %v2554_v7, %v2547_v10 }
0x1b98   :  { %2563 = vrot.lane.b32.xlu2 %v2556_v9, %s6540_s28  ;;  %2561 = vrot.lane.b32.xlu1 %v2555_v60, %s6540_s28 }
0x1b9c   :  { %v2584_v51 = vpop.permute.xlu0 %2583 }
0x1b9d   :  { %v2586_v19 = vmul.f32 0.0, %v2584_v51  ;;  %v2587_v45 = vmul.f32 %v2584_v51, %v8170_v22  ;;  %v2588_v17 = vmul.f32 %v2584_v51, %v8172_v4 }
0x1ba0   :  { %2576 = vperm.xlu2 %6216, %v8087_v2   ;;  %2565 = vrot.lane.b32.xlu1 %v2557_v63, %s6540_s28  ;;  %s8507_s28 = sld [smem:[#allocation7]] }
0x1ba8   :  { %2592 = vrot.lane.b32.xlu1 %v2586_v19, %s6510_s18  ;;  %2594 = vrot.lane.b32.xlu2 %v2587_v45, %s6510_s18 }
0x1ba9   :  { %6218 = vset.pattern.permute.xlu2 %v10377_v37 }
0x1bb0   :  { %2596 = vrot.lane.b32.xlu1 %v2588_v17, %s6510_s18  ;;  %2607 = vperm.xlu2 %6218, %v8087_v2  }
0x1bb8   :  { %6220 = vset.pattern.permute.xlu2 %v10390_v32 }
0x1bf2   :  { %v8218_v1 = vpop.permute.xlu2 %2563 }
0x1bfa   :  { %v2577_v53 = vpop.permute.xlu2 %2576 }
0x1bfb   :  { %v2579_v27 = vmul.f32 0.0, %v2577_v53  ;;  %v2580_v35 = vmul.f32 %v2577_v53, %v8170_v22  ;;  %v2581_v19 = vmul.f32 %v2577_v53, %v8172_v4 }
0x1c02   :  { %v2595_v38 = vpop.permute.xlu2 %2594 }
0x1c0a   :  { %v2608_v41 = vpop.permute.xlu2 %2607  ;;  %v8234_v49 = vpop.permute.xlu1 %2561 }
0x1c0b   :  { %v2610_v16 = vmul.f32 0.0, %v2608_v41  ;;  %v2611_v46 = vmul.f32 %v2608_v41, %v8170_v22  ;;  %v2612_v5 = vmul.f32 %v2608_v41, %v8172_v4 }
0x1c0d   :  { %2616 = vrot.lane.b32.xlu0 %v2610_v16, %s6516_s13  ;;  %2620 = vrot.lane.b32.xlu2 %v2612_v5, %s6516_s13 }
0x1c0e   :  { %2618 = vrot.lane.b32.xlu1 %v2611_v46, %s6516_s13 }
0x1c12   :  { %v8236_v61 = vpop.permute.xlu1 %2565 }
0x1c15   :  { %2631 = vperm.xlu0 %6219, %v8087_v2  }
0x1c1a   :  { %v2593_v58 = vpop.permute.xlu1 %2592 }
0x1c1b   :  { %v2598_v36 = vsel %vm10286_vm0, %v2593_v58, %v2595_v38 }
0x1c1c   :  { %v2603_v42 = vadd.f32 %v2598_v36, %v2579_v27  ;;  %v10392_v36 = vmov 8  }
0x1c1d   :  { %6221 = vset.pattern.permute.xlu0 %v10333_v0 }
0x1c22   :  { %v2597_v40 = vpop.permute.xlu1 %2596 }
0x1c23   :  { %v2599_v12 = vsel %vm10286_vm0, %v2595_v38, %v2597_v40  ;;  %v2605_v17 = vadd.f32 %v2597_v40, %v2581_v19 }
0x1c24   :  { %v2604_v52 = vadd.f32 %v2599_v12, %v2580_v35 }
0x1c67   :  { %v2621_v39 = vpop.permute.xlu2 %2620 }
0x1c68   :  { %v2629_v38 = vadd.f32 %v2621_v39, %v2605_v17 }
0x1c7f   :  { %v2617_v11 = vpop.permute.xlu0 %2616 }
0x1c80   :  { %v2619_v59 = vpop.permute.xlu1 %2618 }
0x1c81   :  { %v2622_v14 = vsel %vm500_vm10, %v2617_v11, %v2619_v59  ;;  %v2623_v56 = vsel %vm500_vm10, %v2619_v59, %v2621_v39 }
0x1c82   :  { %v2627_v60 = vadd.f32 %v2622_v14, %v2603_v42  ;;  %v2628_v6 = vadd.f32 %v2623_v56, %v2604_v52 }
0x1c87   :  { %v2632_v29 = vpop.permute.xlu0 %2631 }
0x1c88   :  { %v2634_v24 = vmul.f32 %v2632_v29, %v8170_v22  ;;  %v2635_v54 = vmul.f32 %v2632_v29, %v8172_v4  ;;  %v2636_v18 = vmul.f32 0.0, %v2632_v29 }
0x1c8a   :  { %2642 = vrot.lane.b32.xlu2 %v2635_v54, %s6514_s22  ;;  %2640 = vrot.lane.b32.xlu1 %v2634_v24, %s6514_s22 }
0x1c92   :  { %2655 = vperm.xlu2 %6220, %v8087_v2   ;;  %2644 = vrot.lane.b32.xlu1 %v2636_v18, %s6514_s22 }
0x1c9a   :  { %6225 = vset.pattern.permute.xlu2 %v10391_v33 }
0x1ce4   :  { %v2643_v50 = vpop.permute.xlu2 %2642 }
0x1cec   :  { %v2656_v9 = vpop.permute.xlu2 %2655 }
0x1ced   :  { %v2658_v47 = vmul.f32 %v2656_v9, %v8170_v22  ;;  %v2659_v10 = vmul.f32 %v2656_v9, %v8172_v4  ;;  %v2660_v46 = vmul.f32 0.0, %v2656_v9 }
0x1cfc   :  { %v2641_v21 = vpop.permute.xlu1 %2640 }
0x1cfd   :  { %v2646_v15 = vsel %vm10270_vm12, %v2641_v21, %v2643_v50  ;;  %v2651_v7 = vadd.f32 %v2641_v21, %v2627_v60 }
0x1cfe   :  { %v2652_v63 = vadd.f32 %v2646_v15, %v2628_v6 }
0x1cff   :  { %v2661_v51 = vadd.f32 %v2658_v47, %v2651_v7 }
0x1d00   :  { %v2662_v45 = vadd.f32 %v2659_v10, %v2652_v63 }
0x1d01   :  { %2667 = vrot.lane.b32.xlu0 %v2661_v51, %s6539_s16 }
0x1d02   :  { %2669 = vrot.lane.b32.xlu1 %v2662_v45, %s6539_s16 }
0x1d04   :  { %v2645_v41 = vpop.permute.xlu1 %2644 }
0x1d05   :  { %v2647_v16 = vsel %vm10270_vm12, %v2643_v50, %v2645_v41 }
0x1d06   :  { %v2653_v5 = vadd.f32 %v2647_v16, %v2629_v38 }
0x1d08   :  { %v2663_v11 = vadd.f32 %v2660_v46, %v2653_v5 }
0x1d09   :  { %2682 = vperm.xlu0 %6221, %v8087_v2  }
0x1d0a   :  { %2689 = vperm.xlu1 %6222, %v8087_v2   ;;  %2671 = vrot.lane.b32.xlu2 %v2663_v11, %s6539_s16  ;;  %s8502_s16 = sld [smem:[#allocation7 + $0x6]] }
0x1d11   :  { %6223 = vset.pattern.permute.xlu0 %v10375_v30 }
0x1d12   :  { %2713 = vperm.xlu0 %6223, %v8087_v2   ;;  %6224 = vset.pattern.permute.xlu1 %v10373_v48 }
0x1d1a   :  { %6226 = vset.pattern.permute.xlu0 %v10371_v3 }
0x1d64   :  { %v8279_v52 = vpop.permute.xlu2 %2671 }
0x1d73   :  { %v8257_v53 = vpop.permute.xlu0 %2667 }
0x1d74   :  { %v8259_v29 = vpop.permute.xlu1 %2669 }
0x1d7b   :  { %v2683_v24 = vpop.permute.xlu0 %2682 }
0x1d7c   :  { %v2690_v54 = vpop.permute.xlu1 %2689  ;;  %v2685_v15 = vmul.f32 0.0, %v2683_v24  ;;  %v2686_v38 = vmul.f32 %v2683_v24, %v8170_v22  ;;  %v2687_v41 = vmul.f32 %v2683_v24, %v8172_v4 }
0x1d7d   :  { %v2692_v18 = vmul.f32 0.0, %v2690_v54  ;;  %v2693_v58 = vmul.f32 %v2690_v54, %v8170_v22  ;;  %v2694_v40 = vmul.f32 %v2690_v54, %v8172_v4 }
0x1d7f   :  { %2698 = vrot.lane.b32.xlu2 %v2692_v18, %s6510_s18  ;;  %2700 = vrot.lane.b32.xlu1 %v2693_v58, %s6510_s18 }
0x1d84   :  { %v2714_v39 = vpop.permute.xlu0 %2713 }
0x1d85   :  { %v2716_v50 = vmul.f32 %v2714_v39, %v8170_v22  ;;  %v2717_v59 = vmul.f32 %v2714_v39, %v8172_v4 }
0x1d87   :  { %2702 = vrot.lane.b32.xlu2 %v2694_v40, %s6510_s18  ;;  %2720 = vrot.lane.b32.xlu1 %v2716_v50, %s6516_s13 }
0x1d8f   :  { %2722 = vrot.lane.b32.xlu2 %v2717_v59, %s6516_s13  ;;  %2732 = vperm.xlu1 %6224, %v8087_v2  }
0x1d97   :  { %6227 = vset.pattern.permute.xlu1 %v10392_v36 }
0x1dd9   :  { %v2699_v9 = vpop.permute.xlu2 %2698 }
0x1de1   :  { %v2703_v60 = vpop.permute.xlu2 %2702 }
0x1de2   :  { %v2711_v46 = vadd.f32 %v2703_v60, %v2687_v41 }
0x1de9   :  { %v2723_v6 = vpop.permute.xlu2 %2722 }
0x1dea   :  { %v2730_v11 = vadd.f32 %v2723_v6, %v2711_v46 }
0x1df1   :  { %v2701_v27 = vpop.permute.xlu1 %2700 }
0x1df2   :  { %v2704_v47 = vsel %vm10286_vm0, %v2699_v9, %v2701_v27  ;;  %v2705_v17 = vsel %vm10286_vm0, %v2701_v27, %v2703_v60 }
0x1df3   :  { %v2709_v7 = vadd.f32 %v2704_v47, %v2685_v15  ;;  %v2710_v5 = vadd.f32 %v2705_v17, %v2686_v38 }
0x1df9   :  { %v2721_v12 = vpop.permute.xlu1 %2720 }
0x1dfa   :  { %v2728_v10 = vadd.f32 %v2721_v12, %v2709_v7  ;;  %v2724_v16 = vsel %vm500_vm10, %v2721_v12, %v2723_v6 }
0x1dfb   :  { %v2729_v54 = vadd.f32 %v2724_v16, %v2710_v5  ;;  %v10394_v5 = vmov 9  }
0x1e01   :  { %v2733_v35 = vpop.permute.xlu1 %2732 }
0x1e02   :  { %v2735_v14 = vmul.f32 %v2733_v35, %v8170_v22  ;;  %v2736_v42 = vmul.f32 %v2733_v35, %v8172_v4  ;;  %v2737_v56 = vmul.f32 0.0, %v2733_v35 }
0x1e04   :  { %2745 = vrot.lane.b32.xlu1 %v2737_v56, %s6514_s22  ;;  %2743 = vrot.lane.b32.xlu0 %v2736_v42, %s6514_s22 }
0x1e05   :  { %2741 = vrot.lane.b32.xlu2 %v2735_v14, %s6514_s22 }
0x1e0d   :  { %2756 = vperm.xlu2 %6225, %v8087_v2  }
0x1e15   :  { %6229 = vset.pattern.permute.xlu2 %v10378_v44 }
0x1e5f   :  { %v2742_v21 = vpop.permute.xlu2 %2741 }
0x1e60   :  { %v2752_v51 = vadd.f32 %v2742_v21, %v2728_v10 }
0x1e67   :  { %v2757_v63 = vpop.permute.xlu2 %2756 }
0x1e68   :  { %v2759_v19 = vmul.f32 %v2757_v63, %v8170_v22  ;;  %v2761_v18 = vmul.f32 0.0, %v2757_v63  ;;  %v2760_v59 = vmul.f32 %v2757_v63, %v8172_v4  ;;  %v10393_v63 = vmov 4  }
0x1e6a   :  { %v2762_v45 = vadd.f32 %v2759_v19, %v2752_v51 }
0x1e6c   :  { %2768 = vrot.lane.b32.xlu0 %v2762_v45, %s6516_s13 }
0x1e74   :  { %2781 = vperm.xlu0 %6226, %v8087_v2  }
0x1e76   :  { %v2746_v58 = vpop.permute.xlu1 %2745  ;;  %v2744_v39 = vpop.permute.xlu0 %2743 }
0x1e77   :  { %v2747_v40 = vsel %vm10270_vm12, %v2742_v21, %v2744_v39  ;;  %v2748_v50 = vsel %vm10270_vm12, %v2744_v39, %v2746_v58 }
0x1e78   :  { %v2753_v27 = vadd.f32 %v2747_v40, %v2729_v54  ;;  %v2754_v35 = vadd.f32 %v2748_v50, %v2730_v11  ;;  %v10395_v11 = vmov 19  }
0x1e7a   :  { %v2763_v24 = vadd.f32 %v2760_v59, %v2753_v27  ;;  %v2764_v14 = vadd.f32 %v2761_v18, %v2754_v35 }
0x1e7c   :  { %6228 = vset.pattern.permute.xlu0 %v10383_v55  ;;  %2772 = vrot.lane.b32.xlu2 %v2764_v14, %s6516_s13  ;;  %v10420_v55 = vstv %s8398_s5 }
0x1e7d   :  { %2770 = vrot.lane.b32.xlu1 %v2763_v24, %s6516_s13  ;;  %2812 = vperm.xlu0 %6228, %v8087_v2  }
0x1e85   :  { %2788 = vperm.xlu1 %6227, %v8087_v2   ;;  %6230 = vset.pattern.permute.xlu0 %v10354_v62 }
0x1e8d   :  { %6237 = vset.pattern.permute.xlu1 %v10381_v31 }
0x1ed6   :  { %v8315_v51 = vpop.permute.xlu2 %2772 }
0x1ede   :  { %v8299_v12 = vpop.permute.xlu0 %2768 }
0x1ee6   :  { %v2782_v56 = vpop.permute.xlu0 %2781 }
0x1ee7   :  { %v2784_v59 = vmul.f32 0.0, %v2782_v56  ;;  %v2785_v27 = vmul.f32 %v2782_v56, %v8170_v22 }
0x1eef   :  { %v8301_v42 = vpop.permute.xlu1 %2770  ;;  %v2813_v21 = vpop.permute.xlu0 %2812 }
0x1ef0   :  { %v2815_v47 = vmul.f32 %v2813_v21, %v8170_v22  ;;  %v2817_v7 = vmul.f32 0.0, %v2813_v21  ;;  %v2816_v10 = vmul.f32 %v2813_v21, %v8172_v4 }
0x1ef7   :  { %v2789_v9 = vpop.permute.xlu1 %2788 }
0x1ef8   :  { %v2791_v60 = vmul.f32 0.0, %v2789_v9  ;;  %v2792_v6 = vmul.f32 %v2789_v9, %v8170_v22  ;;  %v2793_v15 = vmul.f32 %v2789_v9, %v8172_v4 }
0x1efa   :  { %2797 = vrot.lane.b32.xlu2 %v2791_v60, %s6510_s18  ;;  %2799 = vrot.lane.b32.xlu1 %v2792_v6, %s6510_s18 }
0x1f02   :  { %2801 = vrot.lane.b32.xlu2 %v2793_v15, %s6510_s18  ;;  %2821 = vrot.lane.b32.xlu1 %v2815_v47, %s6516_s13 }
0x1f0a   :  { %2823 = vrot.lane.b32.xlu2 %v2816_v10, %s6516_s13  ;;  %2825 = vrot.lane.b32.xlu1 %v2817_v7, %s6516_s13 }
0x1f12   :  { %2836 = vperm.xlu2 %6229, %v8087_v2  }
0x1f1a   :  { %6231 = vset.pattern.permute.xlu2 %v10393_v63 }
0x1f54   :  { %v2798_v19 = vpop.permute.xlu2 %2797 }
0x1f5c   :  { %v2802_v45 = vpop.permute.xlu2 %2801 }
0x1f64   :  { %v2824_v17 = vpop.permute.xlu2 %2823 }
0x1f6c   :  { %v2837_v38 = vpop.permute.xlu2 %2836  ;;  %v2800_v54 = vpop.permute.xlu1 %2799 }
0x1f6d   :  { %v2839_v41 = vmul.f32 %v2837_v38, %v8170_v22  ;;  %v2840_v16 = vmul.f32 %v2837_v38, %v8172_v4  ;;  %v2841_v46 = vmul.f32 0.0, %v2837_v38  ;;  %v2803_v40 = vsel %vm10286_vm0, %v2798_v19, %v2800_v54 }
0x1f6e   :  { %v2804_v50 = vsel %vm10286_vm0, %v2800_v54, %v2802_v45  ;;  %v2808_v14 = vadd.f32 %v2803_v40, %v2784_v59  ;;  %v2786_v38 = vmul.f32 %v2782_v56, %v8172_v4 }
0x1f6f   :  { %2845 = vrot.lane.b32.xlu0 %v2839_v41, %s6514_s22  ;;  %2847 = vrot.lane.b32.xlu1 %v2840_v16, %s6514_s22  ;;  %v2809_v9 = vadd.f32 %v2804_v50, %v2785_v27 }
0x1f70   :  { %2849 = vrot.lane.b32.xlu2 %v2841_v46, %s6514_s22  ;;  %v2810_v54 = vadd.f32 %v2802_v45, %v2786_v38  ;;  %v10396_v45 = vmov 14  }
0x1f74   :  { %v2822_v18 = vpop.permute.xlu1 %2821 }
0x1f75   :  { %v2827_v24 = vsel %vm500_vm10, %v2822_v18, %v2824_v17  ;;  %v2832_v6 = vadd.f32 %v2822_v18, %v2808_v14 }
0x1f76   :  { %v2833_v21 = vadd.f32 %v2827_v24, %v2809_v9 }
0x1f77   :  { %2860 = vperm.xlu0 %6230, %v8087_v2  }
0x1f7c   :  { %v2826_v58 = vpop.permute.xlu1 %2825 }
0x1f7d   :  { %v2828_v46 = vsel %vm500_vm10, %v2824_v17, %v2826_v58 }
0x1f7f   :  { %6232 = vset.pattern.permute.xlu0 %v10394_v5 }
0x1f80   :  { %2894 = vperm.xlu0 %6232, %v8087_v2  }
0x1f88   :  { %6234 = vset.pattern.permute.xlu0 %v10395_v11 }
0x1fca   :  { %v2850_v40 = vpop.permute.xlu2 %2849 }
0x1fe1   :  { %v2846_v39 = vpop.permute.xlu0 %2845  ;;  %v2848_v35 = vpop.permute.xlu1 %2847 }
0x1fe2   :  { %v2851_v60 = vsel %vm10270_vm12, %v2846_v39, %v2848_v35  ;;  %v2856_v15 = vadd.f32 %v2846_v39, %v2832_v6  ;;  %v2852_v18 = vsel %vm10270_vm12, %v2848_v35, %v2850_v40  ;;  %v2834_v39 = vadd.f32 %v2828_v46, %v2810_v54 }
0x1fe3   :  { %v2857_v7 = vadd.f32 %v2851_v60, %v2833_v21  ;;  %v10397_v35 = vmov 24  }
0x1fe4   :  { %v2858_v59 = vadd.f32 %v2852_v18, %v2834_v39 }
0x1fe9   :  { %v2861_v47 = vpop.permute.xlu0 %2860 }
0x1fea   :  { %v2863_v10 = vmul.f32 %v2861_v47, %v8170_v22  ;;  %v2864_v19 = vmul.f32 %v2861_v47, %v8172_v4  ;;  %v2865_v50 = vmul.f32 0.0, %v2861_v47 }
0x1fec   :  { %v2866_v41 = vadd.f32 %v2863_v10, %v2856_v15  ;;  %v2867_v16 = vadd.f32 %v2864_v19, %v2857_v7  ;;  %v2868_v27 = vadd.f32 %v2865_v50, %v2858_v59 }
0x1fee   :  { %2872 = vrot.lane.b32.xlu1 %v2866_v41, %s6541_s29  ;;  %2874 = vrot.lane.b32.xlu2 %v2867_v16, %s6541_s29 }
0x1ff2   :  { %v2895_v56 = vpop.permute.xlu0 %2894 }
0x1ff3   :  { %v2897_v24 = vmul.f32 0.0, %v2895_v56  ;;  %v2898_v17 = vmul.f32 %v2895_v56, %v8170_v22  ;;  %v2899_v58 = vmul.f32 %v2895_v56, %v8172_v4 }
0x1ff6   :  { %2876 = vrot.lane.b32.xlu1 %v2868_v27, %s6541_s29  ;;  %2887 = vperm.xlu2 %6231, %v8087_v2   ;;  %s8396_s29 = sld [smem:[#allocation3 + $0x1]] }
0x1ffe   :  { %2903 = vrot.lane.b32.xlu1 %v2897_v24, %s6510_s18  ;;  %2905 = vrot.lane.b32.xlu2 %v2898_v17, %s6510_s18 }
0x1fff   :  { %6233 = vset.pattern.permute.xlu2 %v10396_v45 }
0x2006   :  { %2907 = vrot.lane.b32.xlu1 %v2899_v58, %s6510_s18  ;;  %2918 = vperm.xlu2 %6233, %v8087_v2  }
0x200e   :  { %6235 = vset.pattern.permute.xlu2 %v10397_v35 }
0x2048   :  { %v8348_v14 = vpop.permute.xlu2 %2874 }
0x2050   :  { %v2888_v9 = vpop.permute.xlu2 %2887 }
0x2051   :  { %v2890_v27 = vmul.f32 0.0, %v2888_v9 }
0x2058   :  { %v2906_v60 = vpop.permute.xlu2 %2905 }
0x2060   :  { %v2919_v6 = vpop.permute.xlu2 %2918  ;;  %v8364_v16 = vpop.permute.xlu1 %2872 }
0x2061   :  { %v2921_v21 = vmul.f32 %v2919_v6, %v8170_v22  ;;  %v2922_v47 = vmul.f32 %v2919_v6, %v8172_v4  ;;  %v2923_v15 = vmul.f32 0.0, %v2919_v6 }
0x2063   :  { %2931 = vrot.lane.b32.xlu2 %v2923_v15, %s6516_s13  ;;  %2929 = vrot.lane.b32.xlu1 %v2922_v47, %s6516_s13 }
0x2064   :  { %2927 = vrot.lane.b32.xlu0 %v2921_v21, %s6516_s13 }
0x2068   :  { %v8366_v46 = vpop.permute.xlu1 %2876 }
0x206c   :  { %2942 = vperm.xlu0 %6234, %v8087_v2  }
0x2070   :  { %v2904_v54 = vpop.permute.xlu1 %2903 }
0x2071   :  { %v2909_v59 = vsel %vm10286_vm0, %v2904_v54, %v2906_v60 }
0x2072   :  { %v2914_v24 = vadd.f32 %v2909_v59, %v2890_v27 }
0x2074   :  { %6236 = vset.pattern.permute.xlu0 %v10381_v31 }
0x2078   :  { %v2908_v18 = vpop.permute.xlu1 %2907 }
0x2079   :  { %v2910_v56 = vsel %vm10286_vm0, %v2906_v60, %v2908_v18  ;;  %v2892_v60 = vmul.f32 %v2888_v9, %v8172_v4  ;;  %vm1132_vm0 = vcmask 1041408  }
0x207b   :  { %v2916_v27 = vadd.f32 %v2908_v18, %v2892_v60 }
0x20bd   :  { %v2932_v40 = vpop.permute.xlu2 %2931 }
0x20d5   :  { %v2930_v50 = vpop.permute.xlu1 %2929 }
0x20d6   :  { %v2928_v7 = vpop.permute.xlu0 %2927  ;;  %v2934_v59 = vsel %vm500_vm10, %v2930_v50, %v2932_v40  ;;  %v10400_v40 = vld [vmem:[#allocation25_spill] sm:$0xff] }
0x20d7   :  { %v2933_v17 = vsel %vm500_vm10, %v2928_v7, %v2930_v50  ;;  %v2938_v6 = vadd.f32 %v2928_v7, %v2914_v24  ;;  %v2940_v7 = vadd.f32 %v2934_v59, %v2916_v27  ;;  %v1070_v27 = vstv %s8404_s12  ;;  %s8593_s12 = sld [smem:[#allocation10 + $0x2]] }
0x20de   :  { %v2943_v10 = vpop.permute.xlu0 %2942 }
0x20df   :  { %v2945_v19 = vmul.f32 %v2943_v10, %v8170_v22  ;;  %v2946_v38 = vmul.f32 %v2943_v10, %v8172_v4  ;;  %v2947_v41 = vmul.f32 0.0, %v2943_v10 }
0x20e1   :  { %2953 = vrot.lane.b32.xlu2 %v2946_v38, %s6514_s22  ;;  %2951 = vrot.lane.b32.xlu1 %v2945_v19, %s6514_s22 }
0x20e9   :  { %2966 = vperm.xlu2 %6235, %v8087_v2   ;;  %2955 = vrot.lane.b32.xlu1 %v2947_v41, %s6514_s22  ;;  %v2891_v2 = vmul.f32 %v2888_v9, %v8170_v22  ;;  %v8386_v9 = vld [vmem:[%s10132_s9] sm:$0xff] }
0x20f1   :  { %6238 = vset.pattern.permute.xlu2 %v10388_v57  ;;  %v2915_v57 = vadd.f32 %v2910_v56, %v2891_v2 }
0x20f3   :  { %v2939_v21 = vadd.f32 %v2933_v17, %v2915_v57  ;;  %v2992_v57 = vld [vmem:[%s10131_s8] sm:$0xff]  ;;  %s8394_s8 = sld [smem:[#allocation3]] }
0x213b   :  { %v2954_v39 = vpop.permute.xlu2 %2953 }
0x2143   :  { %v2967_v58 = vpop.permute.xlu2 %2966 }
0x2144   :  { %v2969_v15 = vmul.f32 %v2967_v58, %v8170_v22  ;;  %v2970_v38 = vmul.f32 %v2967_v58, %v8172_v4  ;;  %v2971_v56 = vmul.f32 0.0, %v2967_v58  ;;  %v10401_v58 = vld [vmem:[#allocation44_spill] sm:$0xff] }
0x2153   :  { %v2952_v47 = vpop.permute.xlu1 %2951 }
0x2154   :  { %v2957_v10 = vsel %vm10270_vm12, %v2952_v47, %v2954_v39  ;;  %v2962_v19 = vadd.f32 %v2952_v47, %v2938_v6  ;;  %v10402_v47 = vld [vmem:[#allocation33_spill] sm:$0xff] }
0x2155   :  { %v2963_v41 = vadd.f32 %v2957_v10, %v2939_v21  ;;  %v10276_v10 = vstv %s8398_s5  ;;  %s8585_s5 = sld [smem:[#allocation10 + $0x4]] }
0x2156   :  { %v2972_v54 = vadd.f32 %v2969_v15, %v2962_v19  ;;  %v10403_v19 = vld [vmem:[#allocation40_spill] sm:$0xff] }
0x2157   :  { %v2973_v31 = vadd.f32 %v2970_v38, %v2963_v41  ;;  %v10404_v38 = vld [vmem:[#allocation46_spill] sm:$0xff] }
0x2158   :  { %2978 = vrot.lane.b32.xlu0 %v2972_v54, %s6543_s27  ;;  %v680_v41 = vsel %vm679_vm8, %v10404_v38, %v10403_v19  ;;  %v10405_v54 = vld [vmem:[#allocation38_spill] sm:$0xff] }
0x2159   :  { %2980 = vrot.lane.b32.xlu1 %v2973_v31, %s6543_s27  ;;  %v10398_v31 = vmov 28   ;;  %v681_v60 = vsel %vm679_vm8, %v10403_v19, %v10405_v54  ;;  %v10410_v54 = vld [vmem:[#allocation30_spill] sm:$0xff] }
0x215b   :  { %v2956_v2 = vpop.permute.xlu1 %2955 }
0x215c   :  { %v2958_v24 = vsel %vm10270_vm12, %v2954_v39, %v2956_v2  ;;  %v10267_v39 = vstv %s8394_s8  ;;  %v10406_v2 = vld [vmem:[#allocation43_spill] sm:$0xff]  ;;  %vm992_vm12 = vcmp.lt.s32.totalorder %v10387_v34, 12 }
0x215d   :  { %v2964_v17 = vadd.f32 %v2958_v24, %v2940_v7  ;;  %v10407_v24 = vld [vmem:[#allocation28_spill] sm:$0xff] }
0x215f   :  { %v2974_v6 = vadd.f32 %v2971_v56, %v2964_v17  ;;  %v894_v17 = vsel %vm893_vm6, %v10407_v24, %v10406_v2 }
0x2160   :  { %2995 = vperm.xlu0 %6236, %v2992_v57   ;;  %v898_v59 = vsel %vm876_vm7, %v894_v17, 0.0 }
0x2161   :  { %2982 = vrot.lane.b32.xlu2 %v2974_v6, %s6543_s27  ;;  %3334 = vperm.xlu1 %6237, %v8386_v9   ;;  %s8400_s27 = sld [smem:[#allocation3 + $0x5]]  ;;  %v1027_v6 = vmul.f32 %v10267_v39, %v10402_v47  ;;  %v10411_v39 = vld [vmem:[#allocation47_spill] sm:$0xff] }
0x2167   :  { %v10269_v50 = vstv %s8400_s27 }
0x2168   :  { %6241 = vset.pattern.permute.xlu0 %v10398_v31  ;;  %v1075_v56 = vmul.f32 %v10269_v50, %v10402_v47  ;;  %v1086_v31 = vstv %s8406_s24  ;;  %v10413_v50 = vld [vmem:[#allocation26_spill] sm:$0xff]  ;;  %s8599_s24 = sld [smem:[#allocation10 + $0x3]] }
0x2169   :  { %3341 = vperm.xlu2 %6238, %v8386_v9   ;;  %6239 = vset.pattern.permute.xlu1 %v10396_v45  ;;  %v10399_v45 = vld [vmem:[#allocation36_spill] sm:$0xff] }
0x216a   :  { %v565_v18 = vsel %vm564_vm2, %v10400_v40, %v10399_v45  ;;  %v566_v21 = vsel %vm564_vm2, %v10399_v45, %v10401_v58  ;;  %v684_v45 = vsel %vm662_vm5, %v680_v41, 0.0  ;;  %v685_v40 = vsel %vm10288_vm9, %v681_v60, 0.0  ;;  %v10409_v58 = vld [vmem:[#allocation45_spill] sm:$0xff] }
0x216b   :  { %v569_v7 = vsel %vm547_vm3, %v565_v18, 0.0  ;;  %v570_v57 = vsel %vm548_vm13, %v566_v21, 0.0  ;;  %v10408_v18 = vld [vmem:[#allocation37_spill] sm:$0xff]  ;;  %v895_v60 = vsel %vm893_vm6, %v10406_v2, %v10413_v50  ;;  %v10414_v50 = vld [vmem:[#allocation27_spill] sm:$0xff] }
0x216c   :  { %v781_v19 = vsel %vm500_vm10, %v10409_v58, %v10408_v18  ;;  %v782_v21 = vsel %vm500_vm10, %v10408_v18, %v10410_v54  ;;  %v686_v24 = vadd.f32 %v684_v45, %v569_v7  ;;  %v1079_v58 = vrot.slane %v1075_v56, 1 }
0x216d   :  { %v1043_v7 = vmul.f32 %v10276_v10, %v10402_v47  ;;  %v1071_v45 = vmul.f32 %v1070_v27, %v10402_v47  ;;  %v1010_v2 = vsel %vm1008_vm15, %v10411_v39, %v10414_v50  ;;  %v10275_v54 = vstv %s8431_s14 }
0x216e   :  { %v785_v18 = vadd.f32 %v781_v19, %v686_v24  ;;  %v1139_v10 = vstv %s8507_s28  ;;  %s8688_s28 = sld [smem:[#allocation13 + $0x3]] }
0x216f   :  { %v1083_v24 = vadd.f32 %v1079_v58, %v1071_v45  ;;  %v1187_v45 = vstv %s8466_s20  ;;  %s8527_s20 = sld [smem:[#allocation7 + $0x3]] }
0x2171   :  { %6240 = vset.pattern.permute.xlu2 %v10390_v32  ;;  %v10268_v32 = vstv %s8396_s29 }
0x2172   :  { %v1031_v15 = vmul.f32 %v10268_v32, %v10402_v47  ;;  %v10412_v32 = vld [vmem:[#allocation42_spill] sm:$0xff] }
0x2173   :  { %v1009_v41 = vsel %vm1008_vm15, %v10412_v32, %v10411_v39  ;;  %v1087_v32 = vmul.f32 %v1086_v31, %v10402_v47  ;;  %v1014_v39 = vsel %vm992_vm12, %v1010_v2, 0.0 }
0x2174   :  { %v1035_v38 = vrot.slane %v1031_v15, 1  ;;  %v687_v15 = vadd.f32 %v685_v40, %v570_v57  ;;  %v1013_v56 = vsel %vm991_vm14, %v1009_v41, 0.0  ;;  %v899_v57 = vsel %vm10287_vm4, %v895_v60, 0.0 }
0x2175   :  { %v900_v40 = vadd.f32 %v898_v59, %v785_v18  ;;  %v1091_v59 = vrot.slane %v1087_v32, 2  ;;  %v1167_v37 = vstv %s8527_s20  ;;  %s8696_s20 = sld [smem:[#allocation13 + $0x4]] }
0x2176   :  { %v786_v17 = vadd.f32 %v782_v21, %v687_v15  ;;  %v1039_v19 = vadd.f32 %v1035_v38, %v1027_v6  ;;  %v1047_v21 = vrot.slane %v1043_v7, 2  ;;  %v10415_v15 = vstv %s8402_s23 }
0x2177   :  { %v1015_v41 = vadd.f32 %v1013_v56, %v900_v40  ;;  %v1055_v50 = vmul.f32 %v10415_v15, %v10402_v47  ;;  %v1099_v6 = vmul.f32 %v10275_v54, %v10402_v47  ;;  %v1095_v7 = vadd.f32 %v1091_v59, %v1083_v24 }
0x2178   :  { %v901_v60 = vadd.f32 %v899_v57, %v786_v17  ;;  %v1051_v38 = vadd.f32 %v1047_v21, %v1039_v19  ;;  %v10416_v17 = vld [vmem:[#allocation35_spill] sm:$0xff]  ;;  %v10417_v57 = vstv %s8400_s27  ;;  %v1143_v19 = vstv %s8488_s0  ;;  %s8588_s27 = sld [smem:[#allocation10 + $0x6]] }
0x2179   :  { %v8505_v58 = vadd.f32 %v8068_v13, %v1015_v41  ;;  %v1059_v32 = vrot.slane %v1055_v50, 3  ;;  %v1103_v47 = vrot.slane %v1099_v6, 3  ;;  %v1076_v40 = vmul.f32 %v10417_v57, %v10416_v17  ;;  %s8610_s0 = sld [smem:[#allocation11]] }
0x217a   :  { %v1016_v18 = vadd.f32 %v1014_v39, %v901_v60  ;;  %v10277_v39 = vstv %s8483_s25  ;;  %v10418_v21 = vstv %s8396_s29  ;;  %v1183_v50 = vstv %s8497_s7  ;;  %s8581_s29 = sld [smem:[#allocation10 + $0x1]] }
0x217b   :  { %v1063_v56 = vadd.f32 %v1059_v32, %v1051_v38  ;;  %v1188_v24 = vmul.f32 %v1187_v45, %v8505_v58  ;;  %v1107_v41 = vadd.f32 %v1103_v47, %v1095_v7  ;;  %v1032_v15 = vmul.f32 %v10418_v21, %v10416_v17  ;;  %s8674_s7 = sld [smem:[#allocation13 + $0x1]] }
0x217c   :  { %v8515_v2 = vadd.f32 %v8068_v13, %v1016_v18  ;;  %v10281_v13 = vstv %s8490_s6  ;;  %v1199_v60 = vstv %s8502_s16  ;;  %v1144_v59 = vmul.f32 %v1143_v19, %v8505_v58  ;;  %s8682_s16 = sld [smem:[#allocation13 + $0x2]] }
0x217d   :  { %v8535_v38 = vadd.f32 %v10277_v39, %v1063_v56  ;;  %v1080_v18 = vrot.slane %v1076_v40, 1  ;;  %v1088_v7 = vmul.f32 %v1086_v31, %v10416_v17  ;;  %v1192_v32 = vrot.slane %v1188_v24, 1 }
0x217e   :  { %v1189_v6 = vmul.f32 %v1187_v45, %v8515_v2  ;;  %v10419_v47 = vstv %s8394_s8  ;;  %v1072_v21 = vmul.f32 %v1070_v27, %v10416_v17  ;;  %v8548_v54 = vadd.f32 %v10281_v13, %v1107_v41  ;;  %s8559_s8 = sld [smem:[#allocation8 + $0x1]] }
0x217f   :  { %v1028_v57 = vmul.f32 %v10419_v47, %v10416_v17  ;;  %v1155_v45 = vstv %s8510_s15  ;;  %v1145_v56 = vmul.f32 %v1143_v19, %v8515_v2  ;;  %v1184_v40 = vmul.f32 %v1183_v50, %v8505_v58  ;;  %s8572_s15 = sld [smem:[#allocation8]] }
0x2180   :  { %v1200_v39 = vmul.f32 %v1199_v60, %v8505_v58  ;;  %v1036_v31 = vrot.slane %v1032_v15, 1  ;;  %v1211_v24 = vstv %s8512_s3  ;;  %v1148_v26 = vrot.slane %v1144_v59, 1  ;;  %s8570_s3 = sld [smem:[#allocation10 + $0x5]] }
0x2181   :  { %v1193_v47 = vrot.slane %v1189_v6, 1  ;;  %v1044_v27 = vmul.f32 %v10420_v55, %v10416_v17  ;;  %v1084_v8 = vadd.f32 %v1080_v18, %v1072_v21  ;;  %v1092_v41 = vrot.slane %v1088_v7, 2 }
0x2182   :  { %v1196_v13 = vadd.f32 %v1192_v32, %v1184_v40  ;;  %v1140_v19 = vmul.f32 %v1139_v10, %v8505_v58  ;;  %v1156_v11 = vmul.f32 %v1155_v45, %v8505_v58  ;;  %v1185_v44 = vmul.f32 %v1183_v50, %v8515_v2 }
0x2183   :  { %v1201_v15 = vmul.f32 %v1199_v60, %v8515_v2  ;;  %v1149_v59 = vrot.slane %v1145_v56, 1  ;;  %v1204_v63 = vrot.slane %v1200_v39, 2  ;;  %v1212_v6 = vmul.f32 %v1211_v24, %v8505_v58 }
0x2184   :  { %v1040_v55 = vadd.f32 %v1036_v31, %v1028_v57  ;;  %v10421_v18 = vstv %s8431_s14  ;;  %v1152_v32 = vadd.f32 %v1148_v26, %v1140_v19  ;;  %v1197_v21 = vadd.f32 %v1193_v47, %v1185_v44  ;;  %s8607_s14 = sld [smem:[#allocation10 + $0x7]] }
0x2185   :  { %v1100_v7 = vmul.f32 %v10421_v18, %v10416_v17  ;;  %v1096_v40 = vadd.f32 %v1092_v41, %v1084_v8  ;;  %v1141_v50 = vmul.f32 %v1139_v10, %v8515_v2  ;;  %v1157_v60 = vmul.f32 %v1155_v45, %v8515_v2 }
0x2186   :  { %v1208_v56 = vadd.f32 %v1204_v63, %v1196_v13  ;;  %v1160_v39 = vrot.slane %v1156_v11, 2  ;;  %v1168_v30 = vmul.f32 %v1167_v37, %v8505_v58  ;;  %v1205_v35 = vrot.slane %v1201_v15, 2 }
0x2187   :  { %v1213_v57 = vmul.f32 %v1211_v24, %v8515_v2  ;;  %v1048_v31 = vrot.slane %v1044_v27, 2  ;;  %v10422_v44 = vstv %s8402_s23  ;;  %v1153_v47 = vadd.f32 %v1149_v59, %v1141_v50  ;;  %s8590_s23 = sld [smem:[#allocation10]] }
0x2188   :  { %v1056_v26 = vmul.f32 %v10422_v44, %v10416_v17  ;;  %v1216_v8 = vrot.slane %v1212_v6, 3  ;;  %v1104_v41 = vrot.slane %v1100_v7, 3  ;;  %v1115_v10 = vrot.slane %v8548_v54, 7 }
0x2189   :  { %v1164_v45 = vadd.f32 %v1160_v39, %v1152_v32  ;;  %v1209_v63 = vadd.f32 %v1205_v35, %v1197_v21  ;;  %v1052_v11 = vadd.f32 %v1048_v31, %v1040_v55  ;;  %v1161_v13 = vrot.slane %v1157_v60, 2 }
0x218a   :  { %v1169_v58 = vmul.f32 %v1167_v37, %v8515_v2  ;;  %v1220_v24 = vadd.f32 %v1216_v8, %v1208_v56  ;;  %v1108_v27 = vadd.f32 %v1104_v41, %v1096_v40  ;;  %v1223_v17 = vstv %s8559_s8  ;;  %s8708_s8 = sld [smem:[#allocation13 + $0x5]] }
0x218b   :  { %v1172_v19 = vrot.slane %v1168_v30, 3  ;;  %v1217_v15 = vrot.slane %v1213_v57, 3  ;;  %v1060_v59 = vrot.slane %v1056_v26, 3  ;;  %v1165_v6 = vadd.f32 %v1161_v13, %v1153_v47 }
0x218c   :  { %v1121_v37 = vrot.slane %v8535_v38, 2  ;;  %v3049_v55 = vstv %s8570_s3  ;;  %v1179_v30 = vstv %s8572_s15  ;;  %v1173_v7 = vrot.slane %v1169_v58, 3  ;;  %s8710_s3 = sld [smem:[#allocation13 + $0x6]] }
0x218d   :  { %v1176_v35 = vadd.f32 %v1172_v19, %v1164_v45  ;;  %v1221_v2 = vadd.f32 %v1217_v15, %v1209_v63  ;;  %v1064_v18 = vadd.f32 %v1060_v59, %v1052_v11  ;;  %v8597_v32 = vadd.f32 %v1223_v17, %v1220_v24  ;;  %s8719_s15 = sld [smem:[#allocation13 + $0x7]] }
0x218e   :  { %v10423_v21 = vstv %s8490_s6  ;;  %v1130_v50 = vsel %vm1129_vm11, %v8535_v38, %v1115_v10  ;;  %v1177_v60 = vadd.f32 %v1173_v7, %v1165_v6  ;;  %v3005_v56 = vstv %s8581_s29  ;;  %s8669_s6 = sld [smem:[#allocation13]] }
0x218f   :  { %v8603_v40 = vadd.f32 %v10423_v21, %v1108_v27  ;;  %v3050_v39 = vmul.f32 %v3049_v55, %v8170_v22  ;;  %v3051_v57 = vmul.f32 %v3049_v55, %v8172_v4  ;;  %v8614_v31 = vadd.f32 %v1179_v30, %v1176_v35  ;;  %s8763_s29 = sld [smem:[#allocation14]] }
0x2190   :  { %v8616_v44 = vadd.f32 %v1223_v17, %v1221_v2  ;;  %v10424_v26 = vstv %s8483_s25  ;;  %v8624_v8 = vsel %vm1132_vm0, %v1130_v50, %v1121_v37  ;;  %v1228_v41 = vrot.slane %v8597_v32, 7  ;;  %s8633_s25 = sld [smem:[#allocation11 + $0x1]] }
0x2191   :  { %v8620_v47 = vadd.f32 %v10424_v26, %v1064_v18  ;;  %v3006_v45 = vmul.f32 %v3005_v56, %v8170_v22  ;;  %v3007_v63 = vmul.f32 %v3005_v56, %v8172_v4  ;;  %v3045_v11 = vstv %s8585_s5  ;;  %s8770_s5 = sld [smem:[#allocation14 + $0x1]] }
0x2192   :  { %v3061_v13 = vstv %s8588_s27  ;;  %v1116_v58 = vrot.slane %v8603_v40, 7  ;;  %v8636_v24 = vadd.f32 %v1179_v30, %v1177_v60  ;;  %v3054_v27 = vrot.slane %v3050_v39, 1 }
0x2193   :  { %v3055_v17 = vrot.slane %v3051_v57, 1  ;;  %v1229_v19 = vrot.slane %v8616_v44, 7  ;;  %v3001_v59 = vstv %s8590_s23  ;;  %v3017_v6 = vstv %s8593_s12  ;;  %s10501_s12 = smov 46  }
0x2194   :  { %v3046_v37 = vmul.f32 %v3045_v11, %v8170_v22  ;;  %v3047_v35 = vmul.f32 %v3045_v11, %v8172_v4  ;;  %v3062_v2 = vmul.f32 %v3061_v13, %v8170_v22  ;;  %v3063_v55 = vmul.f32 %v3061_v13, %v8172_v4 }
0x2195   :  { %v8648_v18 = vsel %vm1129_vm11, %v8614_v31, %v1228_v41  ;;  %v3010_v30 = vrot.slane %v3006_v45, 1  ;;  %v3011_v7 = vrot.slane %v3007_v63, 1  ;;  %v3073_v21 = vstv %s8607_s14 }
0x2196   :  { %v3029_v50 = vstv %s8599_s24  ;;  %v3058_v56 = vadd.f32 %v3054_v27, %v3046_v37  ;;  %v3059_v39 = vadd.f32 %v3055_v17, %v3047_v35  ;;  %v3002_v57 = vmul.f32 %v3001_v59, %v8170_v22 }
0x2197   :  { %v3003_v26 = vmul.f32 %v3001_v59, %v8172_v4  ;;  %v3018_v11 = vmul.f32 %v3017_v6, %v8170_v22  ;;  %v3019_v13 = vmul.f32 %v3017_v6, %v8172_v4  ;;  %v3066_v41 = vrot.slane %v3062_v2, 2 }
0x2198   :  { %v3067_v15 = vrot.slane %v3063_v55, 2  ;;  %v3074_v45 = vmul.f32 %v3073_v21, %v8170_v22  ;;  %v3075_v63 = vmul.f32 %v3073_v21, %v8172_v4  ;;  %v3014_v27 = vadd.f32 %v3010_v30, %v3002_v57 }
0x2199   :  { %v3015_v17 = vadd.f32 %v3011_v7, %v3003_v26  ;;  %v3085_v37 = vstv %s8633_s25  ;;  %v2673_v59 = vsel %vm679_vm8, %v8257_v53, %v8259_v29  ;;  %v2674_v6 = vsel %vm679_vm8, %v8259_v29, %v8279_v52  ;;  %s10059_s25 = sld [smem:[#allocation17 + $0x2]] }
0x219a   :  { %v3070_v35 = vadd.f32 %v3066_v41, %v3058_v56  ;;  %v3071_v2 = vadd.f32 %v3067_v15, %v3059_v39  ;;  %v3022_v55 = vrot.slane %v3018_v11, 2  ;;  %v3023_v21 = vrot.slane %v3019_v13, 2 }
0x219b   :  { %v3030_v30 = vmul.f32 %v3029_v50, %v8170_v22  ;;  %v3031_v7 = vmul.f32 %v3029_v50, %v8172_v4  ;;  %v2567_v53 = vsel %vm564_vm2, %v8234_v49, %v8218_v1  ;;  %v2568_v29 = vsel %vm564_vm2, %v8218_v1, %v8236_v61 }
0x219c   :  { %v3078_v52 = vrot.slane %v3074_v45, 3  ;;  %v3079_v15 = vrot.slane %v3075_v63, 3  ;;  %v2678_v22 = vsel %vm10288_vm9, %v2674_v6, 0.0  ;;  %v3026_v4 = vadd.f32 %v3022_v55, %v3014_v27 }
0x219d   :  { %v3027_v50 = vadd.f32 %v3023_v21, %v3015_v17  ;;  %v2878_v49 = vsel %vm893_vm6, %v8364_v16, %v8348_v14  ;;  %v2879_v1 = vsel %vm893_vm6, %v8348_v14, %v8366_v46  ;;  %v2571_v39 = vsel %vm547_vm3, %v2567_v53, 0.0 }
0x219e   :  { %v3082_v61 = vadd.f32 %v3078_v52, %v3070_v35  ;;  %v3083_v56 = vadd.f32 %v3079_v15, %v3071_v2  ;;  %v2572_v57 = vsel %vm548_vm13, %v2568_v29, 0.0  ;;  %v2774_v26 = vsel %vm500_vm10, %v8299_v12, %v8301_v42 }
0x219f   :  { %v2775_v16 = vsel %vm500_vm10, %v8301_v42, %v8315_v51  ;;  %v2680_v46 = vadd.f32 %v2678_v22, %v2572_v57  ;;  %v3034_v41 = vrot.slane %v3030_v30, 3  ;;  %v3035_v45 = vrot.slane %v3031_v7, 3 }
0x21a0   :  { %v2882_v63 = vsel %vm876_vm7, %v2878_v49, 0.0  ;;  %v2883_v12 = vsel %vm10287_vm4, %v2879_v1, 0.0  ;;  %v8726_v55 = vadd.f32 %v3085_v37, %v3082_v61  ;;  %v1122_v21 = vrot.slane %v8620_v47, 2 }
0x21a1   :  { %v2779_v17 = vadd.f32 %v2775_v16, %v2680_v46  ;;  %v3039_v6 = vadd.f32 %v3035_v45, %v3027_v50  ;;  %v8735_v30 = vsel %vm1129_vm11, %v8620_v47, %v1116_v58  ;;  %v1235_v29 = vrot.slane %v8636_v24, 2 }
0x21a2   :  { %v10425_v15 = vrot.slane %v8614_v31, 2  ;;  %v3115_v61 = vstv %s8674_s7  ;;  %v3155_v16 = vstv %s8696_s20  ;;  %v3183_v46 = vstv %s8719_s15  ;;  %s10069_s7 = sld [smem:[#allocation16 + $0x7]] }
0x21a3   :  { %v2885_v53 = vadd.f32 %v2883_v12, %v2779_v17  ;;  %vm1135_vm3 = vcmask 1042432   ;;  %v3100_v47 = vrot.slane %v8726_v55, 1  ;;  %vm3278_vm6 = vcmask 1043456  }
0x21a4   :  { %v8747_v58 = vsel %vm1132_vm0, %v8648_v18, %v10425_v15  ;;  %v3127_v18 = vstv %s8682_s16  ;;  %vm3281_vm8 = vcmask 1044480   ;;  %vm10293_vm13 = vcmask 1046528   ;;  %s10073_s16 = sld [smem:[#allocation17 + $0x3]] }
0x21a5   :  { %vm10436_vm2 = vcmask 654336   ;;  %vm10438_vm9 = vcmask 392192  }
0x21a6   :  { %vm10437_vm4 = vmmov %vm10436_vm2 }
0x21bb   :  { %v8627_v10 = vpop.permute.xlu2 %2982 }
0x21c3   :  { %v8657_v38 = vpop.permute.xlu2 %3341 }
0x21c4   :  { %v3344_v60 = vmul.f32 0.0, %v8657_v38 }
0x21c6   :  { %3350 = vrot.lane.b32.xlu1 %v3344_v60, %s6511_s30  ;;  %v2677_v60 = vsel %vm662_vm5, %v2673_v59, 0.0  ;;  %v3038_v59 = vadd.f32 %v3034_v41, %v3026_v4 }
0x21c7   :  { %v2679_v14 = vadd.f32 %v2677_v60, %v2571_v39  ;;  %v10426_v60 = vstv %s8610_s0  ;;  %v3139_v39 = vstv %s8688_s28  ;;  %s10517_s0 = smov 45  }
0x21c8   :  { %v8751_v22 = vadd.f32 %v10426_v60, %v3038_v59  ;;  %v10427_v4 = vmov %v10426_v60 }
0x21c9   :  { %v2778_v51 = vadd.f32 %v2774_v26, %v2679_v14  ;;  %v8755_v50 = vadd.f32 %v10427_v4, %v3039_v6  ;;  %v3171_v14 = vstv %s8710_s3 }
0x21ca   :  { %v2979_v11 = vpop.permute.xlu0 %2978 }
0x21cb   :  { %v2981_v13 = vpop.permute.xlu1 %2980  ;;  %v2884_v7 = vadd.f32 %v2882_v63, %v2778_v51 }
0x21cc   :  { %v2984_v27 = vsel %vm1008_vm15, %v2979_v11, %v2981_v13  ;;  %v2985_v42 = vsel %vm1008_vm15, %v2981_v13, %v8627_v10  ;;  %v8728_v10 = vadd.f32 %v3085_v37, %v3083_v56  ;;  %v1243_v37 = vsel %vm1129_vm11, %v8636_v24, %v1229_v19 }
0x21cd   :  { %v2988_v35 = vsel %vm991_vm14, %v2984_v27, 0.0  ;;  %v2989_v2 = vsel %vm992_vm12, %v2985_v42, 0.0  ;;  %v3090_v24 = vrot.slane %v8726_v55, 7  ;;  %v3111_v19 = vstv %s8669_s6  ;;  %s10064_s6 = sld [smem:[#allocation16 + $0x6]] }
0x21ce   :  { %3365 = vperm.xlu1 %6239, %v8386_v9   ;;  %v2990_v49 = vadd.f32 %v2988_v35, %v2884_v7  ;;  %v2991_v1 = vadd.f32 %v2989_v2, %v2885_v53  ;;  %v3091_v31 = vrot.slane %v8728_v10, 7  ;;  %v3159_v11 = vstv %s8708_s8 }
0x21cf   :  { %vm3284_vm12 = vcmask 1045504   ;;  %vm10434_vm14 = vcmask 785408  }
0x21d0   :  { %vm10435_vm15 = vmmov %vm10434_vm14 }
0x21d2   :  { %v2996_v56 = vpop.permute.xlu0 %2995 }
0x21d3   :  { %v2998_v57 = vadd.f32 %v2996_v56, %v2990_v49  ;;  %v2999_v26 = vadd.f32 %v2996_v56, %v2991_v1 }
0x21d5   :  { %v3112_v13 = vmul.f32 %v3111_v19, %v2998_v57  ;;  %v3113_v41 = vmul.f32 %v3111_v19, %v2999_v26  ;;  %v3116_v45 = vmul.f32 %v3115_v61, %v2998_v57  ;;  %v3117_v63 = vmul.f32 %v3115_v61, %v2999_v26 }
0x21d6   :  { %v3128_v12 = vmul.f32 %v3127_v18, %v2998_v57  ;;  %v3129_v27 = vmul.f32 %v3127_v18, %v2999_v26  ;;  %v3140_v42 = vmul.f32 %v3139_v39, %v2998_v57  ;;  %v3141_v51 = vmul.f32 %v3139_v39, %v2999_v26  ;;  %6252 = vset.pattern.permute.xlu1 %v10394_v5 }
0x21d7   :  { %v3120_v17 = vrot.slane %v3116_v45, 1  ;;  %v3121_v59 = vrot.slane %v3117_v63, 1  ;;  %v3156_v6 = vmul.f32 %v3155_v16, %v2998_v57  ;;  %v3157_v35 = vmul.f32 %v3155_v16, %v2999_v26 }
0x21d8   :  { %v3132_v2 = vrot.slane %v3128_v12, 2  ;;  %v3133_v7 = vrot.slane %v3129_v27, 2  ;;  %v3144_v53 = vrot.slane %v3140_v42, 3  ;;  %v3145_v15 = vrot.slane %v3141_v51, 3 }
0x21d9   :  { %v3124_v60 = vadd.f32 %v3120_v17, %v3112_v13  ;;  %v3125_v4 = vadd.f32 %v3121_v59, %v3113_v41  ;;  %v3160_v49 = vmul.f32 %v3159_v11, %v2998_v57  ;;  %v3161_v1 = vmul.f32 %v3159_v11, %v2999_v26 }
0x21da   :  { %v3172_v19 = vmul.f32 %v3171_v14, %v2998_v57  ;;  %v3173_v61 = vmul.f32 %v3171_v14, %v2999_v26  ;;  %v3184_v56 = vmul.f32 %v3183_v46, %v2998_v57  ;;  %v3185_v5 = vmul.f32 %v3183_v46, %v2999_v26 }
0x21db   :  { %v3136_v18 = vadd.f32 %v3132_v2, %v3124_v60  ;;  %v3137_v39 = vadd.f32 %v3133_v7, %v3125_v4  ;;  %v3164_v45 = vrot.slane %v3160_v49, 1  ;;  %v3165_v16 = vrot.slane %v3161_v1, 1 }
0x21dc   :  { %v1245_v63 = vsel %vm1132_vm0, %v1243_v37, %v1235_v29  ;;  %v3151_v12 = vstv %s8763_s29  ;;  %v3176_v27 = vrot.slane %v3172_v19, 2  ;;  %v3177_v42 = vrot.slane %v3173_v61, 2 }
0x21dd   :  { %v3148_v51 = vadd.f32 %v3144_v53, %v3136_v18  ;;  %v3149_v52 = vadd.f32 %v3145_v15, %v3137_v39  ;;  %v3168_v13 = vadd.f32 %v3164_v45, %v3156_v6  ;;  %v3169_v41 = vadd.f32 %v3165_v16, %v3157_v35 }
0x21de   :  { %v3096_v11 = vrot.slane %v8751_v22, 2  ;;  %v3097_v14 = vrot.slane %v8755_v50, 2  ;;  %v3104_v57 = vsel %vm1129_vm11, %v8751_v22, %v3090_v24  ;;  %v3105_v26 = vsel %vm1129_vm11, %v8755_v50, %v3091_v31 }
0x21df   :  { %v3180_v46 = vadd.f32 %v3176_v27, %v3168_v13  ;;  %v3181_v29 = vadd.f32 %v3177_v42, %v3169_v41  ;;  %v3188_v37 = vrot.slane %v3184_v56, 3  ;;  %v3189_v17 = vrot.slane %v3185_v5, 3 }
0x21e0   :  { %v1239_v59 = vrot.slane %v8616_v44, 1  ;;  %v3195_v2 = vstv %s8770_s5  ;;  %v3152_v7 = vadd.f32 %v3151_v12, %v3148_v51  ;;  %v3153_v6 = vadd.f32 %v3151_v12, %v3149_v52 }
0x21e1   :  { %v1126_v35 = vrot.slane %v8603_v40, 1  ;;  %v1134_v53 = vsel %vm1132_vm0, %v8735_v30, %v1122_v21  ;;  %v3192_v22 = vadd.f32 %v3188_v37, %v3180_v46  ;;  %v3193_v24 = vadd.f32 %v3189_v17, %v3181_v29 }
0x21e2   :  { %v10428_v50 = vrot.slane %v8597_v32, 1  ;;  %v8794_v44 = vsel %vm1135_vm3, %v1245_v63, %v1239_v59  ;;  %v3106_v52 = vsel %vm1132_vm0, %v3104_v57, %v3096_v11  ;;  %v3107_v40 = vsel %vm1132_vm0, %v3105_v26, %v3097_v14 }
0x21e3   :  { %v3101_v15 = vrot.slane %v8728_v10, 1  ;;  %v3196_v21 = vadd.f32 %v3195_v2, %v3192_v22  ;;  %v3197_v30 = vadd.f32 %v3195_v2, %v3193_v24  ;;  %v10429_v60 = vrot.slane %v8548_v54, 1 }
0x21e4   :  { %v8791_v31 = vsel %vm1135_vm3, %v8747_v58, %v10428_v50  ;;  %v8807_v58 = vsel %vm1135_vm3, %v1134_v53, %v1126_v35  ;;  %v3206_v4 = vrot.slane %v3152_v7, 2  ;;  %v3207_v49 = vrot.slane %v3153_v6, 2 }
0x21e5   :  { %v8804_v32 = vsel %vm1135_vm3, %v8624_v8, %v10429_v60  ;;  %v8810_v1 = vsel %vm1135_vm3, %v3106_v52, %v3100_v47  ;;  %v8813_v55 = vsel %vm1135_vm3, %v3107_v40, %v3101_v15  ;;  %v3200_v10 = vrot.slane %v3196_v21, 7 }
0x21e6   :  { %v3201_v19 = vrot.slane %v3197_v30, 7  ;;  %v3220_v54 = vadd.f32 %v8791_v31, %v8804_v32  ;;  %v3221_v8 = vadd.f32 %v8794_v44, %v8807_v58  ;;  %v3210_v61 = vrot.slane %v3196_v21, 1 }
0x21e7   :  { %v3211_v56 = vrot.slane %v3197_v30, 1  ;;  %v3214_v5 = vsel %vm1129_vm11, %v3152_v7, %v3200_v10 }
0x21e8   :  { %v3215_v18 = vsel %vm1129_vm11, %v3153_v6, %v3201_v19  ;;  %v3222_v39 = vadd.f32 %v3220_v54, %v8810_v1  ;;  %v3223_v45 = vadd.f32 %v3221_v8, %v8813_v55  ;;  %v3216_v16 = vsel %vm1132_vm0, %v3214_v5, %v3206_v4 }
0x21e9   :  { %v3217_v63 = vsel %vm1132_vm0, %v3215_v18, %v3207_v49  ;;  %v8826_v12 = vsel %vm1135_vm3, %v3216_v16, %v3210_v61  ;;  %v8857_v61 = vpop.permute.xlu1 %3334 }
0x21ea   :  { %10430 = vst [vmem:[#allocation31_spill] sm:$0xff] %v8826_v12  ;;  %v8829_v27 = vsel %vm1135_vm3, %v3217_v63, %v3211_v56  ;;  %v3224_v42 = vadd.f32 %v3222_v39, %v8826_v12 }
0x21eb   :  { %10431 = vst [vmem:[#allocation39_spill] sm:$0xff] %v8829_v27  ;;  %v3225_v51 = vadd.f32 %v3223_v45, %v8829_v27 }
0x21ec   :  { %v3234_v13 = vrot.slane %v3224_v42, 1 }
0x21ed   :  { %v3235_v41 = vrot.slane %v3225_v51, 1 }
0x21ee   :  { %v3238_v11 = vadd.f32 %v3234_v13, %v3224_v42 }
0x21ef   :  { %v3239_v14 = vadd.f32 %v3235_v41, %v3225_v51 }
0x21f0   :  { %v3248_v57 = vmul.f32 0.125, %v3238_v11  ;;  %v10433_v11 = vmov 42  }
0x21f1   :  { %v3249_v26 = vmul.f32 0.125, %v3239_v14 }
0x21f2   :  { %v3252_v46 = vrot.slane %v3248_v57, 7  ;;  %v3256_v37 = vrot.slane %v3248_v57, 6  ;;  %v3260_v59 = vrot.slane %v3248_v57, 5  ;;  %v3264_v50 = vrot.slane %v3248_v57, 4 }
0x21f3   :  { %v3253_v29 = vrot.slane %v3249_v26, 7  ;;  %v3257_v17 = vrot.slane %v3249_v26, 6  ;;  %v3261_v2 = vrot.slane %v3249_v26, 5  ;;  %v3265_v52 = vrot.slane %v3249_v26, 4 }
0x21f4   :  { %v3272_v7 = vsel %vm1129_vm11, %v3248_v57, %v3252_v46  ;;  %v3268_v15 = vrot.slane %v3248_v57, 3  ;;  %v3269_v21 = vrot.slane %v3249_v26, 3 }
0x21f5   :  { %v3273_v6 = vsel %vm1129_vm11, %v3249_v26, %v3253_v29  ;;  %v3274_v35 = vsel %vm1132_vm0, %v3272_v7, %v3256_v37 }
0x21f6   :  { %v3275_v53 = vsel %vm1132_vm0, %v3273_v6, %v3257_v17  ;;  %v3276_v22 = vsel %vm1135_vm3, %v3274_v35, %v3260_v59 }
0x21f7   :  { %v3277_v24 = vsel %vm1135_vm3, %v3275_v53, %v3261_v2  ;;  %v3279_v40 = vsel %vm3278_vm6, %v3276_v22, %v3256_v37 }
0x21f8   :  { %v3280_v47 = vsel %vm3278_vm6, %v3277_v24, %v3257_v17  ;;  %v3282_v30 = vsel %vm3281_vm8, %v3279_v40, %v3260_v59 }
0x21f9   :  { %v3283_v60 = vsel %vm3281_vm8, %v3280_v47, %v3261_v2  ;;  %v3285_v4 = vsel %vm3284_vm12, %v3282_v30, %v3264_v50 }
0x21fa   :  { %v3286_v49 = vsel %vm3284_vm12, %v3283_v60, %v3265_v52  ;;  %v8846_v10 = vsel %vm10293_vm13, %v3285_v4, %v3268_v15 }
0x21fb   :  { %v8849_v19 = vsel %vm10293_vm13, %v3286_v49, %v3269_v21  ;;  %v3345_v54 = vmul.f32 %v8657_v38, %v8846_v10  ;;  %v3338_v60 = vmul.f32 %v8857_v61, %v8846_v10 }
0x21fc   :  { %v3346_v8 = vmul.f32 %v8657_v38, %v8849_v19  ;;  %v10432_v38 = vmov 35  }
0x21fd   :  { %3352 = vrot.lane.b32.xlu2 %v3345_v54, %s6511_s30 }
0x21fe   :  { %3354 = vrot.lane.b32.xlu0 %v3346_v8, %s6511_s30 }
0x2238   :  { %v3351_v56 = vpop.permute.xlu1 %3350 }
0x2240   :  { %v3366_v5 = vpop.permute.xlu1 %3365 }
0x2241   :  { %v3368_v18 = vmul.f32 0.0, %v3366_v5  ;;  %v3369_v39 = vmul.f32 %v3366_v5, %v8846_v10  ;;  %v3370_v45 = vmul.f32 %v3366_v5, %v8849_v19 }
0x2243   :  { %3374 = vrot.lane.b32.xlu2 %v3368_v18, %s6510_s18  ;;  %3378 = vrot.lane.b32.xlu1 %v3370_v45, %s6510_s18 }
0x2244   :  { %3376 = vrot.lane.b32.xlu0 %v3369_v39, %s6510_s18 }
0x224b   :  { %3389 = vperm.xlu2 %6240, %v8386_v9  }
0x2253   :  { %6242 = vset.pattern.permute.xlu2 %v10432_v38 }
0x2257   :  { %v3353_v16 = vpop.permute.xlu2 %3352 }
0x2270   :  { %v3355_v14 = vpop.permute.xlu0 %3354 }
0x2271   :  { %v3357_v30 = vsel %vm224_vm1, %v3353_v16, %v3355_v14 }
0x2272   :  { %v3362_v8 = vadd.f32 %v3357_v30, %v3338_v60 }
0x229d   :  { %v3375_v63 = vpop.permute.xlu2 %3374 }
0x22a5   :  { %v3390_v42 = vpop.permute.xlu2 %3389 }
0x22a6   :  { %v3392_v51 = vmul.f32 0.0, %v3390_v42  ;;  %v3393_v13 = vmul.f32 %v3390_v42, %v8846_v10  ;;  %v3394_v41 = vmul.f32 %v3390_v42, %v8849_v19 }
0x22a8   :  { %3402 = vrot.lane.b32.xlu2 %v3394_v41, %s6532_s2  ;;  %3400 = vrot.lane.b32.xlu1 %v3393_v13, %s6532_s2 }
0x22a9   :  { %3398 = vrot.lane.b32.xlu0 %v3392_v51, %s6532_s2 }
0x22b1   :  { %3416 = vperm.xlu0 %6241, %v8386_v9  }
0x22b5   :  { %v3379_v40 = vpop.permute.xlu1 %3378 }
0x22b6   :  { %v3377_v57 = vpop.permute.xlu0 %3376 }
0x22b7   :  { %v3380_v4 = vsel %vm10434_vm14, %v3375_v63, %v3377_v57  ;;  %v3381_v54 = vsel %vm10435_vm15, %v3377_v57, %v3379_v40  ;;  %v3339_v63 = vmul.f32 %v8857_v61, %v8849_v19  ;;  %vm10439_vm14 = vcmask 261120  }
0x22b8   :  { %v3386_v38 = vadd.f32 %v3381_v54, %v3362_v8  ;;  %v10442_v54 = vmov 36  }
0x22b9   :  { %6243 = vset.pattern.permute.xlu0 %v10433_v11 }
0x2302   :  { %v3403_v59 = vpop.permute.xlu2 %3402 }
0x231a   :  { %v3401_v47 = vpop.permute.xlu1 %3400 }
0x231b   :  { %v3399_v26 = vpop.permute.xlu0 %3398 }
0x231c   :  { %v3404_v5 = vsel %vm10436_vm2, %v3399_v26, %v3401_v47  ;;  %vm10444_vm2 = vmmov %vm10435_vm15 }
0x2323   :  { %v3417_v46 = vpop.permute.xlu0 %3416 }
0x2324   :  { %v3419_v29 = vmul.f32 %v3417_v46, %v8846_v10  ;;  %v3420_v37 = vmul.f32 %v3417_v46, %v8849_v19  ;;  %v3421_v17 = vmul.f32 0.0, %v3417_v46  ;;  %v3363_v46 = vadd.f32 %v3355_v14, %v3339_v63 }
0x2326   :  { %3427 = vrot.lane.b32.xlu2 %v3420_v37, %s6516_s13  ;;  %3425 = vrot.lane.b32.xlu1 %v3419_v29, %s6516_s13 }
0x232e   :  { %3440 = vperm.xlu2 %6242, %v8386_v9   ;;  %3429 = vrot.lane.b32.xlu1 %v3421_v17, %s6516_s13 }
0x2336   :  { %6244 = vset.pattern.permute.xlu2 %v10389_v25 }
0x2380   :  { %v3428_v2 = vpop.permute.xlu2 %3427 }
0x2388   :  { %v3441_v7 = vpop.permute.xlu2 %3440 }
0x2389   :  { %v3443_v6 = vmul.f32 %v3441_v7, %v8846_v10  ;;  %v3444_v35 = vmul.f32 %v3441_v7, %v8849_v19  ;;  %v3445_v53 = vmul.f32 0.0, %v3441_v7 }
0x238b   :  { %3453 = vrot.lane.b32.xlu2 %v3445_v53, %s6535_s17  ;;  %3449 = vrot.lane.b32.xlu0 %v3443_v6, %s6535_s17  ;;  %v3387_v6 = vadd.f32 %v3379_v40, %v3363_v46  ;;  %v8914_v40 = vld [vmem:[%s10132_s9] sm:$0xff] }
0x238c   :  { %3451 = vrot.lane.b32.xlu1 %v3444_v35, %s6535_s17 }
0x2393   :  { %3464 = vperm.xlu0 %6243, %v8386_v9   ;;  %v3356_v9 = vsel %vm224_vm1, %v3351_v56, %v3353_v16  ;;  %v3405_v56 = vsel %vm10437_vm4, %v3401_v47, %v3403_v59  ;;  %vm10440_vm4 = vmmov %vm10439_vm14 }
0x2394   :  { %v3410_v51 = vadd.f32 %v3405_v56, %v3386_v38  ;;  %v10443_v56 = vmov 43  }
0x2398   :  { %v3426_v15 = vpop.permute.xlu1 %3425 }
0x2399   :  { %v3431_v16 = vsel %vm500_vm10, %v3426_v15, %v3428_v2 }
0x239a   :  { %v3437_v11 = vadd.f32 %v3431_v16, %v3410_v51 }
0x239b   :  { %6245 = vset.pattern.permute.xlu0 %v10392_v36  ;;  %v3337_v36 = vmul.f32 0.0, %v8857_v61 }
0x239d   :  { %v3361_v49 = vadd.f32 %v3356_v9, %v3337_v36  ;;  %v10441_v9 = vmov 29  }
0x239f   :  { %v3385_v45 = vadd.f32 %v3380_v4, %v3361_v49 }
0x23a0   :  { %v3430_v21 = vpop.permute.xlu1 %3429 }
0x23a1   :  { %v3409_v42 = vadd.f32 %v3404_v5, %v3385_v45  ;;  %v3432_v53 = vsel %vm500_vm10, %v3428_v2, %v3430_v21 }
0x23a3   :  { %v3436_v13 = vadd.f32 %v3426_v15, %v3409_v42 }
0x23e5   :  { %v3454_v18 = vpop.permute.xlu2 %3453 }
0x23fd   :  { %v3450_v22 = vpop.permute.xlu0 %3449 }
0x23fe   :  { %v3452_v39 = vpop.permute.xlu1 %3451  ;;  %v3460_v57 = vadd.f32 %v3450_v22, %v3436_v13 }
0x23ff   :  { %v3455_v41 = vsel %vm10438_vm9, %v3450_v22, %v3452_v39  ;;  %v3456_v61 = vsel %vm10438_vm9, %v3452_v39, %v3454_v18 }
0x2400   :  { %v3461_v26 = vadd.f32 %v3455_v41, %v3437_v11 }
0x2405   :  { %v3465_v25 = vpop.permute.xlu0 %3464 }
0x2406   :  { %v3467_v24 = vmul.f32 %v3465_v25, %v8846_v10  ;;  %v3468_v50 = vmul.f32 %v3465_v25, %v8849_v19  ;;  %v3469_v52 = vmul.f32 0.0, %v3465_v25  ;;  %v3411_v25 = vadd.f32 %v3403_v59, %v3387_v6 }
0x2408   :  { %3475 = vrot.lane.b32.xlu2 %v3468_v50, %s6514_s22  ;;  %3473 = vrot.lane.b32.xlu1 %v3467_v24, %s6514_s22  ;;  %v3438_v24 = vadd.f32 %v3432_v53, %v3411_v25 }
0x240a   :  { %v3462_v22 = vadd.f32 %v3456_v61, %v3438_v24 }
0x2410   :  { %3477 = vrot.lane.b32.xlu1 %v3469_v52, %s6514_s22 }
0x2462   :  { %v3476_v29 = vpop.permute.xlu2 %3475 }
0x247a   :  { %v3474_v37 = vpop.permute.xlu1 %3473 }
0x247b   :  { %v3479_v17 = vsel %vm10439_vm14, %v3474_v37, %v3476_v29  ;;  %v3484_v7 = vadd.f32 %v3474_v37, %v3460_v57  ;;  %vm10445_vm14 = vcmask 654336  }
0x247c   :  { %v3485_v35 = vadd.f32 %v3479_v17, %v3461_v26  ;;  %vm10446_vm9 = vmmov %vm10445_vm14 }
0x247d   :  { %3490 = vrot.lane.b32.xlu2 %v3484_v7, %s6536_s19 }
0x247e   :  { %3492 = vrot.lane.b32.xlu0 %v3485_v35, %s6536_s19 }
0x2482   :  { %v3478_v14 = vpop.permute.xlu1 %3477 }
0x2483   :  { %v3480_v50 = vsel %vm10440_vm4, %v3476_v29, %v3478_v14  ;;  %vm10447_vm4 = vcmask 392192  }
0x2484   :  { %v3486_v52 = vadd.f32 %v3480_v50, %v3462_v22 }
0x2485   :  { %3505 = vperm.xlu2 %6244, %v8914_v40  }
0x2486   :  { %3512 = vperm.xlu0 %6245, %v8914_v40   ;;  %3494 = vrot.lane.b32.xlu1 %v3486_v52, %s6536_s19 }
0x248d   :  { %6246 = vset.pattern.permute.xlu2 %v10331_v23 }
0x248e   :  { %6247 = vset.pattern.permute.xlu0 %v10391_v33 }
0x24d7   :  { %v8930_v23 = vpop.permute.xlu2 %3490 }
0x24df   :  { %v8932_v33 = vpop.permute.xlu2 %3505 }
0x24e0   :  { %v3508_v52 = vmul.f32 0.0, %v8932_v33 }
0x24f0   :  { %v8921_v59 = vpop.permute.xlu0 %3492 }
0x24f8   :  { %v3513_v2 = vpop.permute.xlu0 %3512  ;;  %v8967_v35 = vpop.permute.xlu1 %3494 }
0x24f9   :  { %v3515_v47 = vmul.f32 0.0, %v3513_v2  ;;  %v3516_v15 = vmul.f32 %v3513_v2, %v8846_v10  ;;  %v3517_v21 = vmul.f32 %v3513_v2, %v8849_v19 }
0x24fb   :  { %3523 = vrot.lane.b32.xlu2 %v3516_v15, %s6511_s30  ;;  %3521 = vrot.lane.b32.xlu1 %v3515_v47, %s6511_s30  ;;  %v3509_v15 = vmul.f32 %v8932_v33, %v8846_v10 }
0x2503   :  { %3536 = vperm.xlu2 %6246, %v8914_v40   ;;  %3525 = vrot.lane.b32.xlu1 %v3517_v21, %s6511_s30 }
0x250b   :  { %6248 = vset.pattern.permute.xlu2 %v10441_v9  ;;  %v3510_v9 = vmul.f32 %v8932_v33, %v8849_v19 }
0x2555   :  { %v3524_v36 = vpop.permute.xlu2 %3523 }
0x255d   :  { %v3537_v30 = vpop.permute.xlu2 %3536 }
0x255e   :  { %v3539_v60 = vmul.f32 0.0, %v3537_v30  ;;  %v3540_v4 = vmul.f32 %v3537_v30, %v8846_v10  ;;  %v3541_v49 = vmul.f32 %v3537_v30, %v8849_v19 }
0x2560   :  { %3545 = vrot.lane.b32.xlu0 %v3539_v60, %s6510_s18  ;;  %3549 = vrot.lane.b32.xlu2 %v3541_v49, %s6510_s18 }
0x2561   :  { %3547 = vrot.lane.b32.xlu1 %v3540_v4, %s6510_s18 }
0x2568   :  { %3560 = vperm.xlu0 %6247, %v8914_v40  }
0x256d   :  { %v3522_v53 = vpop.permute.xlu1 %3521 }
0x256e   :  { %v3527_v50 = vsel %vm224_vm1, %v3522_v53, %v3524_v36 }
0x256f   :  { %v3532_v21 = vadd.f32 %v3527_v50, %v3508_v52 }
0x2570   :  { %6249 = vset.pattern.permute.xlu0 %v10442_v54 }
0x2575   :  { %v3526_v25 = vpop.permute.xlu1 %3525 }
0x2576   :  { %v3528_v2 = vsel %vm224_vm1, %v3524_v36, %v3526_v25  ;;  %v3534_v49 = vadd.f32 %v3526_v25, %v3510_v9 }
0x2577   :  { %v3533_v4 = vadd.f32 %v3528_v2, %v3509_v15 }
0x25ba   :  { %v3550_v38 = vpop.permute.xlu2 %3549 }
0x25bb   :  { %v3558_v36 = vadd.f32 %v3550_v38, %v3534_v49 }
0x25d2   :  { %v3546_v8 = vpop.permute.xlu0 %3545 }
0x25d3   :  { %v3548_v61 = vpop.permute.xlu1 %3547 }
0x25d4   :  { %v3551_v47 = vsel %vm10435_vm15, %v3546_v8, %v3548_v61  ;;  %v3552_v30 = vsel %vm10444_vm2, %v3548_v61, %v3550_v38  ;;  %vm10448_vm15 = vmmov %vm10447_vm4  ;;  %vm10449_vm2 = vcmask 261120  }
0x25d5   :  { %v3556_v54 = vadd.f32 %v3551_v47, %v3532_v21  ;;  %v10453_v21 = vmov 37  }
0x25da   :  { %v3561_v5 = vpop.permute.xlu0 %3560 }
0x25db   :  { %v3563_v18 = vmul.f32 0.0, %v3561_v5  ;;  %v3564_v39 = vmul.f32 %v3561_v5, %v8846_v10  ;;  %v3565_v45 = vmul.f32 %v3561_v5, %v8849_v19 }
0x25dd   :  { %3571 = vrot.lane.b32.xlu2 %v3564_v39, %s6532_s2  ;;  %3569 = vrot.lane.b32.xlu1 %v3563_v18, %s6532_s2  ;;  %v3557_v39 = vadd.f32 %v3552_v30, %v3533_v4 }
0x25e5   :  { %3584 = vperm.xlu2 %6248, %v8914_v40   ;;  %3573 = vrot.lane.b32.xlu1 %v3565_v45, %s6532_s2 }
0x25ed   :  { %6250 = vset.pattern.permute.xlu2 %v10443_v56 }
0x2637   :  { %v3572_v42 = vpop.permute.xlu2 %3571 }
0x263f   :  { %v3585_v16 = vpop.permute.xlu2 %3584 }
0x2640   :  { %v3587_v51 = vmul.f32 %v3585_v16, %v8846_v10  ;;  %v3588_v13 = vmul.f32 %v3585_v16, %v8849_v19  ;;  %v3589_v41 = vmul.f32 0.0, %v3585_v16 }
0x2642   :  { %3597 = vrot.lane.b32.xlu2 %v3589_v41, %s6516_s13  ;;  %3593 = vrot.lane.b32.xlu0 %v3587_v51, %s6516_s13 }
0x2643   :  { %3595 = vrot.lane.b32.xlu1 %v3588_v13, %s6516_s13 }
0x264a   :  { %3608 = vperm.xlu0 %6249, %v8914_v40  }
0x2652   :  { %6251 = vset.pattern.permute.xlu0 %v10333_v0 }
0x269c   :  { %v3598_v29 = vpop.permute.xlu2 %3597 }
0x26b4   :  { %v3594_v63 = vpop.permute.xlu0 %3593 }
0x26bc   :  { %v3609_v11 = vpop.permute.xlu0 %3608 }
0x26bd   :  { %v3611_v57 = vmul.f32 %v3609_v11, %v8846_v10  ;;  %v3612_v46 = vmul.f32 %v3609_v11, %v8849_v19  ;;  %v3613_v26 = vmul.f32 0.0, %v3609_v11 }
0x26bf   :  { %3619 = vrot.lane.b32.xlu2 %v3612_v46, %s6535_s17  ;;  %3617 = vrot.lane.b32.xlu1 %v3611_v57, %s6535_s17 }
0x26c7   :  { %3632 = vperm.xlu2 %6250, %v8914_v40   ;;  %3621 = vrot.lane.b32.xlu1 %v3613_v26, %s6535_s17 }
0x26cf   :  { %6254 = vset.pattern.permute.xlu2 %v10354_v62  ;;  %v3570_v62 = vpop.permute.xlu1 %3569 }
0x26d0   :  { %v3575_v60 = vsel %vm10445_vm14, %v3570_v62, %v3572_v42  ;;  %vm10450_vm14 = vmmov %vm10449_vm2 }
0x26d1   :  { %v3580_v8 = vadd.f32 %v3575_v60, %v3556_v54 }
0x26d3   :  { %v3604_v33 = vadd.f32 %v3594_v63, %v3580_v8 }
0x26d7   :  { %v3574_v24 = vpop.permute.xlu1 %3573 }
0x26d8   :  { %v3576_v18 = vsel %vm10446_vm9, %v3572_v42, %v3574_v24  ;;  %v3582_v51 = vadd.f32 %v3574_v24, %v3558_v36  ;;  %v10454_v36 = vmov 44   ;;  %vm10455_vm9 = vcmask 785408  }
0x26d9   :  { %v3581_v16 = vadd.f32 %v3576_v18, %v3557_v39 }
0x26df   :  { %v3596_v22 = vpop.permute.xlu1 %3595 }
0x26e0   :  { %v3599_v45 = vsel %vm500_vm10, %v3594_v63, %v3596_v22  ;;  %v3600_v56 = vsel %vm500_vm10, %v3596_v22, %v3598_v29  ;;  %v10451_v63 = vmov 31  }
0x26e1   :  { %v3605_v11 = vadd.f32 %v3599_v45, %v3581_v16  ;;  %v3606_v57 = vadd.f32 %v3600_v56, %v3582_v51 }
0x2719   :  { %v3620_v37 = vpop.permute.xlu2 %3619 }
0x2721   :  { %v3633_v0 = vpop.permute.xlu2 %3632 }
0x2722   :  { %v3635_v17 = vmul.f32 %v3633_v0, %v8846_v10  ;;  %v3636_v7 = vmul.f32 %v3633_v0, %v8849_v19  ;;  %v3637_v6 = vmul.f32 0.0, %v3633_v0 }
0x2724   :  { %3645 = vrot.lane.b32.xlu2 %v3637_v6, %s6514_s22  ;;  %3641 = vrot.lane.b32.xlu0 %v3635_v17, %s6514_s22 }
0x2725   :  { %3643 = vrot.lane.b32.xlu1 %v3636_v7, %s6514_s22 }
0x2731   :  { %v3618_v14 = vpop.permute.xlu1 %3617 }
0x2732   :  { %v3623_v13 = vsel %vm10447_vm4, %v3618_v14, %v3620_v37  ;;  %v3628_v46 = vadd.f32 %v3618_v14, %v3604_v33  ;;  %vm10456_vm4 = vmmov %vm10455_vm9 }
0x2733   :  { %v3629_v0 = vadd.f32 %v3623_v13, %v3605_v11 }
0x2739   :  { %v3622_v5 = vpop.permute.xlu1 %3621 }
0x273a   :  { %v3624_v41 = vsel %vm10448_vm15, %v3620_v37, %v3622_v5  ;;  %v10452_v37 = vmov 30   ;;  %vm10457_vm15 = vcmask 654336  }
0x273b   :  { %v3630_v42 = vadd.f32 %v3624_v41, %v3606_v57 }
0x277e   :  { %v3646_v38 = vpop.permute.xlu2 %3645 }
0x2796   :  { %v3642_v26 = vpop.permute.xlu0 %3641 }
0x2797   :  { %v3652_v17 = vadd.f32 %v3642_v26, %v3628_v46  ;;  %v3644_v7 = vpop.permute.xlu1 %3643 }
0x2798   :  { %v3647_v6 = vsel %vm10449_vm2, %v3642_v26, %v3644_v7  ;;  %v3648_v29 = vsel %vm10450_vm14, %v3644_v7, %v3646_v38  ;;  %vm10458_vm2 = vmmov %vm10457_vm15  ;;  %vm10459_vm14 = vcmask 392192  }
0x2799   :  { %v3653_v53 = vadd.f32 %v3647_v6, %v3629_v0  ;;  %v3654_v25 = vadd.f32 %v3648_v29, %v3630_v42  ;;  %3658 = vrot.lane.b32.xlu0 %v3652_v17, %s6544_s11 }
0x279b   :  { %3662 = vrot.lane.b32.xlu2 %v3654_v25, %s6544_s11  ;;  %3660 = vrot.lane.b32.xlu1 %v3653_v53, %s6544_s11 }
0x27a1   :  { %3673 = vperm.xlu0 %6251, %v8914_v40  }
0x27a3   :  { %3680 = vperm.xlu1 %6252, %v8914_v40  }
0x27a9   :  { %6253 = vset.pattern.permute.xlu0 %v10370_v28 }
0x27aa   :  { %3704 = vperm.xlu0 %6253, %v8914_v40  }
0x27ab   :  { %6262 = vset.pattern.permute.xlu1 %v10451_v63 }
0x27b2   :  { %6255 = vset.pattern.permute.xlu0 %v10452_v37 }
0x27f5   :  { %v9013_v9 = vpop.permute.xlu2 %3662 }
0x280b   :  { %v8995_v61 = vpop.permute.xlu0 %3658 }
0x280d   :  { %v8997_v62 = vpop.permute.xlu1 %3660 }
0x2813   :  { %v8999_v24 = vpop.permute.xlu0 %3673 }
0x2814   :  { %v3676_v25 = vmul.f32 0.0, %v8999_v24  ;;  %v3677_v37 = vmul.f32 %v8999_v24, %v8846_v10 }
0x2815   :  { %v3681_v22 = vpop.permute.xlu1 %3680 }
0x2816   :  { %v3683_v14 = vmul.f32 0.0, %v3681_v22  ;;  %v3684_v50 = vmul.f32 %v3681_v22, %v8846_v10  ;;  %v3685_v2 = vmul.f32 %v3681_v22, %v8849_v19 }
0x2818   :  { %3689 = vrot.lane.b32.xlu2 %v3683_v14, %s6511_s30  ;;  %3691 = vrot.lane.b32.xlu1 %v3684_v50, %s6511_s30 }
0x281c   :  { %v3705_v28 = vpop.permute.xlu0 %3704 }
0x281d   :  { %v3707_v52 = vmul.f32 0.0, %v3705_v28  ;;  %v3708_v47 = vmul.f32 %v3705_v28, %v8846_v10  ;;  %v3709_v15 = vmul.f32 %v3705_v28, %v8849_v19 }
0x2820   :  { %3693 = vrot.lane.b32.xlu2 %v3685_v2, %s6511_s30  ;;  %3713 = vrot.lane.b32.xlu1 %v3707_v52, %s6510_s18 }
0x2828   :  { %3715 = vrot.lane.b32.xlu2 %v3708_v47, %s6510_s18  ;;  %3717 = vrot.lane.b32.xlu1 %v3709_v15, %s6510_s18 }
0x2830   :  { %3728 = vperm.xlu2 %6254, %v8914_v40  }
0x2838   :  { %6256 = vset.pattern.permute.xlu2 %v10453_v21 }
0x2872   :  { %v3690_v30 = vpop.permute.xlu2 %3689 }
0x287a   :  { %v9015_v60 = vpop.permute.xlu2 %3693 }
0x2882   :  { %v3716_v4 = vpop.permute.xlu2 %3715 }
0x288a   :  { %v3729_v49 = vpop.permute.xlu2 %3728  ;;  %v3692_v38 = vpop.permute.xlu1 %3691 }
0x288b   :  { %v3731_v54 = vmul.f32 0.0, %v3729_v49  ;;  %v3732_v5 = vmul.f32 %v3729_v49, %v8846_v10  ;;  %v3733_v18 = vmul.f32 %v3729_v49, %v8849_v19  ;;  %v3696_v63 = vsel %vm224_vm1, %v3692_v38, %v9015_v60 }
0x288c   :  { %v3701_v28 = vadd.f32 %v3696_v63, %v3677_v37 }
0x288d   :  { %3737 = vrot.lane.b32.xlu0 %v3731_v54, %s6532_s2  ;;  %3741 = vrot.lane.b32.xlu2 %v3733_v18, %s6532_s2 }
0x288e   :  { %3739 = vrot.lane.b32.xlu1 %v3732_v5, %s6532_s2 }
0x2892   :  { %v3714_v17 = vpop.permute.xlu1 %3713 }
0x2893   :  { %v3719_v22 = vsel %vm10455_vm9, %v3714_v17, %v3716_v4  ;;  %vm10460_vm9 = vcmask 261120  }
0x2895   :  { %3752 = vperm.xlu0 %6255, %v8914_v40  }
0x289a   :  { %v3718_v7 = vpop.permute.xlu1 %3717 }
0x289b   :  { %v3720_v50 = vsel %vm10456_vm4, %v3716_v4, %v3718_v7  ;;  %vm10461_vm4 = vmmov %vm10459_vm14 }
0x289d   :  { %6257 = vset.pattern.permute.xlu0 %v10454_v36 }
0x28e7   :  { %v3742_v51 = vpop.permute.xlu2 %3741 }
0x28ff   :  { %v3738_v39 = vpop.permute.xlu0 %3737 }
0x2900   :  { %v3740_v6 = vpop.permute.xlu1 %3739 }
0x2901   :  { %v3743_v52 = vsel %vm10457_vm15, %v3738_v39, %v3740_v6  ;;  %v3744_v21 = vsel %vm10458_vm2, %v3740_v6, %v3742_v51  ;;  %vm10462_vm15 = vmmov %vm10460_vm9  ;;  %vm10469_vm2 = vcmask 785408  }
0x2907   :  { %v3753_v8 = vpop.permute.xlu0 %3752 }
0x2908   :  { %v3755_v45 = vmul.f32 %v3753_v8, %v8846_v10  ;;  %v3756_v56 = vmul.f32 %v3753_v8, %v8849_v19  ;;  %v3757_v16 = vmul.f32 0.0, %v3753_v8  ;;  %v3678_v8 = vmul.f32 %v8999_v24, %v8849_v19 }
0x290a   :  { %3763 = vrot.lane.b32.xlu2 %v3756_v56, %s6516_s13  ;;  %3761 = vrot.lane.b32.xlu1 %v3755_v45, %s6516_s13  ;;  %v3702_v39 = vadd.f32 %v9015_v60, %v3678_v8 }
0x2912   :  { %3776 = vperm.xlu2 %6256, %v8914_v40   ;;  %3765 = vrot.lane.b32.xlu1 %v3757_v16, %s6516_s13 }
0x291a   :  { %6258 = vset.pattern.permute.xlu2 %v10371_v3 }
0x2964   :  { %v3764_v33 = vpop.permute.xlu2 %3763 }
0x296c   :  { %v3777_v13 = vpop.permute.xlu2 %3776 }
0x296d   :  { %v3779_v41 = vmul.f32 %v3777_v13, %v8846_v10  ;;  %v3780_v11 = vmul.f32 %v3777_v13, %v8849_v19  ;;  %v3781_v57 = vmul.f32 0.0, %v3777_v13 }
0x296f   :  { %3789 = vrot.lane.b32.xlu2 %v3781_v57, %s6535_s17  ;;  %3785 = vrot.lane.b32.xlu0 %v3779_v41, %s6535_s17  ;;  %v3726_v57 = vadd.f32 %v3718_v7, %v3702_v39  ;;  %v10467_v39 = vmov 4  }
0x2970   :  { %3787 = vrot.lane.b32.xlu1 %v3780_v11, %s6535_s17 }
0x2977   :  { %3800 = vperm.xlu0 %6257, %v8914_v40  }
0x297c   :  { %v3762_v29 = vpop.permute.xlu1 %3761 }
0x297d   :  { %v3767_v54 = vsel %vm500_vm10, %v3762_v29, %v3764_v33 }
0x297f   :  { %6259 = vset.pattern.permute.xlu0 %v10372_v43  ;;  %v3695_v43 = vsel %vm224_vm1, %v3690_v30, %v3692_v38  ;;  %v3725_v30 = vadd.f32 %v3720_v50, %v3701_v28  ;;  %v10465_v28 = vmov 45  }
0x2980   :  { %v3700_v14 = vadd.f32 %v3695_v43, %v3676_v25  ;;  %v10464_v43 = vmov 38  }
0x2981   :  { %v3749_v5 = vadd.f32 %v3744_v21, %v3725_v30  ;;  %v10466_v21 = vmov 12  }
0x2982   :  { %v3724_v15 = vadd.f32 %v3719_v22, %v3700_v14 }
0x2983   :  { %v3773_v4 = vadd.f32 %v3767_v54, %v3749_v5 }
0x2984   :  { %v3766_v53 = vpop.permute.xlu1 %3765  ;;  %v3748_v49 = vadd.f32 %v3743_v52, %v3724_v15 }
0x2986   :  { %v3772_v18 = vadd.f32 %v3762_v29, %v3748_v49 }
0x29c9   :  { %v3790_v2 = vpop.permute.xlu2 %3789 }
0x29e1   :  { %v3786_v46 = vpop.permute.xlu0 %3785 }
0x29e2   :  { %v3788_v47 = vpop.permute.xlu1 %3787  ;;  %v3796_v45 = vadd.f32 %v3786_v46, %v3772_v18 }
0x29e3   :  { %v3791_v36 = vsel %vm10459_vm14, %v3786_v46, %v3788_v47  ;;  %v3792_v24 = vsel %vm10461_vm4, %v3788_v47, %v3790_v2  ;;  %vm10470_vm14 = vmmov %vm10469_vm2 }
0x29e4   :  { %v3797_v56 = vadd.f32 %v3791_v36, %v3773_v4 }
0x29e9   :  { %v3801_v3 = vpop.permute.xlu0 %3800 }
0x29ea   :  { %v3803_v26 = vmul.f32 %v3801_v3, %v8846_v10  ;;  %v3804_v0 = vmul.f32 %v3801_v3, %v8849_v19  ;;  %v3805_v42 = vmul.f32 0.0, %v3801_v3 }
0x29ec   :  { %3811 = vrot.lane.b32.xlu2 %v3804_v0, %s6514_s22  ;;  %3809 = vrot.lane.b32.xlu1 %v3803_v26, %s6514_s22  ;;  %v3768_v26 = vsel %vm500_vm10, %v3764_v33, %v3766_v53  ;;  %v3750_v0 = vadd.f32 %v3742_v51, %v3726_v57  ;;  %v10463_v33 = vmov 24  }
0x29ee   :  { %v3774_v46 = vadd.f32 %v3768_v26, %v3750_v0  ;;  %v10468_v26 = vmov 11  }
0x29f4   :  { %3813 = vrot.lane.b32.xlu1 %v3805_v42, %s6514_s22  ;;  %v3798_v42 = vadd.f32 %v3792_v24, %v3774_v46 }
0x2a46   :  { %v3812_v16 = vpop.permute.xlu2 %3811 }
0x2a5e   :  { %v3810_v13 = vpop.permute.xlu1 %3809 }
0x2a5f   :  { %v3815_v41 = vsel %vm10460_vm9, %v3810_v13, %v3812_v16  ;;  %v3820_v11 = vadd.f32 %v3810_v13, %v3796_v45  ;;  %vm10471_vm9 = vcmask 654336  }
0x2a60   :  { %v3821_v3 = vadd.f32 %v3815_v41, %v3797_v56 }
0x2a61   :  { %3826 = vrot.lane.b32.xlu2 %v3820_v11, %s6548_s1 }
0x2a62   :  { %3828 = vrot.lane.b32.xlu0 %v3821_v3, %s6548_s1 }
0x2a66   :  { %v3814_v60 = vpop.permute.xlu1 %3813 }
0x2a67   :  { %v3816_v38 = vsel %vm10462_vm15, %v3812_v16, %v3814_v60 }
0x2a68   :  { %v3822_v17 = vadd.f32 %v3816_v38, %v3798_v42 }
0x2a69   :  { %3841 = vperm.xlu2 %6258, %v8914_v40  }
0x2a6a   :  { %3848 = vperm.xlu0 %6259, %v8914_v40   ;;  %3830 = vrot.lane.b32.xlu1 %v3822_v17, %s6548_s1 }
0x2a71   :  { %6260 = vset.pattern.permute.xlu2 %v10373_v48 }
0x2a72   :  { %6261 = vset.pattern.permute.xlu0 %v10463_v33 }
0x2abb   :  { %v9078_v48 = vpop.permute.xlu2 %3826 }
0x2ac3   :  { %v9080_v25 = vpop.permute.xlu2 %3841 }
0x2ad4   :  { %v9069_v51 = vpop.permute.xlu0 %3828 }
0x2adc   :  { %v3849_v7 = vpop.permute.xlu0 %3848  ;;  %v9095_v30 = vpop.permute.xlu1 %3830 }
0x2add   :  { %v3851_v6 = vmul.f32 0.0, %v3849_v7  ;;  %v3852_v29 = vmul.f32 %v3849_v7, %v8846_v10  ;;  %v3853_v53 = vmul.f32 %v3849_v7, %v8849_v19  ;;  %v3844_v7 = vmul.f32 0.0, %v9080_v25 }
0x2adf   :  { %3859 = vrot.lane.b32.xlu2 %v3852_v29, %s6511_s30  ;;  %3857 = vrot.lane.b32.xlu1 %v3851_v6, %s6511_s30  ;;  %v3845_v29 = vmul.f32 %v9080_v25, %v8846_v10 }
0x2ae7   :  { %3872 = vperm.xlu2 %6260, %v8914_v40   ;;  %3861 = vrot.lane.b32.xlu1 %v3853_v53, %s6511_s30 }
0x2aef   :  { %6263 = vset.pattern.permute.xlu2 %v10464_v43 }
0x2b39   :  { %v3860_v63 = vpop.permute.xlu2 %3859 }
0x2b41   :  { %v3873_v37 = vpop.permute.xlu2 %3872 }
0x2b42   :  { %v3875_v22 = vmul.f32 0.0, %v3873_v37  ;;  %v3876_v14 = vmul.f32 %v3873_v37, %v8846_v10  ;;  %v3877_v50 = vmul.f32 %v3873_v37, %v8849_v19 }
0x2b44   :  { %3881 = vrot.lane.b32.xlu0 %v3875_v22, %s6510_s18  ;;  %3885 = vrot.lane.b32.xlu2 %v3877_v50, %s6510_s18 }
0x2b45   :  { %3883 = vrot.lane.b32.xlu1 %v3876_v14, %s6510_s18 }
0x2b4c   :  { %3896 = vperm.xlu0 %6261, %v8914_v40  }
0x2b51   :  { %v3858_v49 = vpop.permute.xlu1 %3857 }
0x2b52   :  { %v3863_v33 = vsel %vm224_vm1, %v3858_v49, %v3860_v63 }
0x2b53   :  { %v3868_v43 = vadd.f32 %v3863_v33, %v3844_v7 }
0x2b54   :  { %6264 = vset.pattern.permute.xlu0 %v10465_v28 }
0x2b59   :  { %v3862_v54 = vpop.permute.xlu1 %3861 }
0x2b5a   :  { %v3864_v6 = vsel %vm224_vm1, %v3860_v63, %v3862_v54 }
0x2b5b   :  { %v3869_v22 = vadd.f32 %v3864_v6, %v3845_v29  ;;  %v10476_v6 = vmov 32  }
0x2b9e   :  { %v3886_v56 = vpop.permute.xlu2 %3885 }
0x2bb6   :  { %v3882_v52 = vpop.permute.xlu0 %3881 }
0x2bb7   :  { %v3884_v5 = vpop.permute.xlu1 %3883 }
0x2bb8   :  { %v3887_v53 = vsel %vm10469_vm2, %v3882_v52, %v3884_v5  ;;  %v3888_v37 = vsel %vm10470_vm14, %v3884_v5, %v3886_v56  ;;  %v3846_v52 = vmul.f32 %v9080_v25, %v8849_v19  ;;  %vm10472_vm2 = vmmov %vm10461_vm4 }
0x2bb9   :  { %v3892_v28 = vadd.f32 %v3887_v53, %v3868_v43  ;;  %vm10473_vm14 = vmmov %vm10462_vm15 }
0x2bba   :  { %v3870_v5 = vadd.f32 %v3862_v54, %v3846_v52 }
0x2bbe   :  { %v3897_v2 = vpop.permute.xlu0 %3896 }
0x2bbf   :  { %v3899_v47 = vmul.f32 %v3897_v2, %v8846_v10  ;;  %v3900_v15 = vmul.f32 %v3897_v2, %v8849_v19 }
0x2bc1   :  { %3905 = vrot.lane.b32.xlu2 %v3900_v15, %s6532_s2  ;;  %3903 = vrot.lane.b32.xlu1 %v3899_v47, %s6532_s2  ;;  %v3893_v47 = vadd.f32 %v3888_v37, %v3869_v22 }
0x2bc9   :  { %3915 = vperm.xlu1 %6262, %v8914_v40  }
0x2bd1   :  { %6273 = vset.pattern.permute.xlu1 %v10466_v21 }
0x2c1b   :  { %v3906_v16 = vpop.permute.xlu2 %3905 }
0x2c33   :  { %v3904_v18 = vpop.permute.xlu1 %3903 }
0x2c34   :  { %v3907_v2 = vsel %vm10471_vm9, %v3904_v18, %v3906_v16  ;;  %v3911_v15 = vadd.f32 %v3904_v18, %v3892_v28  ;;  %v10477_v28 = vmov 39   ;;  %vm10481_vm9 = vcmask 785408  }
0x2c35   :  { %v3912_v49 = vadd.f32 %v3907_v2, %v3893_v47 }
0x2c3b   :  { %v3916_v36 = vpop.permute.xlu1 %3915 }
0x2c3c   :  { %v3918_v8 = vmul.f32 %v3916_v36, %v8846_v10  ;;  %v3919_v4 = vmul.f32 %v3916_v36, %v8849_v19  ;;  %v3920_v45 = vmul.f32 0.0, %v3916_v36 }
0x2c3e   :  { %3928 = vrot.lane.b32.xlu1 %v3920_v45, %s6516_s13  ;;  %3926 = vrot.lane.b32.xlu0 %v3919_v4, %s6516_s13 }
0x2c3f   :  { %3924 = vrot.lane.b32.xlu2 %v3918_v8, %s6516_s13 }
0x2c47   :  { %3939 = vperm.xlu2 %6263, %v8914_v40  }
0x2c4f   :  { %6265 = vset.pattern.permute.xlu2 %v10467_v39 }
0x2c99   :  { %v3925_v13 = vpop.permute.xlu2 %3924 }
0x2c9a   :  { %v3935_v63 = vadd.f32 %v3925_v13, %v3911_v15 }
0x2ca1   :  { %v3940_v41 = vpop.permute.xlu2 %3939 }
0x2ca2   :  { %v3942_v11 = vmul.f32 %v3940_v41, %v8846_v10  ;;  %v3943_v57 = vmul.f32 %v3940_v41, %v8849_v19  ;;  %v3944_v3 = vmul.f32 0.0, %v3940_v41 }
0x2ca4   :  { %3952 = vrot.lane.b32.xlu2 %v3944_v3, %s6535_s17  ;;  %3950 = vrot.lane.b32.xlu1 %v3943_v57, %s6535_s17  ;;  %v3894_v3 = vadd.f32 %v3886_v56, %v3870_v5  ;;  %v10474_v56 = vmov 18  }
0x2ca5   :  { %3948 = vrot.lane.b32.xlu0 %v3942_v11, %s6535_s17 }
0x2cad   :  { %3963 = vperm.xlu0 %6264, %v8914_v40  }
0x2cb0   :  { %v3927_v0 = vpop.permute.xlu0 %3926  ;;  %v3929_v17 = vpop.permute.xlu1 %3928 }
0x2cb1   :  { %v3930_v21 = vsel %vm500_vm10, %v3925_v13, %v3927_v0  ;;  %v3913_v13 = vadd.f32 %v3906_v16, %v3894_v3 }
0x2cb2   :  { %v3936_v8 = vadd.f32 %v3930_v21, %v3912_v49 }
0x2cb5   :  { %6266 = vset.pattern.permute.xlu0 %v10468_v26  ;;  %v3931_v26 = vsel %vm500_vm10, %v3927_v0, %v3929_v17  ;;  %v10475_v0 = vmov 25  }
0x2cfe   :  { %v3953_v14 = vpop.permute.xlu2 %3952 }
0x2d16   :  { %v3951_v50 = vpop.permute.xlu1 %3950 }
0x2d17   :  { %v3949_v24 = vpop.permute.xlu0 %3948  ;;  %v3955_v25 = vsel %vm10472_vm2, %v3951_v50, %v3953_v14 }
0x2d18   :  { %v3954_v36 = vsel %vm10461_vm4, %v3949_v24, %v3951_v50  ;;  %v3959_v4 = vadd.f32 %v3949_v24, %v3935_v63  ;;  %v10478_v63 = vmov 46   ;;  %vm10482_vm4 = vmmov %vm10481_vm9 }
0x2d19   :  { %v3960_v45 = vadd.f32 %v3954_v36, %v3936_v8 }
0x2d1f   :  { %v3964_v46 = vpop.permute.xlu0 %3963 }
0x2d20   :  { %v3966_v42 = vmul.f32 %v3964_v46, %v8846_v10  ;;  %v3967_v60 = vmul.f32 %v3964_v46, %v8849_v19  ;;  %v3968_v38 = vmul.f32 0.0, %v3964_v46  ;;  %v3937_v46 = vadd.f32 %v3931_v26, %v3913_v13 }
0x2d21   :  { %v10480_v26 = vmov 26  }
0x2d22   :  { %3974 = vrot.lane.b32.xlu2 %v3967_v60, %s6514_s22  ;;  %3972 = vrot.lane.b32.xlu1 %v3966_v42, %s6514_s22  ;;  %v3961_v24 = vadd.f32 %v3955_v25, %v3937_v46 }
0x2d2a   :  { %3976 = vrot.lane.b32.xlu1 %v3968_v38, %s6514_s22 }
0x2d7c   :  { %v3975_v39 = vpop.permute.xlu2 %3974 }
0x2d94   :  { %v3973_v41 = vpop.permute.xlu1 %3972 }
0x2d95   :  { %v3978_v11 = vsel %vm10462_vm15, %v3973_v41, %v3975_v39  ;;  %v3983_v57 = vadd.f32 %v3973_v41, %v3959_v4  ;;  %vm10483_vm15 = vcmask 654336  }
0x2d96   :  { %v3984_v18 = vadd.f32 %v3978_v11, %v3960_v45  ;;  %vm10484_vm2 = vmmov %vm10483_vm15 }
0x2d97   :  { %3989 = vrot.lane.b32.xlu2 %v3983_v57, %s6535_s17 }
0x2d98   :  { %3991 = vrot.lane.b32.xlu0 %v3984_v18, %s6535_s17 }
0x2d9c   :  { %v3977_v54 = vpop.permute.xlu1 %3976 }
0x2d9d   :  { %v3979_v42 = vsel %vm10473_vm14, %v3975_v39, %v3977_v54  ;;  %v10479_v39 = vmov 5   ;;  %vm10485_vm14 = vcmask 392192  }
0x2d9e   :  { %v3985_v60 = vadd.f32 %v3979_v42, %v3961_v24 }
0x2d9f   :  { %4002 = vperm.xlu2 %6265, %v8914_v40  }
0x2da0   :  { %4009 = vperm.xlu0 %6266, %v8914_v40   ;;  %3993 = vrot.lane.b32.xlu1 %v3985_v60, %s6535_s17 }
0x2da7   :  { %6267 = vset.pattern.permute.xlu2 %v10474_v56 }
0x2da8   :  { %6268 = vset.pattern.permute.xlu0 %v10475_v0 }
0x2df1   :  { %v9148_v29 = vpop.permute.xlu2 %3989 }
0x2df9   :  { %v9150_v53 = vpop.permute.xlu2 %4002 }
0x2e0a   :  { %v9139_v16 = vpop.permute.xlu0 %3991 }
0x2e12   :  { %v4010_v38 = vpop.permute.xlu0 %4009  ;;  %v9185_v60 = vpop.permute.xlu1 %3993 }
0x2e13   :  { %v4012_v17 = vmul.f32 0.0, %v4010_v38  ;;  %v4013_v33 = vmul.f32 %v4010_v38, %v8846_v10  ;;  %v4014_v7 = vmul.f32 %v4010_v38, %v8849_v19 }
0x2e15   :  { %4020 = vrot.lane.b32.xlu2 %v4013_v33, %s6511_s30  ;;  %4018 = vrot.lane.b32.xlu1 %v4012_v17, %s6511_s30 }
0x2e1d   :  { %4033 = vperm.xlu2 %6267, %v8914_v40   ;;  %4022 = vrot.lane.b32.xlu1 %v4014_v7, %s6511_s30 }
0x2e25   :  { %6269 = vset.pattern.permute.xlu2 %v10476_v6 }
0x2e6f   :  { %v4021_v43 = vpop.permute.xlu2 %4020 }
0x2e77   :  { %v4034_v37 = vpop.permute.xlu2 %4033 }
0x2e78   :  { %v4036_v22 = vmul.f32 0.0, %v4034_v37  ;;  %v4037_v14 = vmul.f32 %v4034_v37, %v8846_v10  ;;  %v4038_v50 = vmul.f32 %v4034_v37, %v8849_v19 }
0x2e7a   :  { %4042 = vrot.lane.b32.xlu0 %v4036_v22, %s6510_s18  ;;  %4046 = vrot.lane.b32.xlu2 %v4038_v50, %s6510_s18  ;;  %v4005_v22 = vmul.f32 0.0, %v9150_v53 }
0x2e7b   :  { %4044 = vrot.lane.b32.xlu1 %v4037_v14, %s6510_s18 }
0x2e82   :  { %4057 = vperm.xlu0 %6268, %v8914_v40  }
0x2e87   :  { %v4019_v56 = vpop.permute.xlu1 %4018 }
0x2e88   :  { %v4024_v37 = vsel %vm224_vm1, %v4019_v56, %v4021_v43 }
0x2e8a   :  { %6270 = vset.pattern.permute.xlu0 %v10477_v28  ;;  %v4006_v28 = vmul.f32 %v9150_v53, %v8846_v10 }
0x2e8f   :  { %v4023_v0 = vpop.permute.xlu1 %4022 }
0x2e90   :  { %v4025_v14 = vsel %vm224_vm1, %v4021_v43, %v4023_v0 }
0x2ed4   :  { %v4047_v36 = vpop.permute.xlu2 %4046 }
0x2eec   :  { %v4043_v2 = vpop.permute.xlu0 %4042 }
0x2eed   :  { %v4045_v38 = vpop.permute.xlu1 %4044 }
0x2eee   :  { %v4048_v50 = vsel %vm10481_vm9, %v4043_v2, %v4045_v38  ;;  %vm10486_vm9 = vmmov %vm10485_vm14 }
0x2ef4   :  { %v4058_v47 = vpop.permute.xlu0 %4057 }
0x2ef5   :  { %v4060_v15 = vmul.f32 %v4058_v47, %v8846_v10  ;;  %v4061_v21 = vmul.f32 %v4058_v47, %v8849_v19  ;;  %v4062_v49 = vmul.f32 0.0, %v4058_v47  ;;  %v4029_v47 = vadd.f32 %v4024_v37, %v4005_v22 }
0x2ef7   :  { %4068 = vrot.lane.b32.xlu2 %v4061_v21, %s6532_s2  ;;  %4066 = vrot.lane.b32.xlu1 %v4060_v15, %s6532_s2  ;;  %v4007_v15 = vmul.f32 %v9150_v53, %v8849_v19  ;;  %v4049_v21 = vsel %vm10482_vm4, %v4045_v38, %v4047_v36  ;;  %vm10487_vm4 = vcmask 261120  }
0x2eff   :  { %4081 = vperm.xlu2 %6269, %v8914_v40   ;;  %4070 = vrot.lane.b32.xlu1 %v4062_v49, %s6532_s2  ;;  %v4030_v49 = vadd.f32 %v4025_v14, %v4006_v28 }
0x2f07   :  { %6271 = vset.pattern.permute.xlu2 %v10478_v63  ;;  %v4031_v63 = vadd.f32 %v4023_v0, %v4007_v15 }
0x2f09   :  { %v4055_v43 = vadd.f32 %v4047_v36, %v4031_v63 }
0x2f51   :  { %v4069_v52 = vpop.permute.xlu2 %4068 }
0x2f59   :  { %v4082_v8 = vpop.permute.xlu2 %4081 }
0x2f5a   :  { %v4084_v4 = vmul.f32 %v4082_v8, %v8846_v10  ;;  %v4085_v5 = vmul.f32 %v4082_v8, %v8849_v19  ;;  %v4086_v45 = vmul.f32 0.0, %v4082_v8  ;;  %v4053_v8 = vadd.f32 %v4048_v50, %v4029_v47 }
0x2f5c   :  { %4094 = vrot.lane.b32.xlu2 %v4086_v45, %s6516_s13  ;;  %4090 = vrot.lane.b32.xlu0 %v4084_v4, %s6516_s13 }
0x2f5d   :  { %4092 = vrot.lane.b32.xlu1 %v4085_v5, %s6516_s13 }
0x2f64   :  { %4105 = vperm.xlu0 %6270, %v8914_v40  }
0x2f69   :  { %v4067_v17 = vpop.permute.xlu1 %4066 }
0x2f6a   :  { %v4072_v5 = vsel %vm10483_vm15, %v4067_v17, %v4069_v52  ;;  %v4077_v2 = vadd.f32 %v4067_v17, %v4053_v8  ;;  %vm10488_vm15 = vmmov %vm10487_vm4 }
0x2f6c   :  { %6272 = vset.pattern.permute.xlu0 %v10479_v39  ;;  %v4054_v39 = vadd.f32 %v4049_v21, %v4030_v49 }
0x2f71   :  { %v4071_v33 = vpop.permute.xlu1 %4070 }
0x2f72   :  { %v4073_v45 = vsel %vm10484_vm2, %v4069_v52, %v4071_v33  ;;  %vm10495_vm2 = vcmask 785408  }
0x2fb6   :  { %v4095_v13 = vpop.permute.xlu2 %4094 }
0x2fce   :  { %v4091_v41 = vpop.permute.xlu0 %4090 }
0x2fcf   :  { %v4093_v7 = vpop.permute.xlu1 %4092  ;;  %v4101_v53 = vadd.f32 %v4091_v41, %v4077_v2 }
0x2fd6   :  { %v4106_v11 = vpop.permute.xlu0 %4105 }
0x2fd7   :  { %v4108_v57 = vmul.f32 %v4106_v11, %v8846_v10  ;;  %v4109_v3 = vmul.f32 %v4106_v11, %v8849_v19  ;;  %v4110_v18 = vmul.f32 0.0, %v4106_v11  ;;  %v4096_v11 = vsel %vm500_vm10, %v4091_v41, %v4093_v7 }
0x2fd8   :  { %v10489_v41 = vmov 19  }
0x2fd9   :  { %4116 = vrot.lane.b32.xlu2 %v4109_v3, %s6535_s17  ;;  %4114 = vrot.lane.b32.xlu1 %v4108_v57, %s6535_s17  ;;  %v4097_v57 = vsel %vm500_vm10, %v4093_v7, %v4095_v13  ;;  %v4078_v3 = vadd.f32 %v4072_v5, %v4054_v39 }
0x2fe1   :  { %4129 = vperm.xlu2 %6271, %v8914_v40   ;;  %4118 = vrot.lane.b32.xlu1 %v4110_v18, %s6535_s17  ;;  %v4079_v18 = vadd.f32 %v4073_v45, %v4055_v43 }
0x2fe9   :  { %6275 = vset.pattern.permute.xlu2 %v10480_v26 }
0x3033   :  { %v4117_v25 = vpop.permute.xlu2 %4116 }
0x303b   :  { %v4130_v46 = vpop.permute.xlu2 %4129 }
0x303c   :  { %v4132_v24 = vmul.f32 %v4130_v46, %v8846_v10  ;;  %v4133_v54 = vmul.f32 %v4130_v46, %v8849_v19  ;;  %v4134_v42 = vmul.f32 0.0, %v4130_v46 }
0x303e   :  { %4142 = vrot.lane.b32.xlu2 %v4134_v42, %s6514_s22  ;;  %4138 = vrot.lane.b32.xlu0 %v4132_v24, %s6514_s22  ;;  %v4102_v24 = vadd.f32 %v4096_v11, %v4078_v3 }
0x303f   :  { %4140 = vrot.lane.b32.xlu1 %v4133_v54, %s6514_s22  ;;  %v4103_v54 = vadd.f32 %v4097_v57, %v4079_v18  ;;  %v10492_v18 = vmov 47  }
0x304b   :  { %v4115_v6 = vpop.permute.xlu1 %4114 }
0x304c   :  { %v4120_v26 = vsel %vm10485_vm14, %v4115_v6, %v4117_v25  ;;  %v4125_v42 = vadd.f32 %v4115_v6, %v4101_v53  ;;  %vm10496_vm14 = vmmov %vm10495_vm2 }
0x304d   :  { %v4126_v0 = vadd.f32 %v4120_v26, %v4102_v24 }
0x3053   :  { %v4119_v4 = vpop.permute.xlu1 %4118 }
0x3054   :  { %v4121_v46 = vsel %vm10486_vm9, %v4117_v25, %v4119_v4  ;;  %v10490_v25 = vmov 33   ;;  %v10491_v4 = vmov 40   ;;  %vm10497_vm9 = vcmask 654336  }
0x3055   :  { %v4127_v52 = vadd.f32 %v4121_v46, %v4103_v54 }
0x3098   :  { %v4143_v36 = vpop.permute.xlu2 %4142 }
0x30b0   :  { %v4139_v56 = vpop.permute.xlu0 %4138 }
0x30b1   :  { %v4149_v38 = vadd.f32 %v4139_v56, %v4125_v42  ;;  %v4141_v17 = vpop.permute.xlu1 %4140  ;;  %v10493_v42 = vmov 6  }
0x30b2   :  { %v4144_v33 = vsel %vm10487_vm4, %v4139_v56, %v4141_v17  ;;  %v4145_v13 = vsel %vm10488_vm15, %v4141_v17, %v4143_v36  ;;  %vm10498_vm4 = vcmask 392192   ;;  %vm10499_vm15 = vmmov %vm10497_vm9 }
0x30b3   :  { %v4150_v7 = vadd.f32 %v4144_v33, %v4126_v0  ;;  %v4151_v37 = vadd.f32 %v4145_v13, %v4127_v52  ;;  %4155 = vrot.lane.b32.xlu0 %v4149_v38, %s6556_s26  ;;  %v10494_v33 = vmov 13  }
0x30b5   :  { %4159 = vrot.lane.b32.xlu2 %v4151_v37, %s6556_s26  ;;  %4157 = vrot.lane.b32.xlu1 %v4150_v7, %s6556_s26 }
0x30bb   :  { %4170 = vperm.xlu0 %6272, %v8914_v40  }
0x30bd   :  { %4177 = vperm.xlu1 %6273, %v8914_v40  }
0x30c3   :  { %6274 = vset.pattern.permute.xlu0 %v10489_v41 }
0x30c4   :  { %4201 = vperm.xlu0 %6274, %v8914_v40  }
0x30cc   :  { %6276 = vset.pattern.permute.xlu0 %v10490_v25 }
0x310f   :  { %v9230_v5 = vpop.permute.xlu2 %4159 }
0x3125   :  { %v9212_v6 = vpop.permute.xlu0 %4155 }
0x3127   :  { %v9214_v22 = vpop.permute.xlu1 %4157 }
0x312d   :  { %v9216_v14 = vpop.permute.xlu0 %4170 }
0x312f   :  { %v4178_v50 = vpop.permute.xlu1 %4177 }
0x3130   :  { %v4180_v28 = vmul.f32 0.0, %v4178_v50  ;;  %v4181_v47 = vmul.f32 %v4178_v50, %v8846_v10  ;;  %v4182_v49 = vmul.f32 %v4178_v50, %v8849_v19 }
0x3132   :  { %4186 = vrot.lane.b32.xlu2 %v4180_v28, %s6511_s30  ;;  %4188 = vrot.lane.b32.xlu1 %v4181_v47, %s6511_s30 }
0x3136   :  { %v4202_v15 = vpop.permute.xlu0 %4201 }
0x3137   :  { %v4204_v21 = vmul.f32 0.0, %v4202_v15  ;;  %v4205_v63 = vmul.f32 %v4202_v15, %v8846_v10  ;;  %v4206_v8 = vmul.f32 %v4202_v15, %v8849_v19 }
0x313a   :  { %4190 = vrot.lane.b32.xlu2 %v4182_v49, %s6511_s30  ;;  %4210 = vrot.lane.b32.xlu1 %v4204_v21, %s6510_s18 }
0x3142   :  { %4212 = vrot.lane.b32.xlu2 %v4205_v63, %s6510_s18  ;;  %4214 = vrot.lane.b32.xlu1 %v4206_v8, %s6510_s18  ;;  %v4173_v63 = vmul.f32 0.0, %v9216_v14 }
0x314a   :  { %4225 = vperm.xlu2 %6275, %v8914_v40  }
0x3152   :  { %6277 = vset.pattern.permute.xlu2 %v10491_v4  ;;  %v4174_v4 = vmul.f32 %v9216_v14, %v8846_v10 }
0x318c   :  { %v4187_v45 = vpop.permute.xlu2 %4186 }
0x3194   :  { %v9232_v43 = vpop.permute.xlu2 %4190 }
0x319c   :  { %v4213_v39 = vpop.permute.xlu2 %4212 }
0x31a4   :  { %v4226_v2 = vpop.permute.xlu2 %4225  ;;  %v4189_v50 = vpop.permute.xlu1 %4188 }
0x31a5   :  { %v4228_v11 = vmul.f32 %v4226_v2, %v8846_v10  ;;  %v4229_v57 = vmul.f32 %v4226_v2, %v8849_v19  ;;  %v4230_v3 = vmul.f32 0.0, %v4226_v2  ;;  %v4192_v49 = vsel %vm224_vm1, %v4187_v45, %v4189_v50 }
0x31a6   :  { %v4193_v8 = vsel %vm224_vm1, %v4189_v50, %v9232_v43 }
0x31a7   :  { %4238 = vrot.lane.b32.xlu2 %v4230_v3, %s6532_s2  ;;  %4234 = vrot.lane.b32.xlu0 %v4228_v11, %s6532_s2  ;;  %v4197_v11 = vadd.f32 %v4192_v49, %v4173_v63  ;;  %v4198_v3 = vadd.f32 %v4193_v8, %v4174_v4 }
0x31a8   :  { %4236 = vrot.lane.b32.xlu1 %v4229_v57, %s6532_s2 }
0x31ac   :  { %v4211_v28 = vpop.permute.xlu1 %4210 }
0x31ad   :  { %v4216_v2 = vsel %vm10495_vm2, %v4211_v28, %v4213_v39  ;;  %vm10500_vm2 = vcmask 261120  }
0x31af   :  { %4249 = vperm.xlu0 %6276, %v8914_v40  }
0x31b4   :  { %v4215_v47 = vpop.permute.xlu1 %4214 }
0x31b5   :  { %v4217_v57 = vsel %vm10496_vm14, %v4213_v39, %v4215_v47  ;;  %vm10502_vm14 = vmmov %vm10498_vm4 }
0x31b6   :  { %v4222_v45 = vadd.f32 %v4217_v57, %v4198_v3 }
0x31b7   :  { %6278 = vset.pattern.permute.xlu0 %v10492_v18 }
0x3201   :  { %v4239_v56 = vpop.permute.xlu2 %4238 }
0x3219   :  { %v4235_v53 = vpop.permute.xlu0 %4234 }
0x321a   :  { %v4237_v15 = vpop.permute.xlu1 %4236 }
0x321b   :  { %v4241_v50 = vsel %vm10499_vm15, %v4237_v15, %v4239_v56 }
0x3221   :  { %v4250_v26 = vpop.permute.xlu0 %4249 }
0x3222   :  { %v4252_v46 = vmul.f32 %v4250_v26, %v8846_v10  ;;  %v4253_v24 = vmul.f32 %v4250_v26, %v8849_v19  ;;  %v4254_v54 = vmul.f32 0.0, %v4250_v26 }
0x3224   :  { %4260 = vrot.lane.b32.xlu2 %v4253_v24, %s6516_s13  ;;  %4258 = vrot.lane.b32.xlu1 %v4252_v46, %s6516_s13  ;;  %v4221_v46 = vadd.f32 %v4216_v2, %v4197_v11  ;;  %v4240_v24 = vsel %vm10497_vm9, %v4235_v53, %v4237_v15  ;;  %vm10503_vm9 = vmmov %vm10500_vm2  ;;  %v10505_v15 = vmov 27  }
0x322c   :  { %4273 = vperm.xlu2 %6277, %v8914_v40   ;;  %4262 = vrot.lane.b32.xlu1 %v4254_v54, %s6516_s13  ;;  %v4245_v54 = vadd.f32 %v4235_v53, %v4221_v46 }
0x3234   :  { %6279 = vset.pattern.permute.xlu2 %v10493_v42 }
0x327e   :  { %v4261_v0 = vpop.permute.xlu2 %4260 }
0x3286   :  { %v4274_v52 = vpop.permute.xlu2 %4273 }
0x3287   :  { %v4276_v36 = vmul.f32 %v4274_v52, %v8846_v10  ;;  %v4277_v38 = vmul.f32 %v4274_v52, %v8849_v19  ;;  %v4278_v17 = vmul.f32 0.0, %v4274_v52  ;;  %v4246_v52 = vadd.f32 %v4240_v24, %v4222_v45 }
0x3289   :  { %4286 = vrot.lane.b32.xlu2 %v4278_v17, %s6535_s17  ;;  %4282 = vrot.lane.b32.xlu0 %v4276_v36, %s6535_s17  ;;  %v4175_v17 = vmul.f32 %v9216_v14, %v8849_v19 }
0x328a   :  { %4284 = vrot.lane.b32.xlu1 %v4277_v38, %s6535_s17 }
0x328b   :  { %v4199_v39 = vadd.f32 %v9232_v43, %v4175_v17 }
0x328d   :  { %v4223_v49 = vadd.f32 %v4215_v47, %v4199_v39  ;;  %v9284_v47 = vld [vmem:[%s10132_s9] sm:$0xff] }
0x328f   :  { %v4247_v8 = vadd.f32 %v4241_v50, %v4223_v49 }
0x3291   :  { %4297 = vperm.xlu0 %6278, %v8914_v40  }
0x3296   :  { %v4259_v40 = vpop.permute.xlu1 %4258 }
0x3297   :  { %v4264_v42 = vsel %vm500_vm10, %v4259_v40, %v4261_v0  ;;  %v4269_v36 = vadd.f32 %v4259_v40, %v4245_v54 }
0x3299   :  { %6280 = vset.pattern.permute.xlu0 %v10494_v33  ;;  %v4270_v33 = vadd.f32 %v4264_v42, %v4246_v52 }
0x329e   :  { %v4263_v21 = vpop.permute.xlu1 %4262 }
0x329f   :  { %v4265_v40 = vsel %vm500_vm10, %v4261_v0, %v4263_v21  ;;  %v10504_v0 = vmov 20  }
0x32a0   :  { %v4271_v43 = vadd.f32 %v4265_v40, %v4247_v8 }
0x32e3   :  { %v4287_v18 = vpop.permute.xlu2 %4286 }
0x32fb   :  { %v4283_v13 = vpop.permute.xlu0 %4282 }
0x32fc   :  { %v4285_v26 = vpop.permute.xlu1 %4284 }
0x32fd   :  { %v4288_v38 = vsel %vm10498_vm4, %v4283_v13, %v4285_v26  ;;  %v4289_v14 = vsel %vm10502_vm14, %v4285_v26, %v4287_v18  ;;  %v10506_v26 = vmov 34   ;;  %vm10509_vm4 = vcmask 785408  }
0x32fe   :  { %vm10510_vm15 = vmmov %vm10509_vm4 }
0x3303   :  { %v4298_v7 = vpop.permute.xlu0 %4297 }
0x3304   :  { %v4300_v37 = vmul.f32 %v4298_v7, %v8846_v10  ;;  %v4301_v41 = vmul.f32 %v4298_v7, %v8849_v19  ;;  %v4302_v25 = vmul.f32 0.0, %v4298_v7  ;;  %v4293_v7 = vadd.f32 %v4283_v13, %v4269_v36 }
0x3305   :  { %v4295_v13 = vadd.f32 %v4289_v14, %v4271_v43 }
0x3306   :  { %4308 = vrot.lane.b32.xlu2 %v4301_v41, %s6514_s22  ;;  %4306 = vrot.lane.b32.xlu1 %v4300_v37, %s6514_s22  ;;  %v4294_v37 = vadd.f32 %v4288_v38, %v4270_v33  ;;  %v10507_v38 = vmov 41  }
0x330e   :  { %4310 = vrot.lane.b32.xlu1 %v4302_v25, %s6514_s22 }
0x3360   :  { %v4309_v41 = vpop.permute.xlu2 %4308 }
0x3378   :  { %v4307_v25 = vpop.permute.xlu1 %4306 }
0x3379   :  { %v4312_v53 = vsel %vm10500_vm2, %v4307_v25, %v4309_v41  ;;  %v4317_v28 = vadd.f32 %v4307_v25, %v4293_v7  ;;  %vm10511_vm2 = vcmask 654336  }
0x337a   :  { %v4318_v63 = vadd.f32 %v4312_v53, %v4294_v37  ;;  %vm10512_vm14 = vmmov %vm10511_vm2 }
0x337b   :  { %4323 = vrot.lane.b32.xlu2 %v4317_v28, %s10501_s12 }
0x337c   :  { %4325 = vrot.lane.b32.xlu0 %v4318_v63, %s10501_s12 }
0x3380   :  { %v4311_v4 = vpop.permute.xlu1 %4310 }
0x3381   :  { %v4313_v2 = vsel %vm10503_vm9, %v4309_v41, %v4311_v4  ;;  %v10508_v41 = vmov 48   ;;  %vm10513_vm9 = vcmask 392192  }
0x3382   :  { %v4319_v56 = vadd.f32 %v4313_v2, %v4295_v13 }
0x3383   :  { %4338 = vperm.xlu2 %6279, %v9284_v47  }
0x3384   :  { %4345 = vperm.xlu0 %6280, %v9284_v47   ;;  %4327 = vrot.lane.b32.xlu1 %v4319_v56, %s10501_s12 }
0x338b   :  { %6281 = vset.pattern.permute.xlu2 %v10504_v0 }
0x338c   :  { %6282 = vset.pattern.permute.xlu0 %v10505_v15 }
0x33d5   :  { %v9300_v46 = vpop.permute.xlu2 %4323 }
0x33dd   :  { %v9302_v24 = vpop.permute.xlu2 %4338 }
0x33ee   :  { %v9291_v21 = vpop.permute.xlu0 %4325 }
0x33f6   :  { %v4346_v11 = vpop.permute.xlu0 %4345 }
0x33f7   :  { %v4348_v57 = vmul.f32 0.0, %v4346_v11  ;;  %v4349_v3 = vmul.f32 %v4346_v11, %v8846_v10  ;;  %v4350_v18 = vmul.f32 %v4346_v11, %v8849_v19 }
0x33f9   :  { %4356 = vrot.lane.b32.xlu2 %v4349_v3, %s6511_s30  ;;  %4354 = vrot.lane.b32.xlu1 %v4348_v57, %s6511_s30  ;;  %v9337_v57 = vpop.permute.xlu1 %4327 }
0x3401   :  { %4369 = vperm.xlu2 %6281, %v9284_v47   ;;  %4358 = vrot.lane.b32.xlu1 %v4350_v18, %s6511_s30 }
0x3409   :  { %6283 = vset.pattern.permute.xlu2 %v10506_v26 }
0x3453   :  { %v9304_v45 = vpop.permute.xlu2 %4356 }
0x345b   :  { %v4370_v54 = vpop.permute.xlu2 %4369 }
0x345c   :  { %v4372_v42 = vmul.f32 0.0, %v4370_v54  ;;  %v4373_v52 = vmul.f32 %v4370_v54, %v8846_v10  ;;  %v4374_v36 = vmul.f32 %v4370_v54, %v8849_v19 }
0x345e   :  { %4378 = vrot.lane.b32.xlu0 %v4372_v42, %s6510_s18  ;;  %4382 = vrot.lane.b32.xlu2 %v4374_v36, %s6510_s18  ;;  %v6568_v36 = vmov 56  }
0x345f   :  { %4380 = vrot.lane.b32.xlu1 %v4373_v52, %s6510_s18  ;;  %v6567_v52 = vmov 49  }
0x3460   :  { %6287 = vset.pattern.permute.xlu1 %v6568_v36 }
0x3466   :  { %4393 = vperm.xlu0 %6282, %v9284_v47  }
0x346b   :  { %v4355_v3 = vpop.permute.xlu1 %4354 }
0x346e   :  { %6284 = vset.pattern.permute.xlu0 %v10507_v38 }
0x3473   :  { %v4359_v18 = vpop.permute.xlu1 %4358 }
0x34b8   :  { %v4383_v25 = vpop.permute.xlu2 %4382 }
0x34d0   :  { %v4379_v17 = vpop.permute.xlu0 %4378 }
0x34d1   :  { %v4381_v26 = vpop.permute.xlu1 %4380 }
0x34d8   :  { %v4394_v33 = vpop.permute.xlu0 %4393 }
0x34d9   :  { %v4396_v7 = vmul.f32 %v4394_v33, %v8846_v10  ;;  %v4397_v39 = vmul.f32 %v4394_v33, %v8849_v19  ;;  %v4398_v37 = vmul.f32 0.0, %v4394_v33 }
0x34db   :  { %4404 = vrot.lane.b32.xlu2 %v4397_v39, %s6532_s2  ;;  %4402 = vrot.lane.b32.xlu1 %v4396_v7, %s6532_s2  ;;  %v4360_v7 = vsel %vm224_vm1, %v4355_v3, %v9304_v45  ;;  %v4341_v39 = vmul.f32 0.0, %v9302_v24 }
0x34e3   :  { %4417 = vperm.xlu2 %6283, %v9284_v47   ;;  %4406 = vrot.lane.b32.xlu1 %v4398_v37, %s6532_s2  ;;  %v4361_v37 = vsel %vm224_vm1, %v9304_v45, %v4359_v18 }
0x34eb   :  { %6285 = vset.pattern.permute.xlu2 %v10508_v41  ;;  %v4384_v41 = vsel %vm10509_vm4, %v4379_v17, %v4381_v26  ;;  %vm10514_vm4 = vmmov %vm10513_vm9 }
0x3535   :  { %v4405_v50 = vpop.permute.xlu2 %4404 }
0x353d   :  { %v4418_v53 = vpop.permute.xlu2 %4417 }
0x353e   :  { %v4420_v28 = vmul.f32 %v4418_v53, %v8846_v10  ;;  %v4421_v49 = vmul.f32 %v4418_v53, %v8849_v19  ;;  %v4422_v63 = vmul.f32 0.0, %v4418_v53  ;;  %v4342_v53 = vmul.f32 %v9302_v24, %v8846_v10 }
0x3540   :  { %4430 = vrot.lane.b32.xlu2 %v4422_v63, %s6516_s13  ;;  %4426 = vrot.lane.b32.xlu0 %v4420_v28, %s6516_s13  ;;  %v4365_v28 = vadd.f32 %v4360_v7, %v4341_v39  ;;  %v4385_v63 = vsel %vm10510_vm15, %v4381_v26, %v4383_v25  ;;  %vm10515_vm15 = vcmask 261120  }
0x3541   :  { %4428 = vrot.lane.b32.xlu1 %v4421_v49, %s6516_s13  ;;  %v4343_v49 = vmul.f32 %v9302_v24, %v8849_v19 }
0x3548   :  { %4441 = vperm.xlu0 %6284, %v9284_v47  }
0x354d   :  { %v4403_v54 = vpop.permute.xlu1 %4402 }
0x3550   :  { %6286 = vset.pattern.permute.xlu0 %v6567_v52 }
0x3555   :  { %v4407_v42 = vpop.permute.xlu1 %4406 }
0x359a   :  { %v4431_v4 = vpop.permute.xlu2 %4430 }
0x35b2   :  { %v4427_v40 = vpop.permute.xlu0 %4426 }
0x35b3   :  { %v4429_v38 = vpop.permute.xlu1 %4428 }
0x35ba   :  { %v4442_v8 = vpop.permute.xlu0 %4441 }
0x35bb   :  { %v4444_v14 = vmul.f32 %v4442_v8, %v8846_v10  ;;  %v4445_v43 = vmul.f32 %v4442_v8, %v8849_v19  ;;  %v4446_v13 = vmul.f32 0.0, %v4442_v8  ;;  %v4366_v8 = vadd.f32 %v4361_v37, %v4342_v53 }
0x35bd   :  { %4452 = vrot.lane.b32.xlu2 %v4445_v43, %s6535_s17  ;;  %4450 = vrot.lane.b32.xlu1 %v4444_v14, %s6535_s17  ;;  %v4367_v14 = vadd.f32 %v4359_v18, %v4343_v49  ;;  %v4389_v43 = vadd.f32 %v4384_v41, %v4365_v28  ;;  %v3229_v49 = vmax.f32 %v8813_v55, %v8829_v27 }
0x35bf   :  { %v4391_v45 = vadd.f32 %v4383_v25, %v4367_v14  ;;  %v4413_v17 = vadd.f32 %v4403_v54, %v4389_v43 }
0x35c5   :  { %4465 = vperm.xlu2 %6285, %v9284_v47   ;;  %4454 = vrot.lane.b32.xlu1 %v4446_v13, %s6535_s17 }
0x3617   :  { %v4453_v2 = vpop.permute.xlu2 %4452 }
0x361f   :  { %v4466_v56 = vpop.permute.xlu2 %4465 }
0x3620   :  { %v4468_v0 = vmul.f32 %v4466_v56, %v8846_v10  ;;  %v4469_v15 = vmul.f32 %v4466_v56, %v8849_v19  ;;  %v4470_v11 = vmul.f32 0.0, %v4466_v56  ;;  %v4408_v56 = vsel %vm10511_vm2, %v4403_v54, %v4405_v50  ;;  %vm10516_vm2 = vmmov %vm10515_vm15 }
0x3621   :  { %v4433_v10 = vsel %vm500_vm10, %v4429_v38, %v4431_v4  ;;  %v4437_v19 = vadd.f32 %v4427_v40, %v4413_v17 }
0x3622   :  { %4478 = vrot.lane.b32.xlu2 %v4470_v11, %s6514_s22  ;;  %4474 = vrot.lane.b32.xlu0 %v4468_v0, %s6514_s22  ;;  %v4409_v0 = vsel %vm10512_vm14, %v4405_v50, %v4407_v42  ;;  %v4432_v11 = vsel %vm500_vm10, %v4427_v40, %v4429_v38  ;;  %v6569_v40 = vmov 63   ;;  %vm10518_vm14 = vcmask 785408  }
0x3623   :  { %4476 = vrot.lane.b32.xlu1 %v4469_v15, %s6514_s22  ;;  %v4390_v15 = vadd.f32 %v4385_v63, %v4366_v8  ;;  %v4415_v52 = vadd.f32 %v4409_v0, %v4391_v45  ;;  %v3227_v8 = vmax.f32 %v8807_v58, %v8794_v44 }
0x3625   :  { %v4414_v3 = vadd.f32 %v4408_v56, %v4390_v15  ;;  %v4439_v36 = vadd.f32 %v4433_v10, %v4415_v52  ;;  %v3231_v14 = vmax.f32 %v3227_v8, %v3229_v49  ;;  %v6570_v52 = vmov 70  }
0x3626   :  { %6289 = vset.pattern.permute.xlu2 %v6570_v52 }
0x3627   :  { %v4438_v26 = vadd.f32 %v4432_v11, %v4414_v3 }
0x362f   :  { %v4451_v33 = vpop.permute.xlu1 %4450 }
0x3630   :  { %v4456_v24 = vsel %vm10513_vm9, %v4451_v33, %v4453_v2  ;;  %v4461_v7 = vadd.f32 %v4451_v33, %v4437_v19  ;;  %v3226_v33 = vmax.f32 %v8804_v32, %v8791_v31  ;;  %vm10519_vm9 = vmmov %vm10518_vm14 }
0x3631   :  { %v4462_v37 = vadd.f32 %v4456_v24, %v4438_v26 }
0x3637   :  { %v4455_v13 = vpop.permute.xlu1 %4454 }
0x3638   :  { %v4457_v18 = vsel %vm10514_vm4, %v4453_v2, %v4455_v13  ;;  %v3228_v2 = vmax.f32 %v8810_v1, %v8826_v12  ;;  %v3243_v13 = vrot.slane %v3231_v14, 1  ;;  %vm10520_vm4 = vcmask 654336  }
0x3639   :  { %v4463_v50 = vadd.f32 %v4457_v18, %v4439_v36 }
0x363a   :  { %v3230_v28 = vmax.f32 %v3226_v33, %v3228_v2  ;;  %v3247_v45 = vmax.f32 %v3231_v14, %v3243_v13 }
0x363c   :  { %v3242_v63 = vrot.slane %v3230_v28, 1  ;;  %v3293_v11 = vrot.slane %v3247_v45, 7  ;;  %v3297_v19 = vrot.slane %v3247_v45, 6 }
0x363e   :  { %v3246_v43 = vmax.f32 %v3230_v28, %v3242_v63  ;;  %v3313_v24 = vsel %vm1129_vm11, %v3247_v45, %v3293_v11  ;;  %v3305_v28 = vrot.slane %v3247_v45, 4  ;;  %v3309_v63 = vrot.slane %v3247_v45, 3 }
0x3640   :  { %v3292_v56 = vrot.slane %v3246_v43, 7  ;;  %v3296_v0 = vrot.slane %v3246_v43, 6  ;;  %v3300_v10 = vrot.slane %v3246_v43, 5 }
0x3642   :  { %v3312_v15 = vsel %vm1129_vm11, %v3246_v43, %v3292_v56 }
0x3643   :  { %v3314_v17 = vsel %vm1132_vm0, %v3312_v15, %v3296_v0 }
0x3644   :  { %v3316_v3 = vsel %vm1135_vm3, %v3314_v17, %v3300_v10  ;;  %v6571_v17 = vmov 77  }
0x3645   :  { %v3318_v26 = vsel %vm3278_vm6, %v3316_v3, %v3296_v0 }
0x367c   :  { %v4479_v25 = vpop.permute.xlu2 %4478 }
0x3694   :  { %v4475_v39 = vpop.permute.xlu0 %4474 }
0x3695   :  { %v4485_v42 = vadd.f32 %v4475_v39, %v4461_v7  ;;  %v4477_v54 = vpop.permute.xlu1 %4476  ;;  %v3315_v7 = vsel %vm1132_vm0, %v3313_v24, %v3297_v19 }
0x3696   :  { %v4480_v41 = vsel %vm10515_vm15, %v4475_v39, %v4477_v54  ;;  %v4481_v4 = vsel %vm10516_vm2, %v4477_v54, %v4479_v25  ;;  %v3301_v39 = vrot.slane %v3247_v45, 5  ;;  %v3308_v54 = vrot.slane %v3246_v43, 3  ;;  %vm10521_vm15 = vmmov %vm10520_vm4 }
0x3697   :  { %v4486_v38 = vadd.f32 %v4480_v41, %v4462_v37  ;;  %v4487_v53 = vadd.f32 %v4481_v4, %v4463_v50  ;;  %4491 = vrot.lane.b32.xlu0 %v4485_v42, %s10517_s0  ;;  %v3320_v37 = vsel %vm3281_vm8, %v3318_v26, %v3300_v10  ;;  %v3304_v50 = vrot.slane %v3246_v43, 4 }
0x3698   :  { %v3317_v25 = vsel %vm1135_vm3, %v3315_v7, %v3301_v39  ;;  %v6572_v26 = vmov 84   ;;  %vm10522_vm2 = vcmask 392192  }
0x3699   :  { %4495 = vrot.lane.b32.xlu2 %v4487_v53, %s10517_s0  ;;  %4493 = vrot.lane.b32.xlu1 %v4486_v38, %s10517_s0  ;;  %v3322_v42 = vsel %vm3284_vm12, %v3320_v37, %v3304_v50  ;;  %v3319_v4 = vsel %vm3278_vm6, %v3317_v25, %v3297_v19 }
0x369a   :  { %v9389_v38 = vsel %vm10293_vm13, %v3322_v42, %v3308_v54  ;;  %v3321_v33 = vsel %vm3281_vm8, %v3319_v4, %v3301_v39  ;;  %v6573_v42 = vmov 91  }
0x369b   :  { %v3323_v49 = vsel %vm3284_vm12, %v3321_v33, %v3305_v28 }
0x369c   :  { %v9397_v14 = vsel %vm10293_vm13, %v3323_v49, %v3309_v63  ;;  %vm10542_vm13 = vcmp.lt.s32.totalorder %v10386_v20, 15 }
0x369f   :  { %4511 = vperm.xlu0 %6286, %v9284_v47  }
0x36a1   :  { %4518 = vperm.xlu1 %6287, %v9284_v47  }
0x36a7   :  { %6288 = vset.pattern.permute.xlu0 %v6569_v40 }
0x36a8   :  { %4542 = vperm.xlu0 %6288, %v9284_v47  }
0x36b0   :  { %6290 = vset.pattern.permute.xlu0 %v6571_v17 }
0x36f3   :  { %v9407_v45 = vpop.permute.xlu2 %4495 }
0x3709   :  { %v9376_v18 = vpop.permute.xlu0 %4491 }
0x370b   :  { %v9379_v36 = vpop.permute.xlu1 %4493 }
0x3711   :  { %v9385_v41 = vpop.permute.xlu0 %4511 }
0x3713   :  { %v4519_v53 = vpop.permute.xlu1 %4518 }
0x3714   :  { %v4521_v40 = vmul.f32 0.0, %v4519_v53  ;;  %v4522_v2 = vmul.f32 %v4519_v53, %v9389_v38  ;;  %v4523_v13 = vmul.f32 %v4519_v53, %v9397_v14 }
0x3716   :  { %4527 = vrot.lane.b32.xlu2 %v4521_v40, %s6511_s30  ;;  %4529 = vrot.lane.b32.xlu1 %v4522_v2, %s6511_s30 }
0x371a   :  { %v4543_v8 = vpop.permute.xlu0 %4542 }
0x371b   :  { %v4545_v43 = vmul.f32 0.0, %v4543_v8  ;;  %v4546_v56 = vmul.f32 %v4543_v8, %v9389_v38  ;;  %v4547_v0 = vmul.f32 %v4543_v8, %v9397_v14 }
0x371e   :  { %4531 = vrot.lane.b32.xlu2 %v4523_v13, %s6511_s30  ;;  %4551 = vrot.lane.b32.xlu1 %v4545_v43, %s6510_s18 }
0x3726   :  { %4553 = vrot.lane.b32.xlu2 %v4546_v56, %s6510_s18  ;;  %4555 = vrot.lane.b32.xlu1 %v4547_v0, %s6510_s18 }
0x372e   :  { %4566 = vperm.xlu2 %6289, %v9284_v47  }
0x3736   :  { %6291 = vset.pattern.permute.xlu2 %v6572_v26 }
0x3770   :  { %v4528_v15 = vpop.permute.xlu2 %4527 }
0x3778   :  { %v9409_v11 = vpop.permute.xlu2 %4531 }
0x3780   :  { %v4554_v10 = vpop.permute.xlu2 %4553 }
0x3788   :  { %v4567_v3 = vpop.permute.xlu2 %4566  ;;  %v4530_v13 = vpop.permute.xlu1 %4529 }
0x3789   :  { %v4569_v52 = vmul.f32 0.0, %v4567_v3  ;;  %v4570_v19 = vmul.f32 %v4567_v3, %v9389_v38  ;;  %v4571_v24 = vmul.f32 %v4567_v3, %v9397_v14  ;;  %v4533_v26 = vsel %vm224_vm1, %v4528_v15, %v4530_v13 }
0x378b   :  { %4575 = vrot.lane.b32.xlu0 %v4569_v52, %s6532_s2  ;;  %4579 = vrot.lane.b32.xlu2 %v4571_v24, %s6532_s2  ;;  %v6574_v52 = vmov 50  }
0x378c   :  { %4577 = vrot.lane.b32.xlu1 %v4570_v19, %s6532_s2  ;;  %v6575_v19 = vmov 57  }
0x3790   :  { %v4552_v56 = vpop.permute.xlu1 %4551 }
0x3793   :  { %4593 = vperm.xlu0 %6290, %v9284_v47  }
0x3798   :  { %v4556_v0 = vpop.permute.xlu1 %4555 }
0x379b   :  { %6292 = vset.pattern.permute.xlu0 %v6573_v42 }
0x37e5   :  { %v4580_v54 = vpop.permute.xlu2 %4579 }
0x37fd   :  { %v4576_v7 = vpop.permute.xlu0 %4575 }
0x37fe   :  { %v4578_v17 = vpop.permute.xlu1 %4577 }
0x37ff   :  { %v4582_v15 = vsel %vm10521_vm15, %v4578_v17, %v4580_v54  ;;  %vm10526_vm15 = vcmask 785408  }
0x3805   :  { %v4594_v39 = vpop.permute.xlu0 %4593 }
0x3806   :  { %v4596_v37 = vmul.f32 %v4594_v39, %v9389_v38  ;;  %v4597_v50 = vmul.f32 %v4594_v39, %v9397_v14  ;;  %v4598_v25 = vmul.f32 0.0, %v4594_v39  ;;  %v4514_v39 = vmul.f32 0.0, %v9385_v41 }
0x3808   :  { %4604 = vrot.lane.b32.xlu2 %v4597_v50, %s6516_s13  ;;  %4602 = vrot.lane.b32.xlu1 %v4596_v37, %s6516_s13  ;;  %v4534_v37 = vsel %vm224_vm1, %v4530_v13, %v9409_v11  ;;  %v4515_v50 = vmul.f32 %v9385_v41, %v9389_v38  ;;  %v4538_v42 = vadd.f32 %v4533_v26, %v4514_v39 }
0x3810   :  { %4617 = vperm.xlu2 %6291, %v9284_v47   ;;  %4606 = vrot.lane.b32.xlu1 %v4598_v25, %s6516_s13  ;;  %v4557_v25 = vsel %vm10518_vm14, %v4552_v56, %v4554_v10  ;;  %v4516_v56 = vmul.f32 %v9385_v41, %v9397_v14  ;;  %vm10523_vm14 = vcmask 261120  }
0x3818   :  { %6293 = vset.pattern.permute.xlu2 %v6574_v52 }
0x3862   :  { %v4605_v4 = vpop.permute.xlu2 %4604 }
0x386a   :  { %v4618_v53 = vpop.permute.xlu2 %4617 }
0x386b   :  { %v4620_v40 = vmul.f32 %v4618_v53, %v9389_v38  ;;  %v4621_v2 = vmul.f32 %v4618_v53, %v9397_v14  ;;  %v4622_v33 = vmul.f32 0.0, %v4618_v53  ;;  %v4558_v53 = vsel %vm10519_vm9, %v4554_v10, %v4556_v0  ;;  %vm10524_vm9 = vmmov %vm10522_vm2 }
0x386d   :  { %4630 = vrot.lane.b32.xlu2 %v4622_v33, %s6535_s17  ;;  %4626 = vrot.lane.b32.xlu0 %v4620_v40, %s6535_s17  ;;  %v4539_v40 = vadd.f32 %v4534_v37, %v4515_v50 }
0x386e   :  { %4628 = vrot.lane.b32.xlu1 %v4621_v2, %s6535_s17  ;;  %v4581_v2 = vsel %vm10520_vm4, %v4576_v7, %v4578_v17  ;;  %v4540_v7 = vadd.f32 %v9409_v11, %v4516_v56  ;;  %vm10525_vm4 = vmmov %vm10523_vm14 }
0x3875   :  { %4641 = vperm.xlu0 %6292, %v9284_v47  }
0x387a   :  { %v4603_v3 = vpop.permute.xlu1 %4602 }
0x387b   :  { %v4608_v13 = vsel %vm500_vm10, %v4603_v3, %v4605_v4 }
0x387d   :  { %6294 = vset.pattern.permute.xlu0 %v6575_v19 }
0x3882   :  { %v4607_v24 = vpop.permute.xlu1 %4606 }
0x38c7   :  { %v4631_v33 = vpop.permute.xlu2 %4630 }
0x38df   :  { %v4627_v28 = vpop.permute.xlu0 %4626 }
0x38e7   :  { %v4642_v49 = vpop.permute.xlu0 %4641 }
0x38e8   :  { %v4644_v63 = vmul.f32 %v4642_v49, %v9389_v38  ;;  %v4645_v8 = vmul.f32 %v4642_v49, %v9397_v14  ;;  %v4646_v43 = vmul.f32 0.0, %v4642_v49  ;;  %v4629_v49 = vpop.permute.xlu1 %4628 }
0x38e9   :  { %v4632_v27 = vsel %vm10522_vm2, %v4627_v28, %v4629_v49  ;;  %v4633_v41 = vsel %vm10524_vm9, %v4629_v49, %v4631_v33  ;;  %vm10527_vm2 = vcmask 654336  }
0x38ea   :  { %4652 = vrot.lane.b32.xlu2 %v4645_v8, %s6514_s22  ;;  %4650 = vrot.lane.b32.xlu1 %v4644_v63, %s6514_s22  ;;  %v4562_v63 = vadd.f32 %v4557_v25, %v4538_v42  ;;  %v4563_v8 = vadd.f32 %v4558_v53, %v4539_v40  ;;  %v4564_v42 = vadd.f32 %v4556_v0, %v4540_v7  ;;  %vm10529_vm9 = vmmov %vm10527_vm2 }
0x38eb   :  { %v4609_v40 = vsel %vm500_vm10, %v4605_v4, %v4607_v24  ;;  %v6576_v4 = vmov 64  }
0x38ec   :  { %v4587_v52 = vadd.f32 %v4582_v15, %v4563_v8  ;;  %v6577_v15 = vmov 71  }
0x38ee   :  { %v4614_v10 = vadd.f32 %v4608_v13, %v4587_v52 }
0x38f0   :  { %v4638_v39 = vadd.f32 %v4632_v27, %v4614_v10 }
0x38f2   :  { %4654 = vrot.lane.b32.xlu1 %v4646_v43, %s6514_s22  ;;  %v4586_v43 = vadd.f32 %v4581_v2, %v4562_v63 }
0x38f4   :  { %v4613_v19 = vadd.f32 %v4603_v3, %v4586_v43  ;;  %v4588_v3 = vadd.f32 %v4580_v54, %v4564_v42 }
0x38f6   :  { %v4637_v26 = vadd.f32 %v4627_v28, %v4613_v19  ;;  %v4615_v28 = vadd.f32 %v4609_v40, %v4588_v3 }
0x38f8   :  { %v4639_v2 = vadd.f32 %v4633_v41, %v4615_v28 }
0x3944   :  { %v4653_v37 = vpop.permute.xlu2 %4652 }
0x395c   :  { %v4651_v50 = vpop.permute.xlu1 %4650 }
0x395d   :  { %v4656_v17 = vsel %vm10523_vm14, %v4651_v50, %v4653_v37  ;;  %v4661_v25 = vadd.f32 %v4651_v50, %v4637_v26  ;;  %v6578_v26 = vmov 78   ;;  %vm10528_vm14 = vmmov %vm10526_vm15 }
0x395e   :  { %v4662_v53 = vadd.f32 %v4656_v17, %v4638_v39 }
0x395f   :  { %4667 = vrot.lane.b32.xlu2 %v4661_v25, %s6536_s19  ;;  %v6579_v25 = vmov 85  }
0x3960   :  { %4669 = vrot.lane.b32.xlu0 %v4662_v53, %s6536_s19 }
0x3964   :  { %v4655_v11 = vpop.permute.xlu1 %4654 }
0x3965   :  { %v4657_v27 = vsel %vm10525_vm4, %v4653_v37, %v4655_v11  ;;  %vm10530_vm4 = vcmask 392192  }
0x3966   :  { %v4663_v63 = vadd.f32 %v4657_v27, %v4639_v2 }
0x3967   :  { %4682 = vperm.xlu2 %6293, %v9284_v47  }
0x3968   :  { %4689 = vperm.xlu0 %6294, %v9284_v47   ;;  %4671 = vrot.lane.b32.xlu1 %v4663_v63, %s6536_s19  ;;  %v6580_v63 = vmov 92  }
0x396f   :  { %6295 = vset.pattern.permute.xlu2 %v6576_v4 }
0x3970   :  { %6296 = vset.pattern.permute.xlu0 %v6577_v15 }
0x39b9   :  { %v9466_v8 = vpop.permute.xlu2 %4667 }
0x39c1   :  { %v9468_v43 = vpop.permute.xlu2 %4682 }
0x39d2   :  { %v9458_v0 = vpop.permute.xlu0 %4669 }
0x39da   :  { %v4690_v54 = vpop.permute.xlu0 %4689  ;;  %v9490_v2 = vpop.permute.xlu1 %4671 }
0x39db   :  { %v4692_v24 = vmul.f32 0.0, %v4690_v54  ;;  %v4693_v33 = vmul.f32 %v4690_v54, %v9389_v38  ;;  %v4694_v49 = vmul.f32 %v4690_v54, %v9397_v14 }
0x39dd   :  { %4700 = vrot.lane.b32.xlu2 %v4693_v33, %s6511_s30  ;;  %4698 = vrot.lane.b32.xlu1 %v4692_v24, %s6511_s30  ;;  %v4685_v24 = vmul.f32 0.0, %v9468_v43 }
0x39e5   :  { %4713 = vperm.xlu2 %6295, %v9284_v47   ;;  %4702 = vrot.lane.b32.xlu1 %v4694_v49, %s6511_s30 }
0x39ed   :  { %6297 = vset.pattern.permute.xlu2 %v6578_v26 }
0x3a37   :  { %v9470_v13 = vpop.permute.xlu2 %4700 }
0x3a3f   :  { %v4714_v52 = vpop.permute.xlu2 %4713 }
0x3a40   :  { %v4716_v19 = vmul.f32 0.0, %v4714_v52  ;;  %v4717_v56 = vmul.f32 %v4714_v52, %v9389_v38  ;;  %v4718_v10 = vmul.f32 %v4714_v52, %v9397_v14 }
0x3a42   :  { %4722 = vrot.lane.b32.xlu0 %v4716_v19, %s6510_s18  ;;  %4726 = vrot.lane.b32.xlu2 %v4718_v10, %s6510_s18 }
0x3a43   :  { %4724 = vrot.lane.b32.xlu1 %v4717_v56, %s6510_s18 }
0x3a4a   :  { %4737 = vperm.xlu0 %6296, %v9284_v47  }
0x3a4f   :  { %v4699_v11 = vpop.permute.xlu1 %4698 }
0x3a50   :  { %v4704_v54 = vsel %vm224_vm1, %v4699_v11, %v9470_v13 }
0x3a51   :  { %v4709_v15 = vadd.f32 %v4704_v54, %v4685_v24  ;;  %v6582_v54 = vmov 58  }
0x3a52   :  { %6298 = vset.pattern.permute.xlu0 %v6579_v25  ;;  %6301 = vset.pattern.permute.xlu1 %v6582_v54 }
0x3a57   :  { %v4703_v27 = vpop.permute.xlu1 %4702 }
0x3a9c   :  { %v4727_v42 = vpop.permute.xlu2 %4726 }
0x3ab4   :  { %v4723_v7 = vpop.permute.xlu0 %4722 }
0x3ab5   :  { %v4725_v4 = vpop.permute.xlu1 %4724 }
0x3ab6   :  { %v4728_v49 = vsel %vm10526_vm15, %v4723_v7, %v4725_v4  ;;  %vm10531_vm15 = vmmov %vm10530_vm4 }
0x3ab7   :  { %v4733_v19 = vadd.f32 %v4728_v49, %v4709_v15  ;;  %v4705_v49 = vsel %vm224_vm1, %v9470_v13, %v4703_v27  ;;  %v4686_v15 = vmul.f32 %v9468_v43, %v9389_v38 }
0x3abc   :  { %v4738_v39 = vpop.permute.xlu0 %4737 }
0x3abd   :  { %v4740_v37 = vmul.f32 0.0, %v4738_v39  ;;  %v4741_v50 = vmul.f32 %v4738_v39, %v9389_v38  ;;  %v4742_v17 = vmul.f32 %v4738_v39, %v9397_v14 }
0x3abf   :  { %4748 = vrot.lane.b32.xlu2 %v4741_v50, %s6532_s2  ;;  %4746 = vrot.lane.b32.xlu1 %v4740_v37, %s6532_s2 }
0x3ac7   :  { %4761 = vperm.xlu2 %6297, %v9284_v47   ;;  %4750 = vrot.lane.b32.xlu1 %v4742_v17, %s6532_s2 }
0x3acf   :  { %6299 = vset.pattern.permute.xlu2 %v6580_v63  ;;  %v6581_v63 = vmov 51  }
0x3b19   :  { %v4749_v53 = vpop.permute.xlu2 %4748 }
0x3b21   :  { %v4762_v40 = vpop.permute.xlu2 %4761 }
0x3b22   :  { %v4764_v3 = vmul.f32 %v4762_v40, %v9389_v38  ;;  %v4765_v41 = vmul.f32 %v4762_v40, %v9397_v14  ;;  %v4766_v28 = vmul.f32 0.0, %v4762_v40 }
0x3b24   :  { %4774 = vrot.lane.b32.xlu2 %v4766_v28, %s6516_s13  ;;  %4770 = vrot.lane.b32.xlu0 %v4764_v3, %s6516_s13 }
0x3b25   :  { %4772 = vrot.lane.b32.xlu1 %v4765_v41, %s6516_s13 }
0x3b2c   :  { %4785 = vperm.xlu0 %6298, %v9284_v47  }
0x3b31   :  { %v4747_v33 = vpop.permute.xlu1 %4746 }
0x3b32   :  { %v4752_v52 = vsel %vm10527_vm2, %v4747_v33, %v4749_v53  ;;  %vm10532_vm2 = vcmask 261120  }
0x3b33   :  { %v4757_v56 = vadd.f32 %v4752_v52, %v4733_v19  ;;  %v4687_v52 = vmul.f32 %v9468_v43, %v9397_v14  ;;  %v4729_v19 = vsel %vm10528_vm14, %v4725_v4, %v4727_v42  ;;  %vm10533_vm14 = vmmov %vm10532_vm2 }
0x3b34   :  { %6300 = vset.pattern.permute.xlu0 %v6581_v63 }
0x3b39   :  { %v4751_v11 = vpop.permute.xlu1 %4750 }
0x3b7e   :  { %v4775_v7 = vpop.permute.xlu2 %4774 }
0x3b96   :  { %v4771_v10 = vpop.permute.xlu0 %4770 }
0x3b97   :  { %v4781_v26 = vadd.f32 %v4771_v10, %v4757_v56  ;;  %v4773_v24 = vpop.permute.xlu1 %4772  ;;  %v4710_v56 = vadd.f32 %v4705_v49, %v4686_v15 }
0x3b9e   :  { %v4786_v39 = vpop.permute.xlu0 %4785 }
0x3b9f   :  { %v4788_v37 = vmul.f32 %v4786_v39, %v9389_v38  ;;  %v4789_v50 = vmul.f32 %v4786_v39, %v9397_v14  ;;  %v4790_v17 = vmul.f32 0.0, %v4786_v39  ;;  %v4711_v39 = vadd.f32 %v4703_v27, %v4687_v52 }
0x3ba1   :  { %4796 = vrot.lane.b32.xlu2 %v4789_v50, %s6535_s17  ;;  %4794 = vrot.lane.b32.xlu1 %v4788_v37, %s6535_s17  ;;  %v4753_v50 = vsel %vm10529_vm9, %v4749_v53, %v4751_v11  ;;  %vm10534_vm9 = vcmask 408576  }
0x3ba9   :  { %4809 = vperm.xlu2 %6299, %v9284_v47   ;;  %4798 = vrot.lane.b32.xlu1 %v4790_v17, %s6535_s17  ;;  %v4735_v17 = vadd.f32 %v4727_v42, %v4711_v39 }
0x3bfb   :  { %v4797_v25 = vpop.permute.xlu2 %4796 }
0x3c03   :  { %v4810_v40 = vpop.permute.xlu2 %4809 }
0x3c04   :  { %v4812_v3 = vmul.f32 %v4810_v40, %v9389_v38  ;;  %v4813_v41 = vmul.f32 %v4810_v40, %v9397_v14  ;;  %v4814_v28 = vmul.f32 0.0, %v4810_v40  ;;  %v4734_v40 = vadd.f32 %v4729_v19, %v4710_v56 }
0x3c06   :  { %4822 = vrot.lane.b32.xlu2 %v4814_v28, %s6514_s22  ;;  %4818 = vrot.lane.b32.xlu0 %v4812_v3, %s6514_s22  ;;  %v4776_v3 = vsel %vm500_vm10, %v4771_v10, %v4773_v24  ;;  %v4758_v13 = vadd.f32 %v4753_v50, %v4734_v40  ;;  %v4759_v28 = vadd.f32 %v4751_v11, %v4735_v17 }
0x3c07   :  { %4820 = vrot.lane.b32.xlu1 %v4813_v41, %s6514_s22  ;;  %v4777_v41 = vsel %vm500_vm10, %v4773_v24, %v4775_v7 }
0x3c08   :  { %v4782_v43 = vadd.f32 %v4776_v3, %v4758_v13  ;;  %v4783_v12 = vadd.f32 %v4777_v41, %v4759_v28 }
0x3c13   :  { %v4795_v33 = vpop.permute.xlu1 %4794 }
0x3c14   :  { %v4800_v63 = vsel %vm10530_vm4, %v4795_v33, %v4797_v25  ;;  %v4805_v4 = vadd.f32 %v4795_v33, %v4781_v26  ;;  %v3664_v26 = vsel %vm10534_vm9, %v8995_v61, %v8997_v62  ;;  %vm10535_vm4 = vcmask 416768  }
0x3c15   :  { %v4806_v27 = vadd.f32 %v4800_v63, %v4782_v43  ;;  %v3668_v33 = vsel %vm662_vm5, %v3664_v26, 0.0  ;;  %vm10539_vm9 = vcmask 384000  }
0x3c16   :  { %v4161_v61 = vsel %vm10539_vm9, %v9212_v6, %v9214_v22  ;;  %vm10545_vm9 = vcmp.lt.s32.totalorder %v10386_v20, 13 }
0x3c17   :  { %v4165_v17 = vsel %vm10542_vm13, %v4161_v61, 0.0  ;;  %vm10546_vm13 = vcmp.ge.s32.totalorder %v10386_v20, 3 }
0x3c1b   :  { %v4799_v37 = vpop.permute.xlu1 %4798 }
0x3c1c   :  { %v4801_v54 = vsel %vm10531_vm15, %v4797_v25, %v4799_v37  ;;  %v3496_v25 = vsel %vm10535_vm4, %v8930_v23, %v8921_v59  ;;  %vm10536_vm15 = vcmask 400384   ;;  %vm10540_vm4 = vcmask 392192  }
0x3c1d   :  { %v4807_v15 = vadd.f32 %v4801_v54, %v4783_v12  ;;  %v6583_v12 = vmov 65   ;;  %v3832_v11 = vsel %vm10536_vm15, %v9078_v48, %v9069_v51  ;;  %v3995_v23 = vsel %vm10540_vm4, %v9148_v29, %v9139_v16 }
0x3c1e   :  { %vm10541_vm15 = vcmask 375808   ;;  %vm10547_vm4 = vcmask 408576  }
0x3c1f   :  { %v4329_v48 = vsel %vm10541_vm15, %v9300_v46, %v9291_v21  ;;  %v6584_v46 = vmov 72  }
0x3c20   :  { %v4333_v6 = vsel %vm876_vm7, %v4329_v48, 0.0  ;;  %6303 = vset.pattern.permute.xlu2 %v6584_v46 }
0x3c60   :  { %v4823_v52 = vpop.permute.xlu2 %4822 }
0x3c78   :  { %v4819_v49 = vpop.permute.xlu0 %4818 }
0x3c79   :  { %v4829_v53 = vadd.f32 %v4819_v49, %v4805_v4  ;;  %v4821_v42 = vpop.permute.xlu1 %4820 }
0x3c7a   :  { %v4824_v19 = vsel %vm10532_vm2, %v4819_v49, %v4821_v42  ;;  %v4825_v10 = vsel %vm10533_vm14, %v4821_v42, %v4823_v52  ;;  %vm10537_vm2 = vcmp.ge.s32.totalorder %v10386_v20, 3  ;;  %vm10538_vm14 = vcmp.ge.s32.totalorder %v10386_v20, 1 }
0x3c7b   :  { %v4830_v7 = vadd.f32 %v4824_v19, %v4806_v27  ;;  %v4831_v24 = vadd.f32 %v4825_v10, %v4807_v15  ;;  %4835 = vrot.lane.b32.xlu0 %v4829_v53, %s6544_s11  ;;  %v3500_v56 = vsel %vm10537_vm2, %v3496_v25, 0.0  ;;  %v3836_v39 = vsel %vm10538_vm14, %v3832_v11, 0.0 }
0x3c7c   :  { %v3670_v37 = vadd.f32 %v3668_v33, %v3500_v56  ;;  %vm10543_vm2 = vcmask 367616   ;;  %vm10544_vm14 = vcmask 416768   ;;  %v6585_v11 = vmov 79  }
0x3c7d   :  { %4839 = vrot.lane.b32.xlu2 %v4831_v24, %s6544_s11  ;;  %4837 = vrot.lane.b32.xlu1 %v4830_v7, %s6544_s11  ;;  %v4497_v3 = vsel %vm10543_vm2, %v9376_v18, %v9379_v36  ;;  %v4673_v29 = vsel %vm10544_vm14, %v9466_v8, %v9458_v0  ;;  %vm10550_vm2 = vcmask 654336  }
0x3c7e   :  { %v3838_v50 = vadd.f32 %v3836_v39, %v3670_v37  ;;  %v4501_v13 = vsel %vm10545_vm9, %v4497_v3, 0.0  ;;  %v4677_v63 = vsel %vm10546_vm13, %v4673_v29, 0.0  ;;  %vm10551_vm14 = vmmov %vm10550_vm2  ;;  %vm10552_vm9 = vcmask 392192  }
0x3c7f   :  { %vm10553_vm13 = vcmask 261120  }
0x3c80   :  { %v3999_v40 = vadd.f32 %v3995_v23, %v3838_v50 }
0x3c82   :  { %v4167_v41 = vadd.f32 %v4165_v17, %v3999_v40 }
0x3c83   :  { %4850 = vperm.xlu0 %6300, %v9284_v47  }
0x3c84   :  { %v4335_v28 = vadd.f32 %v4333_v6, %v4167_v41 }
0x3c85   :  { %4857 = vperm.xlu1 %6301, %v9284_v47  }
0x3c86   :  { %v4503_v43 = vadd.f32 %v4501_v13, %v4335_v28 }
0x3c88   :  { %v4679_v4 = vadd.f32 %v4677_v63, %v4503_v43  ;;  %v6586_v43 = vmov 86  }
0x3c8b   :  { %6302 = vset.pattern.permute.xlu0 %v6583_v12 }
0x3c8c   :  { %4881 = vperm.xlu0 %6302, %v9284_v47  }
0x3c94   :  { %6304 = vset.pattern.permute.xlu0 %v6585_v11 }
0x3cd7   :  { %v9587_v26 = vpop.permute.xlu2 %4839 }
0x3ced   :  { %v4836_v54 = vpop.permute.xlu0 %4835 }
0x3cef   :  { %v9566_v18 = vpop.permute.xlu1 %4837 }
0x3cf0   :  { %v4841_v49 = vsel %vm10547_vm4, %v4836_v54, %v9566_v18  ;;  %vm10554_vm4 = vmmov %vm10552_vm9 }
0x3cf1   :  { %v4845_v8 = vsel %vm662_vm5, %v4841_v49, 0.0  ;;  %vm10548_vm5 = vcmask 785408  }
0x3cf2   :  { %v9572_v27 = vadd.f32 %v4845_v8, %v4679_v4  ;;  %vm10549_vm15 = vmmov %vm10548_vm5 }
0x3cf5   :  { %v9574_v15 = vpop.permute.xlu0 %4850 }
0x3cf6   :  { %v4853_v17 = vmul.f32 0.0, %v9574_v15  ;;  %v4854_v13 = vmul.f32 %v9574_v15, %v9389_v38 }
0x3cf7   :  { %v4858_v52 = vpop.permute.xlu1 %4857 }
0x3cf8   :  { %v4860_v53 = vmul.f32 0.0, %v4858_v52  ;;  %v4861_v42 = vmul.f32 %v4858_v52, %v9389_v38  ;;  %v4862_v7 = vmul.f32 %v4858_v52, %v9397_v14 }
0x3cfa   :  { %4866 = vrot.lane.b32.xlu2 %v4860_v53, %s6511_s30  ;;  %4868 = vrot.lane.b32.xlu1 %v4861_v42, %s6511_s30 }
0x3cfe   :  { %v4882_v19 = vpop.permute.xlu0 %4881 }
0x3cff   :  { %v4884_v10 = vmul.f32 0.0, %v4882_v19  ;;  %v4885_v24 = vmul.f32 %v4882_v19, %v9389_v38  ;;  %v4886_v12 = vmul.f32 %v4882_v19, %v9397_v14 }
0x3d02   :  { %4870 = vrot.lane.b32.xlu2 %v4862_v7, %s6511_s30  ;;  %4890 = vrot.lane.b32.xlu1 %v4884_v10, %s6510_s18  ;;  %v6587_v7 = vmov 93  }
0x3d0a   :  { %4892 = vrot.lane.b32.xlu2 %v4885_v24, %s6510_s18  ;;  %4894 = vrot.lane.b32.xlu1 %v4886_v12, %s6510_s18 }
0x3d12   :  { %4905 = vperm.xlu2 %6303, %v9284_v47  }
0x3d1a   :  { %6305 = vset.pattern.permute.xlu2 %v6586_v43 }
0x3d54   :  { %v4867_v25 = vpop.permute.xlu2 %4866 }
0x3d5c   :  { %v4871_v33 = vpop.permute.xlu2 %4870 }
0x3d64   :  { %v4893_v56 = vpop.permute.xlu2 %4892 }
0x3d6c   :  { %v4906_v39 = vpop.permute.xlu2 %4905  ;;  %v4869_v37 = vpop.permute.xlu1 %4868 }
0x3d6d   :  { %v4908_v61 = vmul.f32 0.0, %v4906_v39  ;;  %v4909_v23 = vmul.f32 %v4906_v39, %v9389_v38  ;;  %v4910_v50 = vmul.f32 %v4906_v39, %v9397_v14  ;;  %v4872_v48 = vsel %vm224_vm1, %v4867_v25, %v4869_v37 }
0x3d6e   :  { %v4877_v40 = vadd.f32 %v4872_v48, %v4853_v17  ;;  %v4873_v29 = vsel %vm224_vm1, %v4869_v37, %v4871_v33  ;;  %v4855_v48 = vmul.f32 %v9574_v15, %v9397_v14 }
0x3d6f   :  { %4914 = vrot.lane.b32.xlu0 %v4908_v61, %s6532_s2  ;;  %4918 = vrot.lane.b32.xlu2 %v4910_v50, %s6532_s2  ;;  %v4878_v46 = vadd.f32 %v4873_v29, %v4854_v13 }
0x3d70   :  { %4916 = vrot.lane.b32.xlu1 %v4909_v23, %s6532_s2 }
0x3d74   :  { %v4891_v3 = vpop.permute.xlu1 %4890 }
0x3d75   :  { %v4896_v6 = vsel %vm10548_vm5, %v4891_v3, %v4893_v56  ;;  %vm10555_vm5 = vmmov %vm10553_vm13 }
0x3d76   :  { %v4901_v41 = vadd.f32 %v4896_v6, %v4877_v40  ;;  %v4879_v40 = vadd.f32 %v4871_v33, %v4855_v48 }
0x3d77   :  { %4929 = vperm.xlu0 %6304, %v9284_v47  }
0x3d7c   :  { %v4895_v28 = vpop.permute.xlu1 %4894 }
0x3d7d   :  { %v4897_v63 = vsel %vm10549_vm15, %v4893_v56, %v4895_v28  ;;  %v4903_v3 = vadd.f32 %v4895_v28, %v4879_v40  ;;  %v6588_v28 = vmov 52   ;;  %vm10556_vm15 = vcmask 408576  }
0x3d7e   :  { %v4902_v54 = vadd.f32 %v4897_v63, %v4878_v46 }
0x3d7f   :  { %6306 = vset.pattern.permute.xlu0 %v6587_v7 }
0x3dc9   :  { %v4919_v24 = vpop.permute.xlu2 %4918 }
0x3dca   :  { %v4927_v6 = vadd.f32 %v4919_v24, %v4903_v3 }
0x3de1   :  { %v4915_v4 = vpop.permute.xlu0 %4914 }
0x3de2   :  { %v4917_v49 = vpop.permute.xlu1 %4916 }
0x3de3   :  { %v4920_v8 = vsel %vm10550_vm2, %v4915_v4, %v4917_v49  ;;  %v4921_v37 = vsel %vm10551_vm14, %v4917_v49, %v4919_v24  ;;  %vm10557_vm2 = vcmask 416768   ;;  %vm10558_vm14 = vcmask 400384  }
0x3de4   :  { %v4925_v52 = vadd.f32 %v4920_v8, %v4901_v41  ;;  %v4926_v61 = vadd.f32 %v4921_v37, %v4902_v54  ;;  %v9634_v37 = vld [vmem:[%s10132_s9] sm:$0xff]  ;;  %v3833_v48 = vsel %vm10558_vm14, %v9069_v51, %v9095_v30  ;;  %vm10565_vm14 = vcmp.lt.s32.totalorder %v10387_v34, 15 }
0x3de9   :  { %v4930_v53 = vpop.permute.xlu0 %4929 }
0x3dea   :  { %v4932_v42 = vmul.f32 %v4930_v53, %v9389_v38  ;;  %v4933_v19 = vmul.f32 %v4930_v53, %v9397_v14  ;;  %v4934_v10 = vmul.f32 0.0, %v4930_v53 }
0x3dec   :  { %4940 = vrot.lane.b32.xlu2 %v4933_v19, %s6516_s13  ;;  %4938 = vrot.lane.b32.xlu1 %v4932_v42, %s6516_s13 }
0x3df4   :  { %4953 = vperm.xlu2 %6305, %v9284_v47   ;;  %4942 = vrot.lane.b32.xlu1 %v4934_v10, %s6516_s13 }
0x3dfc   :  { %6307 = vset.pattern.permute.xlu2 %v6588_v28 }
0x3e46   :  { %v4941_v12 = vpop.permute.xlu2 %4940 }
0x3e4e   :  { %v4954_v25 = vpop.permute.xlu2 %4953 }
0x3e4f   :  { %v4956_v11 = vmul.f32 %v4954_v25, %v9389_v38  ;;  %v4957_v56 = vmul.f32 %v4954_v25, %v9397_v14  ;;  %v4958_v39 = vmul.f32 0.0, %v4954_v25 }
0x3e51   :  { %4966 = vrot.lane.b32.xlu2 %v4958_v39, %s6535_s17  ;;  %4962 = vrot.lane.b32.xlu0 %v4956_v11, %s6535_s17 }
0x3e52   :  { %4964 = vrot.lane.b32.xlu1 %v4957_v56, %s6535_s17 }
0x3e59   :  { %4977 = vperm.xlu0 %6306, %v9284_v47  }
0x3e5e   :  { %v4939_v23 = vpop.permute.xlu1 %4938 }
0x3e5f   :  { %v4944_v50 = vsel %vm500_vm10, %v4939_v23, %v4941_v12  ;;  %v4949_v46 = vadd.f32 %v4939_v23, %v4925_v52  ;;  %v6589_v52 = vmov 59   ;;  %v3665_v23 = vsel %vm10556_vm15, %v8997_v62, %v9013_v9 }
0x3e60   :  { %v4950_v17 = vadd.f32 %v4944_v50, %v4926_v61  ;;  %v6590_v61 = vmov 66   ;;  %v3497_v50 = vsel %vm10557_vm2, %v8921_v59, %v8967_v35  ;;  %vm10563_vm15 = vcmask 392192  }
0x3e61   :  { %6308 = vset.pattern.permute.xlu0 %v6589_v52  ;;  %v3996_v59 = vsel %vm10563_vm15, %v9139_v16, %v9185_v60  ;;  %vm10564_vm2 = vcmask 375808   ;;  %vm10570_vm15 = vcmp.lt.s32.totalorder %v10387_v34, 13 }
0x3e62   :  { %v4330_v9 = vsel %vm10564_vm2, %v9291_v21, %v9337_v57  ;;  %vm10571_vm2 = vcmp.ge.s32.totalorder %v10386_v20, 1 }
0x3e66   :  { %v4943_v41 = vpop.permute.xlu1 %4942 }
0x3e67   :  { %v4945_v29 = vsel %vm500_vm10, %v4941_v12, %v4943_v41 }
0x3e68   :  { %v4951_v13 = vadd.f32 %v4945_v29, %v4927_v6 }
0x3eab   :  { %v4967_v53 = vpop.permute.xlu2 %4966 }
0x3ec3   :  { %v4963_v63 = vpop.permute.xlu0 %4962 }
0x3ec4   :  { %v4973_v47 = vadd.f32 %v4963_v63, %v4949_v46  ;;  %v4965_v43 = vpop.permute.xlu1 %4964 }
0x3ec5   :  { %v4968_v54 = vsel %vm10552_vm9, %v4963_v63, %v4965_v43  ;;  %v4969_v12 = vsel %vm10554_vm4, %v4965_v43, %v4967_v53  ;;  %vm10559_vm9 = vcmp.ge.s32.totalorder %v10387_v34, 2  ;;  %vm10561_vm4 = vcmp.ge.s32.totalorder %v10387_v34, 1 }
0x3ec6   :  { %v4974_v4 = vadd.f32 %v4968_v54, %v4950_v17  ;;  %v4975_v25 = vadd.f32 %v4969_v12, %v4951_v13  ;;  %v3669_v17 = vsel %vm10559_vm9, %v3665_v23, 0.0  ;;  %v3837_v3 = vsel %vm10561_vm4, %v3833_v48, 0.0 }
0x3ec7   :  { %vm10566_vm9 = vcmask 367616   ;;  %vm10568_vm4 = vcmask 416768   ;;  %v6592_v12 = vmov 80  }
0x3ec8   :  { %v4498_v41 = vsel %vm10566_vm9, %v9379_v36, %v9407_v45  ;;  %v4674_v16 = vsel %vm10568_vm4, %v9458_v0, %v9490_v2  ;;  %vm10573_vm9 = vcmp.ge.s32.totalorder %v10387_v34, 3  ;;  %6311 = vset.pattern.permute.xlu1 %v6592_v12 }
0x3ec9   :  { %v4502_v21 = vsel %vm10570_vm15, %v4498_v41, 0.0  ;;  %v4678_v63 = vsel %vm10573_vm9, %v4674_v16, 0.0  ;;  %vm10577_vm15 = vcmask 785408   ;;  %vm10580_vm9 = vcmask 392192  }
0x3ecb   :  { %v4978_v49 = vpop.permute.xlu0 %4977 }
0x3ecc   :  { %v4980_v8 = vmul.f32 %v4978_v49, %v9389_v38  ;;  %v4981_v15 = vmul.f32 %v4978_v49, %v9397_v14  ;;  %v4982_v33 = vmul.f32 0.0, %v4978_v49 }
0x3ece   :  { %4988 = vrot.lane.b32.xlu2 %v4981_v15, %s6514_s22  ;;  %4986 = vrot.lane.b32.xlu1 %v4980_v8, %s6514_s22 }
0x3ed6   :  { %4990 = vrot.lane.b32.xlu1 %v4982_v33, %s6514_s22  ;;  %v6591_v33 = vmov 73  }
0x3f28   :  { %v4989_v42 = vpop.permute.xlu2 %4988 }
0x3f40   :  { %v4987_v19 = vpop.permute.xlu1 %4986 }
0x3f41   :  { %v4992_v10 = vsel %vm10553_vm13, %v4987_v19, %v4989_v42  ;;  %v4997_v7 = vadd.f32 %v4987_v19, %v4973_v47  ;;  %vm10560_vm13 = vcmp.ge.s32.totalorder %v10387_v34, 3 }
0x3f42   :  { %v4998_v24 = vadd.f32 %v4992_v10, %v4974_v4  ;;  %v3501_v40 = vsel %vm10560_vm13, %v3497_v50, 0.0  ;;  %vm10567_vm13 = vcmp.lt.s32.totalorder %v10387_v34, 14 }
0x3f43   :  { %5003 = vrot.lane.b32.xlu2 %v4997_v7, %s6548_s1  ;;  %v3671_v6 = vadd.f32 %v3669_v17, %v3501_v40 }
0x3f44   :  { %5005 = vrot.lane.b32.xlu0 %v4998_v24, %s6548_s1 }
0x3f45   :  { %v3839_v35 = vadd.f32 %v3837_v3, %v3671_v6  ;;  %v6593_v3 = vmov 87  }
0x3f47   :  { %v4000_v30 = vadd.f32 %v3996_v59, %v3839_v35 }
0x3f48   :  { %v4991_v11 = vpop.permute.xlu1 %4990 }
0x3f49   :  { %v4993_v56 = vsel %vm10555_vm5, %v4989_v42, %v4991_v11  ;;  %vm10562_vm5 = vcmask 384000  }
0x3f4a   :  { %v4999_v39 = vadd.f32 %v4993_v56, %v4975_v25  ;;  %v4162_v62 = vsel %vm10562_vm5, %v9214_v22, %v9230_v5  ;;  %v4334_v22 = vsel %vm10567_vm13, %v4330_v9, 0.0  ;;  %vm10569_vm5 = vcmask 400384  }
0x3f4b   :  { %5018 = vperm.xlu2 %6307, %v9634_v37   ;;  %v4166_v51 = vsel %vm10565_vm14, %v4162_v62, 0.0  ;;  %vm10572_vm14 = vcmask 408576   ;;  %vm10574_vm13 = vcmp.ge.s32.totalorder %v10387_v34, 2  ;;  %vm10575_vm4 = vmmov %vm10569_vm5 }
0x3f4c   :  { %5025 = vperm.xlu0 %6308, %v9634_v37   ;;  %5007 = vrot.lane.b32.xlu1 %v4999_v39, %s6548_s1  ;;  %v4168_v13 = vadd.f32 %v4166_v51, %v4000_v30  ;;  %v4842_v36 = vsel %vm10572_vm14, %v9566_v18, %v9587_v26  ;;  %vm10579_vm14 = vcmask 654336   ;;  %s10051_s1 = sld [smem:[#allocation16 + $0x4]] }
0x3f4d   :  { %v4846_v2 = vsel %vm10574_vm13, %v4842_v36, 0.0  ;;  %vm10581_vm13 = vcmask 261120  }
0x3f4e   :  { %v4336_v46 = vadd.f32 %v4334_v22, %v4168_v13 }
0x3f50   :  { %v4504_v0 = vadd.f32 %v4502_v21, %v4336_v46 }
0x3f52   :  { %v4680_v47 = vadd.f32 %v4678_v63, %v4504_v0 }
0x3f53   :  { %6309 = vset.pattern.permute.xlu2 %v6590_v61 }
0x3f54   :  { %v4848_v4 = vadd.f32 %v4846_v2, %v4680_v47  ;;  %6310 = vset.pattern.permute.xlu0 %v6591_v33 }
0x3f9d   :  { %v5004_v5 = vpop.permute.xlu2 %5003 }
0x3fa5   :  { %v9699_v28 = vpop.permute.xlu2 %5018 }
0x3fa6   :  { %v5021_v11 = vmul.f32 0.0, %v9699_v28  ;;  %v5022_v59 = vmul.f32 %v9699_v28, %v9389_v38  ;;  %v5023_v12 = vmul.f32 %v9699_v28, %v9397_v14 }
0x3fb6   :  { %v5006_v29 = vpop.permute.xlu0 %5005 }
0x3fb7   :  { %v5009_v60 = vsel %vm10569_vm5, %v5004_v5, %v5006_v29  ;;  %vm10576_vm5 = vcmp.ge.s32.totalorder %v10387_v34, 1 }
0x3fb8   :  { %v5013_v57 = vsel %vm10571_vm2, %v5009_v60, 0.0  ;;  %vm10578_vm2 = vmmov %vm10577_vm15 }
0x3fb9   :  { %v9682_v45 = vadd.f32 %v5013_v57, %v9572_v27  ;;  %v6594_v57 = vmov 94  }
0x3fbe   :  { %v5026_v43 = vpop.permute.xlu0 %5025  ;;  %v5008_v54 = vpop.permute.xlu1 %5007 }
0x3fbf   :  { %v5028_v49 = vmul.f32 0.0, %v5026_v43  ;;  %v5029_v8 = vmul.f32 %v5026_v43, %v9389_v38  ;;  %v5010_v15 = vsel %vm10575_vm4, %v5006_v29, %v5008_v54  ;;  %v5030_v26 = vmul.f32 %v5026_v43, %v9397_v14  ;;  %vm10582_vm4 = vmmov %vm10580_vm9 }
0x3fc0   :  { %v5014_v18 = vsel %vm10576_vm5, %v5010_v15, 0.0  ;;  %vm10583_vm5 = vmmov %vm10581_vm13 }
0x3fc1   :  { %v9692_v27 = vadd.f32 %v5014_v18, %v4848_v4  ;;  %5036 = vrot.lane.b32.xlu2 %v5029_v8, %s6511_s30  ;;  %5034 = vrot.lane.b32.xlu1 %v5028_v49, %s6511_s30 }
0x3fc9   :  { %5049 = vperm.xlu2 %6309, %v9634_v37   ;;  %5038 = vrot.lane.b32.xlu1 %v5030_v26, %s6511_s30 }
0x3fd1   :  { %6312 = vset.pattern.permute.xlu2 %v6593_v3 }
0x401b   :  { %v5037_v52 = vpop.permute.xlu2 %5036 }
0x4023   :  { %v5050_v53 = vpop.permute.xlu2 %5049 }
0x4024   :  { %v5052_v42 = vmul.f32 0.0, %v5050_v53  ;;  %v5053_v19 = vmul.f32 %v5050_v53, %v9389_v38  ;;  %v5054_v10 = vmul.f32 %v5050_v53, %v9397_v14 }
0x4026   :  { %5058 = vrot.lane.b32.xlu0 %v5052_v42, %s6510_s18  ;;  %5062 = vrot.lane.b32.xlu2 %v5054_v10, %s6510_s18  ;;  %v6595_v10 = vmov 53  }
0x4027   :  { %5060 = vrot.lane.b32.xlu1 %v5053_v19, %s6510_s18 }
0x402e   :  { %5073 = vperm.xlu0 %6310, %v9634_v37  }
0x4033   :  { %v5035_v7 = vpop.permute.xlu1 %5034 }
0x4034   :  { %v5040_v24 = vsel %vm224_vm1, %v5035_v7, %v5037_v52  ;;  %v6596_v7 = vmov 60  }
0x4035   :  { %v5045_v39 = vadd.f32 %v5040_v24, %v5021_v11 }
0x4036   :  { %6313 = vset.pattern.permute.xlu0 %v6594_v57 }
0x403b   :  { %v9708_v25 = vpop.permute.xlu1 %5038 }
0x403c   :  { %v5041_v62 = vsel %vm224_vm1, %v5037_v52, %v9708_v25  ;;  %v5047_v11 = vadd.f32 %v9708_v25, %v5023_v12 }
0x403d   :  { %v5046_v9 = vadd.f32 %v5041_v62, %v5022_v59 }
0x4080   :  { %v5063_v6 = vpop.permute.xlu2 %5062 }
0x4098   :  { %v5059_v56 = vpop.permute.xlu0 %5058 }
0x4099   :  { %v5061_v61 = vpop.permute.xlu1 %5060 }
0x409a   :  { %v5064_v23 = vsel %vm10577_vm15, %v5059_v56, %v5061_v61  ;;  %v5065_v35 = vsel %vm10578_vm2, %v5061_v61, %v5063_v6  ;;  %vm10584_vm15 = vmmov %vm10582_vm4 }
0x409b   :  { %v5069_v50 = vadd.f32 %v5064_v23, %v5045_v39  ;;  %v5070_v51 = vadd.f32 %v5065_v35, %v5046_v9  ;;  %vm10585_vm2 = vmmov %vm10582_vm4 }
0x40a0   :  { %v5074_v48 = vpop.permute.xlu0 %5073 }
0x40a1   :  { %v5076_v17 = vmul.f32 %v5074_v48, %v9389_v38  ;;  %v5077_v40 = vmul.f32 %v5074_v48, %v9397_v14 }
0x40a3   :  { %5082 = vrot.lane.b32.xlu2 %v5077_v40, %s6532_s2  ;;  %5080 = vrot.lane.b32.xlu1 %v5076_v17, %s6532_s2 }
0x40ab   :  { %5092 = vperm.xlu1 %6311, %v9634_v37  }
0x40fd   :  { %v5083_v30 = vpop.permute.xlu2 %5082 }
0x4115   :  { %v5081_v41 = vpop.permute.xlu1 %5080 }
0x4116   :  { %v5084_v22 = vsel %vm10579_vm14, %v5081_v41, %v5083_v30  ;;  %v5088_v5 = vadd.f32 %v5081_v41, %v5069_v50  ;;  %v5071_v50 = vadd.f32 %v5063_v6, %v5047_v11  ;;  %v6597_v6 = vmov 67  }
0x4117   :  { %v5089_v29 = vadd.f32 %v5084_v22, %v5070_v51  ;;  %vm10586_vm14 = vcmask 785408  }
0x4118   :  { %v5090_v40 = vadd.f32 %v5083_v30, %v5071_v50 }
0x411d   :  { %v5093_v13 = vpop.permute.xlu1 %5092 }
0x411e   :  { %v5095_v16 = vmul.f32 %v5093_v13, %v9389_v38  ;;  %v5096_v60 = vmul.f32 %v5093_v13, %v9397_v14  ;;  %v5097_v21 = vmul.f32 0.0, %v5093_v13 }
0x4120   :  { %5105 = vrot.lane.b32.xlu1 %v5097_v21, %s6516_s13  ;;  %5103 = vrot.lane.b32.xlu0 %v5096_v60, %s6516_s13 }
0x4121   :  { %5101 = vrot.lane.b32.xlu2 %v5095_v16, %s6516_s13 }
0x4129   :  { %5116 = vperm.xlu2 %6312, %v9634_v37  }
0x4131   :  { %6314 = vset.pattern.permute.xlu2 %v6595_v10 }
0x417b   :  { %v5102_v46 = vpop.permute.xlu2 %5101 }
0x417c   :  { %v5112_v36 = vadd.f32 %v5102_v46, %v5088_v5 }
0x4183   :  { %v5117_v63 = vpop.permute.xlu2 %5116 }
0x4184   :  { %v5119_v0 = vmul.f32 %v5117_v63, %v9389_v38  ;;  %v5120_v2 = vmul.f32 %v5117_v63, %v9397_v14  ;;  %v5121_v47 = vmul.f32 0.0, %v5117_v63 }
0x4186   :  { %5129 = vrot.lane.b32.xlu2 %v5121_v47, %s6535_s17  ;;  %5127 = vrot.lane.b32.xlu1 %v5120_v2, %s6535_s17  ;;  %v6599_v2 = vmov 81  }
0x4187   :  { %5125 = vrot.lane.b32.xlu0 %v5119_v0, %s6535_s17 }
0x418f   :  { %5140 = vperm.xlu0 %6313, %v9634_v37  }
0x4192   :  { %v5104_v43 = vpop.permute.xlu0 %5103  ;;  %v5106_v49 = vpop.permute.xlu1 %5105 }
0x4193   :  { %v5107_v54 = vsel %vm500_vm10, %v5102_v46, %v5104_v43  ;;  %v5108_v17 = vsel %vm500_vm10, %v5104_v43, %v5106_v49 }
0x4194   :  { %v5113_v4 = vadd.f32 %v5107_v54, %v5089_v29  ;;  %v5114_v62 = vadd.f32 %v5108_v17, %v5090_v40 }
0x4197   :  { %6315 = vset.pattern.permute.xlu0 %v6596_v7 }
0x41e0   :  { %v5130_v24 = vpop.permute.xlu2 %5129 }
0x41f8   :  { %v5128_v8 = vpop.permute.xlu1 %5127 }
0x41f9   :  { %v5126_v15 = vpop.permute.xlu0 %5125  ;;  %v5132_v3 = vsel %vm10582_vm4, %v5128_v8, %v5130_v24  ;;  %vm10589_vm4 = vmmov %vm10585_vm2 }
0x41fa   :  { %v5131_v18 = vsel %vm10580_vm9, %v5126_v15, %v5128_v8  ;;  %v5136_v26 = vadd.f32 %v5126_v15, %v5112_v36  ;;  %v5138_v28 = vadd.f32 %v5132_v3, %v5114_v62  ;;  %vm10587_vm9 = vmmov %vm10586_vm14  ;;  %v6601_v62 = vmov 95  }
0x41fb   :  { %v5137_v33 = vadd.f32 %v5131_v18, %v5113_v4 }
0x4201   :  { %v5141_v52 = vpop.permute.xlu0 %5140 }
0x4202   :  { %v5143_v53 = vmul.f32 %v5141_v52, %v9389_v38  ;;  %v5144_v42 = vmul.f32 %v5141_v52, %v9397_v14  ;;  %v5145_v19 = vmul.f32 0.0, %v5141_v52 }
0x4204   :  { %5151 = vrot.lane.b32.xlu2 %v5144_v42, %s6514_s22  ;;  %5149 = vrot.lane.b32.xlu1 %v5143_v53, %s6514_s22 }
0x420c   :  { %5153 = vrot.lane.b32.xlu1 %v5145_v19, %s6514_s22  ;;  %v6600_v19 = vmov 88  }
0x425e   :  { %v5152_v56 = vpop.permute.xlu2 %5151 }
0x4276   :  { %v5150_v39 = vpop.permute.xlu1 %5149 }
0x4277   :  { %v5155_v61 = vsel %vm10581_vm13, %v5150_v39, %v5152_v56  ;;  %v5160_v23 = vadd.f32 %v5150_v39, %v5136_v26  ;;  %vm10588_vm13 = vcmask 654336  }
0x4278   :  { %v5161_v48 = vadd.f32 %v5155_v61, %v5137_v33 }
0x4279   :  { %5166 = vrot.lane.b32.xlu2 %v5160_v23, %s6535_s17 }
0x427a   :  { %5168 = vrot.lane.b32.xlu0 %v5161_v48, %s6535_s17 }
0x427e   :  { %v5154_v59 = vpop.permute.xlu1 %5153 }
0x427f   :  { %v5156_v25 = vsel %vm10583_vm5, %v5152_v56, %v5154_v59  ;;  %vm10590_vm5 = vmmov %vm10588_vm13 }
0x4280   :  { %v5162_v35 = vadd.f32 %v5156_v25, %v5138_v28 }
0x4281   :  { %5179 = vperm.xlu2 %6314, %v9634_v37  }
0x4282   :  { %5186 = vperm.xlu0 %6315, %v9634_v37   ;;  %5170 = vrot.lane.b32.xlu1 %v5162_v35, %s6535_s17 }
0x4289   :  { %6316 = vset.pattern.permute.xlu2 %v6597_v6 }
0x42d3   :  { %v5167_v9 = vpop.permute.xlu2 %5166 }
0x42db   :  { %v9768_v57 = vpop.permute.xlu2 %5179 }
0x42dc   :  { %v5182_v4 = vmul.f32 0.0, %v9768_v57  ;;  %v5183_v61 = vmul.f32 %v9768_v57, %v9389_v38 }
0x42ec   :  { %v5169_v51 = vpop.permute.xlu0 %5168 }
0x42ed   :  { %v5172_v30 = vsel %vm10584_vm15, %v5167_v9, %v5169_v51  ;;  %vm10591_vm15 = vmmov %vm10585_vm2 }
0x42ee   :  { %v9756_v41 = vadd.f32 %v5172_v30, %v9682_v45  ;;  %v6598_v45 = vmov 74  }
0x42ef   :  { %6317 = vset.pattern.permute.xlu0 %v6598_v45 }
0x42f4   :  { %v5187_v22 = vpop.permute.xlu0 %5186  ;;  %v5171_v5 = vpop.permute.xlu1 %5170 }
0x42f5   :  { %v5189_v29 = vmul.f32 0.0, %v5187_v22  ;;  %v5190_v13 = vmul.f32 %v5187_v22, %v9389_v38  ;;  %v5173_v16 = vsel %vm10585_vm2, %v5169_v51, %v5171_v5  ;;  %v5191_v21 = vmul.f32 %v5187_v22, %v9397_v14 }
0x42f6   :  { %v9761_v60 = vadd.f32 %v5173_v16, %v9692_v27  ;;  %vm10592_vm2 = vcmask 261120  }
0x42f7   :  { %5197 = vrot.lane.b32.xlu2 %v5190_v13, %s6511_s30  ;;  %5195 = vrot.lane.b32.xlu1 %v5189_v29, %s6511_s30 }
0x42ff   :  { %5210 = vperm.xlu2 %6316, %v9634_v37   ;;  %5199 = vrot.lane.b32.xlu1 %v5191_v21, %s6511_s30 }
0x4307   :  { %6318 = vset.pattern.permute.xlu2 %v6599_v2 }
0x4351   :  { %v5198_v46 = vpop.permute.xlu2 %5197 }
0x4359   :  { %v5211_v36 = vpop.permute.xlu2 %5210 }
0x435a   :  { %v5213_v63 = vmul.f32 0.0, %v5211_v36  ;;  %v5214_v27 = vmul.f32 %v5211_v36, %v9389_v38  ;;  %v5215_v0 = vmul.f32 %v5211_v36, %v9397_v14 }
0x435c   :  { %5219 = vrot.lane.b32.xlu0 %v5213_v63, %s6510_s18  ;;  %5223 = vrot.lane.b32.xlu2 %v5215_v0, %s6510_s18  ;;  %v5184_v63 = vmul.f32 %v9768_v57, %v9397_v14  ;;  %v6603_v57 = vmov 61  }
0x435d   :  { %5221 = vrot.lane.b32.xlu1 %v5214_v27, %s6510_s18 }
0x435e   :  { %6322 = vset.pattern.permute.xlu1 %v6603_v57 }
0x4364   :  { %5234 = vperm.xlu0 %6317, %v9634_v37  }
0x4369   :  { %v5196_v47 = vpop.permute.xlu1 %5195 }
0x436a   :  { %v5201_v54 = vsel %vm224_vm1, %v5196_v47, %v5198_v46 }
0x436b   :  { %v5206_v8 = vadd.f32 %v5201_v54, %v5182_v4 }
0x436c   :  { %6319 = vset.pattern.permute.xlu0 %v6600_v19 }
0x4371   :  { %v9776_v43 = vpop.permute.xlu1 %5199 }
0x4372   :  { %v5202_v39 = vsel %vm224_vm1, %v5198_v46, %v9776_v43  ;;  %v5208_v2 = vadd.f32 %v9776_v43, %v5184_v63 }
0x4373   :  { %v5207_v50 = vadd.f32 %v5202_v39, %v5183_v61  ;;  %v6605_v39 = vmov 89   ;;  %v10594_v61 = vmov 0  }
0x43b6   :  { %v5224_v10 = vpop.permute.xlu2 %5223 }
0x43b7   :  { %v5232_v4 = vadd.f32 %v5224_v10, %v5208_v2 }
0x43ce   :  { %v5220_v49 = vpop.permute.xlu0 %5219 }
0x43cf   :  { %v5222_v15 = vpop.permute.xlu1 %5221 }
0x43d0   :  { %v5225_v18 = vsel %vm10586_vm14, %v5220_v49, %v5222_v15  ;;  %v5226_v23 = vsel %vm10587_vm9, %v5222_v15, %v5224_v10  ;;  %vm10593_vm14 = vmmov %vm10592_vm2  ;;  %vm10595_vm9 = vcmask 384000  }
0x43d1   :  { %v5230_v26 = vadd.f32 %v5225_v18, %v5206_v8  ;;  %v5231_v48 = vadd.f32 %v5226_v23, %v5207_v50  ;;  %v6606_v23 = vmov 68   ;;  %v6607_v50 = vmov 75  }
0x43d6   :  { %v5235_v33 = vpop.permute.xlu0 %5234 }
0x43d7   :  { %v5237_v52 = vmul.f32 %v5235_v33, %v9389_v38  ;;  %v5238_v53 = vmul.f32 %v5235_v33, %v9397_v14  ;;  %v5239_v42 = vmul.f32 0.0, %v5235_v33 }
0x43d9   :  { %5245 = vrot.lane.b32.xlu2 %v5238_v53, %s6532_s2  ;;  %5243 = vrot.lane.b32.xlu1 %v5237_v52, %s6532_s2  ;;  %v6602_v52 = vmov 54  }
0x43e1   :  { %5258 = vperm.xlu2 %6318, %v9634_v37   ;;  %5247 = vrot.lane.b32.xlu1 %v5239_v42, %s6532_s2 }
0x43e9   :  { %6320 = vset.pattern.permute.xlu2 %v6601_v62 }
0x4433   :  { %v5246_v7 = vpop.permute.xlu2 %5245 }
0x443b   :  { %v5259_v24 = vpop.permute.xlu2 %5258 }
0x443c   :  { %v5261_v12 = vmul.f32 %v5259_v24, %v9389_v38  ;;  %v5262_v11 = vmul.f32 %v5259_v24, %v9397_v14  ;;  %v5263_v56 = vmul.f32 0.0, %v5259_v24 }
0x443e   :  { %5271 = vrot.lane.b32.xlu2 %v5263_v56, %s6516_s13  ;;  %5267 = vrot.lane.b32.xlu0 %v5261_v12, %s6516_s13  ;;  %v6604_v56 = vmov 62  }
0x443f   :  { %5269 = vrot.lane.b32.xlu1 %v5262_v11, %s6516_s13 }
0x4446   :  { %5282 = vperm.xlu0 %6319, %v9634_v37  }
0x444b   :  { %v5244_v17 = vpop.permute.xlu1 %5243 }
0x444c   :  { %v5249_v40 = vsel %vm10588_vm13, %v5244_v17, %v5246_v7  ;;  %v5254_v59 = vadd.f32 %v5244_v17, %v5230_v26  ;;  %vm10596_vm13 = vmmov %vm10595_vm9 }
0x444d   :  { %v5255_v3 = vadd.f32 %v5249_v40, %v5231_v48 }
0x444e   :  { %6321 = vset.pattern.permute.xlu0 %v6602_v52 }
0x4453   :  { %v5248_v28 = vpop.permute.xlu1 %5247 }
0x4454   :  { %v5250_v54 = vsel %vm10590_vm5, %v5246_v7, %v5248_v28  ;;  %vm10598_vm5 = vcmp.lt.s32.totalorder %v10387_v34, 15 }
0x4455   :  { %v5256_v8 = vadd.f32 %v5250_v54, %v5232_v4 }
0x4498   :  { %v5272_v13 = vpop.permute.xlu2 %5271 }
0x44b0   :  { %v5268_v25 = vpop.permute.xlu0 %5267 }
0x44b1   :  { %v5278_v35 = vadd.f32 %v5268_v25, %v5254_v59  ;;  %v5270_v6 = vpop.permute.xlu1 %5269 }
0x44b2   :  { %v5273_v9 = vsel %vm500_vm10, %v5268_v25, %v5270_v6  ;;  %v5274_v49 = vsel %vm500_vm10, %v5270_v6, %v5272_v13  ;;  %v6613_v13 = vmov 90  }
0x44b3   :  { %v5279_v51 = vadd.f32 %v5273_v9, %v5255_v3  ;;  %v5280_v15 = vadd.f32 %v5274_v49, %v5256_v8 }
0x44b8   :  { %v5283_v30 = vpop.permute.xlu0 %5282 }
0x44b9   :  { %v5285_v22 = vmul.f32 %v5283_v30, %v9389_v38  ;;  %v5286_v5 = vmul.f32 %v5283_v30, %v9397_v14  ;;  %v5287_v29 = vmul.f32 0.0, %v5283_v30 }
0x44bb   :  { %5293 = vrot.lane.b32.xlu2 %v5286_v5, %s6535_s17  ;;  %5291 = vrot.lane.b32.xlu1 %v5285_v22, %s6535_s17  ;;  %v6610_v22 = vmov 76   ;;  %v6611_v5 = vmov 83  }
0x44c3   :  { %5306 = vperm.xlu2 %6320, %v9634_v37   ;;  %5295 = vrot.lane.b32.xlu1 %v5287_v29, %s6535_s17  ;;  %v6612_v29 = vmov 96  }
0x44cb   :  { %6323 = vset.pattern.permute.xlu2 %v6606_v23 }
0x4515   :  { %v5294_v16 = vpop.permute.xlu2 %5293 }
0x451d   :  { %v5307_v21 = vpop.permute.xlu2 %5306 }
0x451e   :  { %v5309_v45 = vmul.f32 %v5307_v21, %v9389_v38  ;;  %v5310_v46 = vmul.f32 %v5307_v21, %v9397_v14  ;;  %v5311_v36 = vmul.f32 0.0, %v5307_v21  ;;  %v6615_v21 = vmov 55  }
0x4520   :  { %5319 = vrot.lane.b32.xlu2 %v5311_v36, %s6514_s22  ;;  %5315 = vrot.lane.b32.xlu0 %v5309_v45, %s6514_s22 }
0x4521   :  { %5317 = vrot.lane.b32.xlu1 %v5310_v46, %s6514_s22 }
0x452d   :  { %v5292_v27 = vpop.permute.xlu1 %5291 }
0x452e   :  { %v5297_v0 = vsel %vm10589_vm4, %v5292_v27, %v5294_v16  ;;  %v5302_v53 = vadd.f32 %v5292_v27, %v5278_v35  ;;  %vm10597_vm4 = vcmp.lt.s32.totalorder %v10386_v20, 15 }
0x452f   :  { %v5303_v47 = vadd.f32 %v5297_v0, %v5279_v51 }
0x4535   :  { %v5296_v18 = vpop.permute.xlu1 %5295 }
0x4536   :  { %v5298_v26 = vsel %vm10591_vm15, %v5294_v16, %v5296_v18  ;;  %v6614_v16 = vmov 97   ;;  %vm10599_vm15 = vcmask 785408  }
0x4537   :  { %v5304_v33 = vadd.f32 %v5298_v26, %v5280_v15 }
0x457a   :  { %v5320_v19 = vpop.permute.xlu2 %5319 }
0x4592   :  { %v5316_v42 = vpop.permute.xlu0 %5315 }
0x4593   :  { %v5326_v43 = vadd.f32 %v5316_v42, %v5302_v53  ;;  %v5318_v24 = vpop.permute.xlu1 %5317 }
0x4594   :  { %v5321_v7 = vsel %vm10592_vm2, %v5316_v42, %v5318_v24  ;;  %v5322_v10 = vsel %vm10593_vm14, %v5318_v24, %v5320_v19  ;;  %vm10600_vm2 = vcmask 654336   ;;  %vm10601_vm14 = vmmov %vm10599_vm15 }
0x4595   :  { %v5327_v12 = vadd.f32 %v5321_v7, %v5303_v47  ;;  %v5328_v11 = vadd.f32 %v5322_v10, %v5304_v33  ;;  %5332 = vrot.lane.b32.xlu0 %v5326_v43, %s6556_s26 }
0x4597   :  { %5336 = vrot.lane.b32.xlu2 %v5328_v11, %s6556_s26  ;;  %5334 = vrot.lane.b32.xlu1 %v5327_v12, %s6556_s26  ;;  %s10055_s26 = sld [smem:[#allocation16 + $0x5]] }
0x459d   :  { %5347 = vperm.xlu0 %6321, %v9634_v37  }
0x459f   :  { %5354 = vperm.xlu1 %6322, %v9634_v37  }
0x45a5   :  { %6324 = vset.pattern.permute.xlu0 %v6604_v56 }
0x45a6   :  { %5522 = vperm.xlu0 %6324, %v9634_v37  }
0x45a7   :  { %6325 = vset.pattern.permute.xlu1 %v6607_v50 }
0x45ae   :  { %6329 = vset.pattern.permute.xlu0 %v6605_v39 }
0x45af   :  { %5450 = vperm.xlu0 %6329, %v9634_v37  }
0x45b7   :  { %6336 = vset.pattern.permute.xlu0 %v10594_v61 }
0x45f1   :  { %v5337_v17 = vpop.permute.xlu2 %5336 }
0x4607   :  { %v5333_v48 = vpop.permute.xlu0 %5332 }
0x4609   :  { %v5335_v40 = vpop.permute.xlu1 %5334 }
0x460a   :  { %v5338_v3 = vsel %vm10595_vm9, %v5333_v48, %v5335_v40  ;;  %v5339_v62 = vsel %vm10596_vm13, %v5335_v40, %v5337_v17  ;;  %vm10602_vm9 = vmmov %vm10601_vm14 }
0x460b   :  { %v5342_v28 = vsel %vm10597_vm4, %v5338_v3, 0.0  ;;  %v5343_v59 = vsel %vm10598_vm5, %v5339_v62, 0.0  ;;  %vm10603_vm13 = vmmov %vm10600_vm2  ;;  %vm10604_vm4 = vcmask 392192  }
0x460c   :  { %v9835_v25 = vadd.f32 %v5342_v28, %v9756_v41  ;;  %v9838_v35 = vadd.f32 %v5343_v59, %v9761_v60  ;;  %v6608_v41 = vmov 69   ;;  %v6609_v60 = vmov 82   ;;  %vm10605_vm5 = vmmov %vm10604_vm4 }
0x460f   :  { %v9856_v45 = vpop.permute.xlu0 %5347 }
0x4610   :  { %v5350_v8 = vmul.f32 0.0, %v9856_v45  ;;  %v5351_v15 = vmul.f32 %v9856_v45, %v9389_v38 }
0x4611   :  { %v5355_v6 = vpop.permute.xlu1 %5354 }
0x4612   :  { %v5357_v9 = vmul.f32 0.0, %v5355_v6  ;;  %v5358_v51 = vmul.f32 %v5355_v6, %v9389_v38  ;;  %v5359_v30 = vmul.f32 %v5355_v6, %v9397_v14 }
0x4614   :  { %5363 = vrot.lane.b32.xlu2 %v5357_v9, %s6511_s30  ;;  %5367 = vrot.lane.b32.xlu0 %v5359_v30, %s6511_s30 }
0x4615   :  { %5365 = vrot.lane.b32.xlu1 %v5358_v51, %s6511_s30 }
0x4618   :  { %v5523_v36 = vpop.permute.xlu0 %5522 }
0x4619   :  { %v5525_v47 = vmul.f32 0.0, %v5523_v36  ;;  %v5526_v54 = vmul.f32 %v5523_v36, %v9389_v38  ;;  %v5527_v4 = vmul.f32 %v5523_v36, %v9397_v14 }
0x461c   :  { %5378 = vperm.xlu2 %6323, %v9634_v37  }
0x461d   :  { %5402 = vperm.xlu1 %6325, %v9634_v37  }
0x4624   :  { %6326 = vset.pattern.permute.xlu2 %v6608_v41 }
0x4625   :  { %6327 = vset.pattern.permute.xlu1 %v6609_v60  ;;  %5546 = vperm.xlu2 %6326, %v9634_v37  }
0x4626   :  { %5426 = vperm.xlu1 %6327, %v9634_v37  }
0x462d   :  { %6328 = vset.pattern.permute.xlu2 %v6610_v22 }
0x462e   :  { %6330 = vset.pattern.permute.xlu1 %v6611_v5  ;;  %5570 = vperm.xlu2 %6328, %v9634_v37  }
0x462f   :  { %5594 = vperm.xlu1 %6330, %v9634_v37  }
0x4636   :  { %6331 = vset.pattern.permute.xlu2 %v6612_v29 }
0x4637   :  { %6332 = vset.pattern.permute.xlu1 %v6613_v13  ;;  %5474 = vperm.xlu2 %6331, %v9634_v37  }
0x4638   :  { %5618 = vperm.xlu1 %6332, %v9634_v37  }
0x463f   :  { %6333 = vset.pattern.permute.xlu2 %v6614_v16 }
0x4640   :  { %6334 = vset.pattern.permute.xlu1 %v6615_v21  ;;  %5642 = vperm.xlu2 %6333, %v9634_v37  }
0x4641   :  { %5515 = vperm.xlu1 %6334, %v9634_v37   ;;  %v5451_v37 = vpop.permute.xlu0 %5450 }
0x4642   :  { %v5455_v40 = vmul.f32 0.0, %v5451_v37  ;;  %v5454_v3 = vmul.f32 %v5451_v37, %v9397_v14  ;;  %v5453_v62 = vmul.f32 %v5451_v37, %v9389_v38 }
0x4648   :  { %6335 = vset.pattern.permute.xlu2 %v10594_v61 }
0x466e   :  { %v5364_v46 = vpop.permute.xlu2 %5363 }
0x4676   :  { %v5379_v63 = vpop.permute.xlu2 %5378 }
0x4677   :  { %v5381_v27 = vmul.f32 0.0, %v5379_v63  ;;  %v5382_v0 = vmul.f32 %v5379_v63, %v9389_v38  ;;  %v5383_v2 = vmul.f32 %v5379_v63, %v9397_v14 }
0x4679   :  { %5389 = vrot.lane.b32.xlu0 %v5382_v0, %s6510_s18  ;;  %5391 = vrot.lane.b32.xlu1 %v5383_v2, %s6510_s18 }
0x467a   :  { %5387 = vrot.lane.b32.xlu2 %v5381_v27, %s6510_s18 }
0x467f   :  { %v5547_v24 = vpop.permute.xlu2 %5546 }
0x4680   :  { %v5549_v7 = vmul.f32 0.0, %v5547_v24  ;;  %v5550_v10 = vmul.f32 %v5547_v24, %v9389_v38  ;;  %v5551_v12 = vmul.f32 %v5547_v24, %v9397_v14 }
0x4681   :  { %5533 = vrot.lane.b32.xlu0 %v5526_v54, %s6511_s30  ;;  %5535 = vrot.lane.b32.xlu1 %v5527_v4, %s6511_s30 }
0x4682   :  { %5531 = vrot.lane.b32.xlu2 %v5525_v47, %s6511_s30  ;;  %s10026_s30 = sld [smem:[#allocation16 + $0x1]] }
0x4686   :  { %v9868_v49 = vpop.permute.xlu0 %5367 }
0x4687   :  { %v5366_v18 = vpop.permute.xlu1 %5365 }
0x4688   :  { %v5369_v26 = vsel %vm224_vm1, %v5364_v46, %v5366_v18  ;;  %v5370_v33 = vsel %vm224_vm1, %v5366_v18, %v9868_v49  ;;  %v5571_v23 = vpop.permute.xlu2 %5570 }
0x4689   :  { %v9876_v52 = vadd.f32 %v5369_v26, %v5350_v8  ;;  %v9878_v57 = vadd.f32 %v5370_v33, %v5351_v15  ;;  %v5575_v50 = vmul.f32 0.0, %v5571_v23  ;;  %v5574_v48 = vmul.f32 %v5571_v23, %v9397_v14 }
0x468a   :  { %v5573_v17 = vmul.f32 %v5571_v23, %v9389_v38 }
0x468f   :  { %v5403_v53 = vpop.permute.xlu1 %5402 }
0x4690   :  { %v5405_v42 = vmul.f32 %v5403_v53, %v9389_v38  ;;  %v5406_v19 = vmul.f32 %v5403_v53, %v9397_v14  ;;  %v5407_v43 = vmul.f32 0.0, %v5403_v53 }
0x4691   :  { %v5475_v51 = vpop.permute.xlu2 %5474 }
0x4692   :  { %5415 = vrot.lane.b32.xlu1 %v5407_v43, %s6532_s2  ;;  %5413 = vrot.lane.b32.xlu0 %v5406_v19, %s6532_s2  ;;  %v5479_v30 = vmul.f32 0.0, %v5475_v51  ;;  %v5478_v41 = vmul.f32 %v5475_v51, %v9397_v14  ;;  %v5477_v60 = vmul.f32 %v5475_v51, %v9389_v38 }
0x4693   :  { %5411 = vrot.lane.b32.xlu2 %v5405_v42, %s6532_s2 }
0x4698   :  { %v5427_v11 = vpop.permute.xlu1 %5426 }
0x4699   :  { %v5431_v56 = vmul.f32 0.0, %v5427_v11  ;;  %v5430_v39 = vmul.f32 %v5427_v11, %v9397_v14  ;;  %v5429_v61 = vmul.f32 %v5427_v11, %v9389_v38 }
0x469a   :  { %5559 = vrot.lane.b32.xlu1 %v5551_v12, %s6510_s18  ;;  %5557 = vrot.lane.b32.xlu0 %v5550_v10, %s6510_s18  ;;  %v5643_v16 = vpop.permute.xlu2 %5642 }
0x469b   :  { %5555 = vrot.lane.b32.xlu2 %v5549_v7, %s6510_s18  ;;  %v5647_v21 = vmul.f32 0.0, %v5643_v16  ;;  %v5646_v46 = vmul.f32 %v5643_v16, %v9397_v14  ;;  %v5645_v36 = vmul.f32 %v5643_v16, %v9389_v38 }
0x46a1   :  { %v5595_v28 = vpop.permute.xlu1 %5594 }
0x46a2   :  { %5439 = vrot.lane.b32.xlu1 %v5431_v56, %s6516_s13  ;;  %5437 = vrot.lane.b32.xlu0 %v5430_v39, %s6516_s13  ;;  %v5599_v59 = vmul.f32 0.0, %v5595_v28  ;;  %v5598_v6 = vmul.f32 %v5595_v28, %v9397_v14  ;;  %v5597_v9 = vmul.f32 %v5595_v28, %v9389_v38 }
0x46a3   :  { %5435 = vrot.lane.b32.xlu2 %v5429_v61, %s6516_s13 }
0x46aa   :  { %5583 = vrot.lane.b32.xlu1 %v5575_v50, %s6532_s2  ;;  %5581 = vrot.lane.b32.xlu0 %v5574_v48, %s6532_s2  ;;  %v5619_v22 = vpop.permute.xlu1 %5618 }
0x46ab   :  { %5579 = vrot.lane.b32.xlu2 %v5573_v17, %s6532_s2  ;;  %v5623_v5 = vmul.f32 0.0, %v5619_v22  ;;  %v5622_v29 = vmul.f32 %v5619_v22, %v9397_v14  ;;  %v5621_v13 = vmul.f32 %v5619_v22, %v9389_v38  ;;  %s10041_s2 = sld [smem:[#allocation16 + $0x3]] }
0x46b2   :  { %5463 = vrot.lane.b32.xlu1 %v5455_v40, %s6535_s17  ;;  %5461 = vrot.lane.b32.xlu0 %v5454_v3, %s6535_s17 }
0x46b3   :  { %5459 = vrot.lane.b32.xlu2 %v5453_v62, %s6535_s17  ;;  %v9925_v0 = vpop.permute.xlu1 %5515 }
0x46b4   :  { %v5518_v28 = vmul.f32 0.0, %v9925_v0 }
0x46ba   :  { %5607 = vrot.lane.b32.xlu1 %v5599_v59, %s6516_s13  ;;  %5605 = vrot.lane.b32.xlu0 %v5598_v6, %s6516_s13 }
0x46bb   :  { %5603 = vrot.lane.b32.xlu2 %v5597_v9, %s6516_s13  ;;  %s10037_s13 = sld [smem:[#allocation16 + $0x2]] }
0x46c2   :  { %5487 = vrot.lane.b32.xlu1 %v5479_v30, %s6514_s22  ;;  %5485 = vrot.lane.b32.xlu0 %v5478_v41, %s6514_s22 }
0x46c3   :  { %5483 = vrot.lane.b32.xlu2 %v5477_v60, %s6514_s22  ;;  %v5352_v60 = vmul.f32 %v9856_v45, %v9397_v14 }
0x46ca   :  { %5631 = vrot.lane.b32.xlu1 %v5623_v5, %s6535_s17  ;;  %5629 = vrot.lane.b32.xlu0 %v5622_v29, %s6535_s17  ;;  %v5376_v5 = vadd.f32 %v9868_v49, %v5352_v60 }
0x46cb   :  { %5627 = vrot.lane.b32.xlu2 %v5621_v13, %s6535_s17  ;;  %s10046_s17 = sld [smem:[#allocation17 + $0x1]] }
0x46d2   :  { %5655 = vrot.lane.b32.xlu1 %v5647_v21, %s6514_s22  ;;  %5653 = vrot.lane.b32.xlu0 %v5646_v46, %s6514_s22 }
0x46d3   :  { %5651 = vrot.lane.b32.xlu2 %v5645_v36, %s6514_s22  ;;  %s10033_s22 = sld [smem:[#allocation17]] }
0x46d4   :  { %v5388_v63 = vpop.permute.xlu2 %5387 }
0x46dc   :  { %v5532_v27 = vpop.permute.xlu2 %5531 }
0x46eb   :  { %v5390_v47 = vpop.permute.xlu0 %5389  ;;  %v5392_v37 = vpop.permute.xlu1 %5391 }
0x46ec   :  { %v5394_v18 = vsel %vm10599_vm15, %v5390_v47, %v5392_v37  ;;  %v5393_v12 = vsel %vm10601_vm14, %v5388_v63, %v5390_v47  ;;  %v5400_v36 = vadd.f32 %v5392_v37, %v5376_v5  ;;  %vm10606_vm15 = vcmask 261120   ;;  %vm10608_vm14 = vmmov %vm10602_vm9 }
0x46ed   :  { %v5412_v2 = vpop.permute.xlu2 %5411  ;;  %v5399_v26 = vadd.f32 %v5394_v18, %v9878_v57  ;;  %v5398_v11 = vadd.f32 %v5393_v12, %v9876_v52 }
0x46ef   :  { %v5422_v23 = vadd.f32 %v5412_v2, %v5398_v11 }
0x46f3   :  { %v9927_v4 = vpop.permute.xlu0 %5533  ;;  %v9929_v8 = vpop.permute.xlu1 %5535 }
0x46f4   :  { %v5537_v62 = vsel %vm224_vm1, %v5532_v27, %v9927_v4 }
0x46f5   :  { %v5556_v54 = vpop.permute.xlu2 %5555  ;;  %v5542_v52 = vadd.f32 %v5537_v62, %v5518_v28 }
0x46fd   :  { %v5436_v15 = vpop.permute.xlu2 %5435 }
0x46fe   :  { %v5446_v57 = vadd.f32 %v5436_v15, %v5422_v23 }
0x4704   :  { %v5414_v33 = vpop.permute.xlu0 %5413  ;;  %v5416_v53 = vpop.permute.xlu1 %5415 }
0x4705   :  { %v5417_v42 = vsel %vm10600_vm2, %v5412_v2, %v5414_v33  ;;  %v9934_v19 = vpop.permute.xlu2 %5579  ;;  %v5418_v21 = vsel %vm10603_vm13, %v5414_v33, %v5416_v53  ;;  %vm10607_vm2 = vmmov %vm10606_vm15 }
0x4706   :  { %v5423_v43 = vadd.f32 %v5417_v42, %v5399_v26  ;;  %v5424_v47 = vadd.f32 %v5418_v21, %v5400_v36 }
0x470c   :  { %v5558_v24 = vpop.permute.xlu0 %5557  ;;  %v9936_v7 = vpop.permute.xlu1 %5559 }
0x470d   :  { %v5460_v10 = vpop.permute.xlu2 %5459  ;;  %v5561_v59 = vsel %vm10602_vm9, %v5556_v54, %v5558_v24  ;;  %v5562_v23 = vsel %vm10608_vm14, %v5558_v24, %v9936_v7  ;;  %vm10609_vm9 = vmmov %vm10603_vm13  ;;  %vm10617_vm14 = vcmp.lt.s32.totalorder %v10387_v34, 14 }
0x470e   :  { %v5470_v50 = vadd.f32 %v5460_v10, %v5446_v57  ;;  %v5566_v6 = vadd.f32 %v5561_v59, %v5542_v52  ;;  %vm10610_vm13 = vmmov %vm10609_vm9 }
0x4710   :  { %v5590_v41 = vadd.f32 %v9934_v19, %v5566_v6 }
0x4714   :  { %v5438_v56 = vpop.permute.xlu0 %5437  ;;  %v5440_v39 = vpop.permute.xlu1 %5439 }
0x4715   :  { %v5604_v61 = vpop.permute.xlu2 %5603  ;;  %v5441_v27 = vsel %vm500_vm10, %v5436_v15, %v5438_v56  ;;  %v5442_v2 = vsel %vm500_vm10, %v5438_v56, %v5440_v39  ;;  %v5682_v56 = vld [vmem:[%s10133_s10] sm:$0xff]  ;;  %v5520_v39 = vmul.f32 %v9925_v0, %v9397_v14  ;;  %s10020_s10 = sld [smem:[#allocation16]] }
0x4716   :  { %v5614_v22 = vadd.f32 %v5604_v61, %v5590_v41  ;;  %v5447_v49 = vadd.f32 %v5441_v27, %v5423_v43  ;;  %v5448_v18 = vadd.f32 %v5442_v2, %v5424_v47  ;;  %v5538_v43 = vsel %vm224_vm1, %v9927_v4, %v9929_v8  ;;  %vm10611_vm1 = vmmov %vm10604_vm4 }
0x471c   :  { %v5582_v48 = vpop.permute.xlu0 %5581  ;;  %v5584_v17 = vpop.permute.xlu1 %5583 }
0x471d   :  { %v5484_v40 = vpop.permute.xlu2 %5483  ;;  %v5585_v62 = vsel %vm10609_vm9, %v9934_v19, %v5582_v48  ;;  %v5586_v4 = vsel %vm10610_vm13, %v5582_v48, %v5584_v17  ;;  %vm10618_vm9 = vcmask 367616  }
0x471e   :  { %v5494_v3 = vadd.f32 %v5484_v40, %v5470_v50  ;;  %v5544_v50 = vadd.f32 %v9929_v8, %v5520_v39  ;;  %vm10619_vm13 = vmmov %vm10618_vm9 }
0x4720   :  { %5500 = vrot.lane.b32.xlu2 %v5494_v3, %s10501_s12  ;;  %v5568_v59 = vadd.f32 %v9936_v7, %v5544_v50 }
0x4722   :  { %v5592_v52 = vadd.f32 %v5586_v4, %v5568_v59 }
0x4724   :  { %v5462_v9 = vpop.permute.xlu0 %5461  ;;  %v5464_v51 = vpop.permute.xlu1 %5463 }
0x4725   :  { %v5628_v30 = vpop.permute.xlu2 %5627  ;;  %v5465_v45 = vsel %vm10604_vm4, %v5460_v10, %v5462_v9  ;;  %v5466_v54 = vsel %vm10605_vm5, %v5462_v9, %v5464_v51  ;;  %v5519_v10 = vmul.f32 %v9925_v0, %v9389_v38  ;;  %vm10612_vm4 = vmmov %vm10611_vm1 }
0x4726   :  { %v5638_v29 = vadd.f32 %v5628_v30, %v5614_v22  ;;  %v5471_v26 = vadd.f32 %v5465_v45, %v5447_v49  ;;  %v5472_v42 = vadd.f32 %v5466_v54, %v5448_v18  ;;  %vm10613_vm5 = vmmov %vm10607_vm2 }
0x4727   :  { %v5543_v57 = vadd.f32 %v5538_v43, %v5519_v10 }
0x4729   :  { %v5567_v28 = vadd.f32 %v5562_v23, %v5543_v57 }
0x472b   :  { %v5591_v0 = vadd.f32 %v5585_v62, %v5567_v28 }
0x472c   :  { %v5606_v13 = vpop.permute.xlu0 %5605  ;;  %v5608_v16 = vpop.permute.xlu1 %5607 }
0x472d   :  { %v5652_v46 = vpop.permute.xlu2 %5651  ;;  %v5609_v38 = vsel %vm500_vm10, %v5604_v61, %v5606_v13  ;;  %v5610_v14 = vsel %vm500_vm10, %v5606_v13, %v5608_v16  ;;  %vm10615_vm10 = vcmask 375808  }
0x472e   :  { %v5662_v63 = vadd.f32 %v5652_v46, %v5638_v29  ;;  %v5615_v6 = vadd.f32 %v5609_v38, %v5591_v0  ;;  %v5616_v9 = vadd.f32 %v5610_v14, %v5592_v52 }
0x4730   :  { %5668 = vrot.lane.b32.xlu2 %v5662_v63, %s10517_s0 }
0x4734   :  { %v5486_v12 = vpop.permute.xlu0 %5485  ;;  %v5488_v33 = vpop.permute.xlu1 %5487 }
0x4735   :  { %v5489_v37 = vsel %vm10606_vm15, %v5484_v40, %v5486_v12  ;;  %v5490_v53 = vsel %vm10607_vm2, %v5486_v12, %v5488_v33  ;;  %vm10614_vm15 = vmmov %vm10607_vm2 }
0x4736   :  { %v5495_v15 = vadd.f32 %v5489_v37, %v5471_v26  ;;  %v5496_v11 = vadd.f32 %v5490_v53, %v5472_v42  ;;  %vm10616_vm2 = vmmov %vm10615_vm10 }
0x4738   :  { %5502 = vrot.lane.b32.xlu0 %v5495_v15, %s10501_s12  ;;  %5504 = vrot.lane.b32.xlu1 %v5496_v11, %s10501_s12 }
0x4739   :  { %5685 = vperm.xlu2 %6335, %v5682_v56  }
0x473c   :  { %v5630_v40 = vpop.permute.xlu0 %5629  ;;  %v5632_v3 = vpop.permute.xlu1 %5631 }
0x473d   :  { %v5633_v24 = vsel %vm10611_vm1, %v5628_v30, %v5630_v40  ;;  %v5634_v8 = vsel %vm10612_vm4, %v5630_v40, %v5632_v3  ;;  %vm10620_vm1 = vcmp.lt.s32.totalorder %v10386_v20, 13  ;;  %vm10621_vm4 = vcmp.lt.s32.totalorder %v10387_v34, 13 }
0x473e   :  { %v5639_v51 = vadd.f32 %v5633_v24, %v5615_v6  ;;  %v5640_v41 = vadd.f32 %v5634_v8, %v5616_v9 }
0x4744   :  { %v5654_v19 = vpop.permute.xlu0 %5653  ;;  %v5656_v60 = vpop.permute.xlu1 %5655 }
0x4745   :  { %v5657_v48 = vsel %vm10613_vm5, %v5652_v46, %v5654_v19  ;;  %v5658_v7 = vsel %vm10614_vm15, %v5654_v19, %v5656_v60 }
0x4746   :  { %v5663_v17 = vadd.f32 %v5657_v48, %v5639_v51  ;;  %v5664_v61 = vadd.f32 %v5658_v7, %v5640_v41 }
0x4748   :  { %5670 = vrot.lane.b32.xlu0 %v5663_v17, %s10517_s0  ;;  %5672 = vrot.lane.b32.xlu1 %v5664_v61, %s10517_s0 }
0x477a   :  { %v5501_v22 = vpop.permute.xlu2 %5500 }
0x478a   :  { %v5669_v29 = vpop.permute.xlu2 %5668 }
0x4793   :  { %v5686_v18 = vpop.permute.xlu2 %5685 }
0x47aa   :  { %v5503_v30 = vpop.permute.xlu0 %5502  ;;  %v5505_v5 = vpop.permute.xlu1 %5504 }
0x47ab   :  { %v5506_v13 = vsel %vm10615_vm10, %v5501_v22, %v5503_v30  ;;  %v5507_v16 = vsel %vm10616_vm2, %v5503_v30, %v5505_v5 }
0x47ac   :  { %v5510_v21 = vsel %vm876_vm7, %v5506_v13, 0.0  ;;  %v5511_v46 = vsel %vm10617_vm14, %v5507_v16, 0.0 }
0x47ad   :  { %v5512_v27 = vadd.f32 %v5510_v21, %v9835_v25  ;;  %v5513_v2 = vadd.f32 %v5511_v46, %v9838_v35  ;;  %v10622_v21 = vld [vmem:[#allocation31_spill] sm:$0xff] }
0x47ba   :  { %v5671_v36 = vpop.permute.xlu0 %5670  ;;  %v5673_v63 = vpop.permute.xlu1 %5672 }
0x47bb   :  { %v5674_v47 = vsel %vm10618_vm9, %v5669_v29, %v5671_v36  ;;  %v5675_v45 = vsel %vm10619_vm13, %v5671_v36, %v5673_v63 }
0x47bc   :  { %v5678_v54 = vsel %vm10620_vm1, %v5674_v47, 0.0  ;;  %v5679_v49 = vsel %vm10621_vm4, %v5675_v45, 0.0 }
0x47bd   :  { %v5680_v26 = vadd.f32 %v5678_v54, %v5512_v27  ;;  %v5681_v42 = vadd.f32 %v5679_v49, %v5513_v2  ;;  %v10623_v2 = vld [vmem:[#allocation39_spill] sm:$0xff] }
0x47bf   :  { %v5688_v12 = vadd.f32 %v5686_v18, %v5680_v26  ;;  %v5689_v33 = vadd.f32 %v5686_v18, %v5681_v42 }
0x47c1   :  { %v5690_v37 = vsub.f32 0.0, %v5688_v12  ;;  %v5691_v53 = vsub.f32 0.0, %v5689_v33 }
0x47c3   :  { %v5692_v25 = vmul.f32 1.442695, %v5690_v37  ;;  %v5694_v15 = vmul.f32 1.442695, %v5691_v53 }
0x47c5   :  { %6337 = vpow2.f32 %v5692_v25 }
0x47c6   :  { %6339 = vpow2.f32 %v5694_v15 }
0x47cb   :  { %v6338_v35 = vpop.eup %6337 }
0x47cc   :  { %v6340_v11 = vpop.eup %6339  ;;  %v5696_v56 = vadd.f32 1.0, %v6338_v35 }
0x47cd   :  { %v5697_v43 = vadd.f32 1.0, %v6340_v11 }
0x47ce   :  { %6341 = vrcp.f32 %v5696_v56  ;;  %v5709_v57 = vand.u32 2147483648, %v5696_v56  ;;  %v5707_v3 = vand.u32 2147483647, %v5696_v56  ;;  %vm5703_vm15 = vweird.f32 %v5696_v56 }
0x47cf   :  { %6343 = vrcp.f32 %v5697_v43  ;;  %v5724_v62 = vand.u32 2147483648, %v5697_v43  ;;  %v5722_v28 = vand.u32 2147483647, %v5697_v43  ;;  %vm5718_vm2 = vweird.f32 %v5697_v43 }
0x47d0   :  { %v5710_v38 = vor.u32 1.1754944e-38, %v5709_v57  ;;  %vm5708_vm14 = vcmp.eq.f32.partialorder %v5707_v3, 8.507059e+37 }
0x47d1   :  { %v5725_v52 = vor.u32 1.1754944e-38, %v5724_v62  ;;  %vm5723_vm13 = vcmp.eq.f32.partialorder %v5722_v28, 8.507059e+37 }
0x47d4   :  { %v6342_v20 = vpop.eup %6341 }
0x47d5   :  { %v6344_v34 = vpop.eup %6343  ;;  %v5699_v10 = vmul.f32 %v6342_v20, %v5696_v56  ;;  %vm5704_vm7 = vweird.f32 %v6342_v20 }
0x47d6   :  { %v5714_v39 = vmul.f32 %v6344_v34, %v5697_v43  ;;  %vm5719_vm5 = vweird.f32 %v6344_v34  ;;  %vm5705_vm10 = vmor %vm5703_vm15, %vm5704_vm7 }
0x47d7   :  { %v5700_v23 = vsub.f32 1.0, %v5699_v10  ;;  %vm5720_vm9 = vmor %vm5718_vm2, %vm5719_vm5 }
0x47d8   :  { %v5715_v50 = vsub.f32 1.0, %v5714_v39 }
0x47d9   :  { %v5701_v40 = vmul.f32 %v6342_v20, %v5700_v23 }
0x47da   :  { %v5716_v4 = vmul.f32 %v6344_v34, %v5715_v50 }
0x47db   :  { %v5702_v59 = vadd.f32 %v6342_v20, %v5701_v40 }
0x47dc   :  { %v5717_v14 = vadd.f32 %v6344_v34, %v5716_v4 }
0x47dd   :  { %v5706_v0 = vsel %vm5705_vm10, %v6342_v20, %v5702_v59 }
0x47de   :  { %v9998_v24 = vsel %vm5708_vm14, %v5710_v38, %v5706_v0  ;;  %v5721_v8 = vsel %vm5720_vm9, %v6344_v34, %v5717_v14 }
0x47df   :  { %v10000_v6 = vsel %vm5723_vm13, %v5725_v52, %v5721_v8  ;;  %v5732_v9 = vrot.slane %v9998_v24, 1  ;;  %v5740_v51 = vrot.slane %v9998_v24, 2  ;;  %v5728_v41 = vmul.f32 %v9998_v24, %v8804_v32 }
0x47e0   :  { %v5733_v19 = vrot.slane %v10000_v6, 1  ;;  %v5741_v60 = vrot.slane %v10000_v6, 2  ;;  %v5748_v48 = vrot.slane %v9998_v24, 3  ;;  %v5729_v7 = vmul.f32 %v10000_v6, %v8807_v58 }
0x47e1   :  { %v5736_v17 = vmul.f32 %v5732_v9, %v8810_v1  ;;  %v10013_v61 = vrot.slane %v10000_v6, 3  ;;  %v5756_v22 = vrot.slane %v9998_v24, 7  ;;  %v5744_v5 = vmul.f32 %v5740_v51, %v8791_v31 }
0x47e2   :  { %v5737_v30 = vmul.f32 %v5733_v19, %v8813_v55  ;;  %v5745_v29 = vmul.f32 %v5741_v60, %v8794_v44  ;;  %v5757_v13 = vrot.slane %v10000_v6, 7  ;;  %v5752_v46 = vmul.f32 %v5748_v48, %v10622_v21 }
0x47e3   :  { %v5738_v16 = vadd.f32 %v5736_v17, %v5728_v41  ;;  %v5760_v36 = vmul.f32 %v5756_v22, %v8804_v32  ;;  %v5762_v63 = vmul.f32 %v9998_v24, %v8810_v1  ;;  %v5753_v47 = vmul.f32 %v10013_v61, %v10623_v2 }
0x47e4   :  { %v5739_v27 = vadd.f32 %v5737_v30, %v5729_v7  ;;  %v5761_v45 = vmul.f32 %v5757_v13, %v8807_v58  ;;  %v5763_v54 = vmul.f32 %v10000_v6, %v8813_v55  ;;  %v5766_v26 = vmul.f32 %v5732_v9, %v8791_v31 }
0x47e5   :  { %v5746_v49 = vadd.f32 %v5744_v5, %v5738_v16  ;;  %v5764_v18 = vadd.f32 %v5762_v63, %v5760_v36  ;;  %v5767_v42 = vmul.f32 %v5733_v19, %v8794_v44  ;;  %v5770_v37 = vmul.f32 %v5740_v51, %v10622_v21 }
0x47e6   :  { %v5747_v12 = vadd.f32 %v5745_v29, %v5739_v27  ;;  %v5765_v33 = vadd.f32 %v5763_v54, %v5761_v45  ;;  %v5774_v53 = vmul.f32 %v5740_v51, %v8804_v32  ;;  %v5771_v15 = vmul.f32 %v5741_v60, %v10623_v2 }
0x47e7   :  { %v5768_v25 = vadd.f32 %v5766_v26, %v5764_v18  ;;  %v5775_v35 = vmul.f32 %v5741_v60, %v8807_v58  ;;  %v5776_v11 = vmul.f32 %v5748_v48, %v8810_v1  ;;  %v5754_v56 = vadd.f32 %v5752_v46, %v5746_v49 }
0x47e8   :  { %v5769_v43 = vadd.f32 %v5767_v42, %v5765_v33  ;;  %v5777_v20 = vmul.f32 %v10013_v61, %v8813_v55  ;;  %v5780_v34 = vrot.slane %v9998_v24, 4  ;;  %v5755_v10 = vadd.f32 %v5753_v47, %v5747_v12 }
0x47e9   :  { %v5778_v39 = vadd.f32 %v5776_v11, %v5774_v53  ;;  %v5781_v23 = vrot.slane %v10000_v6, 4  ;;  %v5788_v57 = vrot.slane %v9998_v24, 5  ;;  %v5772_v50 = vadd.f32 %v5770_v37, %v5768_v25 }
0x47ea   :  { %v5779_v40 = vadd.f32 %v5777_v20, %v5775_v35  ;;  %v5784_v3 = vmul.f32 %v5780_v34, %v8791_v31  ;;  %v5789_v62 = vrot.slane %v10000_v6, 5  ;;  %v5773_v4 = vadd.f32 %v5771_v15, %v5769_v43 }
0x47eb   :  { %v5785_v28 = vmul.f32 %v5781_v23, %v8794_v44  ;;  %v5796_v59 = vmul.f32 %v5732_v9, %v8804_v32  ;;  %v5797_v38 = vmul.f32 %v5733_v19, %v8807_v58  ;;  %v5792_v0 = vmul.f32 %v5788_v57, %v10622_v21 }
0x47ec   :  { %v5786_v14 = vadd.f32 %v5784_v3, %v5778_v39  ;;  %v5798_v52 = vmul.f32 %v5740_v51, %v8810_v1  ;;  %v5799_v24 = vmul.f32 %v5741_v60, %v8813_v55  ;;  %v5793_v6 = vmul.f32 %v5789_v62, %v10623_v2 }
0x47ed   :  { %v5787_v8 = vadd.f32 %v5785_v28, %v5779_v40  ;;  %v5802_v41 = vmul.f32 %v5748_v48, %v8791_v31  ;;  %v5803_v1 = vmul.f32 %v10013_v61, %v8794_v44  ;;  %v5810_v51 = vsel %vm1129_vm11, %v5754_v56, %v5772_v50 }
0x47ee   :  { %v5794_v32 = vadd.f32 %v5792_v0, %v5786_v14  ;;  %v5800_v58 = vadd.f32 %v5798_v52, %v5796_v59  ;;  %v5801_v9 = vadd.f32 %v5799_v24, %v5797_v38  ;;  %v5811_v19 = vsel %vm1129_vm11, %v5755_v10, %v5773_v4 }
0x47ef   :  { %v5795_v55 = vadd.f32 %v5793_v6, %v5787_v8  ;;  %v5806_v48 = vmul.f32 %v5780_v34, %v10622_v21  ;;  %v5807_v7 = vmul.f32 %v5781_v23, %v10623_v2  ;;  %v5817_v61 = vstv %s10020_s10 }
0x47f0   :  { %v5804_v31 = vadd.f32 %v5802_v41, %v5800_v58  ;;  %v5805_v60 = vadd.f32 %v5803_v1, %v5801_v9  ;;  %v5812_v17 = vsel %vm1132_vm0, %v5810_v51, %v5794_v32  ;;  %v5821_v22 = vstv %s10026_s30 }
0x47f1   :  { %v5813_v44 = vsel %vm1132_vm0, %v5811_v19, %v5795_v55  ;;  %v5833_v29 = vstv %s10033_s22  ;;  %v5837_v13 = vstv %s10037_s13  ;;  %v5841_v16 = vstv %s10041_s2 }
0x47f2   :  { %v5808_v30 = vadd.f32 %v5806_v48, %v5804_v31  ;;  %v5809_v5 = vadd.f32 %v5807_v7, %v5805_v60  ;;  %v5853_v46 = vstv %s10046_s17  ;;  %v5857_v36 = vstv %s10051_s1 }
0x47f3   :  { %v5861_v21 = vstv %s10055_s26  ;;  %v5873_v2 = vstv %s10059_s25  ;;  %v5877_v47 = vstv %s10064_s6  ;;  %v5881_v49 = vstv %s10069_s7 }
0x47f4   :  { %v5814_v63 = vsel %vm1135_vm3, %v5812_v17, %v5808_v30  ;;  %v5815_v27 = vsel %vm1135_vm3, %v5813_v44, %v5809_v5  ;;  %v5893_v18 = vstv %s10073_s16 }
0x47f5   :  { %v5822_v45 = vmul.f32 %v5821_v22, %v5814_v63  ;;  %v5823_v54 = vmul.f32 %v5821_v22, %v5815_v27  ;;  %v5842_v26 = vmul.f32 %v5841_v16, %v5814_v63  ;;  %v5843_v42 = vmul.f32 %v5841_v16, %v5815_v27 }
0x47f6   :  { %v5838_v37 = vmul.f32 %v5837_v13, %v5814_v63  ;;  %v5839_v53 = vmul.f32 %v5837_v13, %v5815_v27  ;;  %v5862_v35 = vmul.f32 %v5861_v21, %v5814_v63  ;;  %v5863_v11 = vmul.f32 %v5861_v21, %v5815_v27 }
0x47f7   :  { %v5826_v12 = vrot.slane %v5822_v45, 1  ;;  %v5827_v33 = vrot.slane %v5823_v54, 1  ;;  %v5846_v25 = vrot.slane %v5842_v26, 1  ;;  %v5847_v15 = vrot.slane %v5843_v42, 1 }
0x47f8   :  { %v5818_v56 = vmul.f32 %v5817_v61, %v5814_v63  ;;  %v5819_v43 = vmul.f32 %v5817_v61, %v5815_v27  ;;  %v5858_v20 = vmul.f32 %v5857_v36, %v5814_v63  ;;  %v5859_v34 = vmul.f32 %v5857_v36, %v5815_v27 }
0x47f9   :  { %v5850_v10 = vadd.f32 %v5846_v25, %v5838_v37  ;;  %v5851_v39 = vadd.f32 %v5847_v15, %v5839_v53  ;;  %v5866_v23 = vrot.slane %v5862_v35, 1  ;;  %v5867_v57 = vrot.slane %v5863_v11, 1  ;;  %v6356_v37 = vld [vmem:[%s10303_s4 + $0x8] sm:$0xff] }
0x47fa   :  { %v5830_v50 = vadd.f32 %v5826_v12, %v5818_v56  ;;  %v5831_v40 = vadd.f32 %v5827_v33, %v5819_v43  ;;  %v5882_v3 = vmul.f32 %v5881_v49, %v5814_v63  ;;  %v5883_v62 = vmul.f32 %v5881_v49, %v5815_v27  ;;  %v6355_v12 = vld [vmem:[%s10303_s4] sm:$0xff] }
0x47fb   :  { %v5854_v4 = vadd.f32 %v5853_v46, %v5850_v10  ;;  %v5855_v28 = vadd.f32 %v5853_v46, %v5851_v39  ;;  %v5870_v59 = vadd.f32 %v5866_v23, %v5858_v20  ;;  %v5871_v38 = vadd.f32 %v5867_v57, %v5859_v34 }
0x47fc   :  { %v5878_v14 = vmul.f32 %v5877_v47, %v5814_v63  ;;  %v5879_v0 = vmul.f32 %v5877_v47, %v5815_v27  ;;  %v5886_v52 = vrot.slane %v5882_v3, 1  ;;  %v5887_v24 = vrot.slane %v5883_v62, 1 }
0x47fd   :  { %v5874_v8 = vadd.f32 %v5873_v2, %v5870_v59  ;;  %v5875_v6 = vadd.f32 %v5873_v2, %v5871_v38  ;;  %v5898_v41 = vrot.slane %v5854_v4, 7  ;;  %v5899_v32 = vrot.slane %v5855_v28, 7 }
0x47fe   :  { %v5834_v58 = vadd.f32 %v5833_v29, %v5830_v50  ;;  %v5835_v9 = vadd.f32 %v5833_v29, %v5831_v40  ;;  %v5890_v1 = vadd.f32 %v5886_v52, %v5878_v14  ;;  %v5891_v55 = vadd.f32 %v5887_v24, %v5879_v0 }
0x47ff   :  { %v5904_v51 = vrot.slane %v5874_v8, 6  ;;  %v5905_v19 = vrot.slane %v5875_v6, 6  ;;  %v5920_v13 = vrot.slane %v5854_v4, 5  ;;  %v5921_v29 = vrot.slane %v5855_v28, 5 }
0x4800   :  { %v5894_v31 = vadd.f32 %v5893_v18, %v5890_v1  ;;  %v5895_v60 = vadd.f32 %v5893_v18, %v5891_v55  ;;  %v5932_v48 = vsel %vm1129_vm11, %v5834_v58, %v5898_v41  ;;  %v5933_v7 = vsel %vm1129_vm11, %v5835_v9, %v5899_v32 }
0x4801   :  { %v5934_v17 = vsel %vm1132_vm0, %v5932_v48, %v5904_v51  ;;  %v5935_v44 = vsel %vm1132_vm0, %v5933_v7, %v5905_v19  ;;  %v5916_v30 = vrot.slane %v5834_v58, 6  ;;  %v5917_v5 = vrot.slane %v5835_v9, 6 }
0x4802   :  { %v5910_v61 = vrot.slane %v5894_v31, 5  ;;  %v5911_v22 = vrot.slane %v5895_v60, 5  ;;  %v5924_v36 = vrot.slane %v5874_v8, 4  ;;  %v5925_v21 = vrot.slane %v5875_v6, 4 }
0x4803   :  { %v5928_v2 = vrot.slane %v5894_v31, 3  ;;  %v5929_v47 = vrot.slane %v5895_v60, 3  ;;  %vm10624_vm0 = vcmask 1046528  }
0x4804   :  { %v5936_v16 = vsel %vm1135_vm3, %v5934_v17, %v5910_v61  ;;  %v5937_v46 = vsel %vm1135_vm3, %v5935_v44, %v5911_v22  ;;  %vm10625_vm11 = vmmov %vm10624_vm0 }
0x4805   :  { %v5938_v63 = vsel %vm3278_vm6, %v5936_v16, %v5916_v30  ;;  %v5939_v27 = vsel %vm3278_vm6, %v5937_v46, %v5917_v5 }
0x4806   :  { %v5940_v45 = vsel %vm3281_vm8, %v5938_v63, %v5920_v13  ;;  %v5941_v54 = vsel %vm3281_vm8, %v5939_v27, %v5921_v29 }
0x4807   :  { %v5942_v49 = vsel %vm3284_vm12, %v5940_v45, %v5924_v36  ;;  %v5943_v18 = vsel %vm3284_vm12, %v5941_v54, %v5925_v21 }
0x4808   :  { %v5944_v26 = vsel %vm10624_vm0, %v5942_v49, %v5928_v2  ;;  %v5945_v42 = vsel %vm10625_vm11, %v5943_v18, %v5929_v47 }
0x4809   :  { %v5946_v33 = vmul.f32 %v6355_v12, %v5944_v26  ;;  %v5947_v53 = vmul.f32 %v6356_v37, %v5945_v42 }
0x480b   :  { %5948 = vst [vmem:[%s10144_s21] sm:$0xff] %v5946_v33 }
0x480c   :  { %5949 = vst [vmem:[%s10144_s21 + $0x8] sm:$0xff] %v5947_v53 }
0x480d   :  { %5954 = vsyncpa [#allocation4], 1 }
0x480e   :  { %5955 = vsyncpa [#allocation6], 1 }
0x480f   :  { %5956 = vsyncpa [#allocation9], 1 }
0x4810   :  { %5957 = vsyncpa [#allocation12], 1 }
0x4811   :  { %5958 = vsyncpa [#allocation15], 1 }
0x4812   :  { %5959 = vsyncpa [#allocation18], 1 }

</bundles_post_ra>
